<compile_context>
chip_gen: v5e
topology: v5e:2x2
jax: 0.10.0
libtpu: 0.0.40
codegen_flags: <defaults>
</compile_context>

<pallas_src>
import functools

import jax
import jax.numpy as jnp
from jax.experimental import pallas as pl
from jax.experimental.pallas import tpu as pltpu

# Matmul input dtype. f32 keeps the kernel bit-faithful to the reference; on
# v6e/v7x the MXU is bf16-native, so jnp.bfloat16 here trades ~1e-2 relative
# error for less MXU time (accumulation stays f32 either way).
MATMUL_DTYPE = jnp.float32


# ----------------------------------------------------------------------------
# Fused kernel: whole ChessResNet forward, activations resident in VMEM.
# ----------------------------------------------------------------------------

def _fused_resnet_kernel(*args, N, H, W, C, C_in, C_out, num_blocks):
    num_in = 5 + 4 * num_blocks          # x, (w1,b1), 4 per block, (w_last,b_last)
    in_refs = args[:num_in]
    o_ref = args[num_in]
    buf_a, buf_b = args[num_in + 1], args[num_in + 2]   # ping-pong VMEM scratch

    x_ref = in_refs[0]
    w1_ref, b1_ref = in_refs[1], in_refs[2]
    blk_refs = in_refs[3:3 + 4 * num_blocks]
    wl_ref, bl_ref = in_refs[3 + 4 * num_blocks], in_refs[4 + 4 * num_blocks]

    NHW = N * H * W
    f32 = jnp.float32

    def pad_hw(act):
        # (N, H, W, C) -> (N, H+2, W+2, C) with a zero halo (in-kernel padding).
        zw = jnp.zeros((N, H, 1, C), f32)
        zh = jnp.zeros((N, 1, W + 2, C), f32)
        mid = jnp.concatenate([zw, act, zw], axis=2)
        return jnp.concatenate([zh, mid, zh], axis=1)

    def im2col(src_ref):
        # Padded (N, H+2, W+2, C) buffer -> (N*H*W, 9*C) patch matrix.
        xp = src_ref[...]
        taps = [xp[:, dy:dy + H, dx:dx + W, :].reshape(NHW, C)
                for dy in range(3) for dx in range(3)]
        return jnp.concatenate(taps, axis=-1)

    def conv_bn(src_ref, w_ref, b_ref, *, relu, residual=None):
        # One K=9*C MXU matmul; BN scale is pre-folded into w, so the epilogue
        # is only bias (+ residual) (+ ReLU), all in f32.
        patches = im2col(src_ref).astype(MATMUL_DTYPE)
        acc = jnp.dot(patches, w_ref[...].astype(MATMUL_DTYPE),
                      preferred_element_type=f32)
        out = acc + b_ref[...]
        if residual is not None:
            out = out + residual
        if relu:
            out = jnp.maximum(out, 0.0)
        return out                                      # (NHW, c_out) f32

    # Stage the input: zero-extend channels to C, pad spatially into buf_a.
    x = x_ref[...]                                      # (N, H, W, C_in)
    if C_in < C:
        x = jnp.concatenate(
            [x, jnp.zeros((N, H, W, C - C_in), f32)], axis=-1)
    buf_a[...] = pad_hw(x)

    # out = relu(bn1(conv1(x)))
    cur = conv_bn(buf_a, w1_ref, b1_ref, relu=True)     # (NHW, C)
    buf_b[...] = pad_hw(cur.reshape(N, H, W, C))

    # Residual BasicBlocks (num_blocks is static -> fully unrolled).
    for b in range(num_blocks):
        bw1, bb1, bw2, bb2 = blk_refs[4 * b: 4 * b + 4]
        h = conv_bn(buf_b, bw1, bb1, relu=True)
        buf_a[...] = pad_hw(h.reshape(N, H, W, C))
        cur = conv_bn(buf_a, bw2, bb2, relu=True, residual=cur)
        buf_b[...] = pad_hw(cur.reshape(N, H, W, C))

    # out = bn_last(conv_last(out))   (no ReLU) — the only HBM write.
    out = conv_bn(buf_b, wl_ref, bl_ref, relu=False)    # (NHW, C_out)
    o_ref[...] = out.reshape(N, H, W, C_out)


def chess_resnet_forward(folded, x_nchw):
    """Fused ChessResNet forward: NCHW in, NCHW out (PyTorch convention)."""
    x = jnp.transpose(x_nchw, (0, 2, 3, 1)).astype(jnp.float32)   # NHWC
    N, H, W, C_in = x.shape
    C = folded["w1"].shape[1]
    C_out = folded["w_last"].shape[1]
    num_blocks = len(folded["blocks"])
    # TODO(synk): input_channels > dim_cnn would need a wider first buffer.
    assert C_in <= C, "input_channels > dim_cnn not supported"

    inputs = [x, folded["w1"], folded["b1"]]
    for blk in folded["blocks"]:
        inputs.extend(blk)                  # (w1, b1, w2, b2)
    inputs.extend([folded["w_last"], folded["b_last"]])

    kernel = functools.partial(
        _fused_resnet_kernel,
        N=N, H=H, W=W, C=C, C_in=C_in, C_out=C_out, num_blocks=num_blocks)

    vmem = pl.BlockSpec(memory_space=pltpu.MemorySpace.VMEM)
    out_nhwc = pl.pallas_call(
        kernel,
        out_shape=jax.ShapeDtypeStruct((N, H, W, C_out), jnp.float32),
        in_specs=[vmem] * len(inputs),
        out_specs=vmem,
        scratch_shapes=[pltpu.VMEM((N, H + 2, W + 2, C), jnp.float32),
                        pltpu.VMEM((N, H + 2, W + 2, C), jnp.float32)],
        # TODO(synk): for larger batch/board/dim_cnn, add a grid over N (or row
        # tiles) with dimension_semantics=("parallel",) to engage v7x's second
        # TensorCore and switch to tiled BlockSpecs (v7x has only 64 MiB VMEM).
    )(*inputs)

    return jnp.transpose(out_nhwc, (0, 3, 1, 2))        # back to NCHW


# ----------------------------------------------------------------------------
# Parameter construction + BN/weight folding (deterministic, in-script).
# ----------------------------------------------------------------------------

def _conv_weight(key, c_in, c_out):
    fan_in = 3 * 3 * c_in
    return (jax.random.normal(key, (3, 3, c_in, c_out), jnp.float32)
            * jnp.sqrt(2.0 / fan_in))


def _bn_params(key, c, eps=1e-5):
    k1, k2, k3, k4 = jax.random.split(key, 4)
    gamma = jax.random.uniform(k1, (c,), jnp.float32, 0.5, 1.5)
    beta = 0.1 * jax.random.normal(k2, (c,), jnp.float32)
    running_mean = 0.1 * jax.random.normal(k3, (c,), jnp.float32)
    running_var = jax.random.uniform(k4, (c,), jnp.float32, 0.5, 1.5)
    scale = gamma / jnp.sqrt(running_var + eps)
    bias = beta - running_mean * scale
    return scale.reshape(1, c), bias.reshape(1, c)


def make_params(key, input_channels, dim_cnn, vit_length, num_blocks_cnn):
    keys = jax.random.split(key, 4 + 4 * num_blocks_cnn)
    p = {
        "conv1_w": _conv_weight(keys[0], input_channels, dim_cnn),
        "bn1": _bn_params(keys[1], dim_cnn),
        "conv_last_w": _conv_weight(keys[2], dim_cnn, vit_length),
        "bn_last": _bn_params(keys[3], vit_length),
        "blocks": [],
    }
    for b in range(num_blocks_cnn):
        kw1, kb1, kw2, kb2 = keys[4 + 4 * b: 8 + 4 * b]
        p["blocks"].append({
            "conv1_w": _conv_weight(kw1, dim_cnn, dim_cnn),
            "bn1": _bn_params(kb1, dim_cnn),
            "conv2_w": _conv_weight(kw2, dim_cnn, dim_cnn),
            "bn2": _bn_params(kb2, dim_cnn),
        })
    return p


def fold_params(params, dim_cnn):
    """Fold eval-mode BN scale into the conv weights and lay out for im2col.

    Each conv becomes a (9*dim_cnn, C_out) matrix (first conv's input channels
    zero-padded up to dim_cnn so every conv in the fused kernel shares K) plus
    a (1, C_out) bias. Done once on constants, outside the jitted forward.
    """
    def fold(w, bn, pad_in_to=None):
        scale, bias = bn
        wf = w * scale.reshape(1, 1, 1, -1)             # fold BN scale
        ci = wf.shape[2]
        if pad_in_to is not None and pad_in_to > ci:
            wf = jnp.concatenate(
                [wf, jnp.zeros((3, 3, pad_in_to - ci, wf.shape[3]), wf.dtype)],
                axis=2)
        return wf.reshape(-1, wf.shape[3]), bias        # (9*Cin, Cout), (1, Cout)

    folded = {}
    folded["w1"], folded["b1"] = fold(params["conv1_w"], params["bn1"],
                                      pad_in_to=dim_cnn)
    folded["blocks"] = []
    for blk in params["blocks"]:
        w1, b1 = fold(blk["conv1_w"], blk["bn1"])
        w2, b2 = fold(blk["conv2_w"], blk["bn2"])
        folded["blocks"].append((w1, b1, w2, b2))
    folded["w_last"], folded["b_last"] = fold(params["conv_last_w"],
                                              params["bn_last"])
    return folded


# ----------------------------------------------------------------------------
# Pure-JAX (XLA) reference, same semantics, for tolerance checking.
# ----------------------------------------------------------------------------

def _ref_conv_bn(x, w, scale, bias):
    y = jax.lax.conv_general_dilated(
        x, w, window_strides=(1, 1), padding="SAME",
        dimension_numbers=("NHWC", "HWIO", "NHWC"))
    return y * scale.reshape(1, 1, 1, -1) + bias.reshape(1, 1, 1, -1)


def chess_resnet_reference(params, x_nchw):
    x = jnp.transpose(x_nchw, (0, 2, 3, 1)).astype(jnp.float32)
    s, b = params["bn1"]
    out = jax.nn.relu(_ref_conv_bn(x, params["conv1_w"], s, b))
    for blk in params["blocks"]:
        s1, b1 = blk["bn1"]
        s2, b2 = blk["bn2"]
        h = jax.nn.relu(_ref_conv_bn(out, blk["conv1_w"], s1, b1))
        out = jax.nn.relu(_ref_conv_bn(h, blk["conv2_w"], s2, b2) + out)
    s, b = params["bn_last"]
    out = _ref_conv_bn(out, params["conv_last_w"], s, b)
    return jnp.transpose(out, (0, 3, 1, 2))


if __name__ == "__main__":
    # Small, chess-flavoured config: 8x8 board.
    batch = 2
    input_channels = 4
    dim_cnn = 32
    vit_length = 16
    num_blocks_cnn = 2
    H = W = 8

    key = jax.random.PRNGKey(0)
    k_x, k_p = jax.random.split(key)
    x = jax.random.normal(k_x, (batch, input_channels, H, W), jnp.float32)  # NCHW
    params = make_params(k_p, input_channels, dim_cnn, vit_length, num_blocks_cnn)
    folded = fold_params(params, dim_cnn)        # one-time fold, outside jit

    fwd = jax.jit(chess_resnet_forward)
    out = fwd(folded, x)
    jax.block_until_ready(out)

    assert out.shape == (batch, vit_length, H, W), out.shape
    assert bool(jnp.all(jnp.isfinite(out)))

    # Tolerance-asserted pure-JAX reference (generous bound: MXU matmuls and
    # XLA convs may use different internal f32 precisions).
    ref = jax.jit(chess_resnet_reference)(params, x)
    rel_err = float(jnp.max(jnp.abs(out - ref)) /
                    (jnp.max(jnp.abs(ref)) + 1e-6))
    assert rel_err < 5e-2, f"mismatch vs pure-JAX reference: rel_err={rel_err}"
    print("KERNEL_OK")
</pallas_src>

<mosaic_0001>
module attributes {stable_mosaic.version = 11 : i64} {
  func.func @_fused_resnet_kernel(%arg0: memref<2x8x8x4xf32, #tpu.memory_space<vmem>>, %arg1: memref<288x32xf32, #tpu.memory_space<vmem>>, %arg2: memref<1x32xf32, #tpu.memory_space<vmem>>, %arg3: memref<288x32xf32, #tpu.memory_space<vmem>>, %arg4: memref<1x32xf32, #tpu.memory_space<vmem>>, %arg5: memref<288x32xf32, #tpu.memory_space<vmem>>, %arg6: memref<1x32xf32, #tpu.memory_space<vmem>>, %arg7: memref<288x32xf32, #tpu.memory_space<vmem>>, %arg8: memref<1x32xf32, #tpu.memory_space<vmem>>, %arg9: memref<288x32xf32, #tpu.memory_space<vmem>>, %arg10: memref<1x32xf32, #tpu.memory_space<vmem>>, %arg11: memref<288x16xf32, #tpu.memory_space<vmem>>, %arg12: memref<1x16xf32, #tpu.memory_space<vmem>>, %arg13: memref<2x8x8x16xf32, #tpu.memory_space<vmem>>, %arg14: memref<2x10x10x32xf32, #tpu.memory_space<vmem>>, %arg15: memref<2x10x10x32xf32, #tpu.memory_space<vmem>>) attributes {dimension_semantics = [], scalar_prefetch = 0 : i64, scratch_operands = 2 : i64, tpu.core_type = #tpu.core_type<tc>} {
    %c0 = arith.constant 0 : index
    %c0_0 = arith.constant 0 : index
    %c0_1 = arith.constant 0 : index
    %c0_2 = arith.constant 0 : index
    %0 = vector.load %arg0[%c0, %c0_0, %c0_1, %c0_2] : memref<2x8x8x4xf32, #tpu.memory_space<vmem>>, vector<2x8x8x4xf32>
    %cst = arith.constant 0.000000e+00 : f32
    %1 = vector.broadcast %cst : f32 to vector<2x8x8x28xf32>
    %2 = tpu.concatenate %0, %1 in 3 : vector<2x8x8x4xf32>, vector<2x8x8x28xf32> -> vector<2x8x8x32xf32>
    %cst_3 = arith.constant 0.000000e+00 : f32
    %3 = vector.broadcast %cst_3 : f32 to vector<2x8x1x32xf32>
    %cst_4 = arith.constant 0.000000e+00 : f32
    %4 = vector.broadcast %cst_4 : f32 to vector<2x1x10x32xf32>
    %5 = tpu.concatenate %3, %2, %3 in 2 : vector<2x8x1x32xf32>, vector<2x8x8x32xf32>, vector<2x8x1x32xf32> -> vector<2x8x10x32xf32>
    %6 = tpu.concatenate %4, %5, %4 in 1 : vector<2x1x10x32xf32>, vector<2x8x10x32xf32>, vector<2x1x10x32xf32> -> vector<2x10x10x32xf32>
    %c0_5 = arith.constant 0 : index
    %c0_6 = arith.constant 0 : index
    %c0_7 = arith.constant 0 : index
    %c0_8 = arith.constant 0 : index
    %7 = vector.load %arg14[%c0_5, %c0_6, %c0_7, %c0_8] : memref<2x10x10x32xf32, #tpu.memory_space<vmem>>, vector<2x10x10x32xf32>
    tpu.vector_store %arg14[%c0_5, %c0_6, %c0_7, %c0_8], %6 {strides = array<i32>} : memref<2x10x10x32xf32, #tpu.memory_space<vmem>>, vector<2x10x10x32xf32>,
    %c0_9 = arith.constant 0 : index
    %c0_10 = arith.constant 0 : index
    %c0_11 = arith.constant 0 : index
    %c0_12 = arith.constant 0 : index
    %8 = vector.load %arg14[%c0_9, %c0_10, %c0_11, %c0_12] : memref<2x10x10x32xf32, #tpu.memory_space<vmem>>, vector<2x10x10x32xf32>
    %9 = vector.extract_strided_slice %8 {offsets = [0, 0, 0, 0], sizes = [2, 8, 8, 32], strides = [1, 1, 1, 1]} : vector<2x10x10x32xf32> to vector<2x8x8x32xf32>
    %10 = vector.shape_cast %9 : vector<2x8x8x32xf32> to vector<128x32xf32>
    %11 = vector.extract_strided_slice %8 {offsets = [0, 0, 1, 0], sizes = [2, 8, 8, 32], strides = [1, 1, 1, 1]} : vector<2x10x10x32xf32> to vector<2x8x8x32xf32>
    %12 = vector.shape_cast %11 : vector<2x8x8x32xf32> to vector<128x32xf32>
    %13 = vector.extract_strided_slice %8 {offsets = [0, 0, 2, 0], sizes = [2, 8, 8, 32], strides = [1, 1, 1, 1]} : vector<2x10x10x32xf32> to vector<2x8x8x32xf32>
    %14 = vector.shape_cast %13 : vector<2x8x8x32xf32> to vector<128x32xf32>
    %15 = vector.extract_strided_slice %8 {offsets = [0, 1, 0, 0], sizes = [2, 8, 8, 32], strides = [1, 1, 1, 1]} : vector<2x10x10x32xf32> to vector<2x8x8x32xf32>
    %16 = vector.shape_cast %15 : vector<2x8x8x32xf32> to vector<128x32xf32>
    %17 = vector.extract_strided_slice %8 {offsets = [0, 1, 1, 0], sizes = [2, 8, 8, 32], strides = [1, 1, 1, 1]} : vector<2x10x10x32xf32> to vector<2x8x8x32xf32>
    %18 = vector.shape_cast %17 : vector<2x8x8x32xf32> to vector<128x32xf32>
    %19 = vector.extract_strided_slice %8 {offsets = [0, 1, 2, 0], sizes = [2, 8, 8, 32], strides = [1, 1, 1, 1]} : vector<2x10x10x32xf32> to vector<2x8x8x32xf32>
    %20 = vector.shape_cast %19 : vector<2x8x8x32xf32> to vector<128x32xf32>
    %21 = vector.extract_strided_slice %8 {offsets = [0, 2, 0, 0], sizes = [2, 8, 8, 32], strides = [1, 1, 1, 1]} : vector<2x10x10x32xf32> to vector<2x8x8x32xf32>
    %22 = vector.shape_cast %21 : vector<2x8x8x32xf32> to vector<128x32xf32>
    %23 = vector.extract_strided_slice %8 {offsets = [0, 2, 1, 0], sizes = [2, 8, 8, 32], strides = [1, 1, 1, 1]} : vector<2x10x10x32xf32> to vector<2x8x8x32xf32>
    %24 = vector.shape_cast %23 : vector<2x8x8x32xf32> to vector<128x32xf32>
    %25 = vector.extract_strided_slice %8 {offsets = [0, 2, 2, 0], sizes = [2, 8, 8, 32], strides = [1, 1, 1, 1]} : vector<2x10x10x32xf32> to vector<2x8x8x32xf32>
    %26 = vector.shape_cast %25 : vector<2x8x8x32xf32> to vector<128x32xf32>
    %27 = tpu.concatenate %10, %12, %14, %16, %18, %20, %22, %24, %26 in 1 : vector<128x32xf32>, vector<128x32xf32>, vector<128x32xf32>, vector<128x32xf32>, vector<128x32xf32>, vector<128x32xf32>, vector<128x32xf32>, vector<128x32xf32>, vector<128x32xf32> -> vector<128x288xf32>
    %c0_13 = arith.constant 0 : index
    %c0_14 = arith.constant 0 : index
    %28 = vector.load %arg1[%c0_13, %c0_14] : memref<288x32xf32, #tpu.memory_space<vmem>>, vector<288x32xf32>
    %cst_15 = arith.constant dense<0.000000e+00> : vector<128x32xf32>
    %29 = tpu.matmul %27, %28, %cst_15 {dimension_numbers = #tpu.dot_dimension_numbers<[1], [0], [0], [1], [0, 0, 1, 1], [], []>} : vector<128x288xf32>, vector<288x32xf32>, vector<128x32xf32> -> vector<128x32xf32>
    %c0_16 = arith.constant 0 : index
    %c0_17 = arith.constant 0 : index
    %30 = vector.load %arg2[%c0_16, %c0_17] : memref<1x32xf32, #tpu.memory_space<vmem>>, vector<1x32xf32>
    %31 = vector.broadcast %30 : vector<1x32xf32> to vector<128x32xf32>
    %32 = arith.addf %29, %31 : vector<128x32xf32>
    %cst_18 = arith.constant 0.000000e+00 : f32
    %33 = vector.broadcast %cst_18 : f32 to vector<128x32xf32>
    %34 = arith.maximumf %32, %33 : vector<128x32xf32>
    %35 = vector.shape_cast %34 : vector<128x32xf32> to vector<2x8x8x32xf32>
    %cst_19 = arith.constant 0.000000e+00 : f32
    %36 = vector.broadcast %cst_19 : f32 to vector<2x8x1x32xf32>
    %cst_20 = arith.constant 0.000000e+00 : f32
    %37 = vector.broadcast %cst_20 : f32 to vector<2x1x10x32xf32>
    %38 = tpu.concatenate %36, %35, %36 in 2 : vector<2x8x1x32xf32>, vector<2x8x8x32xf32>, vector<2x8x1x32xf32> -> vector<2x8x10x32xf32>
    %39 = tpu.concatenate %37, %38, %37 in 1 : vector<2x1x10x32xf32>, vector<2x8x10x32xf32>, vector<2x1x10x32xf32> -> vector<2x10x10x32xf32>
    %c0_21 = arith.constant 0 : index
    %c0_22 = arith.constant 0 : index
    %c0_23 = arith.constant 0 : index
    %c0_24 = arith.constant 0 : index
    %40 = vector.load %arg15[%c0_21, %c0_22, %c0_23, %c0_24] : memref<2x10x10x32xf32, #tpu.memory_space<vmem>>, vector<2x10x10x32xf32>
    tpu.vector_store %arg15[%c0_21, %c0_22, %c0_23, %c0_24], %39 {strides = array<i32>} : memref<2x10x10x32xf32, #tpu.memory_space<vmem>>, vector<2x10x10x32xf32>,
    %c0_25 = arith.constant 0 : index
    %c0_26 = arith.constant 0 : index
    %c0_27 = arith.constant 0 : index
    %c0_28 = arith.constant 0 : index
    %41 = vector.load %arg15[%c0_25, %c0_26, %c0_27, %c0_28] : memref<2x10x10x32xf32, #tpu.memory_space<vmem>>, vector<2x10x10x32xf32>
    %42 = vector.extract_strided_slice %41 {offsets = [0, 0, 0, 0], sizes = [2, 8, 8, 32], strides = [1, 1, 1, 1]} : vector<2x10x10x32xf32> to vector<2x8x8x32xf32>
    %43 = vector.shape_cast %42 : vector<2x8x8x32xf32> to vector<128x32xf32>
    %44 = vector.extract_strided_slice %41 {offsets = [0, 0, 1, 0], sizes = [2, 8, 8, 32], strides = [1, 1, 1, 1]} : vector<2x10x10x32xf32> to vector<2x8x8x32xf32>
    %45 = vector.shape_cast %44 : vector<2x8x8x32xf32> to vector<128x32xf32>
    %46 = vector.extract_strided_slice %41 {offsets = [0, 0, 2, 0], sizes = [2, 8, 8, 32], strides = [1, 1, 1, 1]} : vector<2x10x10x32xf32> to vector<2x8x8x32xf32>
    %47 = vector.shape_cast %46 : vector<2x8x8x32xf32> to vector<128x32xf32>
    %48 = vector.extract_strided_slice %41 {offsets = [0, 1, 0, 0], sizes = [2, 8, 8, 32], strides = [1, 1, 1, 1]} : vector<2x10x10x32xf32> to vector<2x8x8x32xf32>
    %49 = vector.shape_cast %48 : vector<2x8x8x32xf32> to vector<128x32xf32>
    %50 = vector.extract_strided_slice %41 {offsets = [0, 1, 1, 0], sizes = [2, 8, 8, 32], strides = [1, 1, 1, 1]} : vector<2x10x10x32xf32> to vector<2x8x8x32xf32>
    %51 = vector.shape_cast %50 : vector<2x8x8x32xf32> to vector<128x32xf32>
    %52 = vector.extract_strided_slice %41 {offsets = [0, 1, 2, 0], sizes = [2, 8, 8, 32], strides = [1, 1, 1, 1]} : vector<2x10x10x32xf32> to vector<2x8x8x32xf32>
    %53 = vector.shape_cast %52 : vector<2x8x8x32xf32> to vector<128x32xf32>
    %54 = vector.extract_strided_slice %41 {offsets = [0, 2, 0, 0], sizes = [2, 8, 8, 32], strides = [1, 1, 1, 1]} : vector<2x10x10x32xf32> to vector<2x8x8x32xf32>
    %55 = vector.shape_cast %54 : vector<2x8x8x32xf32> to vector<128x32xf32>
    %56 = vector.extract_strided_slice %41 {offsets = [0, 2, 1, 0], sizes = [2, 8, 8, 32], strides = [1, 1, 1, 1]} : vector<2x10x10x32xf32> to vector<2x8x8x32xf32>
    %57 = vector.shape_cast %56 : vector<2x8x8x32xf32> to vector<128x32xf32>
    %58 = vector.extract_strided_slice %41 {offsets = [0, 2, 2, 0], sizes = [2, 8, 8, 32], strides = [1, 1, 1, 1]} : vector<2x10x10x32xf32> to vector<2x8x8x32xf32>
    %59 = vector.shape_cast %58 : vector<2x8x8x32xf32> to vector<128x32xf32>
    %60 = tpu.concatenate %43, %45, %47, %49, %51, %53, %55, %57, %59 in 1 : vector<128x32xf32>, vector<128x32xf32>, vector<128x32xf32>, vector<128x32xf32>, vector<128x32xf32>, vector<128x32xf32>, vector<128x32xf32>, vector<128x32xf32>, vector<128x32xf32> -> vector<128x288xf32>
    %c0_29 = arith.constant 0 : index
    %c0_30 = arith.constant 0 : index
    %61 = vector.load %arg3[%c0_29, %c0_30] : memref<288x32xf32, #tpu.memory_space<vmem>>, vector<288x32xf32>
    %cst_31 = arith.constant dense<0.000000e+00> : vector<128x32xf32>
    %62 = tpu.matmul %60, %61, %cst_31 {dimension_numbers = #tpu.dot_dimension_numbers<[1], [0], [0], [1], [0, 0, 1, 1], [], []>} : vector<128x288xf32>, vector<288x32xf32>, vector<128x32xf32> -> vector<128x32xf32>
    %c0_32 = arith.constant 0 : index
    %c0_33 = arith.constant 0 : index
    %63 = vector.load %arg4[%c0_32, %c0_33] : memref<1x32xf32, #tpu.memory_space<vmem>>, vector<1x32xf32>
    %64 = vector.broadcast %63 : vector<1x32xf32> to vector<128x32xf32>
    %65 = arith.addf %62, %64 : vector<128x32xf32>
    %cst_34 = arith.constant 0.000000e+00 : f32
    %66 = vector.broadcast %cst_34 : f32 to vector<128x32xf32>
    %67 = arith.maximumf %65, %66 : vector<128x32xf32>
    %68 = vector.shape_cast %67 : vector<128x32xf32> to vector<2x8x8x32xf32>
    %cst_35 = arith.constant 0.000000e+00 : f32
    %69 = vector.broadcast %cst_35 : f32 to vector<2x8x1x32xf32>
    %cst_36 = arith.constant 0.000000e+00 : f32
    %70 = vector.broadcast %cst_36 : f32 to vector<2x1x10x32xf32>
    %71 = tpu.concatenate %69, %68, %69 in 2 : vector<2x8x1x32xf32>, vector<2x8x8x32xf32>, vector<2x8x1x32xf32> -> vector<2x8x10x32xf32>
    %72 = tpu.concatenate %70, %71, %70 in 1 : vector<2x1x10x32xf32>, vector<2x8x10x32xf32>, vector<2x1x10x32xf32> -> vector<2x10x10x32xf32>
    %c0_37 = arith.constant 0 : index
    %c0_38 = arith.constant 0 : index
    %c0_39 = arith.constant 0 : index
    %c0_40 = arith.constant 0 : index
    %73 = vector.load %arg14[%c0_37, %c0_38, %c0_39, %c0_40] : memref<2x10x10x32xf32, #tpu.memory_space<vmem>>, vector<2x10x10x32xf32>
    tpu.vector_store %arg14[%c0_37, %c0_38, %c0_39, %c0_40], %72 {strides = array<i32>} : memref<2x10x10x32xf32, #tpu.memory_space<vmem>>, vector<2x10x10x32xf32>,
    %c0_41 = arith.constant 0 : index
    %c0_42 = arith.constant 0 : index
    %c0_43 = arith.constant 0 : index
    %c0_44 = arith.constant 0 : index
    %74 = vector.load %arg14[%c0_41, %c0_42, %c0_43, %c0_44] : memref<2x10x10x32xf32, #tpu.memory_space<vmem>>, vector<2x10x10x32xf32>
    %75 = vector.extract_strided_slice %74 {offsets = [0, 0, 0, 0], sizes = [2, 8, 8, 32], strides = [1, 1, 1, 1]} : vector<2x10x10x32xf32> to vector<2x8x8x32xf32>
    %76 = vector.shape_cast %75 : vector<2x8x8x32xf32> to vector<128x32xf32>
    %77 = vector.extract_strided_slice %74 {offsets = [0, 0, 1, 0], sizes = [2, 8, 8, 32], strides = [1, 1, 1, 1]} : vector<2x10x10x32xf32> to vector<2x8x8x32xf32>
    %78 = vector.shape_cast %77 : vector<2x8x8x32xf32> to vector<128x32xf32>
    %79 = vector.extract_strided_slice %74 {offsets = [0, 0, 2, 0], sizes = [2, 8, 8, 32], strides = [1, 1, 1, 1]} : vector<2x10x10x32xf32> to vector<2x8x8x32xf32>
    %80 = vector.shape_cast %79 : vector<2x8x8x32xf32> to vector<128x32xf32>
    %81 = vector.extract_strided_slice %74 {offsets = [0, 1, 0, 0], sizes = [2, 8, 8, 32], strides = [1, 1, 1, 1]} : vector<2x10x10x32xf32> to vector<2x8x8x32xf32>
    %82 = vector.shape_cast %81 : vector<2x8x8x32xf32> to vector<128x32xf32>
    %83 = vector.extract_strided_slice %74 {offsets = [0, 1, 1, 0], sizes = [2, 8, 8, 32], strides = [1, 1, 1, 1]} : vector<2x10x10x32xf32> to vector<2x8x8x32xf32>
    %84 = vector.shape_cast %83 : vector<2x8x8x32xf32> to vector<128x32xf32>
    %85 = vector.extract_strided_slice %74 {offsets = [0, 1, 2, 0], sizes = [2, 8, 8, 32], strides = [1, 1, 1, 1]} : vector<2x10x10x32xf32> to vector<2x8x8x32xf32>
    %86 = vector.shape_cast %85 : vector<2x8x8x32xf32> to vector<128x32xf32>
    %87 = vector.extract_strided_slice %74 {offsets = [0, 2, 0, 0], sizes = [2, 8, 8, 32], strides = [1, 1, 1, 1]} : vector<2x10x10x32xf32> to vector<2x8x8x32xf32>
    %88 = vector.shape_cast %87 : vector<2x8x8x32xf32> to vector<128x32xf32>
    %89 = vector.extract_strided_slice %74 {offsets = [0, 2, 1, 0], sizes = [2, 8, 8, 32], strides = [1, 1, 1, 1]} : vector<2x10x10x32xf32> to vector<2x8x8x32xf32>
    %90 = vector.shape_cast %89 : vector<2x8x8x32xf32> to vector<128x32xf32>
    %91 = vector.extract_strided_slice %74 {offsets = [0, 2, 2, 0], sizes = [2, 8, 8, 32], strides = [1, 1, 1, 1]} : vector<2x10x10x32xf32> to vector<2x8x8x32xf32>
    %92 = vector.shape_cast %91 : vector<2x8x8x32xf32> to vector<128x32xf32>
    %93 = tpu.concatenate %76, %78, %80, %82, %84, %86, %88, %90, %92 in 1 : vector<128x32xf32>, vector<128x32xf32>, vector<128x32xf32>, vector<128x32xf32>, vector<128x32xf32>, vector<128x32xf32>, vector<128x32xf32>, vector<128x32xf32>, vector<128x32xf32> -> vector<128x288xf32>
    %c0_45 = arith.constant 0 : index
    %c0_46 = arith.constant 0 : index
    %94 = vector.load %arg5[%c0_45, %c0_46] : memref<288x32xf32, #tpu.memory_space<vmem>>, vector<288x32xf32>
    %cst_47 = arith.constant dense<0.000000e+00> : vector<128x32xf32>
    %95 = tpu.matmul %93, %94, %cst_47 {dimension_numbers = #tpu.dot_dimension_numbers<[1], [0], [0], [1], [0, 0, 1, 1], [], []>} : vector<128x288xf32>, vector<288x32xf32>, vector<128x32xf32> -> vector<128x32xf32>
    %c0_48 = arith.constant 0 : index
    %c0_49 = arith.constant 0 : index
    %96 = vector.load %arg6[%c0_48, %c0_49] : memref<1x32xf32, #tpu.memory_space<vmem>>, vector<1x32xf32>
    %97 = vector.broadcast %96 : vector<1x32xf32> to vector<128x32xf32>
    %98 = arith.addf %95, %97 : vector<128x32xf32>
    %99 = arith.addf %98, %34 : vector<128x32xf32>
    %cst_50 = arith.constant 0.000000e+00 : f32
    %100 = vector.broadcast %cst_50 : f32 to vector<128x32xf32>
    %101 = arith.maximumf %99, %100 : vector<128x32xf32>
    %102 = vector.shape_cast %101 : vector<128x32xf32> to vector<2x8x8x32xf32>
    %cst_51 = arith.constant 0.000000e+00 : f32
    %103 = vector.broadcast %cst_51 : f32 to vector<2x8x1x32xf32>
    %cst_52 = arith.constant 0.000000e+00 : f32
    %104 = vector.broadcast %cst_52 : f32 to vector<2x1x10x32xf32>
    %105 = tpu.concatenate %103, %102, %103 in 2 : vector<2x8x1x32xf32>, vector<2x8x8x32xf32>, vector<2x8x1x32xf32> -> vector<2x8x10x32xf32>
    %106 = tpu.concatenate %104, %105, %104 in 1 : vector<2x1x10x32xf32>, vector<2x8x10x32xf32>, vector<2x1x10x32xf32> -> vector<2x10x10x32xf32>
    %c0_53 = arith.constant 0 : index
    %c0_54 = arith.constant 0 : index
    %c0_55 = arith.constant 0 : index
    %c0_56 = arith.constant 0 : index
    %107 = vector.load %arg15[%c0_53, %c0_54, %c0_55, %c0_56] : memref<2x10x10x32xf32, #tpu.memory_space<vmem>>, vector<2x10x10x32xf32>
    tpu.vector_store %arg15[%c0_53, %c0_54, %c0_55, %c0_56], %106 {strides = array<i32>} : memref<2x10x10x32xf32, #tpu.memory_space<vmem>>, vector<2x10x10x32xf32>,
    %c0_57 = arith.constant 0 : index
    %c0_58 = arith.constant 0 : index
    %c0_59 = arith.constant 0 : index
    %c0_60 = arith.constant 0 : index
    %108 = vector.load %arg15[%c0_57, %c0_58, %c0_59, %c0_60] : memref<2x10x10x32xf32, #tpu.memory_space<vmem>>, vector<2x10x10x32xf32>
    %109 = vector.extract_strided_slice %108 {offsets = [0, 0, 0, 0], sizes = [2, 8, 8, 32], strides = [1, 1, 1, 1]} : vector<2x10x10x32xf32> to vector<2x8x8x32xf32>
    %110 = vector.shape_cast %109 : vector<2x8x8x32xf32> to vector<128x32xf32>
    %111 = vector.extract_strided_slice %108 {offsets = [0, 0, 1, 0], sizes = [2, 8, 8, 32], strides = [1, 1, 1, 1]} : vector<2x10x10x32xf32> to vector<2x8x8x32xf32>
    %112 = vector.shape_cast %111 : vector<2x8x8x32xf32> to vector<128x32xf32>
    %113 = vector.extract_strided_slice %108 {offsets = [0, 0, 2, 0], sizes = [2, 8, 8, 32], strides = [1, 1, 1, 1]} : vector<2x10x10x32xf32> to vector<2x8x8x32xf32>
    %114 = vector.shape_cast %113 : vector<2x8x8x32xf32> to vector<128x32xf32>
    %115 = vector.extract_strided_slice %108 {offsets = [0, 1, 0, 0], sizes = [2, 8, 8, 32], strides = [1, 1, 1, 1]} : vector<2x10x10x32xf32> to vector<2x8x8x32xf32>
    %116 = vector.shape_cast %115 : vector<2x8x8x32xf32> to vector<128x32xf32>
    %117 = vector.extract_strided_slice %108 {offsets = [0, 1, 1, 0], sizes = [2, 8, 8, 32], strides = [1, 1, 1, 1]} : vector<2x10x10x32xf32> to vector<2x8x8x32xf32>
    %118 = vector.shape_cast %117 : vector<2x8x8x32xf32> to vector<128x32xf32>
    %119 = vector.extract_strided_slice %108 {offsets = [0, 1, 2, 0], sizes = [2, 8, 8, 32], strides = [1, 1, 1, 1]} : vector<2x10x10x32xf32> to vector<2x8x8x32xf32>
    %120 = vector.shape_cast %119 : vector<2x8x8x32xf32> to vector<128x32xf32>
    %121 = vector.extract_strided_slice %108 {offsets = [0, 2, 0, 0], sizes = [2, 8, 8, 32], strides = [1, 1, 1, 1]} : vector<2x10x10x32xf32> to vector<2x8x8x32xf32>
    %122 = vector.shape_cast %121 : vector<2x8x8x32xf32> to vector<128x32xf32>
    %123 = vector.extract_strided_slice %108 {offsets = [0, 2, 1, 0], sizes = [2, 8, 8, 32], strides = [1, 1, 1, 1]} : vector<2x10x10x32xf32> to vector<2x8x8x32xf32>
    %124 = vector.shape_cast %123 : vector<2x8x8x32xf32> to vector<128x32xf32>
    %125 = vector.extract_strided_slice %108 {offsets = [0, 2, 2, 0], sizes = [2, 8, 8, 32], strides = [1, 1, 1, 1]} : vector<2x10x10x32xf32> to vector<2x8x8x32xf32>
    %126 = vector.shape_cast %125 : vector<2x8x8x32xf32> to vector<128x32xf32>
    %127 = tpu.concatenate %110, %112, %114, %116, %118, %120, %122, %124, %126 in 1 : vector<128x32xf32>, vector<128x32xf32>, vector<128x32xf32>, vector<128x32xf32>, vector<128x32xf32>, vector<128x32xf32>, vector<128x32xf32>, vector<128x32xf32>, vector<128x32xf32> -> vector<128x288xf32>
    %c0_61 = arith.constant 0 : index
    %c0_62 = arith.constant 0 : index
    %128 = vector.load %arg7[%c0_61, %c0_62] : memref<288x32xf32, #tpu.memory_space<vmem>>, vector<288x32xf32>
    %cst_63 = arith.constant dense<0.000000e+00> : vector<128x32xf32>
    %129 = tpu.matmul %127, %128, %cst_63 {dimension_numbers = #tpu.dot_dimension_numbers<[1], [0], [0], [1], [0, 0, 1, 1], [], []>} : vector<128x288xf32>, vector<288x32xf32>, vector<128x32xf32> -> vector<128x32xf32>
    %c0_64 = arith.constant 0 : index
    %c0_65 = arith.constant 0 : index
    %130 = vector.load %arg8[%c0_64, %c0_65] : memref<1x32xf32, #tpu.memory_space<vmem>>, vector<1x32xf32>
    %131 = vector.broadcast %130 : vector<1x32xf32> to vector<128x32xf32>
    %132 = arith.addf %129, %131 : vector<128x32xf32>
    %cst_66 = arith.constant 0.000000e+00 : f32
    %133 = vector.broadcast %cst_66 : f32 to vector<128x32xf32>
    %134 = arith.maximumf %132, %133 : vector<128x32xf32>
    %135 = vector.shape_cast %134 : vector<128x32xf32> to vector<2x8x8x32xf32>
    %cst_67 = arith.constant 0.000000e+00 : f32
    %136 = vector.broadcast %cst_67 : f32 to vector<2x8x1x32xf32>
    %cst_68 = arith.constant 0.000000e+00 : f32
    %137 = vector.broadcast %cst_68 : f32 to vector<2x1x10x32xf32>
    %138 = tpu.concatenate %136, %135, %136 in 2 : vector<2x8x1x32xf32>, vector<2x8x8x32xf32>, vector<2x8x1x32xf32> -> vector<2x8x10x32xf32>
    %139 = tpu.concatenate %137, %138, %137 in 1 : vector<2x1x10x32xf32>, vector<2x8x10x32xf32>, vector<2x1x10x32xf32> -> vector<2x10x10x32xf32>
    %c0_69 = arith.constant 0 : index
    %c0_70 = arith.constant 0 : index
    %c0_71 = arith.constant 0 : index
    %c0_72 = arith.constant 0 : index
    %140 = vector.load %arg14[%c0_69, %c0_70, %c0_71, %c0_72] : memref<2x10x10x32xf32, #tpu.memory_space<vmem>>, vector<2x10x10x32xf32>
    tpu.vector_store %arg14[%c0_69, %c0_70, %c0_71, %c0_72], %139 {strides = array<i32>} : memref<2x10x10x32xf32, #tpu.memory_space<vmem>>, vector<2x10x10x32xf32>,
    %c0_73 = arith.constant 0 : index
    %c0_74 = arith.constant 0 : index
    %c0_75 = arith.constant 0 : index
    %c0_76 = arith.constant 0 : index
    %141 = vector.load %arg14[%c0_73, %c0_74, %c0_75, %c0_76] : memref<2x10x10x32xf32, #tpu.memory_space<vmem>>, vector<2x10x10x32xf32>
    %142 = vector.extract_strided_slice %141 {offsets = [0, 0, 0, 0], sizes = [2, 8, 8, 32], strides = [1, 1, 1, 1]} : vector<2x10x10x32xf32> to vector<2x8x8x32xf32>
    %143 = vector.shape_cast %142 : vector<2x8x8x32xf32> to vector<128x32xf32>
    %144 = vector.extract_strided_slice %141 {offsets = [0, 0, 1, 0], sizes = [2, 8, 8, 32], strides = [1, 1, 1, 1]} : vector<2x10x10x32xf32> to vector<2x8x8x32xf32>
    %145 = vector.shape_cast %144 : vector<2x8x8x32xf32> to vector<128x32xf32>
    %146 = vector.extract_strided_slice %141 {offsets = [0, 0, 2, 0], sizes = [2, 8, 8, 32], strides = [1, 1, 1, 1]} : vector<2x10x10x32xf32> to vector<2x8x8x32xf32>
    %147 = vector.shape_cast %146 : vector<2x8x8x32xf32> to vector<128x32xf32>
    %148 = vector.extract_strided_slice %141 {offsets = [0, 1, 0, 0], sizes = [2, 8, 8, 32], strides = [1, 1, 1, 1]} : vector<2x10x10x32xf32> to vector<2x8x8x32xf32>
    %149 = vector.shape_cast %148 : vector<2x8x8x32xf32> to vector<128x32xf32>
    %150 = vector.extract_strided_slice %141 {offsets = [0, 1, 1, 0], sizes = [2, 8, 8, 32], strides = [1, 1, 1, 1]} : vector<2x10x10x32xf32> to vector<2x8x8x32xf32>
    %151 = vector.shape_cast %150 : vector<2x8x8x32xf32> to vector<128x32xf32>
    %152 = vector.extract_strided_slice %141 {offsets = [0, 1, 2, 0], sizes = [2, 8, 8, 32], strides = [1, 1, 1, 1]} : vector<2x10x10x32xf32> to vector<2x8x8x32xf32>
    %153 = vector.shape_cast %152 : vector<2x8x8x32xf32> to vector<128x32xf32>
    %154 = vector.extract_strided_slice %141 {offsets = [0, 2, 0, 0], sizes = [2, 8, 8, 32], strides = [1, 1, 1, 1]} : vector<2x10x10x32xf32> to vector<2x8x8x32xf32>
    %155 = vector.shape_cast %154 : vector<2x8x8x32xf32> to vector<128x32xf32>
    %156 = vector.extract_strided_slice %141 {offsets = [0, 2, 1, 0], sizes = [2, 8, 8, 32], strides = [1, 1, 1, 1]} : vector<2x10x10x32xf32> to vector<2x8x8x32xf32>
    %157 = vector.shape_cast %156 : vector<2x8x8x32xf32> to vector<128x32xf32>
    %158 = vector.extract_strided_slice %141 {offsets = [0, 2, 2, 0], sizes = [2, 8, 8, 32], strides = [1, 1, 1, 1]} : vector<2x10x10x32xf32> to vector<2x8x8x32xf32>
    %159 = vector.shape_cast %158 : vector<2x8x8x32xf32> to vector<128x32xf32>
    %160 = tpu.concatenate %143, %145, %147, %149, %151, %153, %155, %157, %159 in 1 : vector<128x32xf32>, vector<128x32xf32>, vector<128x32xf32>, vector<128x32xf32>, vector<128x32xf32>, vector<128x32xf32>, vector<128x32xf32>, vector<128x32xf32>, vector<128x32xf32> -> vector<128x288xf32>
    %c0_77 = arith.constant 0 : index
    %c0_78 = arith.constant 0 : index
    %161 = vector.load %arg9[%c0_77, %c0_78] : memref<288x32xf32, #tpu.memory_space<vmem>>, vector<288x32xf32>
    %cst_79 = arith.constant dense<0.000000e+00> : vector<128x32xf32>
    %162 = tpu.matmul %160, %161, %cst_79 {dimension_numbers = #tpu.dot_dimension_numbers<[1], [0], [0], [1], [0, 0, 1, 1], [], []>} : vector<128x288xf32>, vector<288x32xf32>, vector<128x32xf32> -> vector<128x32xf32>
    %c0_80 = arith.constant 0 : index
    %c0_81 = arith.constant 0 : index
    %163 = vector.load %arg10[%c0_80, %c0_81] : memref<1x32xf32, #tpu.memory_space<vmem>>, vector<1x32xf32>
    %164 = vector.broadcast %163 : vector<1x32xf32> to vector<128x32xf32>
    %165 = arith.addf %162, %164 : vector<128x32xf32>
    %166 = arith.addf %165, %101 : vector<128x32xf32>
    %cst_82 = arith.constant 0.000000e+00 : f32
    %167 = vector.broadcast %cst_82 : f32 to vector<128x32xf32>
    %168 = arith.maximumf %166, %167 : vector<128x32xf32>
    %169 = vector.shape_cast %168 : vector<128x32xf32> to vector<2x8x8x32xf32>
    %cst_83 = arith.constant 0.000000e+00 : f32
    %170 = vector.broadcast %cst_83 : f32 to vector<2x8x1x32xf32>
    %cst_84 = arith.constant 0.000000e+00 : f32
    %171 = vector.broadcast %cst_84 : f32 to vector<2x1x10x32xf32>
    %172 = tpu.concatenate %170, %169, %170 in 2 : vector<2x8x1x32xf32>, vector<2x8x8x32xf32>, vector<2x8x1x32xf32> -> vector<2x8x10x32xf32>
    %173 = tpu.concatenate %171, %172, %171 in 1 : vector<2x1x10x32xf32>, vector<2x8x10x32xf32>, vector<2x1x10x32xf32> -> vector<2x10x10x32xf32>
    %c0_85 = arith.constant 0 : index
    %c0_86 = arith.constant 0 : index
    %c0_87 = arith.constant 0 : index
    %c0_88 = arith.constant 0 : index
    %174 = vector.load %arg15[%c0_85, %c0_86, %c0_87, %c0_88] : memref<2x10x10x32xf32, #tpu.memory_space<vmem>>, vector<2x10x10x32xf32>
    tpu.vector_store %arg15[%c0_85, %c0_86, %c0_87, %c0_88], %173 {strides = array<i32>} : memref<2x10x10x32xf32, #tpu.memory_space<vmem>>, vector<2x10x10x32xf32>,
    %c0_89 = arith.constant 0 : index
    %c0_90 = arith.constant 0 : index
    %c0_91 = arith.constant 0 : index
    %c0_92 = arith.constant 0 : index
    %175 = vector.load %arg15[%c0_89, %c0_90, %c0_91, %c0_92] : memref<2x10x10x32xf32, #tpu.memory_space<vmem>>, vector<2x10x10x32xf32>
    %176 = vector.extract_strided_slice %175 {offsets = [0, 0, 0, 0], sizes = [2, 8, 8, 32], strides = [1, 1, 1, 1]} : vector<2x10x10x32xf32> to vector<2x8x8x32xf32>
    %177 = vector.shape_cast %176 : vector<2x8x8x32xf32> to vector<128x32xf32>
    %178 = vector.extract_strided_slice %175 {offsets = [0, 0, 1, 0], sizes = [2, 8, 8, 32], strides = [1, 1, 1, 1]} : vector<2x10x10x32xf32> to vector<2x8x8x32xf32>
    %179 = vector.shape_cast %178 : vector<2x8x8x32xf32> to vector<128x32xf32>
    %180 = vector.extract_strided_slice %175 {offsets = [0, 0, 2, 0], sizes = [2, 8, 8, 32], strides = [1, 1, 1, 1]} : vector<2x10x10x32xf32> to vector<2x8x8x32xf32>
    %181 = vector.shape_cast %180 : vector<2x8x8x32xf32> to vector<128x32xf32>
    %182 = vector.extract_strided_slice %175 {offsets = [0, 1, 0, 0], sizes = [2, 8, 8, 32], strides = [1, 1, 1, 1]} : vector<2x10x10x32xf32> to vector<2x8x8x32xf32>
    %183 = vector.shape_cast %182 : vector<2x8x8x32xf32> to vector<128x32xf32>
    %184 = vector.extract_strided_slice %175 {offsets = [0, 1, 1, 0], sizes = [2, 8, 8, 32], strides = [1, 1, 1, 1]} : vector<2x10x10x32xf32> to vector<2x8x8x32xf32>
    %185 = vector.shape_cast %184 : vector<2x8x8x32xf32> to vector<128x32xf32>
    %186 = vector.extract_strided_slice %175 {offsets = [0, 1, 2, 0], sizes = [2, 8, 8, 32], strides = [1, 1, 1, 1]} : vector<2x10x10x32xf32> to vector<2x8x8x32xf32>
    %187 = vector.shape_cast %186 : vector<2x8x8x32xf32> to vector<128x32xf32>
    %188 = vector.extract_strided_slice %175 {offsets = [0, 2, 0, 0], sizes = [2, 8, 8, 32], strides = [1, 1, 1, 1]} : vector<2x10x10x32xf32> to vector<2x8x8x32xf32>
    %189 = vector.shape_cast %188 : vector<2x8x8x32xf32> to vector<128x32xf32>
    %190 = vector.extract_strided_slice %175 {offsets = [0, 2, 1, 0], sizes = [2, 8, 8, 32], strides = [1, 1, 1, 1]} : vector<2x10x10x32xf32> to vector<2x8x8x32xf32>
    %191 = vector.shape_cast %190 : vector<2x8x8x32xf32> to vector<128x32xf32>
    %192 = vector.extract_strided_slice %175 {offsets = [0, 2, 2, 0], sizes = [2, 8, 8, 32], strides = [1, 1, 1, 1]} : vector<2x10x10x32xf32> to vector<2x8x8x32xf32>
    %193 = vector.shape_cast %192 : vector<2x8x8x32xf32> to vector<128x32xf32>
    %194 = tpu.concatenate %177, %179, %181, %183, %185, %187, %189, %191, %193 in 1 : vector<128x32xf32>, vector<128x32xf32>, vector<128x32xf32>, vector<128x32xf32>, vector<128x32xf32>, vector<128x32xf32>, vector<128x32xf32>, vector<128x32xf32>, vector<128x32xf32> -> vector<128x288xf32>
    %c0_93 = arith.constant 0 : index
    %c0_94 = arith.constant 0 : index
    %195 = vector.load %arg11[%c0_93, %c0_94] : memref<288x16xf32, #tpu.memory_space<vmem>>, vector<288x16xf32>
    %cst_95 = arith.constant dense<0.000000e+00> : vector<128x16xf32>
    %196 = tpu.matmul %194, %195, %cst_95 {dimension_numbers = #tpu.dot_dimension_numbers<[1], [0], [0], [1], [0, 0, 1, 1], [], []>} : vector<128x288xf32>, vector<288x16xf32>, vector<128x16xf32> -> vector<128x16xf32>
    %c0_96 = arith.constant 0 : index
    %c0_97 = arith.constant 0 : index
    %197 = vector.load %arg12[%c0_96, %c0_97] : memref<1x16xf32, #tpu.memory_space<vmem>>, vector<1x16xf32>
    %198 = vector.broadcast %197 : vector<1x16xf32> to vector<128x16xf32>
    %199 = arith.addf %196, %198 : vector<128x16xf32>
    %200 = vector.shape_cast %199 : vector<128x16xf32> to vector<2x8x8x16xf32>
    %c0_98 = arith.constant 0 : index
    %c0_99 = arith.constant 0 : index
    %c0_100 = arith.constant 0 : index
    %c0_101 = arith.constant 0 : index
    %201 = vector.load %arg13[%c0_98, %c0_99, %c0_100, %c0_101] : memref<2x8x8x16xf32, #tpu.memory_space<vmem>>, vector<2x8x8x16xf32>
    tpu.vector_store %arg13[%c0_98, %c0_99, %c0_100, %c0_101], %200 {strides = array<i32>} : memref<2x8x8x16xf32, #tpu.memory_space<vmem>>, vector<2x8x8x16xf32>,
    return
  }
}

</mosaic_0001>

<bundles_post_ra>
// kernel: chess_resnet_forward.1
= control target key start
LH: loop header
LB: loop body
LE: loop exit
PB: predicated region body
PF: predicated region fallthrough
CT: control target
= control target key end

     0   :  { %vm61_vm0 = vcmask 31744   ;;  %vm159_vm1 = vcmask 261120   ;;  %vm161_vm2 = vcmask 254976   ;;  %vm126_vm3 = vcmask 1040384   ;;  %s7770_s26 = smov 32   ;;  %s12535_s0 = inlined_call_operand.vmem [shape: f32[2,8,8,4], index: 0, kind: input, shape index: {}]   ;;  %s12536_s1 = inlined_call_operand.vmem [shape: f32[288,32], index: 1, kind: input, shape index: {}]   ;;  %s12537_s2 = inlined_call_operand.vmem [shape: f32[1,32], index: 2, kind: input, shape index: {}]   ;;  %s12538_s3 = inlined_call_operand.vmem [shape: f32[288,32], index: 3, kind: input, shape index: {}]   ;;  %s12539_s4 = inlined_call_operand.vmem [shape: f32[1,32], index: 4, kind: input, shape index: {}]   ;;  %s12540_s5 = inlined_call_operand.vmem [shape: f32[288,32], index: 5, kind: input, shape index: {}]   ;;  %s12541_s6 = inlined_call_operand.vmem [shape: f32[1,32], index: 6, kind: input, shape index: {}]   ;;  %s12542_s7 = inlined_call_operand.vmem [shape: f32[288,32], index: 7, kind: input, shape index: {}]   ;;  %s12543_s8 = inlined_call_operand.vmem [shape: f32[1,32], index: 8, kind: input, shape index: {}]   ;;  %s12544_s9 = inlined_call_operand.vmem [shape: f32[288,32], index: 9, kind: input, shape index: {}]   ;;  %s12545_s10 = inlined_call_operand.vmem [shape: f32[1,32], index: 10, kind: input, shape index: {}]   ;;  %s12546_s11 = inlined_call_operand.vmem [shape: f32[288,16], index: 11, kind: input, shape index: {}]   ;;  %s12547_s12 = inlined_call_operand.vmem [shape: f32[1,16], index: 12, kind: input, shape index: {}]   ;;  %s12548_s13 = inlined_call_operand.hbm [shape: f32[2,8,8,16], index: 13, kind: output, shape index: {}]  }
   0x1   :  { %v48_v0 = vld [vmem:[%s12535_s0 + $0x18] sm:$0xff]  ;;  %v49_v1 = vld [vmem:[%s12535_s0 + $0x20] sm:$0xff]  ;;  %v12549_v8 = vmov 0.0   ;;  %v50_v18 = vld [vmem:[%s12535_s0 + $0x28] sm:$0xff]  ;;  %vm273_vm4 = vcmask 1046528  }
   0x2   :  { %v65_v2 = vsel %vm61_vm0, %v48_v0, 0.0  ;;  %v66_v3 = vsel %vm61_vm0, %v49_v1, 0.0  ;;  %v45_v4 = vld [vmem:[%s12535_s0] sm:$0xff]  ;;  %160 = vst.msk [vmem:[#allocation2] sm:$0xff] %vm159_vm1, %v12549_v8  ;;  %v51_v20 = vld [vmem:[%s12535_s0 + $0x30] sm:$0xff]  ;;  %v67_v27 = vsel %vm61_vm0, %v50_v18, 0.0 }
   0x3   :  { %v97_v5 = vrot.slane %v65_v2, 7  ;;  %v98_v6 = vrot.slane %v66_v3, 7  ;;  %v62_v7 = vsel %vm61_vm0, %v45_v4, 0.0  ;;  %162 = vst.msk [vmem:[#allocation2 + $0x8] sm:$0x3] %vm161_vm2, %v12549_v8  ;;  %v68_v30 = vsel %vm61_vm0, %v51_v20, 0.0 }
   0x4   :  { %v94_v9 = vrot.slane %v62_v7, 7  ;;  %179 = vst.msk [vmem:[#allocation2 + $0x90] sm:$0xff] %vm159_vm1, %v12549_v8  ;;  %v46_v34 = vld [vmem:[%s12535_s0 + $0x8] sm:$0xff]  ;;  %v47_v35 = vld [vmem:[%s12535_s0 + $0x10] sm:$0xff]  ;;  %v99_v38 = vrot.slane %v67_v27, 7  ;;  %v100_v42 = vrot.slane %v68_v30, 7 }
   0x5   :  { %v130_v10 = vsel %vm126_vm3, 0.0, %v97_v5  ;;  %v131_v11 = vsel %vm126_vm3, 0.0, %v98_v6  ;;  %v146_v12 = vsel %vm126_vm3, %v97_v5, 0.0  ;;  %v147_v13 = vsel %vm126_vm3, %v98_v6, 0.0  ;;  %180 = vst.msk [vmem:[#allocation2 + $0x98] sm:$0x3] %vm161_vm2, %v12549_v8 }
   0x6   :  { %169 = vst.msk [vmem:[#allocation2 + $0x40] sm:$0xff] %vm159_vm1, %v130_v10  ;;  %v127_v14 = vsel %vm126_vm3, 0.0, %v94_v9  ;;  %v143_v15 = vsel %vm126_vm3, %v94_v9, 0.0  ;;  %v53_v44 = vld [vmem:[%s12535_s0 + $0x40] sm:$0xff]  ;;  %v63_v46 = vsel %vm61_vm0, %v46_v34, 0.0  ;;  %v64_v47 = vsel %vm61_vm0, %v47_v35, 0.0 }
   0x7   :  { %170 = vst.msk [vmem:[#allocation2 + $0x48] sm:$0x3] %vm161_vm2, %v146_v12  ;;  %v58_v48 = vld [vmem:[%s12535_s0 + $0x68] sm:$0xff]  ;;  %v59_v50 = vld [vmem:[%s12535_s0 + $0x70] sm:$0xff]  ;;  %v132_v51 = vsel %vm126_vm3, 0.0, %v99_v38  ;;  %v133_v52 = vsel %vm126_vm3, 0.0, %v100_v42 }
   0x8   :  { %171 = vst.msk [vmem:[#allocation2 + $0x50] sm:$0xff] %vm159_vm1, %v131_v11  ;;  %v70_v53 = vsel %vm61_vm0, %v53_v44, 0.0  ;;  %v148_v54 = vsel %vm126_vm3, %v99_v38, 0.0  ;;  %v95_v55 = vrot.slane %v63_v46, 7  ;;  %v96_v56 = vrot.slane %v64_v47, 7 }
   0x9   :  { %172 = vst.msk [vmem:[#allocation2 + $0x58] sm:$0x3] %vm161_vm2, %v147_v13  ;;  %v7876_v16 = vld [vmem:[#allocation2] sm:$0xff]  ;;  %v75_v57 = vsel %vm61_vm0, %v58_v48, 0.0  ;;  %v76_v58 = vsel %vm61_vm0, %v59_v50, 0.0  ;;  %v149_v59 = vsel %vm126_vm3, %v100_v42, 0.0 }
   0xa   :  { %163 = vst.msk [vmem:[#allocation2 + $0x10] sm:$0xff] %vm159_vm1, %v127_v14  ;;  %v7878_v17 = vld [vmem:[#allocation2 + $0x8] sm:$0x3]  ;;  %v274_v25 = vrot.slane %v7876_v16, 1 }
   0xb   :  { %164 = vst.msk [vmem:[#allocation2 + $0x18] sm:$0x3] %vm161_vm2, %v143_v15  ;;  %v275_v26 = vrot.slane %v7878_v17, 1 }
   0xc   :  { %2171 = vst.msk [vmem:[#allocation2] sm:$0xff] %vm159_vm1, %v12549_v8 }
   0xd   :  { %v7885_v19 = vld [vmem:[#allocation2 + $0x40] sm:$0xff]  ;;  %2172 = vst.msk [vmem:[#allocation2 + $0x8] sm:$0x3] %vm161_vm2, %v12549_v8  ;;  %v276_v40 = vsel %vm273_vm4, %v274_v25, %v275_v26 }
   0xe   :  { %v7892_v21 = vld [vmem:[#allocation2 + $0x48] sm:$0x3]  ;;  %v286_v22 = vrot.slane %v7885_v19, 1  ;;  %181 = vst.msk [vmem:[#allocation2 + $0xa0] sm:$0xff] %vm159_vm1, %v12549_v8 }
   0xf   :  { %v7897_v23 = vld [vmem:[#allocation2 + $0x50] sm:$0xff]  ;;  %v287_v24 = vrot.slane %v7892_v21, 1  ;;  %182 = vst.msk [vmem:[#allocation2 + $0xa8] sm:$0x3] %vm161_vm2, %v12549_v8 }
  0x10   :  { %v7905_v28 = vld [vmem:[#allocation2 + $0x58] sm:$0x3]  ;;  %v289_v29 = vrot.slane %v7897_v23, 1  ;;  %199 = vst.msk [vmem:[#allocation2 + $0x130] sm:$0xff] %vm159_vm1, %v12549_v8 }
  0x11   :  { %v7912_v31 = vsel %vm273_vm4, %v286_v22, %v287_v24  ;;  %v290_v32 = vrot.slane %v7905_v28, 1  ;;  %v7915_v33 = vld [vmem:[#allocation2 + $0x10] sm:$0xff]  ;;  %200 = vst.msk [vmem:[#allocation2 + $0x138] sm:$0x3] %vm161_vm2, %v12549_v8 }
  0x12   :  { %v7925_v36 = vld [vmem:[#allocation2 + $0x18] sm:$0x3]  ;;  %v277_v37 = vrot.slane %v7915_v33, 1  ;;  %1168 = vst.msk [vmem:[#allocation3] sm:$0xff] %vm159_vm1, %v12549_v8 }
  0x13   :  { %v7931_v39 = vsel %vm273_vm4, %v289_v29, %v290_v32  ;;  %v278_v41 = vrot.slane %v7925_v36, 1  ;;  %1169 = vst.msk [vmem:[#allocation3 + $0x8] sm:$0x3] %vm161_vm2, %v12549_v8 }
  0x14   :  { %v7939_v43 = vpack.i.bf16 %v7931_v39, %v7912_v31  ;;  %1186 = vst.msk [vmem:[#allocation3 + $0x90] sm:$0xff] %vm159_vm1, %v12549_v8 }
  0x15   :  { %v7947_v45 = vsel %vm273_vm4, %v277_v37, %v278_v41  ;;  %1187 = vst.msk [vmem:[#allocation3 + $0x98] sm:$0x3] %vm161_vm2, %v12549_v8 }
  0x16   :  { %6304 = vrot.lane.b32.xlu1 %v7939_v43, %s7770_s26  ;;  %v6293_v49 = vpack.i.bf16 %v7947_v45, %v276_v40  ;;  %1188 = vst.msk [vmem:[#allocation3 + $0xa0] sm:$0xff] %vm159_vm1, %v12549_v8 }
  0x17   :  { %1189 = vst.msk [vmem:[#allocation3 + $0xa8] sm:$0x3] %vm161_vm2, %v12549_v8 }
  0x18   :  { %6294 = vrot.lane.b32.xlu0 %v6293_v49, %s7770_s26  ;;  %1206 = vst.msk [vmem:[#allocation3 + $0x130] sm:$0xff] %vm159_vm1, %v12549_v8 }
  0x19   :  { %1207 = vst.msk [vmem:[#allocation3 + $0x138] sm:$0x3] %vm161_vm2, %v12549_v8 }
  0x1a   :  { %173 = vst.msk [vmem:[#allocation2 + $0x60] sm:$0xff] %vm159_vm1, %v132_v51 }
  0x1b   :  { %18 = vsyncpa [#allocation5], 0  ;;  %174 = vst.msk [vmem:[#allocation2 + $0x68] sm:$0x3] %vm161_vm2, %v148_v54  ;;  %v128_v60 = vsel %vm126_vm3, 0.0, %v95_v55  ;;  %v102_v61 = vrot.slane %v70_v53, 7 }
  0x1c   :  { %v56_v62 = vld [vmem:[%s12535_s0 + $0x58] sm:$0xff]  ;;  %175 = vst.msk [vmem:[#allocation2 + $0x70] sm:$0xff] %vm159_vm1, %v133_v52  ;;  %v144_v63 = vsel %vm126_vm3, %v95_v55, 0.0  ;;  %v107_v0 = vrot.slane %v75_v57, 7  ;;  %v108_v1 = vrot.slane %v76_v58, 7  ;;  %v129_v2 = vsel %vm126_vm3, 0.0, %v96_v56 }
  0x1d   :  { %176 = vst.msk [vmem:[#allocation2 + $0x78] sm:$0x3] %vm161_vm2, %v149_v59  ;;  %v145_v3 = vsel %vm126_vm3, %v96_v56, 0.0  ;;  %v73_v4 = vsel %vm61_vm0, %v56_v62, 0.0  ;;  %v135_v5 = vsel %vm126_vm3, 0.0, %v102_v61  ;;  %v57_v6 = vld [vmem:[%s12535_s0 + $0x60] sm:$0xff] }
  0x1e   :  { %165 = vst.msk [vmem:[#allocation2 + $0x20] sm:$0xff] %vm159_vm1, %v128_v60  ;;  %v151_v7 = vsel %vm126_vm3, %v102_v61, 0.0  ;;  %v140_v9 = vsel %vm126_vm3, 0.0, %v107_v0  ;;  %v141_v10 = vsel %vm126_vm3, 0.0, %v108_v1  ;;  %v54_v11 = vld [vmem:[%s12535_s0 + $0x48] sm:$0xff]  ;;  %v156_v13 = vsel %vm126_vm3, %v107_v0, 0.0 }
  0x1f   :  { %166 = vst.msk [vmem:[#allocation2 + $0x28] sm:$0x3] %vm161_vm2, %v144_v63  ;;  %v157_v14 = vsel %vm126_vm3, %v108_v1, 0.0  ;;  %v105_v15 = vrot.slane %v73_v4, 7  ;;  %v74_v22 = vsel %vm61_vm0, %v57_v6, 0.0  ;;  %v55_v24 = vld [vmem:[%s12535_s0 + $0x50] sm:$0xff] }
  0x20   :  { %167 = vst.msk [vmem:[#allocation2 + $0x30] sm:$0xff] %vm159_vm1, %v129_v2  ;;  %v8022_v27 = vld [vmem:[#allocation2 + $0xa0] sm:$0xff]  ;;  %v71_v29 = vsel %vm61_vm0, %v54_v11, 0.0  ;;  %v8028_v34 = vld [vmem:[#allocation2 + $0xa8] sm:$0x3]  ;;  %v106_v40 = vrot.slane %v74_v22, 7 }
  0x21   :  { %v8005_v12 = vld [vmem:[#allocation2 + $0x60] sm:$0xff]  ;;  %168 = vst.msk [vmem:[#allocation2 + $0x38] sm:$0x3] %vm161_vm2, %v145_v3  ;;  %v138_v41 = vsel %vm126_vm3, 0.0, %v105_v15  ;;  %v72_v46 = vsel %vm61_vm0, %v55_v24, 0.0  ;;  %v103_v47 = vrot.slane %v71_v29, 7 }
  0x22   :  { %v8010_v18 = vld [vmem:[#allocation2 + $0x68] sm:$0x3]  ;;  %v292_v20 = vrot.slane %v8005_v12, 1  ;;  %183 = vst.msk [vmem:[#allocation2 + $0xb0] sm:$0xff] %vm159_vm1, %v135_v5  ;;  %v298_v51 = vrot.slane %v8022_v27, 1  ;;  %v299_v52 = vrot.slane %v8028_v34, 1 }
  0x23   :  { %v8018_v25 = vld [vmem:[#allocation2 + $0x70] sm:$0xff]  ;;  %v293_v26 = vrot.slane %v8010_v18, 1  ;;  %184 = vst.msk [vmem:[#allocation2 + $0xb8] sm:$0x3] %vm161_vm2, %v151_v7  ;;  %v154_v56 = vsel %vm126_vm3, %v105_v15, 0.0  ;;  %v139_v60 = vsel %vm126_vm3, 0.0, %v106_v40 }
  0x24   :  { %v8025_v30 = vld [vmem:[#allocation2 + $0x78] sm:$0x3]  ;;  %v295_v32 = vrot.slane %v8018_v25, 1  ;;  %2191 = vst.msk [vmem:[#allocation2 + $0xa0] sm:$0xff] %vm159_vm1, %v12549_v8  ;;  %v104_v61 = vrot.slane %v72_v46, 7  ;;  %v155_v0 = vsel %vm126_vm3, %v106_v40, 0.0  ;;  %v300_v2 = vsel %vm273_vm4, %v298_v51, %v299_v52 }
  0x25   :  { %v8033_v35 = vsel %vm273_vm4, %v292_v20, %v293_v26  ;;  %v296_v37 = vrot.slane %v8025_v30, 1  ;;  %v8036_v38 = vld [vmem:[#allocation2 + $0x20] sm:$0xff]  ;;  %2192 = vst.msk [vmem:[#allocation2 + $0xa8] sm:$0x3] %vm161_vm2, %v12549_v8  ;;  %v136_v4 = vsel %vm126_vm3, 0.0, %v103_v47  ;;  %v152_v6 = vsel %vm126_vm3, %v103_v47, 0.0 }
  0x26   :  { %12636 = vst [vmem:[#allocation7_spill] sm:$0xff] %v8033_v35  ;;  %v8041_v42 = vld [vmem:[#allocation2 + $0x28] sm:$0x3]  ;;  %v280_v44 = vrot.slane %v8036_v38, 1  ;;  %v153_v15 = vsel %vm126_vm3, %v104_v61, 0.0  ;;  %v52_v20 = vld [vmem:[%s12535_s0 + $0x38] sm:$0xff] }
  0x27   :  { %193 = vst.msk [vmem:[#allocation2 + $0x100] sm:$0xff] %vm159_vm1, %v140_v9  ;;  %v8047_v48 = vsel %vm273_vm4, %v295_v32, %v296_v37  ;;  %v8049_v49 = vld [vmem:[#allocation2 + $0x30] sm:$0xff]  ;;  %v281_v50 = vrot.slane %v8041_v42, 1  ;;  %v335_v26 = vrot.slane %v7885_v19, 2  ;;  %v336_v29 = vrot.slane %v7892_v21, 2  ;;  %s7771_s22 = smov 64  }
  0x28   :  { %12637 = vst [vmem:[#allocation8_spill] sm:$0xff] %v8047_v48  ;;  %v8057_v53 = vpack.i.bf16 %v8047_v48, %v8033_v35  ;;  %v8059_v54 = vld [vmem:[#allocation2 + $0x38] sm:$0x3]  ;;  %v283_v55 = vrot.slane %v8049_v49, 1  ;;  %v338_v40 = vrot.slane %v7897_v23, 2  ;;  %vm322_vm5 = vcmask 1045504  }
  0x29   :  { %194 = vst.msk [vmem:[#allocation2 + $0x108] sm:$0x3] %vm161_vm2, %v156_v13  ;;  %v8065_v57 = vsel %vm273_vm4, %v280_v44, %v281_v50  ;;  %v284_v58 = vrot.slane %v8059_v54, 1  ;;  %v8068_v59 = vld [vmem:[#allocation2 + $0xb0] sm:$0xff]  ;;  %v8131_v21 = vsel %vm61_vm0, %v52_v20, 0.0  ;;  %v333_v20 = vrot.slane %v8059_v54, 2 }
  0x2a   :  { %195 = vst.msk [vmem:[#allocation2 + $0x110] sm:$0xff] %vm159_vm1, %v141_v10  ;;  %6309 = vrot.lane.b32.xlu1 %v8057_v53, %s7770_s26  ;;  %v8074_v62 = vld [vmem:[#allocation2 + $0xb8] sm:$0x3]  ;;  %v301_v63 = vrot.slane %v8068_v59, 1  ;;  %v137_v10 = vsel %vm126_vm3, 0.0, %v104_v61  ;;  %v12551_v52 = vrot.slane %v8131_v21, 7 }
  0x2b   :  { %196 = vst.msk [vmem:[#allocation2 + $0x118] sm:$0x3] %vm161_vm2, %v157_v14  ;;  %v8080_v1 = vsel %vm273_vm4, %v283_v55, %v284_v58  ;;  %v302_v3 = vrot.slane %v8074_v62, 1  ;;  %v323_v54 = vrot.slane %v7876_v16, 2  ;;  %vm723_vm6 = vcmask 523264   ;;  %s7774_s19 = smov 128  }
  0x2c   :  { %189 = vst.msk [vmem:[#allocation2 + $0xe0] sm:$0xff] %vm159_vm1, %v138_v41  ;;  %v8088_v5 = vpack.i.bf16 %v8080_v1, %v8065_v57  ;;  %v339_v41 = vrot.slane %v7905_v28, 2  ;;  %vm740_vm7 = vcmask 785408   ;;  %vm6119_vm8 = vcmask 130048   ;;  %s7775_s20 = smov 8  }
  0x2d   :  { %190 = vst.msk [vmem:[#allocation2 + $0xe8] sm:$0x3] %vm161_vm2, %v154_v56  ;;  %v8093_v7 = vsel %vm273_vm4, %v301_v63, %v302_v3  ;;  %v8151_v63 = vsel %vm322_vm5, %v335_v26, %v336_v29 }
  0x2e   :  { %191 = vst.msk [vmem:[#allocation2 + $0xf0] sm:$0xff] %vm159_vm1, %v139_v60  ;;  %v8095_v9 = vld [vmem:[#allocation2 + $0x100] sm:$0xff]  ;;  %6299 = vrot.lane.b32.xlu0 %v8088_v5, %s7770_s26  ;;  %v6313_v11 = vpack.i.bf16 %v8093_v7, %v300_v2 }
  0x2f   :  { %12638 = vst [vmem:[#allocation9_spill] sm:$0xff] %v8093_v7  ;;  %v316_v14 = vrot.slane %v8095_v9, 1 }
  0x30   :  { %192 = vst.msk [vmem:[#allocation2 + $0xf8] sm:$0x3] %vm161_vm2, %v155_v0  ;;  %v8102_v13 = vld [vmem:[#allocation2 + $0x108] sm:$0x3]  ;;  %6314 = vrot.lane.b32.xlu2 %v6313_v11, %s7770_s26  ;;  %v8154_v0 = vsel %vm322_vm5, %v338_v40, %v339_v41 }
  0x31   :  { %185 = vst.msk [vmem:[#allocation2 + $0xc0] sm:$0xff] %vm159_vm1, %v136_v4  ;;  %v8110_v22 = vld [vmem:[#allocation2 + $0x110] sm:$0xff]  ;;  %v317_v24 = vrot.slane %v8102_v13, 1 }
  0x32   :  { %186 = vst.msk [vmem:[#allocation2 + $0xc8] sm:$0x3] %vm161_vm2, %v152_v6  ;;  %v8117_v32 = vld [vmem:[#allocation2 + $0x118] sm:$0x3]  ;;  %v319_v37 = vrot.slane %v8110_v22, 1  ;;  %v329_v6 = vrot.slane %v8036_v38, 2 }
  0x33   :  { %187 = vst.msk [vmem:[#allocation2 + $0xd0] sm:$0xff] %vm159_vm1, %v137_v10  ;;  %v8124_v44 = vsel %vm273_vm4, %v316_v14, %v317_v24  ;;  %v320_v46 = vrot.slane %v8117_v32, 1  ;;  %v8127_v47 = vld [vmem:[#allocation2 + $0xe0] sm:$0xff]  ;;  %v330_v10 = vrot.slane %v8041_v42, 2  ;;  %v134_v24 = vsel %vm126_vm3, 0.0, %v12551_v52 }
  0x34   :  { %12639 = vst [vmem:[#allocation10_spill] sm:$0xff] %v8124_v44  ;;  %v8133_v50 = vld [vmem:[#allocation2 + $0xe8] sm:$0x3]  ;;  %v310_v51 = vrot.slane %v8127_v47, 1 }
  0x35   :  { %188 = vst.msk [vmem:[#allocation2 + $0xd8] sm:$0x3] %vm161_vm2, %v153_v15  ;;  %v8138_v28 = vsel %vm273_vm4, %v319_v37, %v320_v46  ;;  %v8140_v55 = vld [vmem:[#allocation2 + $0xf0] sm:$0xff]  ;;  %v311_v56 = vrot.slane %v8133_v50, 1  ;;  %v332_v15 = vrot.slane %v8049_v49, 2  ;;  %v324_v46 = vrot.slane %v7878_v17, 2 }
  0x36   :  { %12640 = vst [vmem:[#allocation11_spill] sm:$0xff] %v8138_v28  ;;  %v8145_v58 = vpack.i.bf16 %v8138_v28, %v8124_v44  ;;  %v313_v61 = vrot.slane %v8140_v55, 1  ;;  %v327_v17 = vrot.slane %v7925_v36, 2 }
  0x37   :  { %v8147_v60 = vld [vmem:[#allocation2 + $0xf8] sm:$0x3]  ;;  %v8157_v2 = vsel %vm273_vm4, %v310_v51, %v311_v56  ;;  %177 = vst.msk [vmem:[#allocation2 + $0x80] sm:$0xff] %vm159_vm1, %v134_v24  ;;  %v8194_v24 = vsel %vm322_vm5, %v329_v6, %v330_v10  ;;  %v8197_v8 = vsel %vm322_vm5, %v332_v15, %v333_v20  ;;  %v325_v6 = vsel %vm322_vm5, %v323_v54, %v324_v46 }
  0x38   :  { %12641 = vst [vmem:[#allocation12_spill] sm:$0xff] %v8157_v2  ;;  %v314_v3 = vrot.slane %v8147_v60, 1  ;;  %v8160_v4 = vld [vmem:[#allocation2 + $0xc0] sm:$0xff]  ;;  %6329 = vrot.lane.b32.xlu1 %v8145_v58, %s7770_s26  ;;  %v6338_v36 = vpack.i.bf16 %v8197_v8, %v8194_v24  ;;  %v348_v15 = vrot.slane %v8028_v34, 2  ;;  %v351_v54 = vrot.slane %v8074_v62, 2  ;;  %v60_v46 = vld [vmem:[%s12535_s0 + $0x78] sm:$0xff] }
  0x39   :  { %v226_v11 = vld [vmem:[#allocation2 + $0xc8] sm:$0x3]  ;;  %v304_v14 = vrot.slane %v8160_v4, 1  ;;  %v342_v62 = vrot.slane %v8010_v18, 2  ;;  %v365_v18 = vrot.slane %v8095_v9, 2  ;;  %s7772_s0 = smov 96  }
  0x3a   :  { %v8173_v26 = vsel %vm273_vm4, %v313_v61, %v314_v3  ;;  %v8175_v29 = vld [vmem:[#allocation2 + $0xd0] sm:$0xff]  ;;  %v305_v42 = vrot.slane %v226_v11, 1  ;;  %v6343_v61 = vpack.i.bf16 %v8154_v0, %v8151_v63  ;;  %v326_v3 = vrot.slane %v7915_v33, 2 }
  0x3b   :  { %12642 = vst [vmem:[#allocation13_spill] sm:$0xff] %v8173_v26  ;;  %v8180_v37 = vpack.i.bf16 %v8173_v26, %v8157_v2  ;;  %v307_v41 = vrot.slane %v8175_v29, 1  ;;  %v354_v52 = vrot.slane %v226_v11, 2  ;;  %v356_v28 = vrot.slane %v8175_v29, 2 }
  0x3c   :  { %v228_v40 = vld [vmem:[#allocation2 + $0xd8] sm:$0x3]  ;;  %v8186_v51 = vsel %vm273_vm4, %v304_v14, %v305_v42  ;;  %v353_v14 = vrot.slane %v8160_v4, 2  ;;  %v8216_v10 = vsel %vm322_vm5, %v326_v3, %v327_v17  ;;  %v347_v11 = vrot.slane %v8022_v27, 2 }
  0x3d   :  { %12643 = vst [vmem:[#allocation14_spill] sm:$0xff] %v8186_v51  ;;  %v308_v56 = vrot.slane %v228_v40, 1  ;;  %6324 = vrot.lane.b32.xlu0 %v8180_v37, %s7770_s26  ;;  %v357_v44 = vrot.slane %v228_v40, 2  ;;  %v344_v17 = vrot.slane %v8018_v25, 2 }
  0x3e   :  { %v8221_v20 = vsel %vm322_vm5, %v353_v14, %v354_v52  ;;  %v341_v52 = vrot.slane %v8005_v12, 2  ;;  %v345_v14 = vrot.slane %v8025_v30, 2  ;;  %v368_v30 = vrot.slane %v8110_v22, 2 }
  0x3f   :  { %v8202_v42 = vsel %vm273_vm4, %v307_v41, %v308_v56  ;;  %12645 = vst [vmem:[#allocation16_spill] sm:$0xff] %v8221_v20  ;;  %v8224_v40 = vsel %vm322_vm5, %v356_v28, %v357_v44  ;;  %v350_v41 = vrot.slane %v8068_v59, 2  ;;  %v77_v56 = vsel %vm61_vm0, %v60_v46, 0.0 }
  0x40   :  { %12644 = vst [vmem:[#allocation15_spill] sm:$0xff] %v8202_v42  ;;  %v8207_v26 = vpack.i.bf16 %v8202_v42, %v8186_v51  ;;  %6344 = vrot.lane.b32.xlu1 %v6343_v61, %s7771_s22  ;;  %v6333_v61 = vpack.i.bf16 %v8216_v10, %v325_v6  ;;  %v109_v3 = vrot.slane %v77_v56, 7  ;;  %v6358_v34 = vpack.i.bf16 %v8224_v40, %v8221_v20 }
  0x41   :  { %12646 = vst [vmem:[#allocation17_spill] sm:$0xff] %v8224_v40  ;;  %v349_v44 = vsel %vm322_vm5, %v347_v11, %v348_v15  ;;  %v8240_v28 = vsel %vm322_vm5, %v350_v41, %v351_v54  ;;  %v8250_v11 = vsel %vm322_vm5, %v341_v52, %v342_v62  ;;  %v366_v15 = vrot.slane %v8102_v13, 2 }
  0x42   :  { %6319 = vrot.lane.b32.xlu2 %v8207_v26, %s7770_s26  ;;  %v142_v6 = vsel %vm126_vm3, 0.0, %v109_v3  ;;  %v8255_v41 = vsel %vm322_vm5, %v344_v17, %v345_v14  ;;  %v369_v54 = vrot.slane %v8117_v32, 2  ;;  %v12647_v46 = vrot.slane %v8131_v21, 7 }
  0x43   :  { %197 = vst.msk [vmem:[#allocation2 + $0x120] sm:$0xff] %vm159_vm1, %v142_v6  ;;  %v6373_v13 = vpack.i.bf16 %v8036_v38, %v7915_v33  ;;  %v360_v21 = vrot.slane %v8133_v50, 2  ;;  %v362_v52 = vrot.slane %v8140_v55, 2  ;;  %v363_v62 = vrot.slane %v8147_v60, 2 }
  0x44   :  { %v150_v56 = vsel %vm126_vm3, %v12647_v46, 0.0  ;;  %v8273_v32 = vsel %vm322_vm5, %v368_v30, %v369_v54  ;;  %v158_v50 = vsel %vm126_vm3, %v109_v3, 0.0  ;;  %v6378_v3 = vpack.i.bf16 %v7885_v19, %v8049_v49 }
  0x45   :  { %6339 = vrot.lane.b32.xlu0 %v6338_v36, %s7771_s22  ;;  %v6353_v36 = vpack.i.bf16 %v8240_v28, %v349_v44  ;;  %178 = vst.msk [vmem:[#allocation2 + $0x88] sm:$0x3] %vm161_vm2, %v150_v56  ;;  %v359_v44 = vrot.slane %v8127_v47, 2  ;;  %v8286_v6 = vsel %vm322_vm5, %v362_v52, %v363_v62  ;;  %v6403_v30 = vpack.i.bf16 %v8095_v9, %v8140_v55 }
  0x46   :  { %198 = vst.msk [vmem:[#allocation2 + $0x128] sm:$0x3] %vm161_vm2, %v158_v50  ;;  %v6398_v54 = vpack.i.bf16 %v8127_v47, %v8175_v29  ;;  %v6393_v46 = vpack.i.bf16 %v8160_v4, %v8068_v59  ;;  %v6418_v56 = vpack.i.bf16 %v8151_v63, %v8197_v8  ;;  %v6433_v50 = vpack.i.bf16 %v8221_v20, %v8240_v28  ;;  %v8345_v28 = vld [vmem:[#allocation2 + $0x130] sm:$0xff] }
  0x47   :  { %v8283_v14 = vsel %vm322_vm5, %v359_v44, %v360_v21  ;;  %12649 = vst [vmem:[#allocation18_spill] sm:$0xff] %v8345_v28 }
  0x48   :  { %6359 = vrot.lane.b32.xlu1 %v6358_v34, %s7771_s22  ;;  %v8269_v34 = vsel %vm322_vm5, %v365_v18, %v366_v15  ;;  %v6363_v60 = vpack.i.bf16 %v8286_v6, %v8283_v14  ;;  %v6383_v15 = vpack.i.bf16 %v8005_v12, %v7897_v23 }
  0x49   :  { %v6368_v17 = vpack.i.bf16 %v8273_v32, %v8269_v34 }
  0x4a   :  { %6334 = vrot.lane.b32.xlu2 %v6333_v61, %s7771_s22  ;;  %v6348_v61 = vpack.i.bf16 %v8255_v41, %v8250_v11  ;;  %v8321_v44 = vld [vmem:[#allocation2 + $0x120] sm:$0xff] }
  0x4d   :  { %6354 = vrot.lane.b32.xlu0 %v6353_v36, %s7771_s22  ;;  %v8288_v36 = vld [vmem:[#allocation2 + $0x80] sm:$0xff]  ;;  %v8325_v62 = vld [vmem:[#allocation2 + $0x128] sm:$0x3] }
  0x4e   :  { %v6388_v18 = vpack.i.bf16 %v8288_v36, %v8018_v25  ;;  %v397_v21 = vrot.slane %v8288_v36, 2 }
  0x50   :  { %6374 = vrot.lane.b32.xlu1 %v6373_v13, %s7772_s0  ;;  %v6413_v13 = vpack.i.bf16 %v8194_v24, %v8216_v10 }
  0x52   :  { %6349 = vrot.lane.b32.xlu2 %v6348_v61, %s7771_s22  ;;  %v8315_v61 = vld [vmem:[#allocation2 + $0x88] sm:$0x3] }
  0x53   :  { %v398_v52 = vrot.slane %v8315_v61, 2 }
  0x55   :  { %6369 = vrot.lane.b32.xlu0 %v6368_v17, %s7771_s22  ;;  %v6408_v17 = vpack.i.bf16 %v8321_v44, %v8110_v22  ;;  %v8335_v10 = vsel %vm322_vm5, %v397_v21, %v398_v52  ;;  %v8361_v21 = vld [vmem:[#allocation2 + $0x98] sm:$0x3]  ;;  %v6438_v52 = vpack.i.bf16 %v8283_v14, %v8224_v40 }
  0x58   :  { %6389 = vrot.lane.b32.xlu1 %v6388_v18, %s7772_s0  ;;  %v400_v18 = vrot.slane %v8321_v44, 2 }
  0x5a   :  { %6364 = vrot.lane.b32.xlu2 %v6363_v60, %s7771_s22  ;;  %v8332_v60 = vld [vmem:[#allocation2 + $0x90] sm:$0xff] }
  0x5d   :  { %6384 = vrot.lane.b32.xlu0 %v6383_v15, %s7772_s0  ;;  %v401_v15 = vrot.slane %v8325_v62, 2 }
  0x60   :  { %6404 = vrot.lane.b32.xlu1 %v6403_v30, %s7772_s0  ;;  %v6428_v30 = vpack.i.bf16 %v8335_v10, %v8255_v41 }
  0x62   :  { %6379 = vrot.lane.b32.xlu2 %v6378_v3, %s7772_s0  ;;  %v12648_v3 = vmov 0.0  }
  0x63   :  { %2189 = vst.msk [vmem:[#allocation2 + $0x90] sm:$0xff] %vm159_vm1, %v12648_v3 }
  0x64   :  { %2209 = vst.msk [vmem:[#allocation2 + $0x130] sm:$0xff] %vm159_vm1, %v12648_v3 }
  0x65   :  { %6399 = vrot.lane.b32.xlu0 %v6398_v54, %s7772_s0  ;;  %v8348_v54 = vsel %vm322_vm5, %v400_v18, %v401_v15  ;;  %2190 = vst.msk [vmem:[#allocation2 + $0x98] sm:$0x3] %vm161_vm2, %v12648_v3  ;;  %v820_v18 = vld [vmem:[%s12536_s1 + $0x78] sm:$0xff]  ;;  %v6453_v15 = vpack.i.bf16 %v8049_v49, %v8036_v38 }
  0x66   :  { %6250 = vmatpush.msra.mxu1 %v820_v18  ;;  %877 = vmatpush.msra.mxu0 %v820_v18  ;;  %v376_v18 = vrot.slane %v8315_v61, 1  ;;  %v815_v61 = vld [vmem:[%s12536_s1 + $0x50] sm:$0xff] }
  0x68   :  { %6419 = vrot.lane.b32.xlu1 %v6418_v56, %s7770_s26  ;;  %v6448_v56 = vpack.i.bf16 %v8348_v54, %v8273_v32 }
  0x6a   :  { %6394 = vrot.lane.b32.xlu2 %v6393_v46, %s7772_s0  ;;  %v6423_v46 = vpack.i.bf16 %v8250_v11, %v8154_v0 }
  0x6d   :  { %6414 = vrot.lane.b32.xlu0 %v6413_v13, %s7770_s26  ;;  %v6443_v13 = vpack.i.bf16 %v8269_v34, %v8286_v6 }
  0x70   :  { %6434 = vrot.lane.b32.xlu1 %v6433_v50, %s7770_s26  ;;  %v6458_v50 = vpack.i.bf16 %v7897_v23, %v7885_v19  ;;  %v6473_v19 = vpack.i.bf16 %v8175_v29, %v8160_v4  ;;  %v819_v23 = vld [vmem:[%s12536_s1 + $0x70] sm:$0xff] }
  0x71   :  { %6251 = vmatpush.msra.mxu1 %v819_v23  ;;  %878 = vmatpush.msra.mxu0 %v819_v23 }
  0x72   :  { %6409 = vrot.lane.b32.xlu2 %v6408_v17, %s7772_s0  ;;  %v6463_v17 = vpack.i.bf16 %v8018_v25, %v8005_v12 }
  0x75   :  { %6429 = vrot.lane.b32.xlu0 %v6428_v30, %s7770_s26  ;;  %v6478_v30 = vpack.i.bf16 %v8140_v55, %v8127_v47 }
  0x78   :  { %6449 = vrot.lane.b32.xlu1 %v6448_v56, %s7770_s26  ;;  %v817_v56 = vld [vmem:[%s12536_s1 + $0x60] sm:$0xff] }
  0x7a   :  { %6424 = vrot.lane.b32.xlu2 %v6423_v46, %s7770_s26  ;;  %v818_v46 = vld [vmem:[%s12536_s1 + $0x68] sm:$0xff] }
  0x7b   :  { %6252 = vmatpush.msra.mxu1 %v818_v46  ;;  %879 = vmatpush.msra.mxu0 %v818_v46 }
  0x7d   :  { %6444 = vrot.lane.b32.xlu0 %v6443_v13, %s7770_s26  ;;  %v8395_v13 = vld [vmem:[#allocation2 + $0x138] sm:$0x3]  ;;  %6253 = vmatpush.msra.mxu1 %v817_v56 }
  0x7e   :  { %12650 = vst [vmem:[#allocation19_spill] sm:$0xff] %v8395_v13  ;;  %880 = vmatpush.msra.mxu0 %v817_v56  ;;  %v814_v56 = vld [vmem:[%s12536_s1 + $0x48] sm:$0xff] }
  0x7f   :  { %2210 = vst.msk [vmem:[#allocation2 + $0x138] sm:$0x3] %vm161_vm2, %v12648_v3 }
  0x80   :  { %6464 = vrot.lane.b32.xlu1 %v6463_v17, %s7771_s22  ;;  %v816_v17 = vld [vmem:[%s12536_s1 + $0x58] sm:$0xff] }
  0x81   :  { %6254 = vmatpush.msra.mxu1 %v816_v17  ;;  %881 = vmatpush.msra.mxu0 %v816_v17 }
  0x82   :  { %6439 = vrot.lane.b32.xlu2 %v6438_v52, %s7770_s26  ;;  %v6468_v52 = vpack.i.bf16 %v8332_v60, %v8288_v36 }
  0x83   :  { %6255 = vmatpush.msra.mxu1 %v815_v61  ;;  %882 = vmatpush.msra.mxu0 %v815_v61  ;;  %v810_v61 = vld [vmem:[%s12536_s1 + $0x28] sm:$0xff] }
  0x85   :  { %6459 = vrot.lane.b32.xlu0 %v6458_v50, %s7771_s22  ;;  %v375_v50 = vrot.slane %v8288_v36, 1  ;;  %v6488_v36 = vpack.i.bf16 %v8345_v28, %v8321_v44  ;;  %6256 = vmatpush.msra.mxu1 %v814_v56 }
  0x86   :  { %883 = vmatpush.msra.mxu0 %v814_v56  ;;  %v808_v56 = vld [vmem:[%s12536_s1 + $0x18] sm:$0xff] }
  0x87   :  { %v8420_v23 = vsel %vm273_vm4, %v375_v50, %v376_v18  ;;  %v812_v50 = vld [vmem:[%s12536_s1 + $0x38] sm:$0xff] }
  0x88   :  { %6479 = vrot.lane.b32.xlu1 %v6478_v30, %s7771_s22  ;;  %v408_v30 = vrot.slane %v8361_v21, 1  ;;  %12651 = vst [vmem:[#allocation20_spill] sm:$0xff] %v8420_v23  ;;  %v8436_v18 = vpop.permute.xlu1 %6304 }
  0x8a   :  { %6454 = vrot.lane.b32.xlu2 %v6453_v15, %s7771_s22  ;;  %v407_v15 = vrot.slane %v8332_v60, 1 }
  0x8c   :  { %v409_v46 = vsel %vm273_vm4, %v407_v15, %v408_v30  ;;  %v811_v15 = vld [vmem:[%s12536_s1 + $0x30] sm:$0xff] }
  0x8d   :  { %6474 = vrot.lane.b32.xlu0 %v6473_v19, %s7771_s22  ;;  %v8410_v19 = vpop.permute.xlu2 %6314  ;;  %v6508_v17 = vpack.i.bf16 %v409_v46, %v8420_v23  ;;  %v809_v46 = vld [vmem:[%s12536_s1 + $0x20] sm:$0xff] }
  0x8e   :  { %v6316_v3 = vunpack.i.l.bf16 %v8410_v19 }
  0x90   :  { %6494 = vrot.lane.b32.xlu1 %v8088_v5, %s7772_s0  ;;  %v813_v5 = vld [vmem:[%s12536_s1 + $0x40] sm:$0xff] }
  0x91   :  { %6257 = vmatpush.msra.mxu1 %v813_v5  ;;  %884 = vmatpush.msra.mxu0 %v813_v5  ;;  %v807_v5 = vld [vmem:[%s12536_s1 + $0x10] sm:$0xff] }
  0x92   :  { %6469 = vrot.lane.b32.xlu2 %v6468_v52, %s7771_s22  ;;  %v6483_v52 = vpack.i.bf16 %v8110_v22, %v8095_v9 }
  0x93   :  { %6258 = vmatpush.msra.mxu1 %v812_v50  ;;  %885 = vmatpush.msra.mxu0 %v812_v50  ;;  %v805_v50 = vld [vmem:[%s12536_s1] sm:$0xff] }
  0x95   :  { %6489 = vrot.lane.b32.xlu0 %v6488_v36, %s7771_s22  ;;  %6259 = vmatpush.msra.mxu1 %v811_v15  ;;  %v8445_v36 = vpop.permute.xlu0 %6294 }
  0x96   :  { %886 = vmatpush.msra.mxu0 %v811_v15  ;;  %v379_v15 = vrot.slane %v8325_v62, 1 }
  0x97   :  { %6260 = vmatpush.msra.mxu1 %v810_v61 }
  0x98   :  { %6509 = vrot.lane.b32.xlu1 %v6508_v17, %s7772_s0  ;;  %887 = vmatpush.msra.mxu0 %v810_v61  ;;  %v806_v17 = vld [vmem:[%s12536_s1 + $0x8] sm:$0xff]  ;;  %v410_v61 = vrot.slane %v8345_v28, 1  ;;  %v715_v28 = vsel %vm159_vm1, %v8022_v27, %v6316_v3  ;;  %v829_v27 = vld [vmem:[%s12536_s1 + $0xc0] sm:$0xff]  ;;  %v6297_v3 = vunpack.i.h.bf16 %v8445_v36 }
  0x99   :  { %6261 = vmatpush.msra.mxu1 %v809_v46 }
  0x9a   :  { %6484 = vrot.lane.b32.xlu2 %v6483_v52, %s7771_s22  ;;  %888 = vmatpush.msra.mxu0 %v809_v46  ;;  %v411_v46 = vrot.slane %v8395_v13, 1 }
  0x9b   :  { %6262 = vmatpush.msra.mxu1 %v808_v56 }
  0x9c   :  { %v8443_v30 = vpop.permute.xlu2 %6319  ;;  %889 = vmatpush.msra.mxu0 %v808_v56  ;;  %v8465_v52 = vpop.permute.xlu1 %6309 }
  0x9d   :  { %6504 = vrot.lane.b32.xlu0 %v8057_v53, %s7772_s0  ;;  %6263 = vmatpush.msra.mxu1 %v807_v5 }
  0x9e   :  { %890 = vmatpush.msra.mxu0 %v807_v5 }
  0x9f   :  { %6264 = vmatpush.msra.mxu1 %v806_v17 }
  0xa0   :  { %6524 = vrot.lane.b32.xlu1 %v8145_v58, %s7772_s0  ;;  %891 = vmatpush.msra.mxu0 %v806_v17  ;;  %v378_v58 = vrot.slane %v8321_v44, 1  ;;  %v836_v44 = vld [vmem:[%s12536_s1 + $0xf8] sm:$0xff] }
  0xa1   :  { %6265 = vmatpush.msra.mxu1 %v805_v50 }
  0xa2   :  { %6499 = vrot.lane.b32.xlu2 %v7939_v43, %s7772_s0  ;;  %v8477_v43 = vpop.permute.xlu0 %6299  ;;  %892 = vmatpush.msra.mxu0 %v805_v50  ;;  %v8486_v56 = vsel %vm273_vm4, %v378_v58, %v379_v15 }
  0xa3   :  { %12652 = vst [vmem:[#allocation21_spill] sm:$0xff] %v8486_v56  ;;  %942 = vmatpush.msrb.mxu1 %v836_v44 }
  0xa4   :  { %v8467_v53 = vpop.permute.xlu2 %6334 }
  0xa5   :  { %6519 = vrot.lane.b32.xlu0 %v8180_v37, %s7772_s0  ;;  %v412_v37 = vsel %vm273_vm4, %v410_v61, %v411_v46  ;;  %v834_v61 = vld [vmem:[%s12536_s1 + $0xe8] sm:$0xff]  ;;  %v833_v46 = vld [vmem:[%s12536_s1 + $0xe0] sm:$0xff]  ;;  %v6336_v13 = vunpack.i.l.bf16 %v8467_v53 }
  0xa6   :  { %v6528_v62 = vpack.i.bf16 %v412_v37, %v8486_v56  ;;  %v831_v56 = vld [vmem:[%s12536_s1 + $0xd0] sm:$0xff] }
  0xaa   :  { %6514 = vrot.lane.b32.xlu2 %v8207_v26, %s7772_s0  ;;  %v8491_v17 = vpop.permute.xlu1 %6329  ;;  %v835_v26 = vld [vmem:[%s12536_s1 + $0xf0] sm:$0xff] }
  0xab   :  { %943 = vmatpush.msrb.mxu1 %v835_v26 }
  0xac   :  { %v8489_v5 = vpop.permute.xlu2 %6349 }
  0xad   :  { %944 = vmatpush.msrb.mxu1 %v834_v61  ;;  %v6296_v61 = vunpack.i.l.bf16 %v8445_v36 }
  0xaf   :  { %v8497_v50 = vpop.permute.xlu0 %6324  ;;  %945 = vmatpush.msrb.mxu1 %v833_v46  ;;  %v707_v42 = vsel %vm159_vm1, %v7876_v16, %v6296_v61  ;;  %v6317_v16 = vunpack.i.h.bf16 %v8410_v19  ;;  %v708_v19 = vsel %vm159_vm1, %v7915_v33, %v6297_v3  ;;  %v6321_v3 = vunpack.i.l.bf16 %v8443_v30 }
  0xb0   :  { %v724_v40 = vsel %vm723_vm6, %v707_v42, %v6336_v13  ;;  %v6337_v42 = vunpack.i.h.bf16 %v8467_v53 }
  0xb1   :  { %v716_v20 = vsel %vm159_vm1, %v8068_v59, %v6317_v16  ;;  %v6301_v59 = vunpack.i.l.bf16 %v8477_v43 }
  0xb2   :  { %6529 = vrot.lane.b32.xlu2 %v6528_v62, %s7772_s0  ;;  %v8505_v15 = vpop.permute.xlu1 %6344  ;;  %v832_v62 = vld [vmem:[%s12536_s1 + $0xd8] sm:$0xff] }
  0xb3   :  { %946 = vmatpush.msrb.mxu1 %v832_v62 }
  0xb4   :  { %v8503_v58 = vpop.permute.xlu2 %6364 }
  0xb5   :  { %947 = vmatpush.msrb.mxu1 %v831_v56  ;;  %v830_v56 = vld [vmem:[%s12536_s1 + $0xc8] sm:$0xff] }
  0xb7   :  { %v8513_v37 = vpop.permute.xlu0 %6339  ;;  %948 = vmatpush.msrb.mxu1 %v830_v56 }
  0xb9   :  { %949 = vmatpush.msrb.mxu1 %v829_v27 }
  0xba   :  { %v8517_v26 = vpop.permute.xlu1 %6359 }
  0xbc   :  { %v8515_v44 = vpop.permute.xlu2 %6379 }
  0xbd   :  { %v6381_v53 = vunpack.i.l.bf16 %v8515_v44 }
  0xbf   :  { %v6355_v2 = vpop.permute.xlu0 %6354 }
  0xc0   :  { %v6356_v46 = vunpack.i.l.bf16 %v6355_v2 }
  0xc2   :  { %v732_v7 = vsel %vm723_vm6, %v715_v28, %v6356_v46  ;;  %v6375_v62 = vpop.permute.xlu1 %6374  ;;  %v6357_v46 = vunpack.i.h.bf16 %v6355_v2  ;;  %v725_v2 = vsel %vm723_vm6, %v708_v19, %v6337_v42  ;;  %v6302_v42 = vunpack.i.h.bf16 %v8477_v43 }
  0xc3   :  { %v6376_v48 = vunpack.i.l.bf16 %v6375_v62  ;;  %v6377_v56 = vunpack.i.h.bf16 %v6375_v62  ;;  %v709_v62 = vsel %vm159_vm1, %v8036_v38, %v6301_v59 }
  0xc4   :  { %v6395_v51 = vpop.permute.xlu2 %6394  ;;  %v710_v43 = vsel %vm159_vm1, %v8049_v49, %v6302_v42 }
  0xc5   :  { %v6396_v23 = vunpack.i.l.bf16 %v6395_v51  ;;  %v741_v61 = vsel %vm740_vm7, %v724_v40, %v6376_v48  ;;  %v6397_v13 = vunpack.i.h.bf16 %v6395_v51  ;;  %v828_v48 = vld [vmem:[%s12536_s1 + $0xb8] sm:$0xff]  ;;  %v827_v51 = vld [vmem:[%s12536_s1 + $0xb0] sm:$0xff]  ;;  %v742_v33 = vsel %vm740_vm7, %v725_v2, %v6377_v56 }
  0xc6   :  { %893 = vmatmul.f32.vlgmr.msra.gmra.mxu0 %v741_v61  ;;  %950 = vmatpush.msrb.mxu1 %v828_v48  ;;  %v825_v61 = vld [vmem:[%s12536_s1 + $0xa0] sm:$0xff]  ;;  %v717_v48 = vsel %vm159_vm1, %v8160_v4, %v6321_v3  ;;  %v824_v4 = vld [vmem:[%s12536_s1 + $0x98] sm:$0xff]  ;;  %v6346_v3 = vunpack.i.l.bf16 %v8505_v15 }
  0xc7   :  { %v749_v28 = vsel %vm740_vm7, %v732_v7, %v6396_v23  ;;  %v8544_v35 = vpop.permute.xlu0 %6369  ;;  %v733_v7 = vsel %vm723_vm6, %v716_v20, %v6357_v46  ;;  %v6341_v20 = vunpack.i.l.bf16 %v8513_v37  ;;  %v6361_v46 = vunpack.i.l.bf16 %v8517_v26 }
  0xc8   :  { %917 = vmatmul.f32.vlgmr.msra.gmra.mxu1 %v749_v28  ;;  %v750_v40 = vsel %vm740_vm7, %v733_v7, %v6397_v13  ;;  %v826_v28 = vld [vmem:[%s12536_s1 + $0xa8] sm:$0xff]  ;;  %v6342_v13 = vunpack.i.h.bf16 %v8513_v37 }
  0xc9   :  { %951 = vmatpush.msrb.mxu1 %v827_v51  ;;  %v726_v16 = vsel %vm723_vm6, %v709_v62, %v6341_v20  ;;  %v734_v2 = vsel %vm723_vm6, %v717_v48, %v6361_v46  ;;  %v6382_v51 = vunpack.i.h.bf16 %v8515_v44  ;;  %v823_v44 = vld [vmem:[%s12536_s1 + $0x90] sm:$0xff]  ;;  %v6362_v20 = vunpack.i.h.bf16 %v8517_v26  ;;  %v838_v48 = vld [vmem:[%s12536_s1 + $0x108] sm:$0xff] }
  0xca   :  { %v8552_v23 = vpop.permute.xlu1 %6389  ;;  %v743_v38 = vsel %vm740_vm7, %v726_v16, %v6381_v53  ;;  %v6306_v62 = vunpack.i.l.bf16 %v8436_v18  ;;  %v840_v16 = vld [vmem:[%s12536_s1 + $0x118] sm:$0xff] }
  0xcb   :  { %952 = vmatpush.msrb.mxu1 %v826_v28  ;;  %1019 = vmatpush.msra.mxu2 %v840_v16 }
  0xcc   :  { %v8584_v56 = vpop.permute.xlu2 %6409  ;;  %6266 = vmatpush.msra.mxu3 %v840_v16 }
  0xcd   :  { %953 = vmatpush.msrb.mxu1 %v825_v61  ;;  %v6326_v61 = vunpack.i.l.bf16 %v8497_v50 }
  0xce   :  { %896 = vmatmul.f32.gmra.mxu0 %v742_v33  ;;  %v6322_v33 = vunpack.i.h.bf16 %v8443_v30 }
  0xcf   :  { %v8565_v36 = vpop.permute.xlu0 %6384  ;;  %954 = vmatpush.msrb.mxu1 %v824_v4  ;;  %v837_v4 = vld [vmem:[%s12536_s1 + $0x100] sm:$0xff] }
  0xd0   :  { %920 = vmatmul.f32.gmra.mxu1 %v750_v40  ;;  %v727_v40 = vsel %vm723_vm6, %v710_v43, %v6342_v13  ;;  %v718_v30 = vsel %vm159_vm1, %v8175_v29, %v6322_v33  ;;  %v6386_v46 = vunpack.i.l.bf16 %v8565_v36  ;;  %v719_v33 = vsel %vm159_vm1, %v8127_v47, %v6326_v61 }
  0xd1   :  { %v744_v49 = vsel %vm740_vm7, %v727_v40, %v6382_v51  ;;  %955 = vmatpush.msrb.mxu1 %v823_v44  ;;  %v735_v26 = vsel %vm723_vm6, %v718_v30, %v6362_v20  ;;  %v6307_v20 = vunpack.i.h.bf16 %v8436_v18  ;;  %v6327_v47 = vunpack.i.h.bf16 %v8497_v50 }
  0xd2   :  { %v8570_v27 = vpop.permute.xlu1 %6404  ;;  %v6367_v50 = vunpack.i.h.bf16 %v8503_v58 }
  0xd3   :  { %v6406_v43 = vunpack.i.l.bf16 %v8570_v27 }
  0xd4   :  { %v8612_v28 = vpop.permute.xlu2 %6424 }
  0xd6   :  { %899 = vmatmul.f32.gmra.mxu0 %v743_v38  ;;  %v7739_v38 = vld [vmem:[#allocation2 + $0x40] sm:$0xff] }
  0xd7   :  { %v6400_v19 = vpop.permute.xlu0 %6399  ;;  %v711_v13 = vsel %vm159_vm1, %v7739_v38, %v6306_v62  ;;  %v6387_v62 = vunpack.i.h.bf16 %v8565_v36 }
  0xd8   :  { %v6401_v7 = vunpack.i.l.bf16 %v6400_v19  ;;  %v6402_v53 = vunpack.i.h.bf16 %v6400_v19  ;;  %v839_v19 = vld [vmem:[%s12536_s1 + $0x110] sm:$0xff]  ;;  %v728_v51 = vsel %vm723_vm6, %v711_v13, %v6346_v3  ;;  %v6391_v13 = vunpack.i.l.bf16 %v8552_v23 }
  0xd9   :  { %1020 = vmatpush.msra.mxu2 %v839_v19  ;;  %v745_v40 = vsel %vm740_vm7, %v728_v51, %v6386_v46  ;;  %6267 = vmatpush.msra.mxu3 %v839_v19  ;;  %v720_v46 = vsel %vm159_vm1, %v8140_v55, %v6327_v47  ;;  %v6371_v55 = vunpack.i.l.bf16 %v8544_v35  ;;  %v6312_v51 = vunpack.i.h.bf16 %v8465_v52 }
  0xda   :  { %v751_v59 = vsel %vm740_vm7, %v734_v2, %v6401_v7  ;;  %v8593_v37 = vpop.permute.xlu1 %6419  ;;  %v752_v42 = vsel %vm740_vm7, %v735_v26, %v6402_v53  ;;  %v822_v7 = vld [vmem:[%s12536_s1 + $0x88] sm:$0xff]  ;;  %v6366_v2 = vunpack.i.l.bf16 %v8503_v58  ;;  %v6347_v53 = vunpack.i.h.bf16 %v8505_v15  ;;  %v7740_v15 = vld [vmem:[#allocation2 + $0x50] sm:$0xff] }
  0xdb   :  { %923 = vmatmul.f32.gmra.mxu1 %v751_v59  ;;  %v821_v59 = vld [vmem:[%s12536_s1 + $0x80] sm:$0xff]  ;;  %1021 = vmatpush.msra.mxu2 %v838_v48  ;;  %v712_v3 = vsel %vm159_vm1, %v7740_v15, %v6307_v20  ;;  %v6311_v26 = vunpack.i.l.bf16 %v8465_v52  ;;  %v737_v38 = vsel %vm723_vm6, %v720_v46, %v6367_v50  ;;  %v6331_v58 = vunpack.i.l.bf16 %v8491_v17 }
  0xdc   :  { %956 = vmatpush.msrb.mxu1 %v822_v7  ;;  %6268 = vmatpush.msra.mxu3 %v838_v48  ;;  %v8652_v16 = vpop.permute.xlu2 %6439  ;;  %v729_v36 = vsel %vm723_vm6, %v712_v3, %v6347_v53  ;;  %v714_v52 = vsel %vm159_vm1, %v8018_v25, %v6312_v51  ;;  %v6372_v20 = vunpack.i.h.bf16 %v8544_v35 }
  0xdd   :  { %1022 = vmatpush.msra.mxu2 %v837_v4  ;;  %v746_v61 = vsel %vm740_vm7, %v729_v36, %v6387_v62 }
  0xde   :  { %902 = vmatmul.f32.gmra.mxu0 %v744_v49  ;;  %957 = vmatpush.msrb.mxu1 %v821_v59  ;;  %v736_v49 = vsel %vm723_vm6, %v719_v33, %v6366_v2  ;;  %v6411_v59 = vunpack.i.l.bf16 %v8584_v56  ;;  %v6332_v33 = vunpack.i.h.bf16 %v8491_v17  ;;  %v6412_v17 = vunpack.i.h.bf16 %v8584_v56 }
  0xdf   :  { %v8642_v44 = vpop.permute.xlu0 %6414  ;;  %v753_v30 = vsel %vm740_vm7, %v736_v49, %v6406_v43  ;;  %6154 = vmatmul.msk.f32.vlgmr.msra.gmra.mxu2 %vm159_vm1, %v8194_v24  ;;  %6269 = vmatpush.msra.mxu3 %v837_v4  ;;  %v6407_v24 = vunpack.i.h.bf16 %v8570_v27  ;;  %v713_v27 = vsel %vm159_vm1, %v8005_v12, %v6311_v26 }
  0xe0   :  { %6164 = vmatmul.msk.f32.vlgmr.msra.gmra.mxu3 %vm159_vm1, %v8283_v14  ;;  %v722_v25 = vsel %vm159_vm1, %v8110_v22, %v6332_v33  ;;  %v6416_v49 = vunpack.i.l.bf16 %v8642_v44  ;;  %v6417_v36 = vunpack.i.h.bf16 %v8642_v44 }
  0xe1   :  { %v754_v19 = vsel %vm740_vm7, %v737_v38, %v6407_v24  ;;  %v739_v35 = vsel %vm723_vm6, %v722_v25, %v6372_v20  ;;  %v12656_v25 = vld [vmem:[#allocation8_spill] sm:$0xff] }
  0xe2   :  { %v8618_v29 = vpop.permute.xlu1 %6434  ;;  %v756_v47 = vsel %vm740_vm7, %v739_v35, %v6412_v17  ;;  %v757_v22 = vsel %vm159_vm1, %v7947_v45, %v6416_v49  ;;  %v758_v45 = vsel %vm159_vm1, %v8065_v57, %v6417_v36 }
  0xe3   :  { %926 = vmatmul.f32.gmra.mxu1 %v752_v42  ;;  %v6351_v42 = vunpack.i.l.bf16 %v8489_v5 }
  0xe4   :  { %v6455_v48 = vpop.permute.xlu2 %6454 }
  0xe5   :  { %v730_v2 = vsel %vm723_vm6, %v713_v27, %v6351_v42  ;;  %v414_v27 = vrot.slane %v8361_v21, 2 }
  0xe6   :  { %905 = vmatmul.f32.gmra.mxu0 %v745_v40  ;;  %v747_v12 = vsel %vm740_vm7, %v730_v2, %v6391_v13  ;;  %v6352_v40 = vunpack.i.h.bf16 %v8489_v5 }
  0xe7   :  { %v8667_v14 = vpop.permute.xlu0 %6429  ;;  %6155 = vmatmul.msk.f32.gmra.mxu2 %vm159_vm1, %v8197_v8  ;;  %v721_v8 = vsel %vm159_vm1, %v8095_v9, %v6331_v58  ;;  %v6422_v58 = vunpack.i.h.bf16 %v8593_v37 }
  0xe8   :  { %6165 = vmatmul.msk.f32.gmra.mxu3 %vm159_vm1, %v8286_v6  ;;  %v738_v43 = vsel %vm723_vm6, %v721_v8, %v6371_v55  ;;  %v6392_v6 = vunpack.i.h.bf16 %v8552_v23  ;;  %v731_v5 = vsel %vm723_vm6, %v714_v52, %v6352_v40  ;;  %v12653_v8 = vld [vmem:[#allocation16_spill] sm:$0xff]  ;;  %v6432_v49 = vunpack.i.h.bf16 %v8667_v14 }
  0xe9   :  { %v755_v4 = vsel %vm740_vm7, %v738_v43, %v6411_v59  ;;  %v6427_v43 = vunpack.i.h.bf16 %v8612_v28 }
  0xea   :  { %v8654_v18 = vpop.permute.xlu1 %6449  ;;  %v748_v23 = vsel %vm740_vm7, %v731_v5, %v6392_v6  ;;  %v12654_v6 = vld [vmem:[#allocation7_spill] sm:$0xff]  ;;  %v12655_v5 = vld [vmem:[#allocation17_spill] sm:$0xff] }
  0xeb   :  { %929 = vmatmul.f32.gmra.mxu1 %v753_v30 }
  0xee   :  { %908 = vmatmul.f32.gmra.mxu0 %v746_v61  ;;  %v6421_v61 = vunpack.i.l.bf16 %v8593_v37 }
  0xef   :  { %6156 = vmatmul.msk.f32.gmra.mxu2 %vm159_vm1, %v8151_v63  ;;  %v8698_v9 = vpop.permute.xlu0 %6444  ;;  %v8709_v63 = vpop.permute.xlu2 %6469 }
  0xf0   :  { %6166 = vmatmul.msk.f32.gmra.mxu3 %vm159_vm1, %v8269_v34  ;;  %v6456_v34 = vunpack.i.l.bf16 %v6455_v48  ;;  %v759_v42 = vsel %vm159_vm1, %v8080_v1, %v6421_v61  ;;  %v760_v1 = vsel %vm159_vm1, %v7912_v31, %v6422_v58  ;;  %v6437_v61 = vunpack.i.h.bf16 %v8618_v29 }
  0xf2   :  { %v8678_v7 = vpop.permute.xlu1 %6464  ;;  %v773_v15 = vsel %vm723_vm6, %v757_v22, %v6456_v34  ;;  %v6472_v34 = vunpack.i.h.bf16 %v8709_v63 }
  0xf3   :  { %932 = vmatmul.f32.gmra.mxu1 %v754_v19  ;;  %v6467_v40 = vunpack.i.h.bf16 %v8678_v7 }
  0xf6   :  { %911 = vmatmul.f32.gmra.mxu0 %v747_v12 }
  0xf7   :  { %6157 = vmatmul.msk.f32.gmra.mxu2 %vm159_vm1, %v8154_v0  ;;  %v6460_v30 = vpop.permute.xlu0 %6459  ;;  %v8722_v50 = vpop.permute.xlu2 %6484  ;;  %v6457_v0 = vunpack.i.h.bf16 %v6455_v48 }
  0xf8   :  { %6167 = vmatmul.msk.f32.gmra.mxu3 %vm159_vm1, %v8273_v32  ;;  %v6462_v19 = vunpack.i.h.bf16 %v6460_v30 }
  0xf9   :  { %v774_v24 = vsel %vm723_vm6, %v758_v45, %v6457_v0  ;;  %v12658_v45 = vld [vmem:[#allocation9_spill] sm:$0xff] }
  0xfa   :  { %v8700_v53 = vpop.permute.xlu1 %6479  ;;  %v776_v48 = vsel %vm723_vm6, %v760_v1, %v6462_v19 }
  0xfb   :  { %935 = vmatmul.f32.gmra.mxu1 %v755_v4  ;;  %v762_v4 = vsel %vm159_vm1, %v12654_v6, %v6427_v43  ;;  %v12663_v43 = vld [vmem:[#allocation12_spill] sm:$0xff]  ;;  %v6446_v6 = vunpack.i.l.bf16 %v8698_v9 }
  0xfc   :  { %v778_v52 = vsel %vm723_vm6, %v762_v4, %v6467_v40 }
  0xfe   :  { %914 = vmatmul.f32.gmra.mxu0 %v748_v23  ;;  %v6471_v23 = vunpack.i.l.bf16 %v8709_v63 }
  0xff   :  { %6158 = vmatmul.msk.f32.gmra.mxu2 %vm159_vm1, %v8250_v11  ;;  %v8731_v26 = vpop.permute.xlu0 %6474  ;;  %v6461_v11 = vunpack.i.l.bf16 %v6460_v30  ;;  %v6500_v46 = vpop.permute.xlu2 %6499 }
 0x100   :  { %6168 = vmatmul.msk.f32.gmra.mxu3 %vm159_vm1, %v8348_v54  ;;  %v6501_v54 = vunpack.i.l.bf16 %v6500_v46  ;;  %v6502_v55 = vunpack.i.h.bf16 %v6500_v46  ;;  %v6476_v36 = vunpack.i.l.bf16 %v8731_v26 }
 0x101   :  { %v775_v57 = vsel %vm723_vm6, %v759_v42, %v6461_v11  ;;  %v6477_v11 = vunpack.i.h.bf16 %v8731_v26  ;;  %v12660_v26 = vld [vmem:[#allocation15_spill] sm:$0xff] }
 0x102   :  { %v6495_v56 = vpop.permute.xlu1 %6494  ;;  %v791_v13 = vsel %vm740_vm7, %v775_v57, %v6501_v54  ;;  %v792_v37 = vsel %vm740_vm7, %v776_v48, %v6502_v55  ;;  %v12659_v54 = vld [vmem:[#allocation14_spill] sm:$0xff] }
 0x103   :  { %938 = vmatmul.f32.gmra.mxu1 %v756_v47  ;;  %v6496_v62 = vunpack.i.l.bf16 %v6495_v56  ;;  %v6497_v32 = vunpack.i.h.bf16 %v6495_v56  ;;  %v766_v42 = vsel %vm159_vm1, %v12659_v54, %v6437_v61  ;;  %v8845_v61 = vld [vmem:[#allocation3] sm:$0xff]  ;;  %v12668_v54 = vld [vmem:[#allocation21_spill] sm:$0xff] }
 0x104   :  { %v782_v57 = vsel %vm723_vm6, %v766_v42, %v6477_v11  ;;  %v12667_v11 = vmov 0.0  }
 0x105   :  { %v789_v3 = vsel %vm740_vm7, %v773_v15, %v6496_v62  ;;  %v790_v44 = vsel %vm740_vm7, %v774_v24, %v6497_v32  ;;  %v12657_v62 = vld [vmem:[#allocation20_spill] sm:$0xff]  ;;  %v6436_v15 = vunpack.i.l.bf16 %v8618_v29  ;;  %v6481_v29 = vunpack.i.l.bf16 %v8700_v53  ;;  %3190 = vst.msk [vmem:[#allocation3] sm:$0xff] %vm159_vm1, %v12667_v11 }
 0x106   :  { %v764_v22 = vsel %vm159_vm1, %v12657_v62, %v6432_v49 }
 0x107   :  { %6159 = vmatmul.msk.f32.gmra.mxu2 %vm159_vm1, %v8255_v41  ;;  %v8741_v38 = vpop.permute.xlu0 %6489  ;;  %v413_v41 = vrot.slane %v8332_v60, 2  ;;  %v6466_v60 = vunpack.i.l.bf16 %v8678_v7  ;;  %v780_v30 = vsel %vm723_vm6, %v764_v22, %v6472_v34  ;;  %v6515_v0 = vpop.permute.xlu2 %6514  ;;  %v765_v63 = vsel %vm159_vm1, %v12658_v45, %v6436_v15 }
 0x108   :  { %v781_v24 = vsel %vm723_vm6, %v765_v63, %v6476_v36  ;;  %v6517_v46 = vunpack.i.h.bf16 %v6515_v0  ;;  %v6491_v22 = vunpack.i.l.bf16 %v8741_v38  ;;  %v6452_v45 = vunpack.i.h.bf16 %v8654_v18 }
 0x109   :  { %v415_v2 = vsel %vm322_vm5, %v413_v41, %v414_v27  ;;  %v6441_v41 = vunpack.i.l.bf16 %v8652_v16 }
 0x10a   :  { %v6510_v17 = vpop.permute.xlu1 %6509  ;;  %v772_v42 = vsel %vm159_vm1, %v12668_v54, %v6452_v45 }
 0x10b   :  { %958 = vmatmul.f32.vlgmr.msrb.gmra.mxu1 %v789_v3  ;;  %v6512_v56 = vunpack.i.h.bf16 %v6510_v17  ;;  %v767_v1 = vsel %vm159_vm1, %v12660_v26, %v6441_v41  ;;  %v8869_v26 = vld [vmem:[%s12537_s2] ss:$0 sm:$0xff] }
 0x10c   :  { %v783_v48 = vsel %vm723_vm6, %v767_v1, %v6481_v29  ;;  %v1842_v29 = vld [vmem:[%s12538_s3 + $0x110] sm:$0xff]  ;;  %v1840_v1 = vld [vmem:[%s12538_s3 + $0x100] sm:$0xff] }
 0x10d   :  { %v796_v3 = vsel %vm740_vm7, %v780_v30, %v6512_v56  ;;  %v6451_v56 = vunpack.i.l.bf16 %v8654_v18 }
 0x10f   :  { %6160 = vmatmul.msk.f32.gmra.mxu2 %vm159_vm1, %v8335_v10  ;;  %v6505_v51 = vpop.permute.xlu0 %6504  ;;  %v6426_v10 = vunpack.i.l.bf16 %v8612_v28  ;;  %v6511_v28 = vunpack.i.l.bf16 %v6510_v17 }
 0x110   :  { %v6506_v59 = vunpack.i.l.bf16 %v6505_v51  ;;  %v6507_v33 = vunpack.i.h.bf16 %v6505_v51 }
 0x111   :  { %v761_v21 = vsel %vm159_vm1, %v7931_v39, %v6426_v10  ;;  %v6431_v39 = vunpack.i.l.bf16 %v8667_v14  ;;  %v6516_v14 = vunpack.i.l.bf16 %v6515_v0  ;;  %v12662_v10 = vld [vmem:[#allocation19_spill] sm:$0xff] }
 0x112   :  { %v777_v31 = vsel %vm723_vm6, %v761_v21, %v6466_v60  ;;  %v794_v20 = vsel %vm740_vm7, %v778_v52, %v6507_v33  ;;  %v417_v60 = vrot.slane %v12662_v10, 2  ;;  %v6482_v21 = vunpack.i.h.bf16 %v8700_v53  ;;  %v6525_v52 = vpop.permute.xlu1 %6524 }
 0x113   :  { %961 = vmatmul.f32.gmra.mxu1 %v790_v44  ;;  %v793_v12 = vsel %vm740_vm7, %v777_v31, %v6506_v59  ;;  %v763_v7 = vsel %vm159_vm1, %v12656_v25, %v6431_v39  ;;  %v797_v44 = vsel %vm740_vm7, %v781_v24, %v6516_v14  ;;  %v6442_v59 = vunpack.i.h.bf16 %v8652_v16  ;;  %v12664_v39 = vld [vmem:[#allocation13_spill] sm:$0xff] }
 0x114   :  { %v779_v35 = vsel %vm723_vm6, %v763_v7, %v6471_v23  ;;  %v6486_v16 = vunpack.i.l.bf16 %v8722_v50  ;;  %v6526_v53 = vunpack.i.l.bf16 %v6525_v52  ;;  %v6447_v23 = vunpack.i.h.bf16 %v8698_v9  ;;  %v6530_v9 = vpop.permute.xlu2 %6529 }
 0x115   :  { %v795_v47 = vsel %vm740_vm7, %v779_v35, %v6511_v28  ;;  %v768_v40 = vsel %vm159_vm1, %v12663_v43, %v6442_v59  ;;  %v6487_v25 = vunpack.i.h.bf16 %v8722_v50  ;;  %v6527_v7 = vunpack.i.h.bf16 %v6525_v52  ;;  %v12665_v35 = vld [vmem:[#allocation10_spill] sm:$0xff] }
 0x116   :  { %v784_v33 = vsel %vm723_vm6, %v768_v40, %v6482_v21  ;;  %v770_v49 = vsel %vm159_vm1, %v12665_v35, %v6447_v23  ;;  %v6531_v15 = vunpack.i.l.bf16 %v6530_v9  ;;  %v6492_v24 = vunpack.i.h.bf16 %v8741_v38 }
 0x117   :  { %6161 = vmatmul.msk.f32.gmra.mxu2 %vm159_vm1, %v415_v2  ;;  %v6520_v19 = vpop.permute.xlu0 %6519  ;;  %v786_v34 = vsel %vm723_vm6, %v770_v49, %v6487_v25  ;;  %v1280_v23 = vrot.slane %v8845_v61, 1 }
 0x118   :  { %v6521_v27 = vunpack.i.l.bf16 %v6520_v19  ;;  %v802_v62 = vsel %vm740_vm7, %v786_v34, %v6527_v7  ;;  %v788_v18 = vsel %vm723_vm6, %v772_v42, %v6492_v24 }
 0x11a   :  { %v799_v2 = vsel %vm740_vm7, %v783_v48, %v6521_v27  ;;  %v1841_v27 = vld [vmem:[%s12538_s3 + $0x108] sm:$0xff] }
 0x11b   :  { %964 = vmatmul.f32.gmra.mxu1 %v791_v13  ;;  %v798_v13 = vsel %vm740_vm7, %v782_v57, %v6517_v46  ;;  %v6532_v46 = vunpack.i.h.bf16 %v6530_v9 }
 0x11d   :  { %v804_v41 = vsel %vm740_vm7, %v788_v18, %v6532_v46 }
 0x11f   :  { %6162 = vmatmul.msk.f32.gmra.mxu2 %vm159_vm1, %v12653_v8 }
 0x123   :  { %967 = vmatmul.f32.gmra.mxu1 %v792_v37  ;;  %v12661_v37 = vld [vmem:[#allocation18_spill] sm:$0xff] }
 0x124   :  { %v416_v51 = vrot.slane %v12661_v37, 2 }
 0x126   :  { %v418_v31 = vsel %vm322_vm5, %v416_v51, %v417_v60 }
 0x127   :  { %6163 = vmatmul.msk.f32.gmra.mxu2 %vm159_vm1, %v12655_v5  ;;  %6169 = vmatmul.msk.f32.gmra.mxu3 %vm159_vm1, %v418_v31 }
 0x12b   :  { %970 = vmatmul.f32.gmra.mxu1 %v793_v12  ;;  %v6522_v12 = vunpack.i.h.bf16 %v6520_v19  ;;  %v1843_v19 = vld [vmem:[%s12538_s3 + $0x118] sm:$0xff] }
 0x12c   :  { %2022 = vmatpush.msrb.mxu0 %v1843_v19 }
 0x12d   :  { %v800_v4 = vsel %vm740_vm7, %v784_v33, %v6522_v12 }
 0x12e   :  { %2023 = vmatpush.msrb.mxu0 %v1842_v29 }
 0x130   :  { %2024 = vmatpush.msrb.mxu0 %v1841_v27 }
 0x132   :  { %2025 = vmatpush.msrb.mxu0 %v1840_v1 }
 0x133   :  { %973 = vmatmul.f32.gmra.mxu1 %v794_v20  ;;  %v769_v20 = vsel %vm159_vm1, %v12664_v39, %v6446_v6 }
 0x134   :  { %v785_v17 = vsel %vm723_vm6, %v769_v20, %v6486_v16 }
 0x135   :  { %v801_v28 = vsel %vm740_vm7, %v785_v17, %v6526_v53  ;;  %v1328_v53 = vrot.slane %v8845_v61, 2 }
 0x13b   :  { %976 = vmatmul.f32.gmra.mxu1 %v795_v47 }
 0x143   :  { %979 = vmatmul.f32.gmra.mxu1 %v796_v3  ;;  %v894_v30 = vpop.f32.mrf.mxu0  ;;  %v12666_v3 = vld [vmem:[#allocation11_spill] sm:$0xff] }
 0x144   :  { %v771_v50 = vsel %vm159_vm1, %v12666_v3, %v6451_v56  ;;  %v895_v48 = vadd.f32 %v8869_v26, %v894_v30 }
 0x145   :  { %v8785_v32 = vpop.f32.mrf.mxu1  ;;  %v787_v0 = vsel %vm723_vm6, %v771_v50, %v6491_v22 }
 0x146   :  { %v803_v63 = vsel %vm740_vm7, %v787_v0, %v6531_v15 }
 0x14b   :  { %982 = vmatmul.f32.gmra.mxu1 %v797_v44  ;;  %v1209_v44 = vld [vmem:[#allocation3 + $0x8] sm:$0x3]  ;;  %v897_v57 = vpop.f32.mrf.mxu0 }
 0x14c   :  { %3191 = vst.msk [vmem:[#allocation3 + $0x8] sm:$0x3] %vm161_vm2, %v12667_v11  ;;  %v898_v21 = vadd.f32 %v8869_v26, %v897_v57  ;;  %v1329_v39 = vrot.slane %v1209_v44, 2 }
 0x14d   :  { %v8796_v58 = vpop.f32.mrf.mxu1 }
 0x153   :  { %985 = vmatmul.f32.gmra.mxu1 %v798_v13  ;;  %v900_v37 = vpop.f32.mrf.mxu0 }
 0x154   :  { %v901_v20 = vadd.f32 %v8869_v26, %v900_v37 }
 0x158   :  { %v8801_v55 = vpop.f32.mrf.mxu1 }
 0x15b   :  { %988 = vmatmul.f32.gmra.mxu1 %v799_v2  ;;  %v903_v6 = vpop.f32.mrf.mxu0 }
 0x15c   :  { %v904_v54 = vadd.f32 %v8869_v26, %v903_v6 }
 0x160   :  { %v8813_v8 = vpop.f32.mrf.mxu1 }
 0x162   :  { %v1024_v36 = vpop.f32.mrf.mxu2 }
 0x163   :  { %991 = vmatmul.f32.gmra.mxu1 %v800_v4 }
 0x168   :  { %v8823_v5 = vpop.f32.mrf.mxu1 }
 0x16a   :  { %v1027_v38 = vpop.f32.mrf.mxu2 }
 0x16b   :  { %994 = vmatmul.f32.gmra.mxu1 %v801_v28  ;;  %v1281_v28 = vrot.slane %v1209_v44, 1 }
 0x16d   :  { %v1282_v3 = vsel %vm273_vm4, %v1280_v23, %v1281_v28 }
 0x170   :  { %v8831_v47 = vpop.f32.mrf.mxu1 }
 0x172   :  { %v1030_v10 = vpop.f32.mrf.mxu2 }
 0x173   :  { %997 = vmatmul.f32.gmra.mxu1 %v802_v62  ;;  %v1330_v62 = vsel %vm322_vm5, %v1328_v53, %v1329_v39 }
 0x178   :  { %v8840_v14 = vpop.f32.mrf.mxu1 }
 0x17a   :  { %v1033_v52 = vpop.f32.mrf.mxu2 }
 0x17b   :  { %1000 = vmatmul.f32.gmra.mxu1 %v803_v63 }
 0x180   :  { %v8854_v13 = vpop.f32.mrf.mxu1 }
 0x182   :  { %v1036_v46 = vpop.f32.mrf.mxu2 }
 0x183   :  { %1003 = vmatmul.f32.gmra.mxu1 %v804_v41 }
 0x188   :  { %v959_v2 = vpop.f32.mrf.mxu1 }
 0x189   :  { %v960_v51 = vadd.f32 %v959_v2, %v895_v48 }
 0x18b   :  { %v8875_v60 = vadd.f32 %v1024_v36, %v960_v51  ;;  %v906_v36 = vpop.f32.mrf.mxu0 }
 0x18d   :  { %v12583_v59 = vmax.f32 %v8875_v60, 0.0 }
 0x18f   :  { %v1104_v31 = vrot.slane %v12583_v59, 7 }
 0x190   :  { %v962_v12 = vpop.f32.mrf.mxu1 }
 0x191   :  { %v1136_v43 = vsel %vm126_vm3, 0.0, %v1104_v31  ;;  %v1152_v40 = vsel %vm126_vm3, %v1104_v31, 0.0  ;;  %v963_v33 = vadd.f32 %v962_v12, %v898_v21  ;;  %v907_v21 = vadd.f32 %v8869_v26, %v906_v36 }
 0x192   :  { %1170 = vst.msk [vmem:[#allocation3 + $0x10] sm:$0xff] %vm159_vm1, %v1136_v43 }
 0x193   :  { %1171 = vst.msk [vmem:[#allocation3 + $0x18] sm:$0x3] %vm161_vm2, %v1152_v40  ;;  %v8885_v4 = vadd.f32 %v1027_v38, %v963_v33  ;;  %v909_v31 = vpop.f32.mrf.mxu0  ;;  %v1039_v33 = vpop.f32.mrf.mxu2 }
 0x195   :  { %v12580_v16 = vmax.f32 %v8885_v4, 0.0 }
 0x197   :  { %v1105_v17 = vrot.slane %v12580_v16, 7 }
 0x198   :  { %v965_v25 = vpop.f32.mrf.mxu1 }
 0x199   :  { %v1137_v7 = vsel %vm126_vm3, 0.0, %v1105_v17  ;;  %v1153_v35 = vsel %vm126_vm3, %v1105_v17, 0.0  ;;  %v966_v49 = vadd.f32 %v965_v25, %v901_v20  ;;  %v8895_v34 = vld [vmem:[#allocation3 + $0x10] sm:$0xff] }
 0x19a   :  { %1172 = vst.msk [vmem:[#allocation3 + $0x20] sm:$0xff] %vm159_vm1, %v1137_v7  ;;  %v1211_v56 = vld [vmem:[#allocation3 + $0x18] sm:$0x3]  ;;  %v1331_v22 = vrot.slane %v8895_v34, 2  ;;  %v1283_v9 = vrot.slane %v8895_v34, 1 }
 0x19b   :  { %1173 = vst.msk [vmem:[#allocation3 + $0x28] sm:$0x3] %vm161_vm2, %v1153_v35  ;;  %v8902_v30 = vadd.f32 %v1030_v10, %v966_v49  ;;  %v1332_v15 = vrot.slane %v1211_v56, 2  ;;  %v1284_v50 = vrot.slane %v1211_v56, 1 }
 0x19d   :  { %v12579_v0 = vmax.f32 %v8902_v30, 0.0  ;;  %v1333_v45 = vsel %vm322_vm5, %v1331_v22, %v1332_v15  ;;  %v8908_v63 = vsel %vm273_vm4, %v1283_v9, %v1284_v50  ;;  %v910_v50 = vadd.f32 %v8869_v26, %v909_v31 }
 0x19e   :  { %v6538_v24 = vpack.i.bf16 %v1333_v45, %v1330_v62  ;;  %v6533_v44 = vpack.i.bf16 %v8908_v63, %v1282_v3 }
 0x19f   :  { %v1106_v42 = vrot.slane %v12579_v0, 7 }
 0x1a0   :  { %6539 = vrot.lane.b32.xlu2 %v6538_v24, %s7771_s22  ;;  %6534 = vrot.lane.b32.xlu0 %v6533_v44, %s7770_s26  ;;  %v968_v57 = vpop.f32.mrf.mxu1 }
 0x1a1   :  { %v1138_v18 = vsel %vm126_vm3, 0.0, %v1106_v42  ;;  %v1154_v38 = vsel %vm126_vm3, %v1106_v42, 0.0  ;;  %v969_v19 = vadd.f32 %v968_v57, %v904_v54  ;;  %v8918_v41 = vld [vmem:[#allocation3 + $0x20] sm:$0xff]  ;;  %v912_v42 = vpop.f32.mrf.mxu0 }
 0x1a2   :  { %1174 = vst.msk [vmem:[#allocation3 + $0x30] sm:$0xff] %vm159_vm1, %v1138_v18  ;;  %v6543_v29 = vpack.i.bf16 %v8918_v41, %v8895_v34  ;;  %v1213_v27 = vld [vmem:[#allocation3 + $0x28] sm:$0x3]  ;;  %v1334_v1 = vrot.slane %v8918_v41, 2  ;;  %v1286_v40 = vrot.slane %v8918_v41, 1  ;;  %v913_v31 = vadd.f32 %v8869_v26, %v912_v42 }
 0x1a3   :  { %1175 = vst.msk [vmem:[#allocation3 + $0x38] sm:$0x3] %vm161_vm2, %v1154_v38  ;;  %v8925_v48 = vadd.f32 %v1033_v52, %v969_v19  ;;  %v1335_v2 = vrot.slane %v1213_v27, 2  ;;  %v1287_v20 = vrot.slane %v1213_v27, 1  ;;  %v1042_v19 = vpop.f32.mrf.mxu2 }
 0x1a4   :  { %6544 = vrot.lane.b32.xlu1 %v6543_v29, %s7772_s0 }
 0x1a5   :  { %v12578_v37 = vmax.f32 %v8925_v48, 0.0  ;;  %v1336_v51 = vsel %vm322_vm5, %v1334_v1, %v1335_v2  ;;  %v8952_v22 = vsel %vm273_vm4, %v1286_v40, %v1287_v20  ;;  %v8977_v1 = vld [vmem:[#allocation3 + $0x90] sm:$0xff] }
 0x1a6   :  { %6170 = vmatmul.msk.f32.vlgmr.msrb.gmra.mxu0 %vm159_vm1, %v1336_v51  ;;  %v6548_v10 = vpack.i.bf16 %v1336_v51, %v1333_v45  ;;  %3208 = vst.msk [vmem:[#allocation3 + $0x90] sm:$0xff] %vm159_vm1, %v12667_v11 }
 0x1a7   :  { %v1107_v12 = vrot.slane %v12578_v37, 7 }
 0x1a8   :  { %6549 = vrot.lane.b32.xlu0 %v6548_v10, %s7770_s26  ;;  %v971_v43 = vpop.f32.mrf.mxu1  ;;  %v8981_v10 = vld [vmem:[#allocation3 + $0x98] sm:$0x3] }
 0x1a9   :  { %v1139_v6 = vsel %vm126_vm3, 0.0, %v1107_v12  ;;  %v1155_v52 = vsel %vm126_vm3, %v1107_v12, 0.0  ;;  %v972_v53 = vadd.f32 %v971_v43, %v907_v21  ;;  %v8938_v39 = vld [vmem:[#allocation3 + $0x30] sm:$0xff]  ;;  %3209 = vst.msk [vmem:[#allocation3 + $0x98] sm:$0x3] %vm161_vm2, %v12667_v11 }
 0x1aa   :  { %1176 = vst.msk [vmem:[#allocation3 + $0x40] sm:$0xff] %vm159_vm1, %v1139_v6  ;;  %v6553_v17 = vpack.i.bf16 %v8938_v39, %v8918_v41  ;;  %v1215_v23 = vld [vmem:[#allocation3 + $0x38] sm:$0x3]  ;;  %v1337_v28 = vrot.slane %v8938_v39, 2  ;;  %v1289_v25 = vrot.slane %v8938_v39, 1 }
 0x1ab   :  { %1177 = vst.msk [vmem:[#allocation3 + $0x48] sm:$0x3] %vm161_vm2, %v1155_v52  ;;  %v8946_v7 = vadd.f32 %v1036_v46, %v972_v53  ;;  %v1338_v35 = vrot.slane %v1215_v23, 2  ;;  %v1290_v49 = vrot.slane %v1215_v23, 1 }
 0x1ac   :  { %6554 = vrot.lane.b32.xlu2 %v6553_v17, %s7771_s22 }
 0x1ad   :  { %v12577_v56 = vmax.f32 %v8946_v7, 0.0  ;;  %v1339_v62 = vsel %vm322_vm5, %v1337_v28, %v1338_v35  ;;  %v8955_v9 = vsel %vm273_vm4, %v1289_v25, %v1290_v49 }
 0x1ae   :  { %6171 = vmatmul.msk.f32.gmra.mxu0 %vm159_vm1, %v1339_v62  ;;  %v6558_v15 = vpack.i.bf16 %v8955_v9, %v8952_v22  ;;  %v6563_v3 = vpack.i.bf16 %v1339_v62, %v1336_v51 }
 0x1af   :  { %v1108_v36 = vrot.slane %v12577_v56, 7 }
 0x1b0   :  { %6559 = vrot.lane.b32.xlu1 %v6558_v15, %s7770_s26  ;;  %6564 = vrot.lane.b32.xlu0 %v6563_v3, %s7771_s22  ;;  %v974_v45 = vpop.f32.mrf.mxu1  ;;  %v9004_v3 = vld [vmem:[#allocation3 + $0xa0] sm:$0xff] }
 0x1b1   :  { %v1140_v24 = vsel %vm126_vm3, 0.0, %v1108_v36  ;;  %v1156_v44 = vsel %vm126_vm3, %v1108_v36, 0.0  ;;  %v975_v46 = vadd.f32 %v974_v45, %v910_v50  ;;  %v8967_v54 = vld [vmem:[#allocation3 + $0x40] sm:$0xff]  ;;  %3210 = vst.msk [vmem:[#allocation3 + $0xa0] sm:$0xff] %vm159_vm1, %v12667_v11 }
 0x1b2   :  { %1178 = vst.msk [vmem:[#allocation3 + $0x50] sm:$0xff] %vm159_vm1, %v1140_v24  ;;  %v6573_v57 = vpack.i.bf16 %v8967_v54, %v8938_v39  ;;  %v1217_v18 = vld [vmem:[#allocation3 + $0x48] sm:$0x3]  ;;  %v1340_v38 = vrot.slane %v8967_v54, 2  ;;  %v1292_v40 = vrot.slane %v8967_v54, 1 }
 0x1b3   :  { %1179 = vst.msk [vmem:[#allocation3 + $0x58] sm:$0x3] %vm161_vm2, %v1156_v44  ;;  %v8974_v29 = vadd.f32 %v1039_v33, %v975_v46  ;;  %v1341_v27 = vrot.slane %v1217_v18, 2  ;;  %v1293_v20 = vrot.slane %v1217_v18, 1  ;;  %v9016_v44 = vld [vmem:[#allocation3 + $0xa8] sm:$0x3] }
 0x1b4   :  { %6574 = vrot.lane.b32.xlu2 %v6573_v57, %s7772_s0  ;;  %3211 = vst.msk [vmem:[#allocation3 + $0xa8] sm:$0x3] %vm161_vm2, %v12667_v11 }
 0x1b5   :  { %12669 = vst [vmem:[#allocation16_spill] sm:$0xff] %v8974_v29  ;;  %v12575_v2 = vmax.f32 %v8974_v29, 0.0  ;;  %v1342_v51 = vsel %vm322_vm5, %v1340_v38, %v1341_v27  ;;  %v9011_v45 = vsel %vm273_vm4, %v1292_v40, %v1293_v20 }
 0x1b6   :  { %6172 = vmatmul.msk.f32.gmra.mxu0 %vm159_vm1, %v1342_v51  ;;  %v6578_v21 = vpack.i.bf16 %v1342_v51, %v1339_v62  ;;  %v915_v62 = vpop.f32.mrf.mxu0 }
 0x1b7   :  { %v1109_v12 = vrot.slane %v12575_v2, 7  ;;  %v916_v57 = vadd.f32 %v8869_v26, %v915_v62 }
 0x1b8   :  { %6579 = vrot.lane.b32.xlu1 %v6578_v21, %s7770_s26  ;;  %6569 = vrot.lane.b32.xlu0 %v6558_v15, %s7772_s0  ;;  %v977_v43 = vpop.f32.mrf.mxu1  ;;  %v1045_v15 = vpop.f32.mrf.mxu2 }
 0x1b9   :  { %v1141_v33 = vsel %vm126_vm3, 0.0, %v1109_v12  ;;  %v1157_v6 = vsel %vm126_vm3, %v1109_v12, 0.0  ;;  %v978_v52 = vadd.f32 %v977_v43, %v913_v31  ;;  %v8996_v53 = vld [vmem:[#allocation3 + $0x50] sm:$0xff] }
 0x1ba   :  { %1180 = vst.msk [vmem:[#allocation3 + $0x60] sm:$0xff] %vm159_vm1, %v1141_v33  ;;  %v1219_v17 = vld [vmem:[#allocation3 + $0x58] sm:$0x3]  ;;  %v1343_v23 = vrot.slane %v8996_v53, 2  ;;  %v1295_v28 = vrot.slane %v8996_v53, 1  ;;  %v6583_v38 = vpack.i.bf16 %v8996_v53, %v8967_v54 }
 0x1bb   :  { %1181 = vst.msk [vmem:[#allocation3 + $0x68] sm:$0x3] %vm161_vm2, %v1157_v6  ;;  %v9002_v25 = vadd.f32 %v1042_v19, %v978_v52  ;;  %v1344_v35 = vrot.slane %v1219_v17, 2  ;;  %v1296_v49 = vrot.slane %v1219_v17, 1  ;;  %v919_v17 = vadd.f32 %v8869_v26, %v8785_v32 }
 0x1bd   :  { %12670 = vst [vmem:[#allocation7_spill] sm:$0xff] %v9002_v25  ;;  %v12574_v50 = vmax.f32 %v9002_v25, 0.0  ;;  %v9008_v36 = vsel %vm322_vm5, %v1343_v23, %v1344_v35  ;;  %v9014_v24 = vsel %vm273_vm4, %v1295_v28, %v1296_v49 }
 0x1be   :  { %6173 = vmatmul.msk.f32.gmra.mxu0 %vm159_vm1, %v9008_v36  ;;  %v6593_v46 = vpack.i.bf16 %v9008_v36, %v1342_v51  ;;  %v6588_v42 = vpack.i.bf16 %v9014_v24, %v9011_v45 }
 0x1bf   :  { %v1110_v18 = vrot.slane %v12574_v50, 7 }
 0x1c0   :  { %6594 = vrot.lane.b32.xlu1 %v6593_v46, %s7771_s22  ;;  %6589 = vrot.lane.b32.xlu2 %v6588_v42, %s7770_s26  ;;  %v980_v19 = vpop.f32.mrf.mxu1  ;;  %v1048_v20 = vpop.f32.mrf.mxu2 }
 0x1c1   :  { %v1142_v27 = vsel %vm126_vm3, 0.0, %v1110_v18  ;;  %v1158_v51 = vsel %vm126_vm3, %v1110_v18, 0.0  ;;  %6584 = vrot.lane.b32.xlu0 %v6583_v38, %s7771_s22  ;;  %v981_v21 = vadd.f32 %v980_v19, %v916_v57  ;;  %v9037_v31 = vld [vmem:[#allocation3 + $0x60] sm:$0xff] }
 0x1c2   :  { %1182 = vst.msk [vmem:[#allocation3 + $0x70] sm:$0xff] %vm159_vm1, %v1142_v27  ;;  %v1221_v12 = vld [vmem:[#allocation3 + $0x68] sm:$0x3]  ;;  %v1346_v43 = vrot.slane %v9037_v31, 2  ;;  %v6603_v28 = vpack.i.bf16 %v9037_v31, %v8996_v53  ;;  %v1298_v49 = vrot.slane %v9037_v31, 1 }
 0x1c3   :  { %1183 = vst.msk [vmem:[#allocation3 + $0x78] sm:$0x3] %vm161_vm2, %v1158_v51  ;;  %v9042_v40 = vadd.f32 %v1045_v15, %v981_v21  ;;  %v1347_v33 = vrot.slane %v1221_v12, 2  ;;  %v1299_v32 = vrot.slane %v1221_v12, 1  ;;  %v1839_v12 = vld [vmem:[%s12538_s3 + $0xf8] sm:$0xff] }
 0x1c4   :  { %1945 = vmatpush.msrb.mxu2 %v1839_v12 }
 0x1c5   :  { %12671 = vst [vmem:[#allocation17_spill] sm:$0xff] %v9042_v40  ;;  %v12569_v6 = vmax.f32 %v9042_v40, 0.0  ;;  %v9046_v52 = vsel %vm322_vm5, %v1346_v43, %v1347_v33 }
 0x1c6   :  { %6174 = vmatmul.msk.f32.gmra.mxu0 %vm159_vm1, %v9046_v52 }
 0x1c7   :  { %v1111_v23 = vrot.slane %v12569_v6, 7  ;;  %v925_v6 = vadd.f32 %v8869_v26, %v8801_v55 }
 0x1c8   :  { %6599 = vrot.lane.b32.xlu2 %v6588_v42, %s7772_s0  ;;  %v983_v35 = vpop.f32.mrf.mxu1 }
 0x1c9   :  { %v1143_v62 = vsel %vm126_vm3, 0.0, %v1111_v23  ;;  %v1159_v15 = vsel %vm126_vm3, %v1111_v23, 0.0  ;;  %6604 = vrot.lane.b32.xlu0 %v6603_v28, %s7772_s0  ;;  %v984_v46 = vadd.f32 %v983_v35, %v919_v17  ;;  %v9061_v57 = vld [vmem:[#allocation3 + $0x70] sm:$0xff]  ;;  %v9080_v17 = vsel %vm273_vm4, %v1298_v49, %v1299_v32  ;;  %v1054_v23 = vpop.f32.mrf.mxu3 }
 0x1ca   :  { %1184 = vst.msk [vmem:[#allocation3 + $0x80] sm:$0xff] %vm159_vm1, %v1143_v62  ;;  %v6613_v18 = vpack.i.bf16 %v9061_v57, %v9037_v31  ;;  %v1223_v38 = vld [vmem:[#allocation3 + $0x78] sm:$0x3]  ;;  %v1349_v42 = vrot.slane %v9061_v57, 2  ;;  %v1301_v19 = vrot.slane %v9061_v57, 1  ;;  %v6608_v28 = vpack.i.bf16 %v9046_v52, %v9008_v36 }
 0x1cb   :  { %1185 = vst.msk [vmem:[#allocation3 + $0x88] sm:$0x3] %vm161_vm2, %v1159_v15  ;;  %v9069_v27 = vadd.f32 %v1048_v20, %v984_v46  ;;  %v1350_v51 = vrot.slane %v1223_v38, 2  ;;  %v1302_v21 = vrot.slane %v1223_v38, 1  ;;  %v922_v62 = vadd.f32 %v8869_v26, %v8796_v58  ;;  %v1051_v46 = vpop.f32.mrf.mxu2 }
 0x1cc   :  { %6614 = vrot.lane.b32.xlu1 %v6613_v18, %s7771_s22 }
 0x1cd   :  { %12672 = vst [vmem:[#allocation8_spill] sm:$0xff] %v9069_v27  ;;  %v12568_v43 = vmax.f32 %v9069_v27, 0.0  ;;  %v9077_v33 = vsel %vm322_vm5, %v1349_v42, %v1350_v51  ;;  %v9083_v20 = vsel %vm273_vm4, %v1301_v19, %v1302_v21  ;;  %v1412_v51 = vrot.slane %v8977_v1, 1 }
 0x1ce   :  { %6175 = vmatmul.msk.f32.gmra.mxu0 %vm159_vm1, %v9077_v33  ;;  %v6618_v35 = vpack.i.bf16 %v9083_v20, %v9080_v17  ;;  %v1413_v21 = vrot.slane %v8981_v10, 1 }
 0x1cf   :  { %v1112_v49 = vrot.slane %v12568_v43, 7 }
 0x1d0   :  { %6609 = vrot.lane.b32.xlu2 %v6608_v28, %s7770_s26  ;;  %v986_v15 = vpop.f32.mrf.mxu1 }
 0x1d1   :  { %v1144_v32 = vsel %vm126_vm3, 0.0, %v1112_v49  ;;  %v1160_v18 = vsel %vm126_vm3, %v1112_v49, 0.0  ;;  %6619 = vrot.lane.b32.xlu0 %v6618_v35, %s7770_s26  ;;  %v987_v36 = vadd.f32 %v986_v15, %v922_v62  ;;  %v1224_v38 = vld [vmem:[#allocation3 + $0x80] sm:$0xff]  ;;  %v1838_v62 = vld [vmem:[%s12538_s3 + $0xf0] sm:$0xff] }
 0x1d2   :  { %1190 = vst.msk [vmem:[#allocation3 + $0xb0] sm:$0xff] %vm159_vm1, %v1144_v32  ;;  %v6633_v42 = vpack.i.bf16 %v1224_v38, %v9061_v57  ;;  %v1225_v58 = vld [vmem:[#allocation3 + $0x88] sm:$0x3]  ;;  %v1402_v19 = vrot.slane %v1224_v38, 2  ;;  %v1380_v49 = vrot.slane %v1224_v38, 1  ;;  %1946 = vmatpush.msrb.mxu2 %v1838_v62 }
 0x1d3   :  { %1191 = vst.msk [vmem:[#allocation3 + $0xb8] sm:$0x3] %vm161_vm2, %v1160_v18  ;;  %v9104_v12 = vadd.f32 %v1051_v46, %v987_v36  ;;  %v1403_v28 = vrot.slane %v1225_v58, 2  ;;  %v1381_v43 = vrot.slane %v1225_v58, 1  ;;  %v6623_v46 = vpack.i.bf16 %v9077_v33, %v9046_v52 }
 0x1d4   :  { %6634 = vrot.lane.b32.xlu1 %v6633_v42, %s7772_s0  ;;  %v1414_v18 = vsel %vm273_vm4, %v1412_v51, %v1413_v21  ;;  %v1418_v36 = vrot.slane %v8977_v1, 2 }
 0x1d5   :  { %12673 = vst [vmem:[#allocation20_spill] sm:$0xff] %v9104_v12  ;;  %v12570_v15 = vmax.f32 %v9104_v12, 0.0  ;;  %v1404_v32 = vsel %vm322_vm5, %v1402_v19, %v1403_v28  ;;  %v9122_v58 = vsel %vm273_vm4, %v1380_v49, %v1381_v43  ;;  %v1419_v19 = vrot.slane %v8981_v10, 2  ;;  %v1057_v28 = vpop.f32.mrf.mxu3 }
 0x1d6   :  { %6176 = vmatmul.msk.f32.gmra.mxu0 %vm159_vm1, %v1404_v32  ;;  %v6648_v43 = vpack.i.bf16 %v1414_v18, %v9122_v58  ;;  %v1304_v10 = vrot.slane %v9004_v3, 1  ;;  %v1836_v18 = vld [vmem:[%s12538_s3 + $0xe0] sm:$0xff] }
 0x1d7   :  { %v1113_v42 = vrot.slane %v12570_v15, 7  ;;  %v1305_v15 = vrot.slane %v9016_v44, 1 }
 0x1d8   :  { %6624 = vrot.lane.b32.xlu2 %v6623_v46, %s7771_s22  ;;  %v989_v55 = vpop.f32.mrf.mxu1 }
 0x1d9   :  { %v1145_v62 = vsel %vm126_vm3, 0.0, %v1113_v42  ;;  %v1161_v52 = vsel %vm126_vm3, %v1113_v42, 0.0  ;;  %6629 = vrot.lane.b32.xlu0 %v6618_v35, %s7772_s0  ;;  %v990_v51 = vadd.f32 %v989_v55, %v925_v6  ;;  %v9129_v21 = vld [vmem:[#allocation3 + $0xb0] sm:$0xff]  ;;  %v1420_v42 = vsel %vm322_vm5, %v1418_v36, %v1419_v19  ;;  %v1837_v55 = vld [vmem:[%s12538_s3 + $0xe8] sm:$0xff] }
 0x1da   :  { %1192 = vst.msk [vmem:[#allocation3 + $0xc0] sm:$0xff] %vm159_vm1, %v1145_v62  ;;  %v1231_v49 = vld [vmem:[#allocation3 + $0xb8] sm:$0x3]  ;;  %v1307_v35 = vrot.slane %v9129_v21, 1  ;;  %1947 = vmatpush.msrb.mxu2 %v1837_v55  ;;  %v928_v36 = vadd.f32 %v8869_v26, %v8813_v8  ;;  %v6638_v19 = vpack.i.bf16 %v8977_v1, %v1224_v38  ;;  %v1822_v8 = vld [vmem:[%s12538_s3 + $0x70] sm:$0xff]  ;;  %v1352_v1 = vrot.slane %v9004_v3, 2 }
 0x1db   :  { %1193 = vst.msk [vmem:[#allocation3 + $0xc8] sm:$0x3] %vm161_vm2, %v1161_v52  ;;  %v9136_v46 = vadd.f32 %v1054_v23, %v990_v51  ;;  %v1308_v6 = vrot.slane %v1231_v49, 1  ;;  %v1823_v23 = vld [vmem:[%s12538_s3 + $0x78] sm:$0xff]  ;;  %v6643_v52 = vpack.i.bf16 %v1404_v32, %v9077_v33  ;;  %v1353_v33 = vrot.slane %v9016_v44, 2 }
 0x1dc   :  { %6649 = vrot.lane.b32.xlu1 %v6648_v43, %s7772_s0  ;;  %1948 = vmatpush.msrb.mxu2 %v1836_v18  ;;  %v1306_v43 = vsel %vm273_vm4, %v1304_v10, %v1305_v15  ;;  %v1355_v38 = vrot.slane %v9129_v21, 2  ;;  %v1356_v32 = vrot.slane %v1231_v49, 2 }
 0x1dd   :  { %12674 = vst [vmem:[#allocation9_spill] sm:$0xff] %v9136_v46  ;;  %v12573_v62 = vmax.f32 %v9136_v46, 0.0  ;;  %v9160_v55 = vsel %vm273_vm4, %v1307_v35, %v1308_v6  ;;  %1880 = vmatpush.msrb.mxu3 %v1823_v23  ;;  %v1060_v18 = vpop.f32.mrf.mxu3  ;;  %v1821_v23 = vld [vmem:[%s12538_s3 + $0x68] sm:$0xff] }
 0x1de   :  { %6177 = vmatmul.msk.f32.gmra.mxu0 %vm159_vm1, %v1420_v42  ;;  %v6653_v44 = vpack.i.bf16 %v9160_v55, %v1306_v43  ;;  %v1354_v43 = vsel %vm322_vm5, %v1352_v1, %v1353_v33  ;;  %v931_v33 = vadd.f32 %v8869_v26, %v8823_v5 }
 0x1df   :  { %v1114_v51 = vrot.slane %v12573_v62, 7  ;;  %1881 = vmatpush.msrb.mxu3 %v1822_v8  ;;  %v1820_v8 = vld [vmem:[%s12538_s3 + $0x60] sm:$0xff] }
 0x1e0   :  { %6639 = vrot.lane.b32.xlu2 %v6638_v19, %s7771_s22  ;;  %v992_v42 = vpop.f32.mrf.mxu1 }
 0x1e1   :  { %v1146_v15 = vsel %vm126_vm3, 0.0, %v1114_v51  ;;  %v1162_v10 = vsel %vm126_vm3, %v1114_v51, 0.0  ;;  %6644 = vrot.lane.b32.xlu0 %v6643_v52, %s7770_s26  ;;  %v993_v35 = vadd.f32 %v992_v42, %v928_v36  ;;  %v9172_v6 = vld [vmem:[#allocation3 + $0xc0] sm:$0xff]  ;;  %v1835_v52 = vld [vmem:[%s12538_s3 + $0xd8] sm:$0xff]  ;;  %1882 = vmatpush.msrb.mxu3 %v1821_v23  ;;  %v1357_v42 = vsel %vm322_vm5, %v1355_v38, %v1356_v32  ;;  %v1818_v23 = vld [vmem:[%s12538_s3 + $0x50] sm:$0xff] }
 0x1e2   :  { %1194 = vst.msk [vmem:[#allocation3 + $0xd0] sm:$0xff] %vm159_vm1, %v1146_v15  ;;  %v1233_v49 = vld [vmem:[#allocation3 + $0xc8] sm:$0x3]  ;;  %v1358_v19 = vrot.slane %v9172_v6, 2  ;;  %1949 = vmatpush.msrb.mxu2 %v1835_v52  ;;  %v6663_v1 = vpack.i.bf16 %v9172_v6, %v9129_v21  ;;  %v6658_v32 = vpack.i.bf16 %v1357_v42, %v1354_v43 }
 0x1e3   :  { %1195 = vst.msk [vmem:[#allocation3 + $0xd8] sm:$0x3] %vm161_vm2, %v1162_v10  ;;  %v9181_v51 = vadd.f32 %v1057_v28, %v993_v35  ;;  %v1359_v36 = vrot.slane %v1233_v49, 2  ;;  %v1834_v28 = vld [vmem:[%s12538_s3 + $0xd0] sm:$0xff]  ;;  %1883 = vmatpush.msrb.mxu3 %v1820_v8  ;;  %v1819_v35 = vld [vmem:[%s12538_s3 + $0x58] sm:$0xff]  ;;  %v1311_v43 = vrot.slane %v1233_v49, 1 }
 0x1e4   :  { %6654 = vrot.lane.b32.xlu1 %v6653_v44, %s7770_s26  ;;  %1950 = vmatpush.msrb.mxu2 %v1834_v28  ;;  %v1817_v28 = vld [vmem:[%s12538_s3 + $0x48] sm:$0xff] }
 0x1e5   :  { %12675 = vst [vmem:[#allocation14_spill] sm:$0xff] %v9181_v51  ;;  %v12571_v15 = vmax.f32 %v9181_v51, 0.0  ;;  %v9197_v10 = vsel %vm322_vm5, %v1358_v19, %v1359_v36  ;;  %1884 = vmatpush.msrb.mxu3 %v1819_v35  ;;  %v1310_v19 = vrot.slane %v9172_v6, 1 }
 0x1e6   :  { %6178 = vmatmul.msk.f32.gmra.mxu0 %vm159_vm1, %v9197_v10  ;;  %v6668_v35 = vpack.i.bf16 %v9197_v10, %v1357_v42  ;;  %v1816_v42 = vld [vmem:[%s12538_s3 + $0x40] sm:$0xff] }
 0x1e7   :  { %v1115_v38 = vrot.slane %v12571_v15, 7  ;;  %1885 = vmatpush.msrb.mxu3 %v1818_v23  ;;  %v1063_v23 = vpop.f32.mrf.mxu3 }
 0x1e8   :  { %6664 = vrot.lane.b32.xlu2 %v6663_v1, %s7772_s0  ;;  %v995_v44 = vpop.f32.mrf.mxu1 }
 0x1e9   :  { %v1147_v36 = vsel %vm126_vm3, 0.0, %v1115_v38  ;;  %v1163_v52 = vsel %vm126_vm3, %v1115_v38, 0.0  ;;  %6659 = vrot.lane.b32.xlu0 %v6658_v32, %s7771_s22  ;;  %v996_v5 = vadd.f32 %v995_v44, %v931_v33  ;;  %v9218_v8 = vld [vmem:[#allocation3 + $0xd0] sm:$0xff]  ;;  %v1833_v44 = vld [vmem:[%s12538_s3 + $0xc8] sm:$0xff]  ;;  %1886 = vmatpush.msrb.mxu3 %v1817_v28  ;;  %v9246_v28 = vsel %vm273_vm4, %v1310_v19, %v1311_v43 }
 0x1ea   :  { %1196 = vst.msk [vmem:[#allocation3 + $0xe0] sm:$0xff] %vm159_vm1, %v1147_v36  ;;  %v1235_v1 = vld [vmem:[#allocation3 + $0xd8] sm:$0x3]  ;;  %v1361_v15 = vrot.slane %v9218_v8, 2  ;;  %v1313_v38 = vrot.slane %v9218_v8, 1  ;;  %1951 = vmatpush.msrb.mxu2 %v1833_v44  ;;  %v1832_v36 = vld [vmem:[%s12538_s3 + $0xc0] sm:$0xff]  ;;  %v6673_v43 = vpack.i.bf16 %v9218_v8, %v9172_v6 }
 0x1eb   :  { %1197 = vst.msk [vmem:[#allocation3 + $0xe8] sm:$0x3] %vm161_vm2, %v1163_v52  ;;  %v9228_v33 = vadd.f32 %v1060_v18, %v996_v5  ;;  %v1362_v32 = vrot.slane %v1235_v1, 2  ;;  %v1314_v49 = vrot.slane %v1235_v1, 1  ;;  %v1815_v18 = vld [vmem:[%s12538_s3 + $0x38] sm:$0xff]  ;;  %1887 = vmatpush.msrb.mxu3 %v1816_v42  ;;  %v1814_v44 = vld [vmem:[%s12538_s3 + $0x30] sm:$0xff] }
 0x1ec   :  { %6669 = vrot.lane.b32.xlu1 %v6668_v35, %s7770_s26  ;;  %1952 = vmatpush.msrb.mxu2 %v1832_v36 }
 0x1ed   :  { %12676 = vst [vmem:[#allocation15_spill] sm:$0xff] %v9228_v33  ;;  %v12572_v52 = vmax.f32 %v9228_v33, 0.0  ;;  %v1363_v5 = vsel %vm322_vm5, %v1361_v15, %v1362_v32  ;;  %v9249_v1 = vsel %vm273_vm4, %v1313_v38, %v1314_v49  ;;  %v934_v15 = vadd.f32 %v8869_v26, %v8831_v47  ;;  %1888 = vmatpush.msrb.mxu3 %v1815_v18  ;;  %v1813_v32 = vld [vmem:[%s12538_s3 + $0x28] sm:$0xff]  ;;  %v1831_v18 = vld [vmem:[%s12538_s3 + $0xb8] sm:$0xff] }
 0x1ee   :  { %6179 = vmatmul.msk.f32.gmra.mxu0 %vm159_vm1, %v1363_v5  ;;  %v9254_v35 = vpack.i.bf16 %v9249_v1, %v9246_v28  ;;  %1953 = vmatpush.msrb.mxu2 %v1831_v18 }
 0x1ef   :  { %v1116_v19 = vrot.slane %v12572_v52, 7  ;;  %1889 = vmatpush.msrb.mxu3 %v1814_v44  ;;  %v6683_v52 = vpack.i.bf16 %v1363_v5, %v9197_v10  ;;  %v1811_v10 = vld [vmem:[%s12538_s3 + $0x18] sm:$0xff] }
 0x1f0   :  { %6679 = vrot.lane.b32.xlu2 %v9254_v35, %s7770_s26  ;;  %v998_v38 = vpop.f32.mrf.mxu1 }
 0x1f1   :  { %v1148_v49 = vsel %vm126_vm3, 0.0, %v1116_v19  ;;  %v1164_v42 = vsel %vm126_vm3, %v1116_v19, 0.0  ;;  %6674 = vrot.lane.b32.xlu0 %v6673_v43, %s7771_s22  ;;  %v999_v47 = vadd.f32 %v998_v38, %v934_v15  ;;  %v9273_v36 = vld [vmem:[#allocation3 + $0xe0] sm:$0xff]  ;;  %1890 = vmatpush.msrb.mxu3 %v1813_v32  ;;  %v1830_v43 = vld [vmem:[%s12538_s3 + $0xb0] sm:$0xff] }
 0x1f2   :  { %1198 = vst.msk [vmem:[#allocation3 + $0xf0] sm:$0xff] %vm159_vm1, %v1148_v49  ;;  %v1237_v62 = vld [vmem:[#allocation3 + $0xe8] sm:$0x3]  ;;  %v1364_v50 = vrot.slane %v9273_v36, 2  ;;  %v1812_v19 = vld [vmem:[%s12538_s3 + $0x20] sm:$0xff]  ;;  %v9294_v38 = vld [vmem:[#allocation3 + $0x130] sm:$0xff]  ;;  %1954 = vmatpush.msrb.mxu2 %v1830_v43 }
 0x1f3   :  { %1199 = vst.msk [vmem:[#allocation3 + $0xf8] sm:$0x3] %vm161_vm2, %v1164_v42  ;;  %v9285_v15 = vadd.f32 %v1063_v23, %v999_v47  ;;  %v1365_v44 = vrot.slane %v1237_v62, 2  ;;  %v1066_v23 = vpop.f32.mrf.mxu3  ;;  %1891 = vmatpush.msrb.mxu3 %v1812_v19  ;;  %v1810_v47 = vld [vmem:[%s12538_s3 + $0x10] sm:$0xff]  ;;  %v6688_v19 = vpack.i.bf16 %v9273_v36, %v9218_v8  ;;  %v1809_v43 = vld [vmem:[%s12538_s3 + $0x8] sm:$0xff]  ;;  %v1317_v37 = vrot.slane %v1237_v62, 1 }
 0x1f4   :  { %6684 = vrot.lane.b32.xlu1 %v6683_v52, %s7771_s22  ;;  %3228 = vst.msk [vmem:[#allocation3 + $0x130] sm:$0xff] %vm159_vm1, %v12667_v11  ;;  %v9300_v52 = vld [vmem:[#allocation3 + $0x138] sm:$0x3]  ;;  %v1415_v40 = vrot.slane %v9294_v38, 1 }
 0x1f5   :  { %12677 = vst [vmem:[#allocation18_spill] sm:$0xff] %v9285_v15  ;;  %v12576_v49 = vmax.f32 %v9285_v15, 0.0  ;;  %v1366_v42 = vsel %vm322_vm5, %v1364_v50, %v1365_v44  ;;  %v937_v50 = vadd.f32 %v8869_v26, %v8840_v14  ;;  %1892 = vmatpush.msrb.mxu3 %v1811_v10  ;;  %v1316_v44 = vrot.slane %v9273_v36, 1 }
 0x1f6   :  { %6180 = vmatmul.msk.f32.gmra.mxu0 %vm159_vm1, %v1366_v42  ;;  %v6693_v32 = vpack.i.bf16 %v1366_v42, %v1363_v5  ;;  %3229 = vst.msk [vmem:[#allocation3 + $0x138] sm:$0x3] %vm161_vm2, %v12667_v11 }
 0x1f7   :  { %v1117_v18 = vrot.slane %v12576_v49, 7  ;;  %1893 = vmatpush.msrb.mxu3 %v1810_v47 }
 0x1f8   :  { %6694 = vrot.lane.b32.xlu2 %v6693_v32, %s7770_s26  ;;  %v1001_v5 = vpop.f32.mrf.mxu1 }
 0x1f9   :  { %v1149_v2 = vsel %vm126_vm3, 0.0, %v1117_v18  ;;  %v1165_v14 = vsel %vm126_vm3, %v1117_v18, 0.0  ;;  %6689 = vrot.lane.b32.xlu0 %v6688_v19, %s7772_s0  ;;  %v1002_v49 = vadd.f32 %v1001_v5, %v937_v50  ;;  %v9322_v56 = vld [vmem:[#allocation3 + $0xf0] sm:$0xff]  ;;  %v1808_v18 = vld [vmem:[%s12538_s3] sm:$0xff]  ;;  %1894 = vmatpush.msrb.mxu3 %v1809_v43 }
 0x1fa   :  { %1200 = vst.msk [vmem:[#allocation3 + $0x100] sm:$0xff] %vm159_vm1, %v1149_v2  ;;  %v6698_v10 = vpack.i.bf16 %v9322_v56, %v9273_v36  ;;  %v1239_v32 = vld [vmem:[#allocation3 + $0xf8] sm:$0x3]  ;;  %v1367_v0 = vrot.slane %v9322_v56, 2  ;;  %v1319_v16 = vrot.slane %v9322_v56, 1  ;;  %v1829_v2 = vld [vmem:[%s12538_s3 + $0xa8] sm:$0xff] }
 0x1fb   :  { %1201 = vst.msk [vmem:[#allocation3 + $0x108] sm:$0x3] %vm161_vm2, %v1165_v14  ;;  %v9333_v50 = vadd.f32 %v1066_v23, %v1002_v49  ;;  %v1368_v62 = vrot.slane %v1239_v32, 2  ;;  %v1320_v47 = vrot.slane %v1239_v32, 1  ;;  %1955 = vmatpush.msrb.mxu2 %v1829_v2  ;;  %v1828_v19 = vld [vmem:[%s12538_s3 + $0xa0] sm:$0xff]  ;;  %1895 = vmatpush.msrb.mxu3 %v1808_v18  ;;  %v9346_v23 = vsel %vm273_vm4, %v1316_v44, %v1317_v37  ;;  %v1069_v18 = vpop.f32.mrf.mxu3 }
 0x1fc   :  { %6699 = vrot.lane.b32.xlu1 %v6698_v10, %s7771_s22  ;;  %v940_v10 = vadd.f32 %v8869_v26, %v8854_v13 }
 0x1fd   :  { %12678 = vst [vmem:[#allocation19_spill] sm:$0xff] %v9333_v50  ;;  %v12581_v5 = vmax.f32 %v9333_v50, 0.0  ;;  %v1369_v14 = vsel %vm322_vm5, %v1367_v0, %v1368_v62  ;;  %v9349_v43 = vsel %vm273_vm4, %v1319_v16, %v1320_v47  ;;  %1956 = vmatpush.msrb.mxu2 %v1828_v19  ;;  %v9359_v62 = vpop.permute.xlu2 %6539 }
 0x1fe   :  { %6181 = vmatmul.msk.f32.gmra.mxu0 %vm159_vm1, %v1369_v14  ;;  %v6708_v49 = vpack.i.bf16 %v1369_v14, %v1366_v42  ;;  %v9357_v0 = vpack.i.bf16 %v9349_v43, %v9346_v23 }
 0x1ff   :  { %v1118_v32 = vrot.slane %v12581_v5, 7 }
 0x200   :  { %6709 = vrot.lane.b32.xlu2 %v6708_v49, %s7771_s22  ;;  %v1004_v37 = vpop.f32.mrf.mxu1 }
 0x201   :  { %v1150_v16 = vsel %vm126_vm3, 0.0, %v1118_v32  ;;  %v1166_v42 = vsel %vm126_vm3, %v1118_v32, 0.0  ;;  %6704 = vrot.lane.b32.xlu0 %v9357_v0, %s7770_s26  ;;  %v1005_v13 = vadd.f32 %v1004_v37, %v940_v10  ;;  %v9366_v26 = vld [vmem:[#allocation3 + $0x100] sm:$0xff]  ;;  %v1827_v10 = vld [vmem:[%s12538_s3 + $0x98] sm:$0xff] }
 0x202   :  { %1202 = vst.msk [vmem:[#allocation3 + $0x110] sm:$0xff] %vm159_vm1, %v1150_v16  ;;  %v6713_v44 = vpack.i.bf16 %v9366_v26, %v9322_v56  ;;  %v1241_v2 = vld [vmem:[#allocation3 + $0x108] sm:$0x3]  ;;  %v1370_v47 = vrot.slane %v9366_v26, 2  ;;  %1957 = vmatpush.msrb.mxu2 %v1827_v10 }
 0x203   :  { %1203 = vst.msk [vmem:[#allocation3 + $0x118] sm:$0x3] %vm161_vm2, %v1166_v42  ;;  %v9373_v19 = vadd.f32 %v1069_v18, %v1005_v13  ;;  %v1371_v49 = vrot.slane %v1241_v2, 2  ;;  %v1826_v13 = vld [vmem:[%s12538_s3 + $0x90] sm:$0xff] }
 0x204   :  { %6714 = vrot.lane.b32.xlu1 %v6713_v44, %s7772_s0  ;;  %1958 = vmatpush.msrb.mxu2 %v1826_v13  ;;  %v1824_v13 = vld [vmem:[%s12538_s3 + $0x80] sm:$0xff] }
 0x205   :  { %12679 = vst [vmem:[#allocation12_spill] sm:$0xff] %v9373_v19  ;;  %v12582_v32 = vmax.f32 %v9373_v19, 0.0  ;;  %v1372_v37 = vsel %vm322_vm5, %v1370_v47, %v1371_v49  ;;  %v1322_v49 = vrot.slane %v9366_v26, 1 }
 0x206   :  { %6182 = vmatmul.msk.f32.gmra.mxu0 %vm159_vm1, %v1372_v37  ;;  %v6718_v16 = vpack.i.bf16 %v1372_v37, %v1369_v14  ;;  %v9384_v18 = vpop.permute.xlu2 %6554  ;;  %v1323_v14 = vrot.slane %v1241_v2, 1  ;;  %v1825_v2 = vld [vmem:[%s12538_s3 + $0x88] sm:$0xff] }
 0x207   :  { %v1119_v42 = vrot.slane %v12582_v32, 7  ;;  %1959 = vmatpush.msrb.mxu2 %v1825_v2 }
 0x208   :  { %v9410_v50 = vsel %vm273_vm4, %v1322_v49, %v1323_v14 }
 0x209   :  { %v1151_v44 = vsel %vm126_vm3, 0.0, %v1119_v42  ;;  %v1167_v5 = vsel %vm126_vm3, %v1119_v42, 0.0  ;;  %6719 = vrot.lane.b32.xlu0 %v6718_v16, %s7770_s26  ;;  %v9392_v47 = vld [vmem:[#allocation3 + $0x110] sm:$0xff]  ;;  %1960 = vmatpush.msrb.mxu2 %v1824_v13  ;;  %v6541_v13 = vunpack.i.l.bf16 %v9359_v62 }
 0x20a   :  { %1204 = vst.msk [vmem:[#allocation3 + $0x120] sm:$0xff] %vm159_vm1, %v1151_v44  ;;  %v6723_v10 = vpack.i.bf16 %v9392_v47, %v9366_v26  ;;  %v1243_v32 = vld [vmem:[#allocation3 + $0x118] sm:$0x3]  ;;  %v1373_v59 = vrot.slane %v9392_v47, 2  ;;  %v1325_v19 = vrot.slane %v9392_v47, 1 }
 0x20b   :  { %1205 = vst.msk [vmem:[#allocation3 + $0x128] sm:$0x3] %vm161_vm2, %v1167_v5  ;;  %v1374_v42 = vrot.slane %v1243_v32, 2  ;;  %v1326_v16 = vrot.slane %v1243_v32, 1 }
 0x20c   :  { %6724 = vrot.lane.b32.xlu2 %v6723_v10, %s7771_s22 }
 0x20d   :  { %v1375_v44 = vsel %vm322_vm5, %v1373_v59, %v1374_v42  ;;  %v9413_v15 = vsel %vm273_vm4, %v1325_v19, %v1326_v16 }
 0x20e   :  { %6183 = vmatmul.msk.f32.gmra.mxu0 %vm159_vm1, %v1375_v44  ;;  %v6733_v5 = vpack.i.bf16 %v9413_v15, %v9410_v50  ;;  %v6738_v32 = vpack.i.bf16 %v1375_v44, %v1372_v37  ;;  %v9420_v59 = vpop.permute.xlu2 %6574 }
 0x210   :  { %6734 = vrot.lane.b32.xlu1 %v6733_v5, %s7770_s26 }
 0x211   :  { %6739 = vrot.lane.b32.xlu0 %v6738_v32, %s7771_s22  ;;  %v1244_v10 = vld [vmem:[#allocation3 + $0x120] sm:$0xff] }
 0x212   :  { %v6535_v49 = vpop.permute.xlu0 %6534  ;;  %v1245_v14 = vld [vmem:[#allocation3 + $0x128] sm:$0x3]  ;;  %v1405_v42 = vrot.slane %v1244_v10, 2  ;;  %v6753_v33 = vpack.i.bf16 %v9294_v38, %v1244_v10 }
 0x213   :  { %v6536_v19 = vunpack.i.l.bf16 %v6535_v49  ;;  %v1406_v16 = vrot.slane %v1245_v14, 2  ;;  %v6537_v12 = vunpack.i.h.bf16 %v6535_v49  ;;  %v1384_v27 = vrot.slane %v1245_v14, 1 }
 0x214   :  { %6729 = vrot.lane.b32.xlu2 %v9254_v35, %s7772_s0 }
 0x215   :  { %v1407_v2 = vsel %vm322_vm5, %v1405_v42, %v1406_v16  ;;  %v1712_v37 = vsel %vm159_vm1, %v8845_v61, %v6536_v19  ;;  %v6748_v19 = vpack.i.bf16 %v1244_v10, %v9392_v47  ;;  %v1383_v16 = vrot.slane %v1244_v10, 1 }
 0x216   :  { %6184 = vmatmul.msk.f32.gmra.mxu0 %vm159_vm1, %v1407_v2  ;;  %v6545_v32 = vpop.permute.xlu1 %6544  ;;  %v1728_v46 = vsel %vm723_vm6, %v1712_v37, %v6541_v13 }
 0x217   :  { %v6546_v51 = vunpack.i.l.bf16 %v6545_v32  ;;  %v6547_v49 = vunpack.i.h.bf16 %v6545_v32  ;;  %v9445_v37 = vsel %vm273_vm4, %v1383_v16, %v1384_v27  ;;  %v6576_v32 = vunpack.i.l.bf16 %v9420_v59 }
 0x218   :  { %6754 = vrot.lane.b32.xlu1 %v6753_v33, %s7771_s22  ;;  %v1416_v33 = vrot.slane %v9300_v52, 1 }
 0x219   :  { %6744 = vrot.lane.b32.xlu0 %v9357_v0, %s7772_s0  ;;  %v1744_v35 = vsel %vm740_vm7, %v1728_v46, %v6546_v51  ;;  %v1713_v0 = vsel %vm159_vm1, %v8895_v34, %v6537_v12  ;;  %v6542_v46 = vunpack.i.h.bf16 %v9359_v62  ;;  %v6758_v51 = vpack.i.bf16 %v1407_v2, %v1375_v44 }
 0x21a   :  { %v9435_v42 = vpop.permute.xlu2 %6589  ;;  %v6550_v61 = vpop.permute.xlu0 %6549  ;;  %1896 = vmatmul.f32.vlgmr.msrb.gmra.mxu3 %v1744_v35  ;;  %v1417_v13 = vsel %vm273_vm4, %v1415_v40, %v1416_v33 }
 0x21b   :  { %v1729_v10 = vsel %vm723_vm6, %v1713_v0, %v6542_v46  ;;  %v6768_v34 = vpack.i.bf16 %v1417_v13, %v9445_v37  ;;  %v6551_v27 = vunpack.i.l.bf16 %v6550_v61 }
 0x21c   :  { %6749 = vrot.lane.b32.xlu2 %v6748_v19, %s7772_s0  ;;  %v1745_v14 = vsel %vm740_vm7, %v1729_v10, %v6547_v49 }
 0x21d   :  { %v1760_v46 = vsel %vm159_vm1, %v8908_v63, %v6551_v27  ;;  %v6557_v27 = vunpack.i.h.bf16 %v9384_v18 }
 0x220   :  { %6759 = vrot.lane.b32.xlu1 %v6758_v51, %s7770_s26  ;;  %v6556_v51 = vunpack.i.l.bf16 %v9384_v18 }
 0x222   :  { %v6560_v35 = vpop.permute.xlu1 %6559  ;;  %v9451_v19 = vpop.permute.xlu2 %6599  ;;  %1899 = vmatmul.f32.gmra.mxu3 %v1745_v14 }
 0x223   :  { %v6561_v12 = vunpack.i.l.bf16 %v6560_v35  ;;  %v6565_v62 = vpop.permute.xlu0 %6564  ;;  %v6562_v16 = vunpack.i.h.bf16 %v6560_v35  ;;  %v1776_v35 = vsel %vm723_vm6, %v1760_v46, %v6556_v51 }
 0x224   :  { %v6566_v44 = vunpack.i.l.bf16 %v6565_v62  ;;  %6769 = vrot.lane.b32.xlu2 %v6768_v34, %s7772_s0  ;;  %v6567_v49 = vunpack.i.h.bf16 %v6565_v62  ;;  %v6577_v62 = vunpack.i.h.bf16 %v9420_v59 }
 0x225   :  { %v1714_v40 = vsel %vm159_vm1, %v8918_v41, %v6561_v12  ;;  %v1715_v13 = vsel %vm159_vm1, %v8938_v39, %v6562_v16 }
 0x226   :  { %v1730_v2 = vsel %vm723_vm6, %v1714_v40, %v6566_v44  ;;  %v1731_v12 = vsel %vm723_vm6, %v1715_v13, %v6567_v49  ;;  %v6591_v49 = vunpack.i.l.bf16 %v9435_v42  ;;  %v6601_v13 = vunpack.i.l.bf16 %v9451_v19 }
 0x227   :  { %v1746_v33 = vsel %vm740_vm7, %v1730_v2, %v6576_v32  ;;  %v1747_v63 = vsel %vm740_vm7, %v1731_v12, %v6577_v62 }
 0x228   :  { %6764 = vrot.lane.b32.xlu1 %v6733_v5, %s7772_s0  ;;  %v6552_v5 = vunpack.i.h.bf16 %v6550_v61 }
 0x22a   :  { %v9461_v0 = vpop.permute.xlu2 %6609  ;;  %1902 = vmatmul.f32.gmra.mxu3 %v1746_v33  ;;  %v6580_v10 = vpop.permute.xlu1 %6579  ;;  %v1761_v39 = vsel %vm159_vm1, %v8952_v22, %v6552_v5 }
 0x22b   :  { %v6570_v41 = vpop.permute.xlu0 %6569  ;;  %v1777_v61 = vsel %vm723_vm6, %v1761_v39, %v6557_v27  ;;  %v6581_v32 = vunpack.i.l.bf16 %v6580_v10 }
 0x22c   :  { %v6571_v14 = vunpack.i.l.bf16 %v6570_v41  ;;  %v6572_v44 = vunpack.i.h.bf16 %v6570_v41 }
 0x22d   :  { %v1762_v41 = vsel %vm159_vm1, %v8955_v9, %v6581_v32  ;;  %v6592_v9 = vunpack.i.h.bf16 %v9435_v42 }
 0x22e   :  { %v1792_v34 = vsel %vm740_vm7, %v1776_v35, %v6571_v14  ;;  %v1793_v33 = vsel %vm740_vm7, %v1777_v61, %v6572_v44  ;;  %v1716_v35 = vsel %vm159_vm1, %v8967_v54, %v6591_v49 }
 0x22f   :  { %1961 = vmatmul.f32.vlgmr.msrb.gmra.mxu2 %v1792_v34  ;;  %v6582_v34 = vunpack.i.h.bf16 %v6580_v10 }
 0x231   :  { %v1763_v54 = vsel %vm159_vm1, %v9011_v45, %v6582_v34  ;;  %v6611_v45 = vunpack.i.l.bf16 %v9461_v0 }
 0x232   :  { %v9473_v40 = vpop.permute.xlu2 %6624  ;;  %1905 = vmatmul.f32.gmra.mxu3 %v1747_v63  ;;  %v6595_v16 = vpop.permute.xlu1 %6594 }
 0x233   :  { %v6585_v2 = vpop.permute.xlu0 %6584  ;;  %v6596_v46 = vunpack.i.l.bf16 %v6595_v16  ;;  %v6597_v39 = vunpack.i.h.bf16 %v6595_v16 }
 0x234   :  { %v6586_v59 = vunpack.i.l.bf16 %v6585_v2  ;;  %v6587_v44 = vunpack.i.h.bf16 %v6585_v2 }
 0x235   :  { %v1732_v5 = vsel %vm723_vm6, %v1716_v35, %v6596_v46  ;;  %v1764_v35 = vsel %vm159_vm1, %v9014_v24, %v6611_v45 }
 0x236   :  { %v1778_v18 = vsel %vm723_vm6, %v1762_v41, %v6586_v59  ;;  %v1779_v10 = vsel %vm723_vm6, %v1763_v54, %v6587_v44  ;;  %v1717_v59 = vsel %vm159_vm1, %v8996_v53, %v6592_v9  ;;  %v6626_v53 = vunpack.i.l.bf16 %v9473_v40 }
 0x237   :  { %1964 = vmatmul.f32.gmra.mxu2 %v1793_v33  ;;  %v1794_v62 = vsel %vm740_vm7, %v1778_v18, %v6601_v13  ;;  %v6602_v33 = vunpack.i.h.bf16 %v9451_v19  ;;  %v1733_v2 = vsel %vm723_vm6, %v1717_v59, %v6597_v39 }
 0x239   :  { %v1795_v16 = vsel %vm740_vm7, %v1779_v10, %v6602_v33  ;;  %v6627_v10 = vunpack.i.h.bf16 %v9473_v40 }
 0x23a   :  { %v9481_v51 = vpop.permute.xlu2 %6639 }
 0x23b   :  { %v6605_v22 = vpop.permute.xlu0 %6604  ;;  %v6641_v40 = vunpack.i.l.bf16 %v9481_v51 }
 0x23c   :  { %v6606_v14 = vunpack.i.l.bf16 %v6605_v22  ;;  %v6607_v27 = vunpack.i.h.bf16 %v6605_v22 }
 0x23e   :  { %v1748_v12 = vsel %vm740_vm7, %v1732_v5, %v6606_v14  ;;  %v6615_v63 = vpop.permute.xlu1 %6614  ;;  %v1749_v42 = vsel %vm740_vm7, %v1733_v2, %v6607_v27 }
 0x23f   :  { %1908 = vmatmul.f32.gmra.mxu3 %v1748_v12  ;;  %1967 = vmatmul.f32.gmra.mxu2 %v1794_v62  ;;  %v6616_v41 = vunpack.i.l.bf16 %v6615_v63  ;;  %v6617_v39 = vunpack.i.h.bf16 %v6615_v63 }
 0x241   :  { %v1780_v34 = vsel %vm723_vm6, %v1764_v35, %v6616_v41 }
 0x242   :  { %v9493_v61 = vpop.permute.xlu2 %6664 }
 0x243   :  { %v6620_v32 = vpop.permute.xlu0 %6619 }
 0x244   :  { %v6621_v49 = vunpack.i.l.bf16 %v6620_v32  ;;  %v6622_v12 = vunpack.i.h.bf16 %v6620_v32 }
 0x246   :  { %v6635_v46 = vpop.permute.xlu1 %6634  ;;  %v1718_v19 = vsel %vm159_vm1, %v9037_v31, %v6621_v49  ;;  %v6612_v31 = vunpack.i.h.bf16 %v9461_v0  ;;  %v1719_v24 = vsel %vm159_vm1, %v9061_v57, %v6622_v12 }
 0x247   :  { %1911 = vmatmul.f32.gmra.mxu3 %v1749_v42  ;;  %1970 = vmatmul.f32.gmra.mxu2 %v1795_v16  ;;  %v6636_v22 = vunpack.i.l.bf16 %v6635_v46  ;;  %v1734_v5 = vsel %vm723_vm6, %v1718_v19, %v6626_v53  ;;  %v6637_v27 = vunpack.i.h.bf16 %v6635_v46  ;;  %v1735_v49 = vsel %vm723_vm6, %v1719_v24, %v6627_v10 }
 0x248   :  { %v1765_v2 = vsel %vm159_vm1, %v9080_v17, %v6612_v31  ;;  %v6666_v53 = vunpack.i.l.bf16 %v9493_v61  ;;  %v6642_v31 = vunpack.i.h.bf16 %v9481_v51  ;;  %v6667_v10 = vunpack.i.h.bf16 %v9493_v61 }
 0x249   :  { %v1750_v62 = vsel %vm740_vm7, %v1734_v5, %v6636_v22  ;;  %v1781_v42 = vsel %vm723_vm6, %v1765_v2, %v6617_v39  ;;  %v1751_v0 = vsel %vm740_vm7, %v1735_v49, %v6637_v27 }
 0x24a   :  { %v9505_v18 = vpop.permute.xlu2 %6679 }
 0x24b   :  { %v6630_v13 = vpop.permute.xlu0 %6629  ;;  %v6681_v51 = vunpack.i.l.bf16 %v9505_v18 }
 0x24c   :  { %v6631_v14 = vunpack.i.l.bf16 %v6630_v13  ;;  %v6632_v54 = vunpack.i.h.bf16 %v6630_v13 }
 0x24e   :  { %v1796_v44 = vsel %vm740_vm7, %v1780_v34, %v6631_v14  ;;  %v6650_v9 = vpop.permute.xlu1 %6649  ;;  %v1797_v63 = vsel %vm740_vm7, %v1781_v42, %v6632_v54 }
 0x24f   :  { %1914 = vmatmul.f32.gmra.mxu3 %v1750_v62  ;;  %1973 = vmatmul.f32.gmra.mxu2 %v1796_v44  ;;  %v6651_v41 = vunpack.i.l.bf16 %v6650_v9  ;;  %v6652_v54 = vunpack.i.h.bf16 %v6650_v9 }
 0x252   :  { %v9520_v59 = vpop.permute.xlu2 %6694 }
 0x253   :  { %v6645_v33 = vpop.permute.xlu0 %6644 }
 0x254   :  { %v6646_v32 = vunpack.i.l.bf16 %v6645_v33  ;;  %v6647_v22 = vunpack.i.h.bf16 %v6645_v33 }
 0x256   :  { %v6655_v16 = vpop.permute.xlu1 %6654  ;;  %v1766_v57 = vsel %vm159_vm1, %v9083_v20, %v6646_v32  ;;  %v1767_v44 = vsel %vm159_vm1, %v9122_v58, %v6647_v22 }
 0x257   :  { %1917 = vmatmul.f32.gmra.mxu3 %v1751_v0  ;;  %1976 = vmatmul.f32.gmra.mxu2 %v1797_v63  ;;  %v6656_v46 = vunpack.i.l.bf16 %v6655_v16  ;;  %v1782_v17 = vsel %vm723_vm6, %v1766_v57, %v6641_v40  ;;  %v6657_v34 = vunpack.i.h.bf16 %v6655_v16  ;;  %v1722_v63 = vsel %vm159_vm1, %v9172_v6, %v6681_v51 }
 0x258   :  { %v1798_v35 = vsel %vm740_vm7, %v1782_v17, %v6651_v41  ;;  %v6682_v41 = vunpack.i.h.bf16 %v9505_v18 }
 0x259   :  { %v1720_v13 = vsel %vm159_vm1, %v9004_v3, %v6656_v46  ;;  %v1783_v3 = vsel %vm723_vm6, %v1767_v44, %v6642_v31  ;;  %v1721_v27 = vsel %vm159_vm1, %v9129_v21, %v6657_v34 }
 0x25a   :  { %v9535_v14 = vpop.permute.xlu2 %6709  ;;  %v1799_v33 = vsel %vm740_vm7, %v1783_v3, %v6652_v54  ;;  %v1723_v34 = vsel %vm159_vm1, %v9218_v8, %v6682_v41 }
 0x25b   :  { %v6660_v45 = vpop.permute.xlu0 %6659  ;;  %v6712_v51 = vunpack.i.h.bf16 %v9535_v14 }
 0x25c   :  { %v6661_v19 = vunpack.i.l.bf16 %v6660_v45  ;;  %v6662_v62 = vunpack.i.h.bf16 %v6660_v45 }
 0x25e   :  { %v6670_v5 = vpop.permute.xlu1 %6669  ;;  %v1736_v20 = vsel %vm723_vm6, %v1720_v13, %v6661_v19  ;;  %v1737_v24 = vsel %vm723_vm6, %v1721_v27, %v6662_v62  ;;  %v6711_v27 = vunpack.i.l.bf16 %v9535_v14 }
 0x25f   :  { %1979 = vmatmul.f32.gmra.mxu2 %v1798_v35  ;;  %v1752_v12 = vsel %vm740_vm7, %v1736_v20, %v6666_v53  ;;  %v1753_v58 = vsel %vm740_vm7, %v1737_v24, %v6667_v10  ;;  %v6671_v42 = vunpack.i.l.bf16 %v6670_v5  ;;  %v6672_v6 = vunpack.i.h.bf16 %v6670_v5 }
 0x260   :  { %1920 = vmatmul.f32.gmra.mxu3 %v1752_v12 }
 0x261   :  { %v1768_v45 = vsel %vm159_vm1, %v9160_v55, %v6671_v42  ;;  %v1769_v18 = vsel %vm159_vm1, %v9246_v28, %v6672_v6 }
 0x263   :  { %v6675_v39 = vpop.permute.xlu0 %6674 }
 0x264   :  { %v6676_v21 = vunpack.i.l.bf16 %v6675_v39  ;;  %v6677_v35 = vunpack.i.h.bf16 %v6675_v39 }
 0x266   :  { %v6685_v32 = vpop.permute.xlu1 %6684  ;;  %v9549_v2 = vpop.permute.xlu2 %6724  ;;  %v1784_v17 = vsel %vm723_vm6, %v1768_v45, %v6676_v21  ;;  %v1785_v31 = vsel %vm723_vm6, %v1769_v18, %v6677_v35 }
 0x267   :  { %1982 = vmatmul.f32.gmra.mxu2 %v1799_v33  ;;  %v6686_v49 = vunpack.i.l.bf16 %v6685_v32  ;;  %v6687_v19 = vunpack.i.h.bf16 %v6685_v32  ;;  %v6726_v18 = vunpack.i.l.bf16 %v9549_v2 }
 0x268   :  { %1923 = vmatmul.f32.gmra.mxu3 %v1753_v58 }
 0x269   :  { %v1738_v61 = vsel %vm723_vm6, %v1722_v63, %v6686_v49  ;;  %v1739_v12 = vsel %vm723_vm6, %v1723_v34, %v6687_v19 }
 0x26b   :  { %v6690_v0 = vpop.permute.xlu0 %6689 }
 0x26c   :  { %v6691_v9 = vunpack.i.l.bf16 %v6690_v0  ;;  %v6692_v53 = vunpack.i.h.bf16 %v6690_v0  ;;  %v6696_v0 = vunpack.i.l.bf16 %v9520_v59 }
 0x26e   :  { %v9556_v16 = vpop.permute.xlu1 %6699  ;;  %v6730_v57 = vpop.permute.xlu2 %6729  ;;  %v1754_v40 = vsel %vm740_vm7, %v1738_v61, %v6691_v9  ;;  %v1755_v62 = vsel %vm740_vm7, %v1739_v12, %v6692_v53  ;;  %v1770_v14 = vsel %vm159_vm1, %v9249_v1, %v6696_v0 }
 0x26f   :  { %v6731_v46 = vunpack.i.l.bf16 %v6730_v57  ;;  %v6732_v20 = vunpack.i.h.bf16 %v6730_v57  ;;  %v6701_v9 = vunpack.i.l.bf16 %v9556_v16  ;;  %v6702_v53 = vunpack.i.h.bf16 %v9556_v16 }
 0x270   :  { %1926 = vmatmul.f32.gmra.mxu3 %v1754_v40 }
 0x271   :  { %v1800_v22 = vsel %vm740_vm7, %v1784_v17, %v6731_v46  ;;  %v1801_v5 = vsel %vm740_vm7, %v1785_v31, %v6732_v20  ;;  %v1786_v41 = vsel %vm723_vm6, %v1770_v14, %v6701_v9 }
 0x272   :  { %1985 = vmatmul.f32.gmra.mxu2 %v1800_v22 }
 0x273   :  { %v6705_v13 = vpop.permute.xlu0 %6704 }
 0x274   :  { %v6706_v55 = vunpack.i.l.bf16 %v6705_v13  ;;  %v6707_v24 = vunpack.i.h.bf16 %v6705_v13 }
 0x276   :  { %v6715_v44 = vpop.permute.xlu1 %6714  ;;  %v1724_v8 = vsel %vm159_vm1, %v9273_v36, %v6706_v55  ;;  %v1725_v58 = vsel %vm159_vm1, %v9322_v56, %v6707_v24  ;;  %v6750_v61 = vpop.permute.xlu2 %6749 }
 0x277   :  { %v6716_v39 = vunpack.i.l.bf16 %v6715_v44  ;;  %v1740_v54 = vsel %vm723_vm6, %v1724_v8, %v6711_v27  ;;  %v6717_v33 = vunpack.i.h.bf16 %v6715_v44  ;;  %v1741_v42 = vsel %vm723_vm6, %v1725_v58, %v6712_v51  ;;  %v9623_v58 = vld [vmem:[#allocation2 + $0x8] sm:$0x3] }
 0x278   :  { %1929 = vmatmul.f32.gmra.mxu3 %v1755_v62  ;;  %v6751_v45 = vunpack.i.l.bf16 %v6750_v61  ;;  %v6752_v12 = vunpack.i.h.bf16 %v6750_v61  ;;  %v1422_v8 = vrot.slane %v9300_v52, 2  ;;  %4194 = vst.msk [vmem:[#allocation2 + $0x8] sm:$0x3] %vm161_vm2, %v12667_v11 }
 0x279   :  { %v1756_v28 = vsel %vm740_vm7, %v1740_v54, %v6716_v39  ;;  %v1757_v36 = vsel %vm740_vm7, %v1741_v42, %v6717_v33  ;;  %v1421_v39 = vrot.slane %v9294_v38, 2  ;;  %v2027_v38 = vpop.f32.mrf.mxu0 }
 0x27a   :  { %1988 = vmatmul.f32.gmra.mxu2 %v1801_v5 }
 0x27b   :  { %v9572_v3 = vpop.permute.xlu0 %6719  ;;  %v1423_v54 = vsel %vm322_vm5, %v1421_v39, %v1422_v8 }
 0x27c   :  { %v6721_v55 = vunpack.i.l.bf16 %v9572_v3  ;;  %v6722_v27 = vunpack.i.h.bf16 %v9572_v3  ;;  %6185 = vmatmul.msk.f32.gmra.mxu0 %vm159_vm1, %v1423_v54 }
 0x27e   :  { %v6770_v51 = vpop.permute.xlu2 %6769 }
 0x280   :  { %1932 = vmatmul.f32.gmra.mxu3 %v1756_v28  ;;  %v1773_v28 = vsel %vm159_vm1, %v9410_v50, %v6722_v27 }
 0x282   :  { %v6735_v10 = vpop.permute.xlu1 %6734 }
 0x283   :  { %v6740_v32 = vpop.permute.xlu0 %6739  ;;  %v6736_v49 = vunpack.i.l.bf16 %v6735_v10  ;;  %v6737_v17 = vunpack.i.h.bf16 %v6735_v10  ;;  %v6727_v10 = vunpack.i.h.bf16 %v9549_v2  ;;  %v2846_v2 = vld [vmem:[%s12540_s5 + $0x118] sm:$0xff] }
 0x284   :  { %v6741_v21 = vunpack.i.l.bf16 %v6740_v32  ;;  %v6742_v6 = vunpack.i.h.bf16 %v6740_v32  ;;  %v9620_v32 = vld [vmem:[#allocation2] sm:$0xff]  ;;  %3025 = vmatpush.msra.mxu2 %v2846_v2 }
 0x285   :  { %v1726_v63 = vsel %vm159_vm1, %v9366_v26, %v6736_v49  ;;  %v6697_v26 = vunpack.i.h.bf16 %v9520_v59  ;;  %v1727_v1 = vsel %vm159_vm1, %v9392_v47, %v6737_v17  ;;  %v1772_v47 = vsel %vm159_vm1, %v9349_v43, %v6721_v55  ;;  %4193 = vst.msk [vmem:[#allocation2] sm:$0xff] %vm159_vm1, %v12667_v11 }
 0x286   :  { %v1742_v46 = vsel %vm723_vm6, %v1726_v63, %v6741_v21  ;;  %v1743_v34 = vsel %vm723_vm6, %v1727_v1, %v6742_v6  ;;  %v1788_v31 = vsel %vm723_vm6, %v1772_v47, %v6726_v18  ;;  %v1789_v52 = vsel %vm723_vm6, %v1773_v28, %v6727_v10  ;;  %v9646_v63 = vld [vmem:[%s12539_s4] ss:$0 sm:$0xff] }
 0x287   :  { %v1758_v19 = vsel %vm740_vm7, %v1742_v46, %v6751_v45  ;;  %v1771_v20 = vsel %vm159_vm1, %v9346_v23, %v6697_v26  ;;  %v1759_v16 = vsel %vm740_vm7, %v1743_v34, %v6752_v12  ;;  %v6771_v21 = vunpack.i.l.bf16 %v6770_v51 }
 0x288   :  { %1935 = vmatmul.f32.gmra.mxu3 %v1757_v36  ;;  %v1787_v62 = vsel %vm723_vm6, %v1771_v20, %v6702_v53  ;;  %v2845_v36 = vld [vmem:[%s12540_s5 + $0x110] sm:$0xff]  ;;  %v2332_v47 = vrot.slane %v9623_v58, 2 }
 0x289   :  { %3026 = vmatpush.msra.mxu2 %v2845_v36 }
 0x28a   :  { %v9588_v57 = vpop.permute.xlu1 %6754 }
 0x28b   :  { %v6745_v56 = vpop.permute.xlu0 %6744  ;;  %v6756_v49 = vunpack.i.l.bf16 %v9588_v57  ;;  %v6757_v46 = vunpack.i.h.bf16 %v9588_v57 }
 0x28c   :  { %v6746_v40 = vunpack.i.l.bf16 %v6745_v56  ;;  %v6747_v13 = vunpack.i.h.bf16 %v6745_v56  ;;  %v2843_v56 = vld [vmem:[%s12540_s5 + $0x100] sm:$0xff] }
 0x28e   :  { %v1802_v22 = vsel %vm740_vm7, %v1786_v41, %v6746_v40  ;;  %v1803_v59 = vsel %vm740_vm7, %v1787_v62, %v6747_v13  ;;  %v2030_v40 = vpop.f32.mrf.mxu0 }
 0x28f   :  { %1991 = vmatmul.f32.gmra.mxu2 %v1802_v22 }
 0x290   :  { %1938 = vmatmul.f32.gmra.mxu3 %v1758_v19  ;;  %v6772_v19 = vunpack.i.h.bf16 %v6770_v51 }
 0x292   :  { %v6760_v35 = vpop.permute.xlu1 %6759 }
 0x293   :  { %v6761_v33 = vunpack.i.l.bf16 %v6760_v35  ;;  %v6762_v9 = vunpack.i.h.bf16 %v6760_v35 }
 0x295   :  { %v1774_v50 = vsel %vm159_vm1, %v9413_v15, %v6761_v33  ;;  %v2844_v15 = vld [vmem:[%s12540_s5 + $0x108] sm:$0xff]  ;;  %v1775_v14 = vsel %vm159_vm1, %v9445_v37, %v6762_v9 }
 0x296   :  { %v1790_v0 = vsel %vm723_vm6, %v1774_v50, %v6756_v49  ;;  %3027 = vmatpush.msra.mxu2 %v2844_v15  ;;  %v1791_v22 = vsel %vm723_vm6, %v1775_v14, %v6757_v46  ;;  %v2033_v13 = vpop.f32.mrf.mxu0 }
 0x297   :  { %1994 = vmatmul.f32.gmra.mxu2 %v1803_v59  ;;  %v1806_v61 = vsel %vm740_vm7, %v1790_v0, %v6771_v21  ;;  %v1807_v53 = vsel %vm740_vm7, %v1791_v22, %v6772_v19 }
 0x298   :  { %1941 = vmatmul.f32.gmra.mxu3 %v1759_v16  ;;  %3028 = vmatpush.msra.mxu2 %v2843_v56  ;;  %v2331_v16 = vrot.slane %v9620_v32, 2 }
 0x29a   :  { %v6765_v44 = vpop.permute.xlu1 %6764  ;;  %v2333_v28 = vsel %vm322_vm5, %v2331_v16, %v2332_v47 }
 0x29b   :  { %v6766_v23 = vunpack.i.l.bf16 %v6765_v44  ;;  %v6767_v43 = vunpack.i.h.bf16 %v6765_v44 }
 0x29d   :  { %v1804_v5 = vsel %vm740_vm7, %v1788_v31, %v6766_v23  ;;  %v1897_v24 = vpop.f32.mrf.mxu3  ;;  %v1805_v3 = vsel %vm740_vm7, %v1789_v52, %v6767_v43  ;;  %v2283_v23 = vrot.slane %v9620_v32, 1  ;;  %v2284_v31 = vrot.slane %v9623_v58, 1 }
 0x29e   :  { %v1898_v45 = vadd.f32 %v9646_v63, %v1897_v24  ;;  %v2036_v39 = vpop.f32.mrf.mxu0 }
 0x29f   :  { %1997 = vmatmul.f32.gmra.mxu2 %v1804_v5  ;;  %v2285_v58 = vsel %vm273_vm4, %v2283_v23, %v2284_v31 }
 0x2a5   :  { %v1900_v42 = vpop.f32.mrf.mxu3 }
 0x2a6   :  { %v1901_v35 = vadd.f32 %v9646_v63, %v1900_v42 }
 0x2a7   :  { %2000 = vmatmul.f32.gmra.mxu2 %v1805_v3 }
 0x2ad   :  { %v1903_v26 = vpop.f32.mrf.mxu3 }
 0x2ae   :  { %v1904_v18 = vadd.f32 %v9646_v63, %v1903_v26 }
 0x2af   :  { %2003 = vmatmul.f32.gmra.mxu2 %v1806_v61 }
 0x2b2   :  { %v1962_v17 = vpop.f32.mrf.mxu2 }
 0x2b3   :  { %v1963_v41 = vadd.f32 %v1962_v17, %v1898_v45  ;;  %v2039_v17 = vpop.f32.mrf.mxu0 }
 0x2b5   :  { %v2028_v6 = vadd.f32 %v2027_v38, %v1963_v41  ;;  %v1906_v62 = vpop.f32.mrf.mxu3 }
 0x2b6   :  { %v1907_v0 = vadd.f32 %v9646_v63, %v1906_v62 }
 0x2b7   :  { %v2075_v1 = vmax.f32 %v2028_v6, 0.0  ;;  %2006 = vmatmul.f32.gmra.mxu2 %v1807_v53 }
 0x2b9   :  { %v2107_v37 = vrot.slane %v2075_v1, 7 }
 0x2ba   :  { %v1965_v20 = vpop.f32.mrf.mxu2 }
 0x2bb   :  { %v2139_v57 = vsel %vm126_vm3, 0.0, %v2107_v37  ;;  %v2155_v34 = vsel %vm126_vm3, %v2107_v37, 0.0  ;;  %v1966_v12 = vadd.f32 %v1965_v20, %v1901_v35 }
 0x2bc   :  { %2173 = vst.msk [vmem:[#allocation2 + $0x10] sm:$0xff] %vm159_vm1, %v2139_v57 }
 0x2bd   :  { %2174 = vst.msk [vmem:[#allocation2 + $0x18] sm:$0x3] %vm161_vm2, %v2155_v34  ;;  %v2031_v55 = vadd.f32 %v2030_v40, %v1966_v12 }
 0x2bf   :  { %v2076_v59 = vmax.f32 %v2031_v55, 0.0 }
 0x2c1   :  { %v2108_v44 = vrot.slane %v2076_v59, 7 }
 0x2c2   :  { %v1968_v5 = vpop.f32.mrf.mxu2  ;;  %v1909_v50 = vpop.f32.mrf.mxu3 }
 0x2c3   :  { %v2140_v8 = vsel %vm126_vm3, 0.0, %v2108_v44  ;;  %v2156_v27 = vsel %vm126_vm3, %v2108_v44, 0.0  ;;  %v1969_v54 = vadd.f32 %v1968_v5, %v1904_v18  ;;  %v9670_v24 = vld [vmem:[#allocation2 + $0x10] sm:$0xff]  ;;  %v1910_v1 = vadd.f32 %v9646_v63, %v1909_v50  ;;  %v2042_v44 = vpop.f32.mrf.mxu0 }
 0x2c4   :  { %2175 = vst.msk [vmem:[#allocation2 + $0x20] sm:$0xff] %vm159_vm1, %v2140_v8  ;;  %v2214_v43 = vld [vmem:[#allocation2 + $0x18] sm:$0x3]  ;;  %v2334_v10 = vrot.slane %v9670_v24, 2  ;;  %v2286_v33 = vrot.slane %v9670_v24, 1 }
 0x2c5   :  { %2176 = vst.msk [vmem:[#allocation2 + $0x28] sm:$0x3] %vm161_vm2, %v2156_v27  ;;  %v2034_v38 = vadd.f32 %v2033_v13, %v1969_v54  ;;  %v2335_v52 = vrot.slane %v2214_v43, 2  ;;  %v2287_v3 = vrot.slane %v2214_v43, 1 }
 0x2c7   :  { %v2077_v2 = vmax.f32 %v2034_v38, 0.0  ;;  %v2336_v51 = vsel %vm322_vm5, %v2334_v10, %v2335_v52  ;;  %v9680_v49 = vsel %vm273_vm4, %v2286_v33, %v2287_v3 }
 0x2c8   :  { %v6778_v42 = vpack.i.bf16 %v2336_v51, %v2333_v28  ;;  %v6773_v36 = vpack.i.bf16 %v9680_v49, %v2285_v58 }
 0x2c9   :  { %v2109_v21 = vrot.slane %v2077_v2, 7 }
 0x2ca   :  { %6779 = vrot.lane.b32.xlu2 %v6778_v42, %s7771_s22  ;;  %6774 = vrot.lane.b32.xlu0 %v6773_v36, %s7770_s26  ;;  %v1971_v9 = vpop.f32.mrf.mxu2  ;;  %v1912_v6 = vpop.f32.mrf.mxu3 }
 0x2cb   :  { %v2141_v15 = vsel %vm126_vm3, 0.0, %v2109_v21  ;;  %v2157_v61 = vsel %vm126_vm3, %v2109_v21, 0.0  ;;  %v1972_v56 = vadd.f32 %v1971_v9, %v1907_v0  ;;  %v9688_v40 = vld [vmem:[#allocation2 + $0x20] sm:$0xff]  ;;  %v1913_v27 = vadd.f32 %v9646_v63, %v1912_v6 }
 0x2cc   :  { %2177 = vst.msk [vmem:[#allocation2 + $0x30] sm:$0xff] %vm159_vm1, %v2141_v15  ;;  %v6783_v14 = vpack.i.bf16 %v9688_v40, %v9670_v24  ;;  %v2216_v46 = vld [vmem:[#allocation2 + $0x28] sm:$0x3]  ;;  %v2337_v45 = vrot.slane %v9688_v40, 2  ;;  %v2289_v5 = vrot.slane %v9688_v40, 1  ;;  %v9734_v15 = vld [vmem:[#allocation2 + $0x90] sm:$0xff] }
 0x2cd   :  { %2178 = vst.msk [vmem:[#allocation2 + $0x38] sm:$0x3] %vm161_vm2, %v2157_v61  ;;  %v2037_v41 = vadd.f32 %v2036_v39, %v1972_v56  ;;  %v2338_v22 = vrot.slane %v2216_v46, 2  ;;  %v2290_v39 = vrot.slane %v2216_v46, 1  ;;  %v2045_v46 = vpop.f32.mrf.mxu0 }
 0x2ce   :  { %6784 = vrot.lane.b32.xlu1 %v6783_v14, %s7772_s0  ;;  %4211 = vst.msk [vmem:[#allocation2 + $0x90] sm:$0xff] %vm159_vm1, %v12667_v11 }
 0x2cf   :  { %v2078_v19 = vmax.f32 %v2037_v41, 0.0  ;;  %v2339_v26 = vsel %vm322_vm5, %v2337_v45, %v2338_v22  ;;  %v9722_v58 = vsel %vm273_vm4, %v2289_v5, %v2290_v39  ;;  %v9771_v5 = vld [vmem:[#allocation2 + $0xa0] sm:$0xff] }
 0x2d0   :  { %6186 = vmatmul.msk.f32.vlgmr.msra.gmra.mxu2 %vm159_vm1, %v2339_v26  ;;  %v6788_v53 = vpack.i.bf16 %v2339_v26, %v2336_v51  ;;  %4213 = vst.msk [vmem:[#allocation2 + $0xa0] sm:$0xff] %vm159_vm1, %v12667_v11 }
 0x2d1   :  { %v2110_v13 = vrot.slane %v2078_v19, 7 }
 0x2d2   :  { %6789 = vrot.lane.b32.xlu0 %v6788_v53, %s7770_s26  ;;  %v1974_v35 = vpop.f32.mrf.mxu2  ;;  %v1915_v28 = vpop.f32.mrf.mxu3 }
 0x2d3   :  { %v2142_v37 = vsel %vm126_vm3, 0.0, %v2110_v13  ;;  %v2158_v20 = vsel %vm126_vm3, %v2110_v13, 0.0  ;;  %v1975_v57 = vadd.f32 %v1974_v35, %v1910_v1  ;;  %v9702_v34 = vld [vmem:[#allocation2 + $0x30] sm:$0xff]  ;;  %v1916_v45 = vadd.f32 %v9646_v63, %v1915_v28 }
 0x2d4   :  { %2179 = vst.msk [vmem:[#allocation2 + $0x40] sm:$0xff] %vm159_vm1, %v2142_v37  ;;  %v6793_v12 = vpack.i.bf16 %v9702_v34, %v9688_v40  ;;  %v2218_v55 = vld [vmem:[#allocation2 + $0x38] sm:$0x3]  ;;  %v2340_v62 = vrot.slane %v9702_v34, 2  ;;  %v2292_v47 = vrot.slane %v9702_v34, 1 }
 0x2d5   :  { %2180 = vst.msk [vmem:[#allocation2 + $0x48] sm:$0x3] %vm161_vm2, %v2158_v20  ;;  %v2040_v59 = vadd.f32 %v2039_v17, %v1975_v57  ;;  %v2341_v16 = vrot.slane %v2218_v55, 2  ;;  %v2293_v18 = vrot.slane %v2218_v55, 1  ;;  %v2048_v39 = vpop.f32.mrf.mxu0 }
 0x2d6   :  { %6794 = vrot.lane.b32.xlu1 %v6793_v12, %s7771_s22 }
 0x2d7   :  { %v2079_v23 = vmax.f32 %v2040_v59, 0.0  ;;  %v2342_v31 = vsel %vm322_vm5, %v2340_v62, %v2341_v16  ;;  %v9716_v43 = vsel %vm273_vm4, %v2292_v47, %v2293_v18 }
 0x2d8   :  { %6187 = vmatmul.msk.f32.gmra.mxu2 %vm159_vm1, %v2342_v31  ;;  %v6803_v8 = vpack.i.bf16 %v2342_v31, %v2339_v26  ;;  %v6798_v50 = vpack.i.bf16 %v9716_v43, %v9722_v58 }
 0x2d9   :  { %v2111_v54 = vrot.slane %v2079_v23, 7  ;;  %v9767_v23 = vld [vmem:[#allocation2 + $0x98] sm:$0x3] }
 0x2da   :  { %6804 = vrot.lane.b32.xlu0 %v6803_v8, %s7771_s22  ;;  %v1977_v10 = vpop.f32.mrf.mxu2  ;;  %v1918_v1 = vpop.f32.mrf.mxu3  ;;  %4212 = vst.msk [vmem:[#allocation2 + $0x98] sm:$0x3] %vm161_vm2, %v12667_v11 }
 0x2db   :  { %v2143_v33 = vsel %vm126_vm3, 0.0, %v2111_v54  ;;  %v2159_v38 = vsel %vm126_vm3, %v2111_v54, 0.0  ;;  %v1978_v52 = vadd.f32 %v1977_v10, %v1913_v27  ;;  %v9724_v3 = vld [vmem:[#allocation2 + $0x40] sm:$0xff]  ;;  %v1919_v47 = vadd.f32 %v9646_v63, %v1918_v1 }
 0x2dc   :  { %2181 = vst.msk [vmem:[#allocation2 + $0x50] sm:$0xff] %vm159_vm1, %v2143_v33  ;;  %v6808_v2 = vpack.i.bf16 %v9724_v3, %v9702_v34  ;;  %v2220_v51 = vld [vmem:[#allocation2 + $0x48] sm:$0x3]  ;;  %v2343_v42 = vrot.slane %v9724_v3, 2  ;;  %v2295_v21 = vrot.slane %v9724_v3, 1 }
 0x2dd   :  { %2182 = vst.msk [vmem:[#allocation2 + $0x58] sm:$0x3] %vm161_vm2, %v2159_v38  ;;  %v2043_v36 = vadd.f32 %v2042_v44, %v1978_v52  ;;  %v2344_v0 = vrot.slane %v2220_v51, 2  ;;  %v2296_v9 = vrot.slane %v2220_v51, 1 }
 0x2de   :  { %6799 = vrot.lane.b32.xlu1 %v6798_v50, %s7770_s26  ;;  %6809 = vrot.lane.b32.xlu2 %v6808_v2, %s7772_s0  ;;  %v9785_v2 = vld [vmem:[#allocation2 + $0xa8] sm:$0x3] }
 0x2df   :  { %v2080_v61 = vmax.f32 %v2043_v36, 0.0  ;;  %v2345_v56 = vsel %vm322_vm5, %v2343_v42, %v2344_v0  ;;  %v9744_v41 = vsel %vm273_vm4, %v2295_v21, %v2296_v9  ;;  %4214 = vst.msk [vmem:[#allocation2 + $0xa8] sm:$0x3] %vm161_vm2, %v12667_v11 }
 0x2e0   :  { %6188 = vmatmul.msk.f32.gmra.mxu2 %vm159_vm1, %v2345_v56  ;;  %v6818_v14 = vpack.i.bf16 %v2345_v56, %v2342_v31  ;;  %v6813_v35 = vpack.i.bf16 %v9744_v41, %v9716_v43 }
 0x2e1   :  { %v2112_v17 = vrot.slane %v2080_v61, 7 }
 0x2e2   :  { %6819 = vrot.lane.b32.xlu0 %v6818_v14, %s7770_s26  ;;  %v1980_v22 = vpop.f32.mrf.mxu2 }
 0x2e3   :  { %v2144_v19 = vsel %vm126_vm3, 0.0, %v2112_v17  ;;  %v2160_v26 = vsel %vm126_vm3, %v2112_v17, 0.0  ;;  %v1981_v6 = vadd.f32 %v1980_v22, %v1916_v45  ;;  %v9749_v53 = vld [vmem:[#allocation2 + $0x50] sm:$0xff]  ;;  %v1921_v21 = vpop.f32.mrf.mxu3 }
 0x2e4   :  { %2183 = vst.msk [vmem:[#allocation2 + $0x60] sm:$0xff] %vm159_vm1, %v2144_v19  ;;  %v6823_v13 = vpack.i.bf16 %v9749_v53, %v9724_v3  ;;  %v2222_v37 = vld [vmem:[#allocation2 + $0x58] sm:$0x3]  ;;  %v2346_v20 = vrot.slane %v9749_v53, 2  ;;  %v2298_v55 = vrot.slane %v9749_v53, 1  ;;  %v1922_v22 = vadd.f32 %v9646_v63, %v1921_v21 }
 0x2e5   :  { %2184 = vst.msk [vmem:[#allocation2 + $0x68] sm:$0x3] %vm161_vm2, %v2160_v26  ;;  %v2046_v57 = vadd.f32 %v2045_v46, %v1981_v6  ;;  %v2347_v12 = vrot.slane %v2222_v37, 2  ;;  %v2299_v62 = vrot.slane %v2222_v37, 1 }
 0x2e6   :  { %6824 = vrot.lane.b32.xlu1 %v6823_v13, %s7771_s22  ;;  %6814 = vrot.lane.b32.xlu2 %v6813_v35, %s7772_s0  ;;  %v2051_v13 = vpop.f32.mrf.mxu0 }
 0x2e7   :  { %v2081_v59 = vmax.f32 %v2046_v57, 0.0  ;;  %v2348_v16 = vsel %vm322_vm5, %v2346_v20, %v2347_v12  ;;  %v9765_v44 = vsel %vm273_vm4, %v2298_v55, %v2299_v62 }
 0x2e8   :  { %6189 = vmatmul.msk.f32.gmra.mxu2 %vm159_vm1, %v2348_v16  ;;  %v6833_v10 = vpack.i.bf16 %v2348_v16, %v2345_v56  ;;  %v6828_v33 = vpack.i.bf16 %v9765_v44, %v9744_v41 }
 0x2e9   :  { %v2113_v18 = vrot.slane %v2081_v59, 7 }
 0x2ea   :  { %v1983_v31 = vpop.f32.mrf.mxu2 }
 0x2eb   :  { %v2145_v8 = vsel %vm126_vm3, 0.0, %v2113_v18  ;;  %v2161_v27 = vsel %vm126_vm3, %v2113_v18, 0.0  ;;  %v1984_v54 = vadd.f32 %v1983_v31, %v1919_v47  ;;  %v9775_v28 = vld [vmem:[#allocation2 + $0x60] sm:$0xff]  ;;  %v1924_v59 = vpop.f32.mrf.mxu3 }
 0x2ec   :  { %2185 = vst.msk [vmem:[#allocation2 + $0x70] sm:$0xff] %vm159_vm1, %v2145_v8  ;;  %v6838_v38 = vpack.i.bf16 %v9775_v28, %v9749_v53  ;;  %v2224_v52 = vld [vmem:[#allocation2 + $0x68] sm:$0x3]  ;;  %v2349_v50 = vrot.slane %v9775_v28, 2  ;;  %v2301_v36 = vrot.slane %v9775_v28, 1  ;;  %v1925_v31 = vadd.f32 %v9646_v63, %v1924_v59  ;;  %v2826_v59 = vld [vmem:[%s12540_s5 + $0x78] sm:$0xff] }
 0x2ed   :  { %2186 = vst.msk [vmem:[#allocation2 + $0x78] sm:$0x3] %vm161_vm2, %v2161_v27  ;;  %v2049_v51 = vadd.f32 %v2048_v39, %v1984_v54  ;;  %v2350_v42 = vrot.slane %v2224_v52, 2  ;;  %v2302_v0 = vrot.slane %v2224_v52, 1  ;;  %2883 = vmatpush.msra.mxu1 %v2826_v59 }
 0x2ee   :  { %6834 = vrot.lane.b32.xlu1 %v6833_v10, %s7771_s22  ;;  %6829 = vrot.lane.b32.xlu2 %v6828_v33, %s7770_s26 }
 0x2ef   :  { %v2082_v9 = vmax.f32 %v2049_v51, 0.0  ;;  %6839 = vrot.lane.b32.xlu0 %v6838_v38, %s7772_s0  ;;  %v2351_v61 = vsel %vm322_vm5, %v2349_v50, %v2350_v42  ;;  %v9797_v14 = vsel %vm273_vm4, %v2301_v36, %v2302_v0 }
 0x2f0   :  { %6190 = vmatmul.msk.f32.gmra.mxu2 %vm159_vm1, %v2351_v61  ;;  %v6843_v26 = vpack.i.bf16 %v9797_v14, %v9765_v44  ;;  %v6848_v35 = vpack.i.bf16 %v2351_v61, %v2348_v16 }
 0x2f1   :  { %v2114_v56 = vrot.slane %v2082_v9, 7  ;;  %v2054_v9 = vpop.f32.mrf.mxu0 }
 0x2f3   :  { %v2146_v46 = vsel %vm126_vm3, 0.0, %v2114_v56  ;;  %v2162_v45 = vsel %vm126_vm3, %v2114_v56, 0.0  ;;  %v9801_v17 = vld [vmem:[#allocation2 + $0x70] sm:$0xff] }
 0x2f4   :  { %2187 = vst.msk [vmem:[#allocation2 + $0x80] sm:$0xff] %vm159_vm1, %v2146_v46  ;;  %v6853_v19 = vpack.i.bf16 %v9801_v17, %v9775_v28  ;;  %v2226_v6 = vld [vmem:[#allocation2 + $0x78] sm:$0x3]  ;;  %v2352_v1 = vrot.slane %v9801_v17, 2  ;;  %v2304_v12 = vrot.slane %v9801_v17, 1 }
 0x2f5   :  { %2188 = vst.msk [vmem:[#allocation2 + $0x88] sm:$0x3] %vm161_vm2, %v2162_v45  ;;  %v1986_v37 = vpop.f32.mrf.mxu2  ;;  %v2353_v20 = vrot.slane %v2226_v6, 2  ;;  %v2305_v55 = vrot.slane %v2226_v6, 1  ;;  %v2421_v45 = vrot.slane %v9734_v15, 2  ;;  %v2308_v6 = vrot.slane %v9785_v2, 1 }
 0x2f6   :  { %6854 = vrot.lane.b32.xlu1 %v6853_v19, %s7771_s22  ;;  %6844 = vrot.lane.b32.xlu2 %v6843_v26, %s7772_s0  ;;  %v1987_v57 = vadd.f32 %v1986_v37, %v1922_v22  ;;  %v2422_v22 = vrot.slane %v9767_v23, 2  ;;  %v2307_v26 = vrot.slane %v9771_v5, 1 }
 0x2f7   :  { %6849 = vrot.lane.b32.xlu0 %v6848_v35, %s7770_s26  ;;  %v2354_v62 = vsel %vm322_vm5, %v2352_v1, %v2353_v20  ;;  %v9818_v16 = vsel %vm273_vm4, %v2304_v12, %v2305_v55  ;;  %v2355_v1 = vrot.slane %v9771_v5, 2 }
 0x2f8   :  { %v2052_v47 = vadd.f32 %v2051_v13, %v1987_v57  ;;  %6191 = vmatmul.msk.f32.gmra.mxu2 %vm159_vm1, %v2354_v62  ;;  %v6863_v54 = vpack.i.bf16 %v2354_v62, %v2351_v61  ;;  %v6858_v38 = vpack.i.bf16 %v9818_v16, %v9797_v14  ;;  %v1927_v13 = vpop.f32.mrf.mxu3  ;;  %v2356_v57 = vrot.slane %v9785_v2, 2 }
 0x2f9   :  { %v2423_v55 = vsel %vm322_vm5, %v2421_v45, %v2422_v22 }
 0x2fa   :  { %v2083_v18 = vmax.f32 %v2052_v47, 0.0 }
 0x2fb   :  { %v2227_v39 = vld [vmem:[#allocation2 + $0x80] sm:$0xff] }
 0x2fc   :  { %v2115_v8 = vrot.slane %v2083_v18, 7  ;;  %v6868_v27 = vpack.i.bf16 %v2227_v39, %v9801_v17  ;;  %v2228_v10 = vld [vmem:[#allocation2 + $0x88] sm:$0x3]  ;;  %v2405_v33 = vrot.slane %v2227_v39, 2  ;;  %v2383_v51 = vrot.slane %v2227_v39, 1 }
 0x2fd   :  { %v1989_v52 = vpop.f32.mrf.mxu2  ;;  %v2406_v50 = vrot.slane %v2228_v10, 2  ;;  %v2384_v42 = vrot.slane %v2228_v10, 1  ;;  %v6873_v37 = vpack.i.bf16 %v9734_v15, %v2227_v39  ;;  %v2357_v10 = vsel %vm322_vm5, %v2355_v1, %v2356_v57 }
 0x2fe   :  { %v2147_v36 = vsel %vm126_vm3, 0.0, %v2115_v8  ;;  %v2163_v0 = vsel %vm126_vm3, %v2115_v8, 0.0  ;;  %6869 = vrot.lane.b32.xlu1 %v6868_v27, %s7772_s0  ;;  %6864 = vrot.lane.b32.xlu2 %v6863_v54, %s7771_s22  ;;  %v1990_v21 = vadd.f32 %v1989_v52, %v1925_v31  ;;  %v2825_v8 = vld [vmem:[%s12540_s5 + $0x70] sm:$0xff]  ;;  %v2309_v27 = vsel %vm273_vm4, %v2307_v26, %v2308_v6  ;;  %v2057_v52 = vpop.f32.mrf.mxu0 }
 0x2ff   :  { %2193 = vst.msk [vmem:[#allocation2 + $0xb0] sm:$0xff] %vm159_vm1, %v2147_v36  ;;  %6859 = vrot.lane.b32.xlu0 %v6858_v38, %s7770_s26  ;;  %v2407_v61 = vsel %vm322_vm5, %v2405_v33, %v2406_v50  ;;  %v9834_v46 = vsel %vm273_vm4, %v2383_v51, %v2384_v42  ;;  %2884 = vmatpush.msra.mxu1 %v2825_v8  ;;  %v2824_v38 = vld [vmem:[%s12540_s5 + $0x68] sm:$0xff]  ;;  %v2415_v26 = vrot.slane %v9734_v15, 1  ;;  %v2818_v8 = vld [vmem:[%s12540_s5 + $0x38] sm:$0xff] }
 0x300   :  { %2194 = vst.msk [vmem:[#allocation2 + $0xb8] sm:$0x3] %vm161_vm2, %v2163_v0  ;;  %v2055_v56 = vadd.f32 %v2054_v9, %v1990_v21  ;;  %6192 = vmatmul.msk.f32.gmra.mxu2 %vm159_vm1, %v2407_v61  ;;  %v6878_v20 = vpack.i.bf16 %v9834_v46, %v9818_v16  ;;  %v6883_v12 = vpack.i.bf16 %v2407_v61, %v2354_v62  ;;  %v2823_v0 = vld [vmem:[%s12540_s5 + $0x60] sm:$0xff]  ;;  %v2842_v21 = vld [vmem:[%s12540_s5 + $0xf8] sm:$0xff]  ;;  %v1930_v9 = vpop.f32.mrf.mxu3  ;;  %v2820_v15 = vld [vmem:[%s12540_s5 + $0x48] sm:$0xff] }
 0x301   :  { %2885 = vmatpush.msra.mxu1 %v2824_v38  ;;  %2948 = vmatpush.msra.mxu3 %v2842_v21  ;;  %v1928_v57 = vadd.f32 %v9646_v63, %v1927_v13  ;;  %v1931_v38 = vadd.f32 %v9646_v63, %v1930_v9  ;;  %v2815_v9 = vld [vmem:[%s12540_s5 + $0x20] sm:$0xff] }
 0x302   :  { %v2084_v19 = vmax.f32 %v2055_v56, 0.0  ;;  %v2822_v56 = vld [vmem:[%s12540_s5 + $0x58] sm:$0xff] }
 0x303   :  { %2886 = vmatpush.msra.mxu1 %v2823_v0 }
 0x304   :  { %v2116_v35 = vrot.slane %v2084_v19, 7 }
 0x305   :  { %2887 = vmatpush.msra.mxu1 %v2822_v56 }
 0x306   :  { %v2148_v47 = vsel %vm126_vm3, 0.0, %v2116_v35  ;;  %v2164_v18 = vsel %vm126_vm3, %v2116_v35, 0.0  ;;  %6874 = vrot.lane.b32.xlu1 %v6873_v37, %s7771_s22  ;;  %6879 = vrot.lane.b32.xlu2 %v6878_v20, %s7772_s0  ;;  %v9853_v31 = vld [vmem:[#allocation2 + $0xb0] sm:$0xff]  ;;  %v2416_v37 = vrot.slane %v9767_v23, 1 }
 0x307   :  { %2195 = vst.msk [vmem:[#allocation2 + $0xc0] sm:$0xff] %vm159_vm1, %v2148_v47  ;;  %6884 = vrot.lane.b32.xlu0 %v6883_v12, %s7770_s26  ;;  %v2234_v2 = vld [vmem:[#allocation2 + $0xb8] sm:$0x3]  ;;  %v2310_v62 = vrot.slane %v9853_v31, 1  ;;  %v2358_v39 = vrot.slane %v9853_v31, 2  ;;  %v2821_v20 = vld [vmem:[%s12540_s5 + $0x50] sm:$0xff]  ;;  %v2060_v47 = vpop.f32.mrf.mxu0 }
 0x308   :  { %2196 = vst.msk [vmem:[#allocation2 + $0xc8] sm:$0x3] %vm161_vm2, %v2164_v18  ;;  %6193 = vmatmul.msk.f32.gmra.mxu2 %vm159_vm1, %v2423_v55  ;;  %v2311_v54 = vrot.slane %v2234_v2, 1  ;;  %v2359_v33 = vrot.slane %v2234_v2, 2  ;;  %2888 = vmatpush.msra.mxu1 %v2821_v20  ;;  %v2417_v18 = vsel %vm273_vm4, %v2415_v26, %v2416_v37  ;;  %v2819_v2 = vld [vmem:[%s12540_s5 + $0x40] sm:$0xff] }
 0x30a   :  { %v9870_v50 = vsel %vm273_vm4, %v2310_v62, %v2311_v54  ;;  %v2360_v51 = vsel %vm322_vm5, %v2358_v39, %v2359_v33  ;;  %2889 = vmatpush.msra.mxu1 %v2820_v15  ;;  %v2841_v39 = vld [vmem:[%s12540_s5 + $0xf0] sm:$0xff] }
 0x30b   :  { %v6888_v42 = vpack.i.bf16 %v9870_v50, %v2309_v27  ;;  %v6893_v36 = vpack.i.bf16 %v2360_v51, %v2357_v10  ;;  %2949 = vmatpush.msra.mxu3 %v2841_v39  ;;  %v1933_v10 = vpop.f32.mrf.mxu3  ;;  %v2817_v33 = vld [vmem:[%s12540_s5 + $0x30] sm:$0xff] }
 0x30c   :  { %2890 = vmatpush.msra.mxu1 %v2819_v2 }
 0x30e   :  { %6889 = vrot.lane.b32.xlu1 %v6888_v42, %s7770_s26  ;;  %v9881_v61 = vld [vmem:[#allocation2 + $0xc0] sm:$0xff]  ;;  %2891 = vmatpush.msra.mxu1 %v2818_v8  ;;  %v2816_v42 = vld [vmem:[%s12540_s5 + $0x28] sm:$0xff] }
 0x30f   :  { %6894 = vrot.lane.b32.xlu0 %v6893_v36, %s7771_s22  ;;  %v6898_v45 = vpack.i.bf16 %v9881_v61, %v9853_v31  ;;  %v2236_v22 = vld [vmem:[#allocation2 + $0xc8] sm:$0x3]  ;;  %v2361_v19 = vrot.slane %v9881_v61, 2  ;;  %v2313_v1 = vrot.slane %v9881_v61, 1 }
 0x310   :  { %v2362_v6 = vrot.slane %v2236_v22, 2  ;;  %v2314_v35 = vrot.slane %v2236_v22, 1  ;;  %2892 = vmatpush.msra.mxu1 %v2817_v33  ;;  %v2063_v22 = vpop.f32.mrf.mxu0  ;;  %v2838_v33 = vld [vmem:[%s12540_s5 + $0xd8] sm:$0xff] }
 0x311   :  { %6899 = vrot.lane.b32.xlu2 %v6898_v45, %s7772_s0  ;;  %v2840_v45 = vld [vmem:[%s12540_s5 + $0xe8] sm:$0xff] }
 0x312   :  { %v1992_v12 = vpop.f32.mrf.mxu2  ;;  %v9899_v55 = vsel %vm322_vm5, %v2361_v19, %v2362_v6  ;;  %v9908_v13 = vsel %vm273_vm4, %v2313_v1, %v2314_v35  ;;  %2893 = vmatpush.msra.mxu1 %v2816_v42  ;;  %2950 = vmatpush.msra.mxu3 %v2840_v45  ;;  %v2814_v19 = vld [vmem:[%s12540_s5 + $0x18] sm:$0xff]  ;;  %v2813_v6 = vld [vmem:[%s12540_s5 + $0x10] sm:$0xff]  ;;  %v1934_v1 = vadd.f32 %v9646_v63, %v1933_v10 }
 0x313   :  { %v1993_v59 = vadd.f32 %v1992_v12, %v1928_v57  ;;  %6194 = vmatmul.msk.f32.gmra.mxu2 %vm159_vm1, %v9899_v55  ;;  %v6908_v23 = vpack.i.bf16 %v9899_v55, %v2360_v51  ;;  %v6903_v54 = vpack.i.bf16 %v9908_v13, %v2417_v18  ;;  %v1936_v37 = vpop.f32.mrf.mxu3  ;;  %v2812_v57 = vld [vmem:[%s12540_s5 + $0x8] sm:$0xff] }
 0x314   :  { %2894 = vmatpush.msra.mxu1 %v2815_v9 }
 0x315   :  { %v2058_v62 = vadd.f32 %v2057_v52, %v1993_v59 }
 0x316   :  { %2895 = vmatpush.msra.mxu1 %v2814_v19 }
 0x317   :  { %v2085_v27 = vmax.f32 %v2058_v62, 0.0  ;;  %6909 = vrot.lane.b32.xlu0 %v6908_v23, %s7770_s26 }
 0x318   :  { %2896 = vmatpush.msra.mxu1 %v2813_v6 }
 0x319   :  { %v2117_v52 = vrot.slane %v2085_v27, 7  ;;  %6904 = vrot.lane.b32.xlu2 %v6903_v54, %s7772_s0  ;;  %v2839_v27 = vld [vmem:[%s12540_s5 + $0xe0] sm:$0xff] }
 0x31a   :  { %v1995_v51 = vpop.f32.mrf.mxu2  ;;  %2897 = vmatpush.msra.mxu1 %v2812_v57  ;;  %v2811_v54 = vld [vmem:[%s12540_s5] sm:$0xff]  ;;  %2951 = vmatpush.msra.mxu3 %v2839_v27 }
 0x31b   :  { %v2149_v36 = vsel %vm126_vm3, 0.0, %v2117_v52  ;;  %v2165_v0 = vsel %vm126_vm3, %v2117_v52, 0.0  ;;  %v1996_v21 = vadd.f32 %v1995_v51, %v1931_v38  ;;  %v2066_v51 = vpop.f32.mrf.mxu0 }
 0x31c   :  { %2197 = vst.msk [vmem:[#allocation2 + $0xd0] sm:$0xff] %vm159_vm1, %v2149_v36  ;;  %2898 = vmatpush.msra.mxu1 %v2811_v54  ;;  %2952 = vmatpush.msra.mxu3 %v2838_v33  ;;  %v1937_v36 = vadd.f32 %v9646_v63, %v1936_v37 }
 0x31d   :  { %2198 = vst.msk [vmem:[#allocation2 + $0xd8] sm:$0x3] %vm161_vm2, %v2165_v0  ;;  %v2061_v56 = vadd.f32 %v2060_v47, %v1996_v21 }
 0x31f   :  { %v2086_v26 = vmax.f32 %v2061_v56, 0.0 }
 0x321   :  { %v2118_v35 = vrot.slane %v2086_v26, 7  ;;  %v1939_v26 = vpop.f32.mrf.mxu3 }
 0x322   :  { %v1998_v20 = vpop.f32.mrf.mxu2 }
 0x323   :  { %v2150_v12 = vsel %vm126_vm3, 0.0, %v2118_v35  ;;  %v2166_v15 = vsel %vm126_vm3, %v2118_v35, 0.0  ;;  %v1999_v59 = vadd.f32 %v1998_v20, %v1934_v1  ;;  %v9952_v23 = vld [vmem:[#allocation2 + $0xd0] sm:$0xff] }
 0x324   :  { %2199 = vst.msk [vmem:[#allocation2 + $0xe0] sm:$0xff] %vm159_vm1, %v2150_v12  ;;  %v6913_v47 = vpack.i.bf16 %v9952_v23, %v9881_v61  ;;  %v2238_v18 = vld [vmem:[#allocation2 + $0xd8] sm:$0x3]  ;;  %v2364_v2 = vrot.slane %v9952_v23, 2  ;;  %v2316_v62 = vrot.slane %v9952_v23, 1  ;;  %v10011_v27 = vpop.permute.xlu2 %6779 }
 0x325   :  { %2200 = vst.msk [vmem:[#allocation2 + $0xe8] sm:$0x3] %vm161_vm2, %v2166_v15  ;;  %v2064_v39 = vadd.f32 %v2063_v22, %v1999_v59  ;;  %v2365_v8 = vrot.slane %v2238_v18, 2  ;;  %v2317_v10 = vrot.slane %v2238_v18, 1  ;;  %v9990_v59 = vld [vmem:[#allocation2 + $0x130] sm:$0xff] }
 0x326   :  { %6914 = vrot.lane.b32.xlu1 %v6913_v47, %s7771_s22  ;;  %4231 = vst.msk [vmem:[#allocation2 + $0x130] sm:$0xff] %vm159_vm1, %v12667_v11  ;;  %v9999_v47 = vld [vmem:[#allocation2 + $0x138] sm:$0x3] }
 0x327   :  { %v2087_v38 = vmax.f32 %v2064_v39, 0.0  ;;  %v2366_v52 = vsel %vm322_vm5, %v2364_v2, %v2365_v8  ;;  %v9973_v42 = vsel %vm273_vm4, %v2316_v62, %v2317_v10  ;;  %4232 = vst.msk [vmem:[#allocation2 + $0x138] sm:$0x3] %vm161_vm2, %v12667_v11  ;;  %v1940_v8 = vadd.f32 %v9646_v63, %v1939_v26  ;;  %v2069_v10 = vpop.f32.mrf.mxu0 }
 0x328   :  { %6195 = vmatmul.msk.f32.gmra.mxu2 %vm159_vm1, %v2366_v52  ;;  %v6918_v21 = vpack.i.bf16 %v9973_v42, %v9908_v13  ;;  %v6923_v6 = vpack.i.bf16 %v2366_v52, %v9899_v55  ;;  %v2837_v55 = vld [vmem:[%s12540_s5 + $0xd0] sm:$0xff] }
 0x329   :  { %v2119_v0 = vrot.slane %v2087_v38, 7  ;;  %2953 = vmatpush.msra.mxu3 %v2837_v55 }
 0x32a   :  { %v2001_v9 = vpop.f32.mrf.mxu2  ;;  %6919 = vrot.lane.b32.xlu2 %v6918_v21, %s7770_s26 }
 0x32b   :  { %v2151_v56 = vsel %vm126_vm3, 0.0, %v2119_v0  ;;  %v2167_v45 = vsel %vm126_vm3, %v2119_v0, 0.0  ;;  %v2002_v22 = vadd.f32 %v2001_v9, %v1937_v36  ;;  %v9981_v19 = vld [vmem:[#allocation2 + $0xe0] sm:$0xff] }
 0x32c   :  { %2201 = vst.msk [vmem:[#allocation2 + $0xf0] sm:$0xff] %vm159_vm1, %v2151_v56  ;;  %v6928_v1 = vpack.i.bf16 %v9981_v19, %v9952_v23  ;;  %v2240_v35 = vld [vmem:[#allocation2 + $0xe8] sm:$0x3]  ;;  %v2367_v37 = vrot.slane %v9981_v19, 2  ;;  %v2319_v20 = vrot.slane %v9981_v19, 1 }
 0x32d   :  { %2202 = vst.msk [vmem:[#allocation2 + $0xf8] sm:$0x3] %vm161_vm2, %v2167_v45  ;;  %v2067_v57 = vadd.f32 %v2066_v51, %v2002_v22  ;;  %v2368_v12 = vrot.slane %v2240_v35, 2  ;;  %v2320_v15 = vrot.slane %v2240_v35, 1  ;;  %v1942_v35 = vpop.f32.mrf.mxu3 }
 0x32e   :  { %6924 = vrot.lane.b32.xlu1 %v6923_v6, %s7771_s22  ;;  %6929 = vrot.lane.b32.xlu0 %v6928_v1, %s7772_s0 }
 0x32f   :  { %v2088_v18 = vmax.f32 %v2067_v57, 0.0  ;;  %v2369_v2 = vsel %vm322_vm5, %v2367_v37, %v2368_v12  ;;  %v10003_v62 = vsel %vm273_vm4, %v2319_v20, %v2320_v15  ;;  %v1943_v12 = vadd.f32 %v9646_v63, %v1942_v35 }
 0x330   :  { %6196 = vmatmul.msk.f32.gmra.mxu2 %vm159_vm1, %v2369_v2  ;;  %v6933_v39 = vpack.i.bf16 %v10003_v62, %v9973_v42  ;;  %v6938_v9 = vpack.i.bf16 %v2369_v2, %v2366_v52  ;;  %v2836_v52 = vld [vmem:[%s12540_s5 + $0xc8] sm:$0xff] }
 0x331   :  { %v2120_v54 = vrot.slane %v2088_v18, 7  ;;  %2954 = vmatpush.msra.mxu3 %v2836_v52  ;;  %v6781_v52 = vunpack.i.l.bf16 %v10011_v27 }
 0x332   :  { %v2004_v33 = vpop.f32.mrf.mxu2  ;;  %6934 = vrot.lane.b32.xlu2 %v6933_v39, %s7772_s0 }
 0x333   :  { %v2152_v38 = vsel %vm126_vm3, 0.0, %v2120_v54  ;;  %v2168_v51 = vsel %vm126_vm3, %v2120_v54, 0.0  ;;  %v2005_v36 = vadd.f32 %v2004_v33, %v1940_v8  ;;  %v10016_v0 = vld [vmem:[#allocation2 + $0xf0] sm:$0xff]  ;;  %v2072_v8 = vpop.f32.mrf.mxu0 }
 0x334   :  { %2203 = vst.msk [vmem:[#allocation2 + $0x100] sm:$0xff] %vm159_vm1, %v2152_v38  ;;  %v6943_v21 = vpack.i.bf16 %v10016_v0, %v9981_v19  ;;  %v2242_v56 = vld [vmem:[#allocation2 + $0xf8] sm:$0x3]  ;;  %v2370_v45 = vrot.slane %v10016_v0, 2  ;;  %v2322_v6 = vrot.slane %v10016_v0, 1 }
 0x335   :  { %2204 = vst.msk [vmem:[#allocation2 + $0x108] sm:$0x3] %vm161_vm2, %v2168_v51  ;;  %v2070_v22 = vadd.f32 %v2069_v10, %v2005_v36  ;;  %v2371_v26 = vrot.slane %v2242_v56, 2  ;;  %v2323_v1 = vrot.slane %v2242_v56, 1 }
 0x336   :  { %6944 = vrot.lane.b32.xlu1 %v6943_v21, %s7771_s22  ;;  %6939 = vrot.lane.b32.xlu0 %v6938_v9, %s7770_s26 }
 0x337   :  { %v2089_v37 = vmax.f32 %v2070_v22, 0.0  ;;  %v2372_v20 = vsel %vm322_vm5, %v2370_v45, %v2371_v26  ;;  %v10035_v18 = vsel %vm273_vm4, %v2322_v6, %v2323_v1 }
 0x338   :  { %6197 = vmatmul.msk.f32.gmra.mxu2 %vm159_vm1, %v2372_v20  ;;  %v6953_v57 = vpack.i.bf16 %v2372_v20, %v2369_v2  ;;  %v10032_v55 = vpop.permute.xlu2 %6809  ;;  %v6948_v51 = vpack.i.bf16 %v10035_v18, %v10003_v62 }
 0x339   :  { %v2121_v15 = vrot.slane %v2089_v37, 7  ;;  %v2835_v37 = vld [vmem:[%s12540_s5 + $0xc0] sm:$0xff] }
 0x33a   :  { %v2007_v39 = vpop.f32.mrf.mxu2  ;;  %6954 = vrot.lane.b32.xlu2 %v6953_v57, %s7771_s22  ;;  %2955 = vmatpush.msra.mxu3 %v2835_v37 }
 0x33b   :  { %v2153_v54 = vsel %vm126_vm3, 0.0, %v2121_v15  ;;  %v2169_v10 = vsel %vm126_vm3, %v2121_v15, 0.0  ;;  %v2008_v33 = vadd.f32 %v2007_v39, %v1943_v12  ;;  %v10040_v38 = vld [vmem:[#allocation2 + $0x100] sm:$0xff] }
 0x33c   :  { %2205 = vst.msk [vmem:[#allocation2 + $0x110] sm:$0xff] %vm159_vm1, %v2153_v54  ;;  %v6775_v63 = vpop.permute.xlu0 %6774  ;;  %v6958_v2 = vpack.i.bf16 %v10040_v38, %v10016_v0  ;;  %v2244_v36 = vld [vmem:[#allocation2 + $0x108] sm:$0x3]  ;;  %v2373_v21 = vrot.slane %v10040_v38, 2  ;;  %v2325_v9 = vrot.slane %v10040_v38, 1 }
 0x33d   :  { %2206 = vst.msk [vmem:[#allocation2 + $0x118] sm:$0x3] %vm161_vm2, %v2169_v10  ;;  %v6776_v56 = vunpack.i.l.bf16 %v6775_v63  ;;  %v2073_v45 = vadd.f32 %v2072_v8, %v2008_v33  ;;  %v2374_v22 = vrot.slane %v2244_v36, 2  ;;  %v2326_v26 = vrot.slane %v2244_v36, 1 }
 0x33e   :  { %6959 = vrot.lane.b32.xlu1 %v6958_v2, %s7772_s0  ;;  %6949 = vrot.lane.b32.xlu0 %v6948_v51, %s7770_s26  ;;  %v6777_v54 = vunpack.i.h.bf16 %v6775_v63 }
 0x33f   :  { %v2715_v6 = vsel %vm159_vm1, %v9620_v32, %v6776_v56  ;;  %v2090_v1 = vmax.f32 %v2073_v45, 0.0  ;;  %v2375_v35 = vsel %vm322_vm5, %v2373_v21, %v2374_v22  ;;  %v10061_v12 = vsel %vm273_vm4, %v2325_v9, %v2326_v26 }
 0x340   :  { %6198 = vmatmul.msk.f32.gmra.mxu2 %vm159_vm1, %v2375_v35  ;;  %v6785_v57 = vpop.permute.xlu1 %6784  ;;  %v6963_v32 = vpack.i.bf16 %v10061_v12, %v10035_v18  ;;  %v2731_v8 = vsel %vm723_vm6, %v2715_v6, %v6781_v52  ;;  %v10068_v2 = vpop.permute.xlu2 %6814  ;;  %v6968_v9 = vpack.i.bf16 %v2375_v35, %v2372_v20  ;;  %v2716_v20 = vsel %vm159_vm1, %v9670_v24, %v6777_v54  ;;  %v2834_v52 = vld [vmem:[%s12540_s5 + $0xb8] sm:$0xff] }
 0x341   :  { %v2122_v15 = vrot.slane %v2090_v1, 7  ;;  %v6786_v39 = vunpack.i.l.bf16 %v6785_v57  ;;  %v6787_v1 = vunpack.i.h.bf16 %v6785_v57  ;;  %2956 = vmatpush.msra.mxu3 %v2834_v52 }
 0x342   :  { %6964 = vrot.lane.b32.xlu2 %v6963_v32, %s7772_s0 }
 0x343   :  { %v2154_v10 = vsel %vm126_vm3, 0.0, %v2122_v15  ;;  %v2170_v33 = vsel %vm126_vm3, %v2122_v15, 0.0  ;;  %v2747_v51 = vsel %vm740_vm7, %v2731_v8, %v6786_v39  ;;  %v10071_v36 = vld [vmem:[#allocation2 + $0x110] sm:$0xff]  ;;  %v6782_v15 = vunpack.i.h.bf16 %v10011_v27 }
 0x344   :  { %2207 = vst.msk [vmem:[#allocation2 + $0x120] sm:$0xff] %vm159_vm1, %v2154_v10  ;;  %2899 = vmatmul.f32.vlgmr.msra.gmra.mxu1 %v2747_v51  ;;  %v6978_v21 = vpack.i.bf16 %v10071_v36, %v10040_v38  ;;  %v2246_v63 = vld [vmem:[#allocation2 + $0x118] sm:$0x3]  ;;  %v2376_v56 = vrot.slane %v10071_v36, 2  ;;  %v10079_v45 = vpop.permute.xlu0 %6789  ;;  %v2328_v26 = vrot.slane %v10071_v36, 1  ;;  %v6973_v57 = vpack.i.bf16 %v9722_v58, %v10071_v36 }
 0x345   :  { %2208 = vst.msk [vmem:[#allocation2 + $0x128] sm:$0x3] %vm161_vm2, %v2170_v33  ;;  %v2377_v22 = vrot.slane %v2246_v63, 2  ;;  %v2329_v6 = vrot.slane %v2246_v63, 1  ;;  %v2732_v8 = vsel %vm723_vm6, %v2716_v20, %v6782_v15 }
 0x346   :  { %6979 = vrot.lane.b32.xlu1 %v6978_v21, %s7771_s22  ;;  %6969 = vrot.lane.b32.xlu0 %v6968_v9, %s7770_s26  ;;  %v2748_v24 = vsel %vm740_vm7, %v2732_v8, %v6787_v1 }
 0x347   :  { %v2378_v37 = vsel %vm322_vm5, %v2376_v56, %v2377_v22  ;;  %v10095_v32 = vsel %vm273_vm4, %v2328_v26, %v2329_v6 }
 0x348   :  { %6199 = vmatmul.msk.f32.gmra.mxu2 %vm159_vm1, %v2378_v37  ;;  %v10092_v39 = vpop.permute.xlu1 %6794  ;;  %v6983_v27 = vpack.i.bf16 %v10095_v32, %v10061_v12  ;;  %v6988_v10 = vpack.i.bf16 %v2378_v37, %v2375_v35  ;;  %v10104_v9 = vpop.permute.xlu2 %6829  ;;  %v2833_v35 = vld [vmem:[%s12540_s5 + $0xb0] sm:$0xff] }
 0x349   :  { %2957 = vmatpush.msra.mxu3 %v2833_v35  ;;  %v2832_v35 = vld [vmem:[%s12540_s5 + $0xa8] sm:$0xff] }
 0x34a   :  { %6974 = vrot.lane.b32.xlu2 %v6973_v57, %s7772_s0  ;;  %v6811_v57 = vunpack.i.l.bf16 %v10032_v55 }
 0x34b   :  { %v2247_v54 = vld [vmem:[#allocation2 + $0x120] sm:$0xff]  ;;  %2958 = vmatpush.msra.mxu3 %v2832_v35  ;;  %v2830_v35 = vld [vmem:[%s12540_s5 + $0x98] sm:$0xff] }
 0x34c   :  { %2902 = vmatmul.f32.gmra.mxu1 %v2748_v24  ;;  %v2248_v33 = vld [vmem:[#allocation2 + $0x128] sm:$0x3]  ;;  %v2408_v51 = vrot.slane %v2247_v54, 2  ;;  %v2386_v21 = vrot.slane %v2247_v54, 1  ;;  %v6805_v22 = vpop.permute.xlu0 %6804  ;;  %v2418_v24 = vrot.slane %v9990_v59, 1 }
 0x34d   :  { %v2409_v63 = vrot.slane %v2248_v33, 2  ;;  %v2387_v56 = vrot.slane %v2248_v33, 1  ;;  %v6806_v15 = vunpack.i.l.bf16 %v6805_v22  ;;  %v7003_v33 = vpack.i.bf16 %v9990_v59, %v2247_v54 }
 0x34e   :  { %6984 = vrot.lane.b32.xlu1 %v6983_v27, %s7770_s26  ;;  %6989 = vrot.lane.b32.xlu0 %v6988_v10, %s7771_s22  ;;  %v2419_v27 = vrot.slane %v9999_v47, 1 }
 0x34f   :  { %v2410_v26 = vsel %vm322_vm5, %v2408_v51, %v2409_v63  ;;  %v10110_v6 = vsel %vm273_vm4, %v2386_v21, %v2387_v56 }
 0x350   :  { %6200 = vmatmul.msk.f32.gmra.mxu2 %vm159_vm1, %v2410_v26  ;;  %v6800_v1 = vpop.permute.xlu1 %6799  ;;  %v6993_v20 = vpack.i.bf16 %v10110_v6, %v10095_v32  ;;  %v6998_v51 = vpack.i.bf16 %v2410_v26, %v2378_v37  ;;  %v10129_v56 = vpop.permute.xlu2 %6844  ;;  %v6807_v26 = vunpack.i.h.bf16 %v6805_v22 }
 0x351   :  { %v6801_v52 = vunpack.i.l.bf16 %v6800_v1  ;;  %v6802_v10 = vunpack.i.h.bf16 %v6800_v1 }
 0x352   :  { %6994 = vrot.lane.b32.xlu2 %v6993_v20, %s7772_s0 }
 0x353   :  { %v2717_v8 = vsel %vm159_vm1, %v9688_v40, %v6801_v52  ;;  %v2420_v40 = vsel %vm273_vm4, %v2418_v24, %v2419_v27  ;;  %v2718_v37 = vsel %vm159_vm1, %v9702_v34, %v6802_v10  ;;  %v2831_v34 = vld [vmem:[%s12540_s5 + $0xa0] sm:$0xff] }
 0x354   :  { %v2733_v21 = vsel %vm723_vm6, %v2717_v8, %v6806_v15  ;;  %v10139_v20 = vpop.permute.xlu0 %6819  ;;  %v7008_v52 = vpack.i.bf16 %v2247_v54, %v2420_v40  ;;  %v2734_v15 = vsel %vm723_vm6, %v2718_v37, %v6807_v26  ;;  %v6831_v8 = vunpack.i.l.bf16 %v10104_v9  ;;  %2959 = vmatpush.msra.mxu3 %v2831_v34 }
 0x355   :  { %v2749_v63 = vsel %vm740_vm7, %v2733_v21, %v6811_v57  ;;  %v6812_v57 = vunpack.i.h.bf16 %v10032_v55 }
 0x356   :  { %7004 = vrot.lane.b32.xlu1 %v7003_v33, %s7771_s22  ;;  %6999 = vrot.lane.b32.xlu0 %v6998_v51, %s7770_s26  ;;  %v2719_v55 = vsel %vm159_vm1, %v9724_v3, %v6831_v8  ;;  %v2829_v8 = vld [vmem:[%s12540_s5 + $0x90] sm:$0xff] }
 0x357   :  { %2905 = vmatmul.f32.gmra.mxu1 %v2749_v63  ;;  %v2750_v24 = vsel %vm740_vm7, %v2734_v15, %v6812_v57  ;;  %v6832_v63 = vunpack.i.h.bf16 %v10104_v9  ;;  %2960 = vmatpush.msra.mxu3 %v2830_v35 }
 0x358   :  { %v10135_v1 = vpop.permute.xlu1 %6824  ;;  %v6865_v22 = vpop.permute.xlu2 %6864 }
 0x359   :  { %v2720_v3 = vsel %vm159_vm1, %v9749_v53, %v6832_v63  ;;  %2961 = vmatpush.msra.mxu3 %v2829_v8  ;;  %v2828_v63 = vld [vmem:[%s12540_s5 + $0x88] sm:$0xff] }
 0x35a   :  { %7009 = vrot.lane.b32.xlu2 %v7008_v52, %s7772_s0 }
 0x35b   :  { %2962 = vmatpush.msra.mxu3 %v2828_v63 }
 0x35f   :  { %2908 = vmatmul.f32.gmra.mxu1 %v2750_v24 }
 0x360   :  { %v6835_v27 = vpop.permute.xlu1 %6834  ;;  %v10163_v15 = vpop.permute.xlu2 %6879 }
 0x361   :  { %v6836_v10 = vunpack.i.l.bf16 %v6835_v27  ;;  %v6840_v54 = vpop.permute.xlu0 %6839  ;;  %v6837_v40 = vunpack.i.h.bf16 %v6835_v27 }
 0x362   :  { %v6841_v33 = vunpack.i.l.bf16 %v6840_v54  ;;  %v6842_v52 = vunpack.i.h.bf16 %v6840_v54 }
 0x363   :  { %v2735_v51 = vsel %vm723_vm6, %v2719_v55, %v6836_v10  ;;  %v2736_v57 = vsel %vm723_vm6, %v2720_v3, %v6837_v40  ;;  %v6866_v10 = vunpack.i.l.bf16 %v6865_v22 }
 0x364   :  { %v2751_v21 = vsel %vm740_vm7, %v2735_v51, %v6841_v33  ;;  %v2752_v9 = vsel %vm740_vm7, %v2736_v57, %v6842_v52  ;;  %v6867_v52 = vunpack.i.h.bf16 %v6865_v22 }
 0x367   :  { %2911 = vmatmul.f32.gmra.mxu1 %v2751_v21 }
 0x368   :  { %v10157_v37 = vpop.permute.xlu1 %6854 }
 0x369   :  { %v10159_v26 = vpop.permute.xlu0 %6849 }
 0x36b   :  { %v6900_v54 = vpop.permute.xlu2 %6899 }
 0x36c   :  { %v6901_v22 = vunpack.i.l.bf16 %v6900_v54 }
 0x36f   :  { %2914 = vmatmul.f32.gmra.mxu1 %v2752_v9 }
 0x370   :  { %v6870_v24 = vpop.permute.xlu1 %6869 }
 0x371   :  { %v6860_v34 = vpop.permute.xlu0 %6859  ;;  %v6871_v33 = vunpack.i.l.bf16 %v6870_v24  ;;  %v6872_v57 = vunpack.i.h.bf16 %v6870_v24 }
 0x372   :  { %v6861_v27 = vunpack.i.l.bf16 %v6860_v34  ;;  %v6862_v55 = vunpack.i.h.bf16 %v6860_v34  ;;  %v2827_v34 = vld [vmem:[%s12540_s5 + $0x80] sm:$0xff] }
 0x373   :  { %v10184_v9 = vpop.permute.xlu2 %6904  ;;  %2963 = vmatpush.msra.mxu3 %v2827_v34 }
 0x374   :  { %v2721_v53 = vsel %vm159_vm1, %v9775_v28, %v6861_v27  ;;  %v2722_v35 = vsel %vm159_vm1, %v9801_v17, %v6862_v55 }
 0x375   :  { %v2737_v51 = vsel %vm723_vm6, %v2721_v53, %v6866_v10  ;;  %v2738_v28 = vsel %vm723_vm6, %v2722_v35, %v6867_v52 }
 0x376   :  { %v2753_v21 = vsel %vm740_vm7, %v2737_v51, %v6871_v33  ;;  %v2754_v8 = vsel %vm740_vm7, %v2738_v28, %v6872_v57  ;;  %v6902_v28 = vunpack.i.h.bf16 %v6900_v54 }
 0x377   :  { %2917 = vmatmul.f32.gmra.mxu1 %v2753_v21 }
 0x378   :  { %v10177_v40 = vpop.permute.xlu1 %6874 }
 0x379   :  { %v10181_v3 = vpop.permute.xlu0 %6884 }
 0x37f   :  { %2920 = vmatmul.f32.gmra.mxu1 %v2754_v8 }
 0x380   :  { %v6890_v27 = vpop.permute.xlu1 %6889 }
 0x381   :  { %v6891_v10 = vunpack.i.l.bf16 %v6890_v27  ;;  %v6895_v33 = vpop.permute.xlu0 %6894  ;;  %v6892_v53 = vunpack.i.h.bf16 %v6890_v27 }
 0x382   :  { %v6896_v17 = vunpack.i.l.bf16 %v6895_v33  ;;  %v6897_v63 = vunpack.i.h.bf16 %v6895_v33 }
 0x383   :  { %v2723_v55 = vsel %vm159_vm1, %v9771_v5, %v6891_v10  ;;  %v2724_v35 = vsel %vm159_vm1, %v9853_v31, %v6892_v53  ;;  %v6791_v53 = vunpack.i.l.bf16 %v10079_v45 }
 0x384   :  { %v2739_v24 = vsel %vm723_vm6, %v2723_v55, %v6896_v17  ;;  %v6920_v51 = vpop.permute.xlu2 %6919  ;;  %v2740_v52 = vsel %vm723_vm6, %v2724_v35, %v6897_v63 }
 0x385   :  { %v2755_v21 = vsel %vm740_vm7, %v2739_v24, %v6901_v22  ;;  %v2756_v8 = vsel %vm740_vm7, %v2740_v52, %v6902_v28  ;;  %v6921_v10 = vunpack.i.l.bf16 %v6920_v51  ;;  %v6922_v63 = vunpack.i.h.bf16 %v6920_v51 }
 0x386   :  { %v2763_v25 = vsel %vm159_vm1, %v9680_v49, %v6791_v53  ;;  %v6816_v53 = vunpack.i.l.bf16 %v10068_v2 }
 0x387   :  { %2923 = vmatmul.f32.gmra.mxu1 %v2755_v21  ;;  %v2725_v54 = vsel %vm159_vm1, %v9881_v61, %v6921_v10  ;;  %v6796_v21 = vunpack.i.l.bf16 %v10092_v39  ;;  %v2726_v51 = vsel %vm159_vm1, %v9952_v23, %v6922_v63 }
 0x389   :  { %v10200_v34 = vpop.permute.xlu0 %6909  ;;  %v2779_v61 = vsel %vm723_vm6, %v2763_v25, %v6796_v21 }
 0x38c   :  { %v10197_v57 = vpop.permute.xlu2 %6934 }
 0x38f   :  { %2926 = vmatmul.f32.gmra.mxu1 %v2756_v8 }
 0x394   :  { %v6955_v5 = vpop.permute.xlu2 %6954 }
 0x398   :  { %v10202_v27 = vpop.permute.xlu1 %6914 }
 0x39c   :  { %v10204_v17 = vpop.permute.xlu2 %6964 }
 0x3a0   :  { %v6925_v33 = vpop.permute.xlu1 %6924  ;;  %v6930_v22 = vpop.permute.xlu0 %6929 }
 0x3a1   :  { %v6926_v55 = vunpack.i.l.bf16 %v6925_v33  ;;  %v6931_v31 = vunpack.i.l.bf16 %v6930_v22  ;;  %v6927_v52 = vunpack.i.h.bf16 %v6925_v33  ;;  %v6932_v29 = vunpack.i.h.bf16 %v6930_v22 }
 0x3a2   :  { %v6792_v33 = vunpack.i.h.bf16 %v10079_v45  ;;  %v6821_v45 = vunpack.i.l.bf16 %v10139_v20 }
 0x3a3   :  { %v2741_v24 = vsel %vm723_vm6, %v2725_v54, %v6926_v55  ;;  %v2742_v54 = vsel %vm723_vm6, %v2726_v51, %v6927_v52  ;;  %v6956_v52 = vunpack.i.l.bf16 %v6955_v5 }
 0x3a4   :  { %v2757_v35 = vsel %vm740_vm7, %v2741_v24, %v6931_v31  ;;  %v10212_v28 = vpop.permute.xlu2 %6974  ;;  %v6797_v24 = vunpack.i.h.bf16 %v10092_v39  ;;  %v2758_v49 = vsel %vm740_vm7, %v2742_v54, %v6932_v29  ;;  %v2764_v25 = vsel %vm159_vm1, %v9722_v58, %v6792_v33 }
 0x3a5   :  { %2929 = vmatmul.f32.gmra.mxu1 %v2757_v35  ;;  %v6977_v8 = vunpack.i.h.bf16 %v10212_v28  ;;  %v6826_v39 = vunpack.i.l.bf16 %v10135_v1  ;;  %v2765_v33 = vsel %vm159_vm1, %v9716_v43, %v6821_v45  ;;  %v6817_v54 = vunpack.i.h.bf16 %v10068_v2 }
 0x3a6   :  { %v2780_v22 = vsel %vm723_vm6, %v2764_v25, %v6797_v24 }
 0x3a7   :  { %v2795_v31 = vsel %vm740_vm7, %v2779_v61, %v6977_v8  ;;  %v2796_v63 = vsel %vm740_vm7, %v2780_v22, %v6816_v53 }
 0x3a8   :  { %v10218_v10 = vpop.permute.xlu1 %6944  ;;  %v10220_v55 = vpop.permute.xlu0 %6939  ;;  %2964 = vmatmul.f32.vlgmr.msra.gmra.mxu3 %v2795_v31  ;;  %v2781_v31 = vsel %vm723_vm6, %v2765_v33, %v6826_v39 }
 0x3a9   :  { %v2797_v53 = vsel %vm740_vm7, %v2781_v31, %v6817_v54 }
 0x3ad   :  { %2932 = vmatmul.f32.gmra.mxu1 %v2758_v49  ;;  %v6957_v49 = vunpack.i.h.bf16 %v6955_v5  ;;  %v10257_v5 = vpop.permute.xlu2 %6994 }
 0x3b0   :  { %v6960_v23 = vpop.permute.xlu1 %6959  ;;  %v6950_v21 = vpop.permute.xlu0 %6949  ;;  %2967 = vmatmul.f32.gmra.mxu3 %v2796_v63 }
 0x3b1   :  { %v6951_v35 = vunpack.i.l.bf16 %v6950_v21  ;;  %v6961_v29 = vunpack.i.l.bf16 %v6960_v23  ;;  %v6952_v8 = vunpack.i.h.bf16 %v6950_v21  ;;  %v6827_v21 = vunpack.i.h.bf16 %v10135_v1 }
 0x3b2   :  { %v6962_v45 = vunpack.i.h.bf16 %v6960_v23 }
 0x3b3   :  { %v2727_v58 = vsel %vm159_vm1, %v9981_v19, %v6951_v35  ;;  %v2728_v24 = vsel %vm159_vm1, %v10016_v0, %v6952_v8  ;;  %v6822_v19 = vunpack.i.h.bf16 %v10139_v20  ;;  %v6846_v20 = vunpack.i.l.bf16 %v10129_v56 }
 0x3b4   :  { %v2743_v61 = vsel %vm723_vm6, %v2727_v58, %v6956_v52  ;;  %v2744_v43 = vsel %vm723_vm6, %v2728_v24, %v6957_v49  ;;  %v6851_v35 = vunpack.i.l.bf16 %v10159_v26  ;;  %v6856_v8 = vunpack.i.l.bf16 %v10157_v37 }
 0x3b5   :  { %v2759_v51 = vsel %vm740_vm7, %v2743_v61, %v6961_v29  ;;  %v2760_v2 = vsel %vm740_vm7, %v2744_v43, %v6962_v45  ;;  %v2766_v0 = vsel %vm159_vm1, %v9744_v41, %v6822_v19  ;;  %v6976_v41 = vunpack.i.l.bf16 %v10212_v28 }
 0x3b6   :  { %2935 = vmatmul.f32.gmra.mxu1 %v2759_v51  ;;  %v2782_v63 = vsel %vm723_vm6, %v2766_v0, %v6827_v21  ;;  %v2767_v51 = vsel %vm159_vm1, %v9765_v44, %v6851_v35  ;;  %v6847_v49 = vunpack.i.h.bf16 %v10129_v56  ;;  %v6852_v19 = vunpack.i.h.bf16 %v10159_v26 }
 0x3b7   :  { %v2798_v52 = vsel %vm740_vm7, %v2782_v63, %v6846_v20  ;;  %v2783_v24 = vsel %vm723_vm6, %v2767_v51, %v6856_v8  ;;  %v6857_v44 = vunpack.i.h.bf16 %v10157_v37  ;;  %v6876_v37 = vunpack.i.l.bf16 %v10177_v40 }
 0x3b8   :  { %v10246_v25 = vpop.permute.xlu1 %6979  ;;  %v10248_v22 = vpop.permute.xlu0 %6969  ;;  %2970 = vmatmul.f32.gmra.mxu3 %v2797_v53  ;;  %v2768_v45 = vsel %vm159_vm1, %v9797_v14, %v6852_v19  ;;  %v6882_v14 = vunpack.i.h.bf16 %v10163_v15  ;;  %v6887_v35 = vunpack.i.h.bf16 %v10181_v3  ;;  %v6947_v19 = vunpack.i.h.bf16 %v10218_v10 }
 0x3b9   :  { %v10276_v53 = vpop.permute.xlu2 %7009  ;;  %v2784_v26 = vsel %vm723_vm6, %v2768_v45, %v6857_v44  ;;  %v6966_v44 = vunpack.i.l.bf16 %v10204_v17 }
 0x3ba   :  { %v7012_v43 = vunpack.i.h.bf16 %v10276_v53 }
 0x3be   :  { %2938 = vmatmul.f32.gmra.mxu1 %v2760_v2  ;;  %v6886_v2 = vunpack.i.l.bf16 %v10181_v3 }
 0x3c0   :  { %v6985_v39 = vpop.permute.xlu1 %6984  ;;  %v6990_v1 = vpop.permute.xlu0 %6989  ;;  %2973 = vmatmul.f32.gmra.mxu3 %v2798_v52  ;;  %v2769_v63 = vsel %vm159_vm1, %v9818_v16, %v6886_v2  ;;  %v2770_v52 = vsel %vm159_vm1, %v9834_v46, %v6887_v35  ;;  %v6911_v16 = vunpack.i.l.bf16 %v10200_v34  ;;  %v6912_v46 = vunpack.i.h.bf16 %v10200_v34 }
 0x3c1   :  { %v6986_v29 = vunpack.i.l.bf16 %v6985_v39  ;;  %v6991_v23 = vunpack.i.l.bf16 %v6990_v1  ;;  %v6987_v58 = vunpack.i.h.bf16 %v6985_v39  ;;  %v6992_v54 = vunpack.i.h.bf16 %v6990_v1 }
 0x3c2   :  { %v2785_v20 = vsel %vm723_vm6, %v2769_v63, %v6876_v37  ;;  %v6877_v1 = vunpack.i.h.bf16 %v10177_v40  ;;  %v2771_v3 = vsel %vm159_vm1, %v9870_v50, %v6911_v16  ;;  %v2772_v51 = vsel %vm159_vm1, %v9908_v13, %v6912_v46  ;;  %v2900_v37 = vpop.f32.mrf.mxu1 }
 0x3c3   :  { %v2729_v61 = vsel %vm159_vm1, %v10040_v38, %v6986_v29  ;;  %v2730_v28 = vsel %vm159_vm1, %v10071_v36, %v6987_v58  ;;  %v2799_v38 = vsel %vm740_vm7, %v2783_v24, %v6847_v49  ;;  %v6881_v36 = vunpack.i.l.bf16 %v10163_v15 }
 0x3c4   :  { %v2745_v33 = vsel %vm723_vm6, %v2729_v61, %v6991_v23  ;;  %v2746_v21 = vsel %vm723_vm6, %v2730_v28, %v6992_v54  ;;  %v2801_v39 = vsel %vm740_vm7, %v2785_v20, %v6882_v14  ;;  %v2786_v29 = vsel %vm723_vm6, %v2770_v52, %v6877_v1 }
 0x3c5   :  { %v2761_v31 = vsel %vm740_vm7, %v2745_v33, %v6976_v41  ;;  %v2762_v56 = vsel %vm740_vm7, %v2746_v21, %v7012_v43  ;;  %v2800_v0 = vsel %vm740_vm7, %v2784_v26, %v6881_v36  ;;  %v6906_v23 = vunpack.i.l.bf16 %v10184_v9 }
 0x3c6   :  { %2941 = vmatmul.f32.gmra.mxu1 %v2761_v31  ;;  %v6916_v15 = vunpack.i.l.bf16 %v10202_v27  ;;  %v6907_v41 = vunpack.i.h.bf16 %v10184_v9  ;;  %v6917_v61 = vunpack.i.h.bf16 %v10202_v27  ;;  %v6936_v31 = vunpack.i.l.bf16 %v10197_v57 }
 0x3c7   :  { %v2802_v8 = vsel %vm740_vm7, %v2786_v29, %v6906_v23  ;;  %v6941_v50 = vunpack.i.l.bf16 %v10220_v55  ;;  %v6946_v9 = vunpack.i.l.bf16 %v10218_v10  ;;  %v6937_v24 = vunpack.i.h.bf16 %v10197_v57 }
 0x3c8   :  { %2976 = vmatmul.f32.gmra.mxu3 %v2799_v38  ;;  %v2787_v40 = vsel %vm723_vm6, %v2771_v3, %v6916_v15  ;;  %v2788_v33 = vsel %vm723_vm6, %v2772_v51, %v6917_v61  ;;  %v6942_v13 = vunpack.i.h.bf16 %v10220_v55  ;;  %v2424_v57 = vrot.slane %v9990_v59, 2  ;;  %v7000_v2 = vpop.permute.xlu0 %6999  ;;  %v7005_v63 = vpop.permute.xlu1 %7004 }
 0x3c9   :  { %v2803_v58 = vsel %vm740_vm7, %v2787_v40, %v6907_v41  ;;  %v2804_v54 = vsel %vm740_vm7, %v2788_v33, %v6936_v31  ;;  %v2773_v34 = vsel %vm159_vm1, %v9973_v42, %v6941_v50  ;;  %v6971_v42 = vunpack.i.l.bf16 %v10248_v22  ;;  %v10358_v40 = vld [vmem:[#allocation3] sm:$0xff] }
 0x3ca   :  { %v2789_v27 = vsel %vm723_vm6, %v2773_v34, %v6946_v9  ;;  %v2774_v28 = vsel %vm159_vm1, %v10003_v62, %v6942_v13  ;;  %v2425_v55 = vrot.slane %v9999_v47, 2  ;;  %v6981_v43 = vunpack.i.l.bf16 %v10246_v25  ;;  %v2903_v1 = vpop.f32.mrf.mxu1  ;;  %5212 = vst.msk [vmem:[#allocation3] sm:$0xff] %vm159_vm1, %v12667_v11 }
 0x3cb   :  { %v2805_v49 = vsel %vm740_vm7, %v2789_v27, %v6937_v24  ;;  %v2790_v38 = vsel %vm723_vm6, %v2774_v28, %v6947_v19  ;;  %v2775_v10 = vsel %vm159_vm1, %v10035_v18, %v6971_v42  ;;  %v6972_v26 = vunpack.i.h.bf16 %v10248_v22 }
 0x3cc   :  { %v2806_v21 = vsel %vm740_vm7, %v2790_v38, %v6966_v44  ;;  %v2426_v62 = vsel %vm322_vm5, %v2424_v57, %v2425_v55  ;;  %v2791_v45 = vsel %vm723_vm6, %v2775_v10, %v6981_v43  ;;  %v6982_v47 = vunpack.i.h.bf16 %v10246_v25  ;;  %v3030_v25 = vpop.f32.mrf.mxu2 }
 0x3cd   :  { %6201 = vmatmul.msk.f32.gmra.mxu2 %vm159_vm1, %v2426_v62  ;;  %v2776_v36 = vsel %vm159_vm1, %v10061_v12, %v6972_v26  ;;  %v7001_v20 = vunpack.i.l.bf16 %v7000_v2  ;;  %v7006_v14 = vunpack.i.l.bf16 %v7005_v63  ;;  %v6997_v12 = vunpack.i.h.bf16 %v10257_v5 }
 0x3ce   :  { %2944 = vmatmul.f32.gmra.mxu1 %v2762_v56  ;;  %v6967_v56 = vunpack.i.h.bf16 %v10204_v17  ;;  %v2792_v18 = vsel %vm723_vm6, %v2776_v36, %v6982_v47  ;;  %v7007_v29 = vunpack.i.h.bf16 %v7005_v63  ;;  %v7011_v15 = vunpack.i.l.bf16 %v10276_v53 }
 0x3cf   :  { %v2777_v22 = vsel %vm159_vm1, %v10095_v32, %v7001_v20  ;;  %v12680_v33 = vmax.f32 %v8875_v60, 0.0  ;;  %v12682_v60 = vmax.f32 %v8885_v4, 0.0  ;;  %v3350_v55 = vrot.slane %v10358_v40, 2 }
 0x3d0   :  { %2979 = vmatmul.f32.gmra.mxu3 %v2800_v0  ;;  %v2807_v59 = vsel %vm740_vm7, %v2791_v45, %v6967_v56  ;;  %v6996_v0 = vunpack.i.l.bf16 %v10257_v5  ;;  %v2793_v35 = vsel %vm723_vm6, %v2777_v22, %v7006_v14  ;;  %v3231_v5 = vld [vmem:[#allocation3 + $0x8] sm:$0x3]  ;;  %v3302_v45 = vrot.slane %v10358_v40, 1 }
 0x3d1   :  { %v2809_v52 = vsel %vm740_vm7, %v2793_v35, %v6997_v12  ;;  %5213 = vst.msk [vmem:[#allocation3 + $0x8] sm:$0x3] %vm161_vm2, %v12667_v11  ;;  %v3351_v43 = vrot.slane %v3231_v5, 2  ;;  %v3303_v56 = vrot.slane %v3231_v5, 1  ;;  %v12684_v63 = vmax.f32 %v8902_v30, 0.0 }
 0x3d2   :  { %v2808_v17 = vsel %vm740_vm7, %v2792_v18, %v6996_v0 }
 0x3d3   :  { %v3352_v18 = vsel %vm322_vm5, %v3350_v55, %v3351_v43  ;;  %v3304_v14 = vsel %vm273_vm4, %v3302_v45, %v3303_v56 }
 0x3d4   :  { %v2906_v32 = vpop.f32.mrf.mxu1 }
 0x3d8   :  { %2982 = vmatmul.f32.gmra.mxu3 %v2801_v39  ;;  %v7002_v39 = vunpack.i.h.bf16 %v7000_v2 }
 0x3da   :  { %v2778_v23 = vsel %vm159_vm1, %v10110_v6, %v7002_v39  ;;  %v10367_v6 = vld [vmem:[%s12541_s6] ss:$0 sm:$0xff] }
 0x3db   :  { %v2794_v16 = vsel %vm723_vm6, %v2778_v23, %v7007_v29  ;;  %v2901_v46 = vadd.f32 %v10367_v6, %v2900_v37  ;;  %v2907_v44 = vadd.f32 %v10367_v6, %v2906_v32 }
 0x3dc   :  { %v2810_v3 = vsel %vm740_vm7, %v2794_v16, %v7011_v15  ;;  %v2909_v53 = vpop.f32.mrf.mxu1 }
 0x3e0   :  { %2985 = vmatmul.f32.gmra.mxu3 %v2802_v8  ;;  %v3033_v8 = vpop.f32.mrf.mxu2 }
 0x3e4   :  { %v2912_v34 = vpop.f32.mrf.mxu1 }
 0x3e8   :  { %2988 = vmatmul.f32.gmra.mxu3 %v2803_v58  ;;  %v3036_v41 = vpop.f32.mrf.mxu2 }
 0x3ec   :  { %v2915_v26 = vpop.f32.mrf.mxu1 }
 0x3f0   :  { %2991 = vmatmul.f32.gmra.mxu3 %v2804_v54  ;;  %v3039_v50 = vpop.f32.mrf.mxu2  ;;  %v2904_v54 = vadd.f32 %v10367_v6, %v2903_v1 }
 0x3f4   :  { %v2918_v5 = vpop.f32.mrf.mxu1 }
 0x3f8   :  { %2994 = vmatmul.f32.gmra.mxu3 %v2805_v49 }
 0x3fc   :  { %v2921_v56 = vpop.f32.mrf.mxu1 }
 0x400   :  { %2997 = vmatmul.f32.gmra.mxu3 %v2806_v21  ;;  %v3042_v21 = vpop.f32.mrf.mxu2 }
 0x408   :  { %3000 = vmatmul.f32.gmra.mxu3 %v2807_v59  ;;  %v3045_v16 = vpop.f32.mrf.mxu2 }
 0x410   :  { %3003 = vmatmul.f32.gmra.mxu3 %v2808_v17 }
 0x418   :  { %3006 = vmatmul.f32.gmra.mxu3 %v2809_v52 }
 0x420   :  { %3009 = vmatmul.f32.gmra.mxu3 %v2810_v3 }
 0x42b   :  { %v2965_v58 = vpop.f32.mrf.mxu3 }
 0x42c   :  { %v2966_v61 = vadd.f32 %v2965_v58, %v2901_v46  ;;  %v12686_v58 = vmax.f32 %v8925_v48, 0.0 }
 0x42e   :  { %v3031_v51 = vadd.f32 %v3030_v25, %v2966_v61  ;;  %v2910_v25 = vadd.f32 %v10367_v6, %v2909_v53 }
 0x430   :  { %v10372_v31 = vadd.f32 %v3031_v51, %v12680_v33  ;;  %v2913_v33 = vadd.f32 %v10367_v6, %v2912_v34 }
 0x432   :  { %12681 = vst [vmem:[#allocation13_spill] sm:$0xff] %v10372_v31  ;;  %v12605_v9 = vmax.f32 %v10372_v31, 0.0 }
 0x433   :  { %v2968_v27 = vpop.f32.mrf.mxu3 }
 0x434   :  { %v3126_v24 = vrot.slane %v12605_v9, 7  ;;  %v2969_v13 = vadd.f32 %v2968_v27, %v2904_v54 }
 0x436   :  { %v3158_v49 = vsel %vm126_vm3, 0.0, %v3126_v24  ;;  %v3174_v19 = vsel %vm126_vm3, %v3126_v24, 0.0  ;;  %v3034_v28 = vadd.f32 %v3033_v8, %v2969_v13 }
 0x437   :  { %3192 = vst.msk [vmem:[#allocation3 + $0x10] sm:$0xff] %vm159_vm1, %v3158_v49 }
 0x438   :  { %3193 = vst.msk [vmem:[#allocation3 + $0x18] sm:$0x3] %vm161_vm2, %v3174_v19  ;;  %v10384_v38 = vadd.f32 %v3034_v28, %v12682_v60 }
 0x43a   :  { %12683 = vst [vmem:[#allocation10_spill] sm:$0xff] %v10384_v38  ;;  %v12604_v42 = vmax.f32 %v10384_v38, 0.0 }
 0x43b   :  { %v2971_v57 = vpop.f32.mrf.mxu3 }
 0x43c   :  { %v3127_v10 = vrot.slane %v12604_v42, 7  ;;  %v2972_v62 = vadd.f32 %v2971_v57, %v2907_v44  ;;  %v3048_v57 = vpop.f32.mrf.mxu2 }
 0x43e   :  { %v3159_v4 = vsel %vm126_vm3, 0.0, %v3127_v10  ;;  %v3175_v59 = vsel %vm126_vm3, %v3127_v10, 0.0  ;;  %v3037_v47 = vadd.f32 %v3036_v41, %v2972_v62  ;;  %v10394_v36 = vld [vmem:[#allocation3 + $0x10] sm:$0xff]  ;;  %v12688_v10 = vmax.f32 %v8946_v7, 0.0 }
 0x43f   :  { %3194 = vst.msk [vmem:[#allocation3 + $0x20] sm:$0xff] %vm159_vm1, %v3159_v4  ;;  %v3233_v2 = vld [vmem:[#allocation3 + $0x18] sm:$0x3]  ;;  %v3353_v0 = vrot.slane %v10394_v36, 2  ;;  %v3305_v37 = vrot.slane %v10394_v36, 1  ;;  %v2916_v4 = vadd.f32 %v10367_v6, %v2915_v26 }
 0x440   :  { %3195 = vst.msk [vmem:[#allocation3 + $0x28] sm:$0x3] %vm161_vm2, %v3175_v59  ;;  %v10403_v20 = vadd.f32 %v3037_v47, %v12684_v63  ;;  %v3354_v17 = vrot.slane %v3233_v2, 2  ;;  %v3306_v22 = vrot.slane %v3233_v2, 1 }
 0x442   :  { %12685 = vst [vmem:[#allocation11_spill] sm:$0xff] %v10403_v20  ;;  %v12603_v35 = vmax.f32 %v10403_v20, 0.0  ;;  %v3355_v12 = vsel %vm322_vm5, %v3353_v0, %v3354_v17  ;;  %v10410_v39 = vsel %vm273_vm4, %v3305_v37, %v3306_v22 }
 0x443   :  { %v2974_v1 = vpop.f32.mrf.mxu3  ;;  %v7018_v52 = vpack.i.bf16 %v3355_v12, %v3352_v18  ;;  %v7013_v29 = vpack.i.bf16 %v10410_v39, %v3304_v14 }
 0x444   :  { %v3128_v30 = vrot.slane %v12603_v35, 7  ;;  %v2975_v23 = vadd.f32 %v2974_v1, %v2910_v25 }
 0x445   :  { %7019 = vrot.lane.b32.xlu2 %v7018_v52, %s7771_s22  ;;  %7014 = vrot.lane.b32.xlu0 %v7013_v29, %s7770_s26  ;;  %v12690_v52 = vld [vmem:[#allocation16_spill] sm:$0xff] }
 0x446   :  { %v3160_v8 = vsel %vm126_vm3, 0.0, %v3128_v30  ;;  %v3176_v15 = vsel %vm126_vm3, %v3128_v30, 0.0  ;;  %v3040_v32 = vadd.f32 %v3039_v50, %v2975_v23  ;;  %v10419_v3 = vld [vmem:[#allocation3 + $0x20] sm:$0xff]  ;;  %v12691_v29 = vmax.f32 %v12690_v52, 0.0 }
 0x447   :  { %3196 = vst.msk [vmem:[#allocation3 + $0x30] sm:$0xff] %vm159_vm1, %v3160_v8  ;;  %v3235_v41 = vld [vmem:[#allocation3 + $0x28] sm:$0x3]  ;;  %v3356_v53 = vrot.slane %v10419_v3, 2  ;;  %v7023_v46 = vpack.i.bf16 %v10419_v3, %v10394_v36  ;;  %v3308_v48 = vrot.slane %v10419_v3, 1  ;;  %v10484_v8 = vld [vmem:[#allocation3 + $0x90] sm:$0xff] }
 0x448   :  { %3197 = vst.msk [vmem:[#allocation3 + $0x38] sm:$0x3] %vm161_vm2, %v3176_v15  ;;  %v10428_v61 = vadd.f32 %v3040_v32, %v12686_v58  ;;  %v3357_v51 = vrot.slane %v3235_v41, 2  ;;  %v3309_v44 = vrot.slane %v3235_v41, 1  ;;  %v10489_v15 = vld [vmem:[#allocation3 + $0x98] sm:$0x3]  ;;  %v2919_v32 = vadd.f32 %v10367_v6, %v2918_v5 }
 0x449   :  { %7024 = vrot.lane.b32.xlu1 %v7023_v46, %s7772_s0  ;;  %12693 = vst [vmem:[#allocation23_spill] sm:$0xff] %v10484_v8 }
 0x44a   :  { %12687 = vst [vmem:[#allocation21_spill] sm:$0xff] %v10428_v61  ;;  %v12601_v50 = vmax.f32 %v10428_v61, 0.0  ;;  %v10434_v54 = vsel %vm322_vm5, %v3356_v53, %v3357_v51  ;;  %v10455_v59 = vsel %vm273_vm4, %v3308_v48, %v3309_v44  ;;  %v2924_v53 = vpop.f32.mrf.mxu1 }
 0x44b   :  { %v7028_v27 = vpack.i.bf16 %v10434_v54, %v3355_v12  ;;  %v2977_v24 = vpop.f32.mrf.mxu3  ;;  %v3051_v12 = vpop.f32.mrf.mxu2  ;;  %5230 = vst.msk [vmem:[#allocation3 + $0x90] sm:$0xff] %vm159_vm1, %v12667_v11 }
 0x44c   :  { %v3129_v13 = vrot.slane %v12601_v50, 7  ;;  %v2978_v49 = vadd.f32 %v2977_v24, %v2913_v33  ;;  %12694 = vst [vmem:[#allocation24_spill] sm:$0xff] %v10489_v15 }
 0x44d   :  { %7029 = vrot.lane.b32.xlu0 %v7028_v27, %s7770_s26  ;;  %5231 = vst.msk [vmem:[#allocation3 + $0x98] sm:$0x3] %vm161_vm2, %v12667_v11 }
 0x44e   :  { %v3161_v19 = vsel %vm126_vm3, 0.0, %v3129_v13  ;;  %v3177_v34 = vsel %vm126_vm3, %v3129_v13, 0.0  ;;  %v3043_v28 = vadd.f32 %v3042_v21, %v2978_v49  ;;  %v10443_v60 = vld [vmem:[#allocation3 + $0x30] sm:$0xff] }
 0x44f   :  { %3198 = vst.msk [vmem:[#allocation3 + $0x40] sm:$0xff] %vm159_vm1, %v3161_v19  ;;  %v3237_v55 = vld [vmem:[#allocation3 + $0x38] sm:$0x3]  ;;  %v3311_v43 = vrot.slane %v10443_v60, 1  ;;  %v7033_v7 = vpack.i.bf16 %v10443_v60, %v10419_v3  ;;  %v3359_v26 = vrot.slane %v10443_v60, 2 }
 0x450   :  { %3199 = vst.msk [vmem:[#allocation3 + $0x48] sm:$0x3] %vm161_vm2, %v3177_v34  ;;  %v10450_v62 = vadd.f32 %v3043_v28, %v12688_v10  ;;  %v3312_v45 = vrot.slane %v3237_v55, 1  ;;  %v3360_v63 = vrot.slane %v3237_v55, 2 }
 0x452   :  { %12689 = vst [vmem:[#allocation22_spill] sm:$0xff] %v10450_v62  ;;  %v12600_v21 = vmax.f32 %v10450_v62, 0.0  ;;  %v10458_v47 = vsel %vm273_vm4, %v3311_v43, %v3312_v45  ;;  %v10482_v23 = vsel %vm322_vm5, %v3359_v26, %v3360_v63  ;;  %v12695_v43 = vld [vmem:[#allocation7_spill] sm:$0xff] }
 0x453   :  { %v2980_v2 = vpop.f32.mrf.mxu3  ;;  %v7038_v18 = vpack.i.bf16 %v10458_v47, %v10455_v59  ;;  %v7043_v58 = vpack.i.bf16 %v10482_v23, %v10434_v54  ;;  %v12696_v10 = vmax.f32 %v12695_v43, 0.0 }
 0x454   :  { %v3130_v0 = vrot.slane %v12600_v21, 7  ;;  %v2981_v37 = vadd.f32 %v2980_v2, %v2916_v4  ;;  %v10519_v2 = vld [vmem:[#allocation3 + $0xa0] sm:$0xff] }
 0x455   :  { %7039 = vrot.lane.b32.xlu1 %v7038_v18, %s7770_s26  ;;  %7034 = vrot.lane.b32.xlu0 %v7033_v7, %s7771_s22  ;;  %v10522_v7 = vld [vmem:[#allocation3 + $0xa8] sm:$0x3]  ;;  %5232 = vst.msk [vmem:[#allocation3 + $0xa0] sm:$0xff] %vm159_vm1, %v12667_v11 }
 0x456   :  { %v3162_v17 = vsel %vm126_vm3, 0.0, %v3130_v0  ;;  %v3178_v14 = vsel %vm126_vm3, %v3130_v0, 0.0  ;;  %v3046_v22 = vadd.f32 %v3045_v16, %v2981_v37  ;;  %v10471_v25 = vld [vmem:[#allocation3 + $0x40] sm:$0xff]  ;;  %v2922_v0 = vadd.f32 %v10367_v6, %v2921_v56  ;;  %5233 = vst.msk [vmem:[#allocation3 + $0xa8] sm:$0x3] %vm161_vm2, %v12667_v11 }
 0x457   :  { %3200 = vst.msk [vmem:[#allocation3 + $0x50] sm:$0xff] %vm159_vm1, %v3162_v17  ;;  %v7053_v1 = vpack.i.bf16 %v10471_v25, %v10443_v60  ;;  %v3239_v16 = vld [vmem:[#allocation3 + $0x48] sm:$0x3]  ;;  %v3362_v27 = vrot.slane %v10471_v25, 2  ;;  %v3314_v5 = vrot.slane %v10471_v25, 1 }
 0x458   :  { %3201 = vst.msk [vmem:[#allocation3 + $0x58] sm:$0x3] %vm161_vm2, %v3178_v14  ;;  %v10479_v30 = vadd.f32 %v3046_v22, %v12691_v29  ;;  %v3363_v24 = vrot.slane %v3239_v16, 2  ;;  %v3315_v34 = vrot.slane %v3239_v16, 1  ;;  %v2927_v16 = vpop.f32.mrf.mxu1 }
 0x459   :  { %7054 = vrot.lane.b32.xlu2 %v7053_v1, %s7772_s0 }
 0x45a   :  { %12692 = vst [vmem:[#allocation16_spill] sm:$0xff] %v10479_v30  ;;  %v12599_v41 = vmax.f32 %v10479_v30, 0.0  ;;  %v10517_v4 = vsel %vm322_vm5, %v3362_v27, %v3363_v24  ;;  %v10529_v26 = vsel %vm273_vm4, %v3314_v5, %v3315_v34  ;;  %v12698_v27 = vld [vmem:[#allocation17_spill] sm:$0xff]  ;;  %v3831_v30 = vld [vmem:[%s12542_s7 + $0x8] sm:$0xff] }
 0x45b   :  { %v2983_v46 = vpop.f32.mrf.mxu3  ;;  %v7058_v14 = vpack.i.bf16 %v10517_v4, %v10482_v23  ;;  %v12699_v24 = vmax.f32 %v12698_v27, 0.0 }
 0x45c   :  { %v3131_v51 = vrot.slane %v12599_v41, 7  ;;  %v2984_v33 = vadd.f32 %v2983_v46, %v2919_v32 }
 0x45d   :  { %7049 = vrot.lane.b32.xlu1 %v7038_v18, %s7772_s0  ;;  %7044 = vrot.lane.b32.xlu0 %v7043_v58, %s7771_s22  ;;  %v3054_v18 = vpop.f32.mrf.mxu2 }
 0x45e   :  { %v3163_v13 = vsel %vm126_vm3, 0.0, %v3131_v51  ;;  %v3179_v49 = vsel %vm126_vm3, %v3131_v51, 0.0  ;;  %v3049_v48 = vadd.f32 %v3048_v57, %v2984_v33  ;;  %v10505_v19 = vld [vmem:[#allocation3 + $0x50] sm:$0xff] }
 0x45f   :  { %3202 = vst.msk [vmem:[#allocation3 + $0x60] sm:$0xff] %vm159_vm1, %v3163_v13  ;;  %v7063_v28 = vpack.i.bf16 %v10505_v19, %v10471_v25  ;;  %v3241_v44 = vld [vmem:[#allocation3 + $0x58] sm:$0x3]  ;;  %v3317_v55 = vrot.slane %v10505_v19, 1  ;;  %v3365_v52 = vrot.slane %v10505_v19, 2 }
 0x460   :  { %3203 = vst.msk [vmem:[#allocation3 + $0x68] sm:$0x3] %vm161_vm2, %v3179_v49  ;;  %v10514_v45 = vadd.f32 %v3049_v48, %v12696_v10  ;;  %v3318_v57 = vrot.slane %v3241_v44, 1  ;;  %v3366_v29 = vrot.slane %v3241_v44, 2 }
 0x461   :  { %7064 = vrot.lane.b32.xlu2 %v7063_v28, %s7771_s22 }
 0x462   :  { %12697 = vst [vmem:[#allocation7_spill] sm:$0xff] %v10514_v45  ;;  %v12598_v37 = vmax.f32 %v10514_v45, 0.0  ;;  %v10532_v63 = vsel %vm273_vm4, %v3317_v55, %v3318_v57  ;;  %v10556_v13 = vsel %vm322_vm5, %v3365_v52, %v3366_v29 }
 0x463   :  { %v2986_v17 = vpop.f32.mrf.mxu3  ;;  %v7078_v22 = vpack.i.bf16 %v10532_v63, %v10529_v26  ;;  %v7073_v55 = vpack.i.bf16 %v10556_v13, %v10517_v4 }
 0x464   :  { %v3132_v56 = vrot.slane %v12598_v37, 7  ;;  %v2987_v1 = vadd.f32 %v2986_v17, %v2922_v0  ;;  %v2930_v17 = vpop.f32.mrf.mxu1 }
 0x465   :  { %7059 = vrot.lane.b32.xlu1 %v7058_v14, %s7770_s26  ;;  %7079 = vrot.lane.b32.xlu0 %v7078_v22, %s7772_s0  ;;  %v3057_v34 = vpop.f32.mrf.mxu2 }
 0x466   :  { %v3164_v32 = vsel %vm126_vm3, 0.0, %v3132_v56  ;;  %v3180_v46 = vsel %vm126_vm3, %v3132_v56, 0.0  ;;  %v3052_v58 = vadd.f32 %v3051_v12, %v2987_v1  ;;  %v10547_v51 = vld [vmem:[#allocation3 + $0x60] sm:$0xff]  ;;  %v2925_v12 = vadd.f32 %v10367_v6, %v2924_v53 }
 0x467   :  { %3204 = vst.msk [vmem:[#allocation3 + $0x70] sm:$0xff] %vm159_vm1, %v3164_v32  ;;  %v3243_v33 = vld [vmem:[#allocation3 + $0x68] sm:$0x3]  ;;  %v3368_v49 = vrot.slane %v10547_v51, 2  ;;  %v7083_v43 = vpack.i.bf16 %v10547_v51, %v10505_v19  ;;  %v3320_v53 = vrot.slane %v10547_v51, 1 }
 0x468   :  { %3205 = vst.msk [vmem:[#allocation3 + $0x78] sm:$0x3] %vm161_vm2, %v3180_v46  ;;  %v10553_v5 = vadd.f32 %v3052_v58, %v12699_v24  ;;  %v3369_v48 = vrot.slane %v3243_v33, 2  ;;  %v3321_v52 = vrot.slane %v3243_v33, 1  ;;  %v12701_v58 = vld [vmem:[#allocation8_spill] sm:$0xff] }
 0x469   :  { %7069 = vrot.lane.b32.xlu2 %v7078_v22, %s7770_s26  ;;  %v12702_v27 = vmax.f32 %v12701_v58, 0.0 }
 0x46a   :  { %12700 = vst [vmem:[#allocation17_spill] sm:$0xff] %v10553_v5  ;;  %v12597_v28 = vmax.f32 %v10553_v5, 0.0  ;;  %v10569_v0 = vsel %vm322_vm5, %v3368_v49, %v3369_v48  ;;  %v10591_v48 = vsel %vm273_vm4, %v3320_v53, %v3321_v52 }
 0x46b   :  { %v2989_v44 = vpop.f32.mrf.mxu3  ;;  %v7088_v29 = vpack.i.bf16 %v10569_v0, %v10556_v13 }
 0x46c   :  { %v3133_v10 = vrot.slane %v12597_v28, 7  ;;  %v2990_v57 = vadd.f32 %v2989_v44, %v2925_v12  ;;  %v12707_v28 = vld [vmem:[#allocation9_spill] sm:$0xff] }
 0x46d   :  { %7074 = vrot.lane.b32.xlu1 %v7073_v55, %s7771_s22  ;;  %7084 = vrot.lane.b32.xlu0 %v7083_v43, %s7772_s0  ;;  %v3060_v44 = vpop.f32.mrf.mxu2  ;;  %v12708_v37 = vmax.f32 %v12707_v28, 0.0 }
 0x46e   :  { %v3165_v14 = vsel %vm126_vm3, 0.0, %v3133_v10  ;;  %v3181_v22 = vsel %vm126_vm3, %v3133_v10, 0.0  ;;  %v3055_v56 = vadd.f32 %v3054_v18, %v2990_v57  ;;  %v10576_v1 = vld [vmem:[#allocation3 + $0x70] sm:$0xff]  ;;  %v2928_v18 = vadd.f32 %v10367_v6, %v2927_v16 }
 0x46f   :  { %3206 = vst.msk [vmem:[#allocation3 + $0x80] sm:$0xff] %vm159_vm1, %v3165_v14  ;;  %v3245_v32 = vld [vmem:[#allocation3 + $0x78] sm:$0x3]  ;;  %v3323_v46 = vrot.slane %v10576_v1, 1 }
 0x470   :  { %3207 = vst.msk [vmem:[#allocation3 + $0x88] sm:$0x3] %vm161_vm2, %v3181_v22  ;;  %v10585_v24 = vadd.f32 %v3055_v56, %v12702_v27  ;;  %v3324_v49 = vrot.slane %v3245_v32, 1  ;;  %v2933_v56 = vpop.f32.mrf.mxu1  ;;  %v3372_v58 = vrot.slane %v3245_v32, 2  ;;  %v12704_v27 = vld [vmem:[#allocation20_spill] sm:$0xff]  ;;  %v3326_v32 = vrot.slane %v10519_v2, 1 }
 0x471   :  { %7089 = vrot.lane.b32.xlu2 %v7088_v29, %s7770_s26  ;;  %v7093_v29 = vpack.i.bf16 %v10576_v1, %v10547_v51 }
 0x472   :  { %12703 = vst [vmem:[#allocation8_spill] sm:$0xff] %v10585_v24  ;;  %v12595_v33 = vmax.f32 %v10585_v24, 0.0  ;;  %v10594_v12 = vsel %vm273_vm4, %v3323_v46, %v3324_v49  ;;  %v3371_v46 = vrot.slane %v10576_v1, 2  ;;  %v12705_v49 = vmax.f32 %v12704_v27, 0.0 }
 0x473   :  { %v2992_v55 = vpop.f32.mrf.mxu3  ;;  %v7098_v43 = vpack.i.bf16 %v10594_v12, %v10591_v48 }
 0x474   :  { %v3134_v10 = vrot.slane %v12595_v33, 7  ;;  %v2993_v57 = vadd.f32 %v2992_v55, %v2928_v18  ;;  %v2931_v55 = vadd.f32 %v10367_v6, %v2930_v17 }
 0x475   :  { %7099 = vrot.lane.b32.xlu0 %v7098_v43, %s7770_s26 }
 0x476   :  { %v3166_v16 = vsel %vm126_vm3, 0.0, %v3134_v10  ;;  %v3182_v14 = vsel %vm126_vm3, %v3134_v10, 0.0  ;;  %v3058_v53 = vadd.f32 %v3057_v34, %v2993_v57  ;;  %v10603_v22 = vld [vmem:[#allocation3 + $0x80] sm:$0xff] }
 0x477   :  { %3212 = vst.msk [vmem:[#allocation3 + $0xb0] sm:$0xff] %vm159_vm1, %v3166_v16  ;;  %v7113_v52 = vpack.i.bf16 %v10603_v22, %v10576_v1  ;;  %v10618_v34 = vld [vmem:[#allocation3 + $0x88] sm:$0x3]  ;;  %v10623_v16 = vsel %vm322_vm5, %v3371_v46, %v3372_v58 }
 0x478   :  { %3213 = vst.msk [vmem:[#allocation3 + $0xb8] sm:$0x3] %vm161_vm2, %v3182_v14  ;;  %v10614_v18 = vadd.f32 %v3058_v53, %v12705_v49  ;;  %v3327_v14 = vrot.slane %v10522_v7, 1  ;;  %v3425_v27 = vrot.slane %v10618_v34, 2  ;;  %v3063_v49 = vpop.f32.mrf.mxu2  ;;  %v3403_v21 = vrot.slane %v10618_v34, 1  ;;  %v3842_v34 = vld [vmem:[%s12542_s7 + $0x60] sm:$0xff] }
 0x479   :  { %7114 = vrot.lane.b32.xlu1 %v7113_v52, %s7772_s0  ;;  %7094 = vrot.lane.b32.xlu2 %v7093_v29, %s7771_s22  ;;  %v3424_v29 = vrot.slane %v10603_v22, 2 }
 0x47a   :  { %12706 = vst [vmem:[#allocation20_spill] sm:$0xff] %v10614_v18  ;;  %v12596_v10 = vmax.f32 %v10614_v18, 0.0  ;;  %v3328_v41 = vsel %vm273_vm4, %v3326_v32, %v3327_v14  ;;  %v3844_v32 = vld [vmem:[%s12542_s7 + $0x70] sm:$0xff] }
 0x47b   :  { %v2995_v57 = vpop.f32.mrf.mxu3 }
 0x47c   :  { %v3135_v53 = vrot.slane %v12596_v10, 7  ;;  %v2996_v52 = vadd.f32 %v2995_v57, %v2931_v55  ;;  %v7103_v10 = vpack.i.bf16 %v10623_v16, %v10569_v0 }
 0x47d   :  { %7109 = vrot.lane.b32.xlu0 %v7098_v43, %s7772_s0 }
 0x47e   :  { %v3167_v17 = vsel %vm126_vm3, 0.0, %v3135_v53  ;;  %v3183_v46 = vsel %vm126_vm3, %v3135_v53, 0.0  ;;  %v3061_v58 = vadd.f32 %v3060_v44, %v2996_v52  ;;  %v10634_v33 = vld [vmem:[#allocation3 + $0xb0] sm:$0xff]  ;;  %v10647_v44 = vsel %vm322_vm5, %v3424_v29, %v3425_v27  ;;  %v3845_v52 = vld [vmem:[%s12542_s7 + $0x78] sm:$0xff] }
 0x47f   :  { %3214 = vst.msk [vmem:[#allocation3 + $0xc0] sm:$0xff] %vm159_vm1, %v3167_v17  ;;  %v3253_v55 = vld [vmem:[#allocation3 + $0xb8] sm:$0x3]  ;;  %v3329_v57 = vrot.slane %v10634_v33, 1  ;;  %v2936_v17 = vpop.f32.mrf.mxu1  ;;  %3902 = vmatpush.msra.mxu0 %v3845_v52  ;;  %6270 = vmatpush.msrb.mxu3 %v3845_v52  ;;  %v7123_v27 = vpack.i.bf16 %v10647_v44, %v10623_v16  ;;  %v3377_v52 = vrot.slane %v10634_v33, 2 }
 0x480   :  { %3215 = vst.msk [vmem:[#allocation3 + $0xc8] sm:$0x3] %vm161_vm2, %v3183_v46  ;;  %v10643_v43 = vadd.f32 %v3061_v58, %v12708_v37  ;;  %v3330_v53 = vrot.slane %v3253_v55, 1  ;;  %v2934_v46 = vadd.f32 %v10367_v6, %v2933_v56  ;;  %v3435_v56 = vrot.slane %v10489_v15, 1 }
 0x481   :  { %7104 = vrot.lane.b32.xlu2 %v7103_v10, %s7771_s22  ;;  %v3434_v10 = vrot.slane %v10484_v8, 1  ;;  %3903 = vmatpush.msra.mxu0 %v3844_v32  ;;  %v3378_v35 = vrot.slane %v3253_v55, 2  ;;  %v12710_v55 = vld [vmem:[#allocation14_spill] sm:$0xff] }
 0x482   :  { %12709 = vst [vmem:[#allocation9_spill] sm:$0xff] %v10643_v43  ;;  %v12602_v28 = vmax.f32 %v10643_v43, 0.0  ;;  %v10656_v37 = vsel %vm273_vm4, %v3329_v57, %v3330_v53  ;;  %v3402_v53 = vrot.slane %v10603_v22, 1  ;;  %6271 = vmatpush.msrb.mxu3 %v3844_v32  ;;  %v3066_v32 = vpop.f32.mrf.mxu2 }
 0x483   :  { %v2998_v14 = vpop.f32.mrf.mxu3  ;;  %v7133_v29 = vpack.i.bf16 %v10656_v37, %v3328_v41  ;;  %v3843_v41 = vld [vmem:[%s12542_s7 + $0x68] sm:$0xff] }
 0x484   :  { %v3136_v58 = vrot.slane %v12602_v28, 7  ;;  %v2999_v57 = vadd.f32 %v2998_v14, %v2934_v46  ;;  %3904 = vmatpush.msra.mxu0 %v3843_v41  ;;  %6272 = vmatpush.msrb.mxu3 %v3843_v41  ;;  %v10697_v9 = vsel %vm273_vm4, %v3402_v53, %v3403_v21  ;;  %v3840_v21 = vld [vmem:[%s12542_s7 + $0x50] sm:$0xff] }
 0x485   :  { %7134 = vrot.lane.b32.xlu1 %v7133_v29, %s7770_s26  ;;  %7124 = vrot.lane.b32.xlu0 %v7123_v27, %s7770_s26  ;;  %v7118_v29 = vpack.i.bf16 %v10484_v8, %v10603_v22  ;;  %v2937_v22 = vadd.f32 %v10367_v6, %v2936_v17 }
 0x486   :  { %v3168_v50 = vsel %vm126_vm3, 0.0, %v3136_v58  ;;  %v3184_v28 = vsel %vm126_vm3, %v3136_v58, 0.0  ;;  %v3064_v46 = vadd.f32 %v3063_v49, %v2999_v57  ;;  %v10678_v14 = vld [vmem:[#allocation3 + $0xc0] sm:$0xff]  ;;  %v3436_v49 = vsel %vm273_vm4, %v3434_v10, %v3435_v56  ;;  %3905 = vmatpush.msra.mxu0 %v3842_v34  ;;  %6273 = vmatpush.msrb.mxu3 %v3842_v34 }
 0x487   :  { %3216 = vst.msk [vmem:[#allocation3 + $0xd0] sm:$0xff] %vm159_vm1, %v3168_v50  ;;  %v10686_v27 = vld [vmem:[#allocation3 + $0xc8] sm:$0x3]  ;;  %v3380_v58 = vrot.slane %v10678_v14, 2  ;;  %v12711_v57 = vmax.f32 %v12710_v55, 0.0  ;;  %v3841_v50 = vld [vmem:[%s12542_s7 + $0x58] sm:$0xff]  ;;  %v3379_v10 = vsel %vm322_vm5, %v3377_v52, %v3378_v35  ;;  %v2939_v53 = vpop.f32.mrf.mxu1 }
 0x488   :  { %3217 = vst.msk [vmem:[#allocation3 + $0xd8] sm:$0x3] %vm161_vm2, %v3184_v28  ;;  %v3381_v41 = vrot.slane %v10686_v27, 2  ;;  %3906 = vmatpush.msra.mxu0 %v3841_v50  ;;  %6274 = vmatpush.msrb.mxu3 %v3841_v50  ;;  %v3374_v35 = vrot.slane %v10519_v2, 2  ;;  %v3375_v52 = vrot.slane %v10522_v7, 2  ;;  %v3838_v7 = vld [vmem:[%s12542_s7 + $0x40] sm:$0xff] }
 0x489   :  { %v10693_v42 = vadd.f32 %v3064_v46, %v12711_v57  ;;  %7119 = vrot.lane.b32.xlu2 %v7118_v29, %s7771_s22  ;;  %v7128_v29 = vpack.i.bf16 %v3436_v49, %v10697_v9 }
 0x48a   :  { %v10707_v56 = vsel %vm322_vm5, %v3380_v58, %v3381_v41  ;;  %3907 = vmatpush.msra.mxu0 %v3840_v21  ;;  %v3839_v58 = vld [vmem:[%s12542_s7 + $0x48] sm:$0xff]  ;;  %6275 = vmatpush.msrb.mxu3 %v3840_v21 }
 0x48b   :  { %12712 = vst [vmem:[#allocation14_spill] sm:$0xff] %v10693_v42  ;;  %v12606_v28 = vmax.f32 %v10693_v42, 0.0  ;;  %v3001_v46 = vpop.f32.mrf.mxu3  ;;  %v7148_v34 = vpack.i.bf16 %v10707_v56, %v3379_v10 }
 0x48c   :  { %12713 = vst [vmem:[#allocation25_spill] sm:$0xff] %v10707_v56  ;;  %v3002_v55 = vadd.f32 %v3001_v46, %v2937_v22  ;;  %3908 = vmatpush.msra.mxu0 %v3839_v58  ;;  %6276 = vmatpush.msrb.mxu3 %v3839_v58  ;;  %v7143_v22 = vpack.i.bf16 %v10678_v14, %v10634_v33  ;;  %v12714_v46 = vld [vmem:[#allocation15_spill] sm:$0xff]  ;;  %v3837_v58 = vld [vmem:[%s12542_s7 + $0x38] sm:$0xff] }
 0x48d   :  { %v3137_v17 = vrot.slane %v12606_v28, 7  ;;  %7149 = vrot.lane.b32.xlu1 %v7148_v34, %s7770_s26  ;;  %7129 = vrot.lane.b32.xlu0 %v7128_v29, %s7772_s0  ;;  %v12715_v34 = vmax.f32 %v12714_v46, 0.0  ;;  %v3332_v46 = vrot.slane %v10678_v14, 1 }
 0x48e   :  { %v3067_v41 = vadd.f32 %v3066_v32, %v3002_v55  ;;  %v10725_v50 = vld [vmem:[#allocation3 + $0xd0] sm:$0xff]  ;;  %v3376_v32 = vsel %vm322_vm5, %v3374_v35, %v3375_v52  ;;  %3909 = vmatpush.msra.mxu0 %v3838_v7  ;;  %6277 = vmatpush.msrb.mxu3 %v3838_v7  ;;  %v3861_v35 = vld [vmem:[%s12542_s7 + $0xf8] sm:$0xff]  ;;  %v2940_v52 = vadd.f32 %v10367_v6, %v2939_v53 }
 0x48f   :  { %v3169_v49 = vsel %vm126_vm3, 0.0, %v3137_v17  ;;  %v3185_v57 = vsel %vm126_vm3, %v3137_v17, 0.0  ;;  %v3257_v21 = vld [vmem:[#allocation3 + $0xd8] sm:$0x3]  ;;  %v3335_v17 = vrot.slane %v10725_v50, 1  ;;  %3967 = vmatpush.msrb.mxu1 %v3861_v35  ;;  %v7138_v28 = vpack.i.bf16 %v3379_v10, %v3376_v32  ;;  %v2942_v35 = vpop.f32.mrf.mxu1  ;;  %v3860_v10 = vld [vmem:[%s12542_s7 + $0xf0] sm:$0xff] }
 0x490   :  { %3218 = vst.msk [vmem:[#allocation3 + $0xe0] sm:$0xff] %vm159_vm1, %v3169_v49  ;;  %v10736_v29 = vadd.f32 %v3067_v41, %v12715_v34  ;;  %v3336_v55 = vrot.slane %v3257_v21, 1  ;;  %v3069_v49 = vpop.f32.mrf.mxu2  ;;  %v3333_v34 = vrot.slane %v10686_v27, 1  ;;  %3910 = vmatpush.msra.mxu0 %v3837_v58  ;;  %v3383_v42 = vrot.slane %v10725_v50, 2  ;;  %6278 = vmatpush.msrb.mxu3 %v3837_v58  ;;  %v3835_v27 = vld [vmem:[%s12542_s7 + $0x28] sm:$0xff]  ;;  %v3834_v32 = vld [vmem:[%s12542_s7 + $0x20] sm:$0xff] }
 0x491   :  { %3219 = vst.msk [vmem:[#allocation3 + $0xe8] sm:$0x3] %vm161_vm2, %v3185_v57  ;;  %7144 = vrot.lane.b32.xlu2 %v7143_v22, %s7772_s0  ;;  %v3836_v57 = vld [vmem:[%s12542_s7 + $0x30] sm:$0xff]  ;;  %v7153_v22 = vpack.i.bf16 %v10725_v50, %v10678_v14  ;;  %v3384_v24 = vrot.slane %v3257_v21, 2  ;;  %3968 = vmatpush.msrb.mxu1 %v3860_v10  ;;  %v3859_v10 = vld [vmem:[%s12542_s7 + $0xe8] sm:$0xff] }
 0x492   :  { %12716 = vst [vmem:[#allocation15_spill] sm:$0xff] %v10736_v29  ;;  %v12611_v41 = vmax.f32 %v10736_v29, 0.0  ;;  %v10760_v18 = vsel %vm273_vm4, %v3335_v17, %v3336_v55  ;;  %3911 = vmatpush.msra.mxu0 %v3836_v57  ;;  %v10776_v58 = vsel %vm273_vm4, %v3332_v46, %v3333_v34  ;;  %6279 = vmatpush.msrb.mxu3 %v3836_v57  ;;  %v3857_v57 = vld [vmem:[%s12542_s7 + $0xd8] sm:$0xff] }
 0x493   :  { %v3004_v7 = vpop.f32.mrf.mxu3  ;;  %v10793_v46 = vsel %vm322_vm5, %v3383_v42, %v3384_v24  ;;  %3969 = vmatpush.msrb.mxu1 %v3859_v10  ;;  %v3833_v42 = vld [vmem:[%s12542_s7 + $0x18] sm:$0xff]  ;;  %v2943_v24 = vadd.f32 %v10367_v6, %v2942_v35 }
 0x494   :  { %v3138_v43 = vrot.slane %v12611_v41, 7  ;;  %v3005_v53 = vadd.f32 %v3004_v7, %v2940_v52  ;;  %3912 = vmatpush.msra.mxu0 %v3835_v27  ;;  %12720 = vst [vmem:[#allocation26_spill] sm:$0xff] %v10793_v46  ;;  %6280 = vmatpush.msrb.mxu3 %v3835_v27  ;;  %v7163_v41 = vpack.i.bf16 %v10793_v46, %v10707_v56 }
 0x495   :  { %7154 = vrot.lane.b32.xlu1 %v7153_v22, %s7771_s22  ;;  %7139 = vrot.lane.b32.xlu0 %v7138_v28, %s7771_s22  ;;  %v10783_v28 = vpack.i.bf16 %v10760_v18, %v10776_v58 }
 0x496   :  { %v3170_v21 = vsel %vm126_vm3, 0.0, %v3138_v43  ;;  %v3186_v17 = vsel %vm126_vm3, %v3138_v43, 0.0  ;;  %v3070_v55 = vadd.f32 %v3069_v49, %v3005_v53  ;;  %v12717_v43 = vld [vmem:[#allocation18_spill] sm:$0xff]  ;;  %3913 = vmatpush.msra.mxu0 %v3834_v32  ;;  %6281 = vmatpush.msrb.mxu3 %v3834_v32 }
 0x497   :  { %v10778_v52 = vld [vmem:[#allocation3 + $0xe0] sm:$0xff]  ;;  %3220 = vst.msk [vmem:[#allocation3 + $0xf0] sm:$0xff] %vm159_vm1, %v3170_v21  ;;  %v12718_v49 = vmax.f32 %v12717_v43, 0.0  ;;  %v10800_v21 = vld [vmem:[#allocation3 + $0x130] sm:$0xff]  ;;  %v10817_v43 = vld [vmem:[#allocation3 + $0x138] sm:$0x3] }
 0x498   :  { %v10785_v7 = vld [vmem:[#allocation3 + $0xe8] sm:$0x3]  ;;  %3221 = vst.msk [vmem:[#allocation3 + $0xf8] sm:$0x3] %vm161_vm2, %v3186_v17  ;;  %v3386_v34 = vrot.slane %v10778_v52, 2  ;;  %3914 = vmatpush.msra.mxu0 %v3833_v42  ;;  %v3858_v17 = vld [vmem:[%s12542_s7 + $0xe0] sm:$0xff]  ;;  %v7168_v35 = vpack.i.bf16 %v10778_v52, %v10725_v50  ;;  %6282 = vmatpush.msrb.mxu3 %v3833_v42 }
 0x499   :  { %v10790_v22 = vadd.f32 %v3070_v55, %v12718_v49  ;;  %v3387_v53 = vrot.slane %v10785_v7, 2  ;;  %12721 = vst [vmem:[#allocation27_spill] sm:$0xff] %v10800_v21  ;;  %7159 = vrot.lane.b32.xlu2 %v10783_v28, %s7770_s26  ;;  %v3832_v55 = vld [vmem:[%s12542_s7 + $0x10] sm:$0xff]  ;;  %v3072_v49 = vpop.f32.mrf.mxu2  ;;  %3970 = vmatpush.msrb.mxu1 %v3858_v17  ;;  %v3338_v17 = vrot.slane %v10778_v52, 1  ;;  %v3438_v8 = vrot.slane %v10817_v43, 1 }
 0x49a   :  { %5250 = vst.msk [vmem:[#allocation3 + $0x130] sm:$0xff] %vm159_vm1, %v12667_v11  ;;  %3915 = vmatpush.msra.mxu0 %v3832_v55  ;;  %6283 = vmatpush.msrb.mxu3 %v3832_v55 }
 0x49b   :  { %12719 = vst [vmem:[#allocation18_spill] sm:$0xff] %v10790_v22  ;;  %v3007_v10 = vpop.f32.mrf.mxu3  ;;  %v12723_v29 = vmax.f32 %v10790_v22, 0.0  ;;  %v10831_v45 = vsel %vm322_vm5, %v3386_v34, %v3387_v53  ;;  %3971 = vmatpush.msrb.mxu1 %v3857_v57 }
 0x49c   :  { %12722 = vst [vmem:[#allocation28_spill] sm:$0xff] %v10817_v43  ;;  %v3008_v27 = vadd.f32 %v3007_v10, %v2943_v24  ;;  %3916 = vmatpush.msra.mxu0 %v3831_v30  ;;  %v2945_v10 = vpop.f32.mrf.mxu1  ;;  %6284 = vmatpush.msrb.mxu3 %v3831_v30  ;;  %v12728_v30 = vld [vmem:[#allocation12_spill] sm:$0xff] }
 0x49d   :  { %5251 = vst.msk [vmem:[#allocation3 + $0x138] sm:$0x3] %vm161_vm2, %v12667_v11  ;;  %v3139_v5 = vrot.slane %v12723_v29, 7  ;;  %7164 = vrot.lane.b32.xlu1 %v7163_v41, %s7771_s22  ;;  %7169 = vrot.lane.b32.xlu0 %v7168_v35, %s7772_s0  ;;  %v3856_v11 = vld [vmem:[%s12542_s7 + $0xd0] sm:$0xff]  ;;  %v3830_v29 = vld [vmem:[%s12542_s7] sm:$0xff]  ;;  %v3339_v41 = vrot.slane %v10785_v7, 1  ;;  %v7173_v35 = vpack.i.bf16 %v10831_v45, %v10793_v46  ;;  %v2946_v57 = vadd.f32 %v10367_v6, %v2945_v10 }
 0x49e   :  { %12724 = vst [vmem:[#allocation29_spill] sm:$0xff] %v10831_v45  ;;  %v3073_v24 = vadd.f32 %v3072_v49, %v3008_v27  ;;  %v10847_v32 = vld [vmem:[#allocation3 + $0xf0] sm:$0xff]  ;;  %3972 = vmatpush.msrb.mxu1 %v3856_v11  ;;  %3917 = vmatpush.msra.mxu0 %v3830_v29  ;;  %v3855_v7 = vld [vmem:[%s12542_s7 + $0xc8] sm:$0xff]  ;;  %v3854_v11 = vld [vmem:[%s12542_s7 + $0xc0] sm:$0xff] }
 0x49f   :  { %v3171_v34 = vsel %vm126_vm3, 0.0, %v3139_v5  ;;  %v3187_v53 = vsel %vm126_vm3, %v3139_v5, 0.0  ;;  %v3261_v22 = vld [vmem:[#allocation3 + $0xf8] sm:$0x3]  ;;  %v3341_v62 = vrot.slane %v10847_v32, 1  ;;  %v12725_v5 = vld [vmem:[#allocation19_spill] sm:$0xff]  ;;  %6285 = vmatpush.msrb.mxu3 %v3830_v29 }
 0x4a0   :  { %3222 = vst.msk [vmem:[#allocation3 + $0x100] sm:$0xff] %vm159_vm1, %v3171_v34  ;;  %v12726_v49 = vmax.f32 %v12725_v5, 0.0  ;;  %v3342_v61 = vrot.slane %v3261_v22, 1  ;;  %v10866_v34 = vsel %vm273_vm4, %v3338_v17, %v3339_v41  ;;  %3973 = vmatpush.msrb.mxu1 %v3855_v7  ;;  %v3853_v6 = vld [vmem:[%s12542_s7 + $0xb8] sm:$0xff] }
 0x4a1   :  { %3223 = vst.msk [vmem:[#allocation3 + $0x108] sm:$0x3] %vm161_vm2, %v3187_v53  ;;  %7174 = vrot.lane.b32.xlu2 %v7173_v35, %s7770_s26  ;;  %v3075_v55 = vpop.f32.mrf.mxu2 }
 0x4a2   :  { %v10857_v27 = vadd.f32 %v3073_v24, %v12726_v49  ;;  %v10869_v53 = vsel %vm273_vm4, %v3341_v62, %v3342_v61  ;;  %3974 = vmatpush.msrb.mxu1 %v3854_v11  ;;  %v3852_v62 = vld [vmem:[%s12542_s7 + $0xb0] sm:$0xff]  ;;  %v12729_v49 = vmax.f32 %v12728_v30, 0.0  ;;  %v3389_v11 = vrot.slane %v10847_v32, 2 }
 0x4a3   :  { %v3010_v24 = vpop.f32.mrf.mxu3  ;;  %v7198_v35 = vpack.i.bf16 %v10869_v53, %v10866_v34  ;;  %v3848_v30 = vld [vmem:[%s12542_s7 + $0x90] sm:$0xff] }
 0x4a4   :  { %12727 = vst [vmem:[#allocation19_spill] sm:$0xff] %v10857_v27  ;;  %v12620_v42 = vmax.f32 %v10857_v27, 0.0  ;;  %v3011_v61 = vadd.f32 %v3010_v24, %v2946_v57  ;;  %3975 = vmatpush.msrb.mxu1 %v3853_v6  ;;  %v3390_v24 = vrot.slane %v3261_v22, 2  ;;  %v3850_v6 = vld [vmem:[%s12542_s7 + $0xa0] sm:$0xff] }
 0x4a5   :  { %7199 = vrot.lane.b32.xlu1 %v7198_v35, %s7772_s0  ;;  %7184 = vrot.lane.b32.xlu0 %v7198_v35, %s7770_s26  ;;  %v3851_v35 = vld [vmem:[%s12542_s7 + $0xa8] sm:$0xff] }
 0x4a6   :  { %v3140_v17 = vrot.slane %v12620_v42, 7  ;;  %v3076_v5 = vadd.f32 %v3075_v55, %v3011_v61  ;;  %3976 = vmatpush.msrb.mxu1 %v3852_v62  ;;  %v7188_v61 = vpack.i.bf16 %v10847_v32, %v10778_v52 }
 0x4a7   :  { %v10894_v57 = vld [vmem:[#allocation3 + $0x100] sm:$0xff] }
 0x4a8   :  { %v3172_v41 = vsel %vm126_vm3, 0.0, %v3140_v17  ;;  %v3188_v10 = vsel %vm126_vm3, %v3140_v17, 0.0  ;;  %v10892_v7 = vadd.f32 %v3076_v5, %v12729_v49  ;;  %v3263_v29 = vld [vmem:[#allocation3 + $0x108] sm:$0x3]  ;;  %3977 = vmatpush.msrb.mxu1 %v3851_v35  ;;  %v10906_v17 = vpop.permute.xlu2 %7019  ;;  %v7203_v22 = vpack.i.bf16 %v10894_v57, %v10847_v32 }
 0x4a9   :  { %3224 = vst.msk [vmem:[#allocation3 + $0x110] sm:$0xff] %vm159_vm1, %v3172_v41  ;;  %7179 = vrot.lane.b32.xlu2 %v10783_v28, %s7772_s0  ;;  %v3849_v28 = vld [vmem:[%s12542_s7 + $0x98] sm:$0xff]  ;;  %v10918_v41 = vsel %vm322_vm5, %v3389_v11, %v3390_v24  ;;  %v3393_v5 = vrot.slane %v3263_v29, 2 }
 0x4aa   :  { %3225 = vst.msk [vmem:[#allocation3 + $0x118] sm:$0x3] %vm161_vm2, %v3188_v10  ;;  %v12619_v55 = vmax.f32 %v10892_v7, 0.0  ;;  %v3392_v10 = vrot.slane %v10894_v57, 2  ;;  %3978 = vmatpush.msrb.mxu1 %v3850_v6  ;;  %v7193_v11 = vpack.i.bf16 %v10918_v41, %v10831_v45  ;;  %v3437_v45 = vrot.slane %v10800_v21, 1 }
 0x4ab   :  { %12730 = vst [vmem:[#allocation12_spill] sm:$0xff] %v10892_v7 }
 0x4ac   :  { %v3141_v62 = vrot.slane %v12619_v55, 7  ;;  %12731 = vst [vmem:[#allocation30_spill] sm:$0xff] %v10918_v41  ;;  %3979 = vmatpush.msrb.mxu1 %v3849_v28  ;;  %v3846_v28 = vld [vmem:[%s12542_s7 + $0x80] sm:$0xff] }
 0x4ad   :  { %7204 = vrot.lane.b32.xlu1 %v7203_v22, %s7772_s0  ;;  %7189 = vrot.lane.b32.xlu0 %v7188_v61, %s7771_s22  ;;  %v10936_v22 = vsel %vm322_vm5, %v3392_v10, %v3393_v5 }
 0x4ae   :  { %v3173_v49 = vsel %vm126_vm3, 0.0, %v3141_v62  ;;  %v3189_v35 = vsel %vm126_vm3, %v3141_v62, 0.0  ;;  %12732 = vst [vmem:[#allocation31_spill] sm:$0xff] %v10936_v22  ;;  %3980 = vmatpush.msrb.mxu1 %v3848_v30  ;;  %v3847_v62 = vld [vmem:[%s12542_s7 + $0x88] sm:$0xff]  ;;  %v7208_v10 = vpack.i.bf16 %v10936_v22, %v10918_v41 }
 0x4af   :  { %3226 = vst.msk [vmem:[#allocation3 + $0x120] sm:$0xff] %vm159_vm1, %v3173_v49 }
 0x4b0   :  { %v10928_v55 = vld [vmem:[#allocation3 + $0x110] sm:$0xff]  ;;  %3227 = vst.msk [vmem:[#allocation3 + $0x128] sm:$0x3] %vm161_vm2, %v3189_v35  ;;  %3981 = vmatpush.msrb.mxu1 %v3847_v62 }
 0x4b1   :  { %v3265_v24 = vld [vmem:[#allocation3 + $0x118] sm:$0x3]  ;;  %v3395_v6 = vrot.slane %v10928_v55, 2  ;;  %7194 = vrot.lane.b32.xlu2 %v7193_v11, %s7771_s22  ;;  %v3347_v30 = vrot.slane %v10928_v55, 1  ;;  %v3344_v11 = vrot.slane %v10894_v57, 1  ;;  %v7213_v62 = vpack.i.bf16 %v10928_v55, %v10894_v57 }
 0x4b2   :  { %v3396_v61 = vrot.slane %v3265_v24, 2  ;;  %v3348_v42 = vrot.slane %v3265_v24, 1  ;;  %3982 = vmatpush.msrb.mxu1 %v3846_v28 }
 0x4b3   :  { %v10948_v35 = vpop.permute.xlu2 %7054 }
 0x4b4   :  { %v10946_v49 = vsel %vm322_vm5, %v3395_v6, %v3396_v61  ;;  %v3345_v6 = vrot.slane %v3263_v29, 1  ;;  %v10961_v27 = vsel %vm273_vm4, %v3347_v30, %v3348_v42  ;;  %v7021_v29 = vunpack.i.l.bf16 %v10906_v17 }
 0x4b5   :  { %v7223_v5 = vpack.i.bf16 %v10946_v49, %v10936_v22  ;;  %7209 = vrot.lane.b32.xlu1 %v7208_v10, %s7770_s26 }
 0x4b6   :  { %v3266_v20 = vld [vmem:[#allocation3 + $0x120] sm:$0xff]  ;;  %v10967_v10 = vsel %vm273_vm4, %v3344_v11, %v3345_v6 }
 0x4b7   :  { %7224 = vrot.lane.b32.xlu0 %v7223_v5, %s7771_s22  ;;  %v7015_v61 = vpop.permute.xlu0 %7014  ;;  %v3267_v24 = vld [vmem:[#allocation3 + $0x128] sm:$0x3]  ;;  %v7218_v31 = vpack.i.bf16 %v10961_v27, %v10967_v10  ;;  %v7233_v42 = vpack.i.bf16 %v10800_v21, %v3266_v20  ;;  %v3427_v22 = vrot.slane %v3266_v20, 2  ;;  %v7228_v41 = vpack.i.bf16 %v3266_v20, %v10928_v55 }
 0x4b8   :  { %v7016_v7 = vunpack.i.l.bf16 %v7015_v61  ;;  %v3405_v56 = vrot.slane %v3266_v20, 1  ;;  %v3406_v15 = vrot.slane %v3267_v24, 1  ;;  %v3439_v20 = vsel %vm273_vm4, %v3437_v45, %v3438_v8 }
 0x4b9   :  { %7214 = vrot.lane.b32.xlu2 %v7213_v62, %s7771_s22  ;;  %v3428_v62 = vrot.slane %v3267_v24, 2 }
 0x4ba   :  { %v3734_v28 = vsel %vm159_vm1, %v10358_v40, %v7016_v7  ;;  %v7017_v7 = vunpack.i.h.bf16 %v7015_v61 }
 0x4bb   :  { %v7025_v5 = vpop.permute.xlu1 %7024  ;;  %v10970_v38 = vpop.permute.xlu2 %7064  ;;  %v3750_v40 = vsel %vm723_vm6, %v3734_v28, %v7021_v29  ;;  %v10982_v46 = vsel %vm322_vm5, %v3427_v22, %v3428_v62  ;;  %v7022_v28 = vunpack.i.h.bf16 %v10906_v17  ;;  %v10994_v22 = vsel %vm273_vm4, %v3405_v56, %v3406_v15 }
 0x4bc   :  { %v7026_v30 = vunpack.i.l.bf16 %v7025_v5  ;;  %12733 = vst [vmem:[#allocation32_spill] sm:$0xff] %v10982_v46  ;;  %v3735_v61 = vsel %vm159_vm1, %v10394_v36, %v7017_v7  ;;  %v7248_v17 = vpack.i.bf16 %v3439_v20, %v10994_v22 }
 0x4bd   :  { %7219 = vrot.lane.b32.xlu1 %v7218_v31, %s7770_s26 }
 0x4be   :  { %v3766_v11 = vsel %vm740_vm7, %v3750_v40, %v7026_v30  ;;  %v7238_v30 = vpack.i.bf16 %v10982_v46, %v10946_v49 }
 0x4bf   :  { %7234 = vrot.lane.b32.xlu0 %v7233_v42, %s7771_s22  ;;  %v7030_v6 = vpop.permute.xlu0 %7029  ;;  %3918 = vmatmul.f32.vlgmr.msra.gmra.mxu0 %v3766_v11  ;;  %v7027_v42 = vunpack.i.h.bf16 %v7025_v5 }
 0x4c0   :  { %v7031_v40 = vunpack.i.l.bf16 %v7030_v6 }
 0x4c1   :  { %7229 = vrot.lane.b32.xlu2 %v7228_v41, %s7772_s0  ;;  %v3751_v41 = vsel %vm723_vm6, %v3735_v61, %v7022_v28  ;;  %v7056_v61 = vunpack.i.l.bf16 %v10948_v35 }
 0x4c2   :  { %v3767_v24 = vsel %vm740_vm7, %v3751_v41, %v7027_v42  ;;  %v3782_v7 = vsel %vm159_vm1, %v10410_v39, %v7031_v40  ;;  %v7032_v39 = vunpack.i.h.bf16 %v7030_v6 }
 0x4c3   :  { %v10989_v29 = vpop.permute.xlu2 %7069 }
 0x4c5   :  { %7239 = vrot.lane.b32.xlu1 %v7238_v30, %s7770_s26 }
 0x4c7   :  { %v7040_v5 = vpop.permute.xlu1 %7039  ;;  %v7035_v36 = vpop.permute.xlu0 %7034  ;;  %3921 = vmatmul.f32.gmra.mxu0 %v3767_v24 }
 0x4c8   :  { %v7041_v15 = vunpack.i.l.bf16 %v7040_v5  ;;  %v7036_v56 = vunpack.i.l.bf16 %v7035_v36  ;;  %v7042_v24 = vunpack.i.h.bf16 %v7040_v5  ;;  %v7037_v43 = vunpack.i.h.bf16 %v7035_v36 }
 0x4c9   :  { %7249 = vrot.lane.b32.xlu2 %v7248_v17, %s7772_s0 }
 0x4ca   :  { %v3798_v28 = vsel %vm723_vm6, %v3782_v7, %v7036_v56  ;;  %v3736_v30 = vsel %vm159_vm1, %v10419_v3, %v7041_v15  ;;  %v3737_v3 = vsel %vm159_vm1, %v10443_v60, %v7042_v24  ;;  %v3783_v7 = vsel %vm159_vm1, %v10455_v59, %v7032_v39 }
 0x4cb   :  { %v11002_v62 = vpop.permute.xlu2 %7089  ;;  %v7071_v59 = vunpack.i.l.bf16 %v10989_v29 }
 0x4cd   :  { %7244 = vrot.lane.b32.xlu1 %v7218_v31, %s7772_s0 }
 0x4cf   :  { %v7050_v8 = vpop.permute.xlu1 %7049  ;;  %v7045_v45 = vpop.permute.xlu0 %7044 }
 0x4d0   :  { %v7051_v11 = vunpack.i.l.bf16 %v7050_v8  ;;  %v7046_v42 = vunpack.i.l.bf16 %v7045_v45  ;;  %v7047_v40 = vunpack.i.h.bf16 %v7045_v45  ;;  %v7052_v21 = vunpack.i.h.bf16 %v7050_v8 }
 0x4d1   :  { %v7066_v45 = vunpack.i.l.bf16 %v10970_v38 }
 0x4d2   :  { %v3814_v20 = vsel %vm740_vm7, %v3798_v28, %v7051_v11  ;;  %v3752_v41 = vsel %vm723_vm6, %v3736_v30, %v7046_v42  ;;  %v3753_v5 = vsel %vm723_vm6, %v3737_v3, %v7047_v40  ;;  %v7057_v11 = vunpack.i.h.bf16 %v10948_v35 }
 0x4d3   :  { %3983 = vmatmul.f32.vlgmr.msrb.gmra.mxu1 %v3814_v20  ;;  %v11013_v31 = vpop.permute.xlu2 %7094  ;;  %v3768_v17 = vsel %vm740_vm7, %v3752_v41, %v7056_v61  ;;  %v3799_v42 = vsel %vm723_vm6, %v3783_v7, %v7037_v43  ;;  %v3738_v41 = vsel %vm159_vm1, %v10471_v25, %v7071_v59  ;;  %v7067_v3 = vunpack.i.h.bf16 %v10970_v38 }
 0x4d4   :  { %3924 = vmatmul.f32.gmra.mxu0 %v3768_v17  ;;  %v3815_v6 = vsel %vm740_vm7, %v3799_v42, %v7052_v21  ;;  %v3769_v8 = vsel %vm740_vm7, %v3753_v5, %v7057_v11  ;;  %v7091_v38 = vunpack.i.l.bf16 %v11002_v62 }
 0x4d7   :  { %v7060_v46 = vpop.permute.xlu1 %7059  ;;  %v7080_v56 = vpop.permute.xlu0 %7079 }
 0x4d8   :  { %v7061_v15 = vunpack.i.l.bf16 %v7060_v46  ;;  %v7062_v43 = vunpack.i.h.bf16 %v7060_v46  ;;  %v7081_v30 = vunpack.i.l.bf16 %v7080_v56 }
 0x4da   :  { %v3784_v60 = vsel %vm159_vm1, %v10458_v47, %v7061_v15  ;;  %v7072_v47 = vunpack.i.h.bf16 %v10989_v29  ;;  %v3785_v46 = vsel %vm159_vm1, %v10529_v26, %v7062_v43  ;;  %v7082_v29 = vunpack.i.h.bf16 %v7080_v56 }
 0x4db   :  { %3986 = vmatmul.f32.gmra.mxu1 %v3815_v6  ;;  %v11024_v36 = vpop.permute.xlu2 %7104  ;;  %v3800_v35 = vsel %vm723_vm6, %v3784_v60, %v7066_v45  ;;  %v3801_v5 = vsel %vm723_vm6, %v3785_v46, %v7067_v3  ;;  %v7096_v45 = vunpack.i.l.bf16 %v11013_v31  ;;  %v3786_v43 = vsel %vm159_vm1, %v10532_v63, %v7091_v38 }
 0x4dc   :  { %3927 = vmatmul.f32.gmra.mxu0 %v3769_v8  ;;  %v3816_v24 = vsel %vm740_vm7, %v3800_v35, %v7081_v30  ;;  %v3739_v11 = vsel %vm159_vm1, %v10505_v19, %v7072_v47  ;;  %v3817_v6 = vsel %vm740_vm7, %v3801_v5, %v7082_v29  ;;  %v7106_v56 = vunpack.i.l.bf16 %v11024_v36 }
 0x4dd   :  { %v3802_v30 = vsel %vm723_vm6, %v3786_v43, %v7096_v45  ;;  %v7107_v3 = vunpack.i.h.bf16 %v11024_v36 }
 0x4df   :  { %v7075_v61 = vpop.permute.xlu1 %7074  ;;  %v7085_v28 = vpop.permute.xlu0 %7084 }
 0x4e0   :  { %v7076_v21 = vunpack.i.l.bf16 %v7075_v61  ;;  %v7086_v20 = vunpack.i.l.bf16 %v7085_v28  ;;  %v7077_v40 = vunpack.i.h.bf16 %v7075_v61  ;;  %v7087_v7 = vunpack.i.h.bf16 %v7085_v28 }
 0x4e2   :  { %v3754_v17 = vsel %vm723_vm6, %v3738_v41, %v7076_v21  ;;  %v3755_v42 = vsel %vm723_vm6, %v3739_v11, %v7077_v40 }
 0x4e3   :  { %3989 = vmatmul.f32.gmra.mxu1 %v3816_v24  ;;  %v3770_v39 = vsel %vm740_vm7, %v3754_v17, %v7086_v20  ;;  %v11041_v15 = vpop.permute.xlu2 %7119  ;;  %v3771_v26 = vsel %vm740_vm7, %v3755_v42, %v7087_v7  ;;  %v7092_v17 = vunpack.i.h.bf16 %v11002_v62 }
 0x4e4   :  { %3930 = vmatmul.f32.gmra.mxu0 %v3770_v39  ;;  %v7121_v36 = vunpack.i.l.bf16 %v11041_v15 }
 0x4e5   :  { %v3787_v7 = vsel %vm159_vm1, %v10591_v48, %v7092_v17 }
 0x4e7   :  { %v7100_v25 = vpop.permute.xlu0 %7099 }
 0x4e8   :  { %v7101_v8 = vunpack.i.l.bf16 %v7100_v25  ;;  %v7102_v41 = vunpack.i.h.bf16 %v7100_v25 }
 0x4ea   :  { %v3740_v19 = vsel %vm159_vm1, %v10547_v51, %v7101_v8  ;;  %v7097_v51 = vunpack.i.h.bf16 %v11013_v31  ;;  %v3741_v63 = vsel %vm159_vm1, %v10576_v1, %v7102_v41 }
 0x4eb   :  { %3992 = vmatmul.f32.gmra.mxu1 %v3817_v6  ;;  %v7115_v60 = vpop.permute.xlu1 %7114  ;;  %v11051_v61 = vpop.permute.xlu2 %7144  ;;  %v3756_v20 = vsel %vm723_vm6, %v3740_v19, %v7106_v56  ;;  %v3757_v31 = vsel %vm723_vm6, %v3741_v63, %v7107_v3 }
 0x4ec   :  { %3933 = vmatmul.f32.gmra.mxu0 %v3771_v26  ;;  %v7116_v59 = vunpack.i.l.bf16 %v7115_v60  ;;  %v7117_v39 = vunpack.i.h.bf16 %v7115_v60  ;;  %v3803_v5 = vsel %vm723_vm6, %v3787_v7, %v7097_v51  ;;  %v7146_v43 = vunpack.i.l.bf16 %v11051_v61 }
 0x4ee   :  { %v3772_v24 = vsel %vm740_vm7, %v3756_v20, %v7116_v59  ;;  %v3773_v29 = vsel %vm740_vm7, %v3757_v31, %v7117_v39 }
 0x4ef   :  { %v7110_v28 = vpop.permute.xlu0 %7109 }
 0x4f0   :  { %v7111_v35 = vunpack.i.l.bf16 %v7110_v28  ;;  %v7112_v47 = vunpack.i.h.bf16 %v7110_v28 }
 0x4f2   :  { %v3818_v21 = vsel %vm740_vm7, %v3802_v30, %v7111_v35  ;;  %v3819_v11 = vsel %vm740_vm7, %v3803_v5, %v7112_v47  ;;  %v7147_v5 = vunpack.i.h.bf16 %v11051_v61 }
 0x4f3   :  { %3995 = vmatmul.f32.gmra.mxu1 %v3818_v21  ;;  %v11069_v25 = vpop.permute.xlu2 %7159 }
 0x4f4   :  { %3936 = vmatmul.f32.gmra.mxu0 %v3772_v24  ;;  %v7161_v31 = vunpack.i.l.bf16 %v11069_v25 }
 0x4f7   :  { %v7135_v40 = vpop.permute.xlu1 %7134  ;;  %v7125_v46 = vpop.permute.xlu0 %7124 }
 0x4f8   :  { %v7126_v62 = vunpack.i.l.bf16 %v7125_v46  ;;  %v7127_v26 = vunpack.i.h.bf16 %v7125_v46  ;;  %v7136_v45 = vunpack.i.l.bf16 %v7135_v40  ;;  %v7137_v17 = vunpack.i.h.bf16 %v7135_v40 }
 0x4fa   :  { %v3788_v1 = vsel %vm159_vm1, %v10594_v12, %v7126_v62  ;;  %v3789_v28 = vsel %vm159_vm1, %v10697_v9, %v7127_v26  ;;  %v7122_v12 = vunpack.i.h.bf16 %v11041_v15  ;;  %v3742_v21 = vsel %vm159_vm1, %v10519_v2, %v7136_v45 }
 0x4fb   :  { %3998 = vmatmul.f32.gmra.mxu1 %v3819_v11  ;;  %v3804_v8 = vsel %vm723_vm6, %v3788_v1, %v7121_v36  ;;  %v11080_v60 = vpop.permute.xlu2 %7174  ;;  %v3743_v3 = vsel %vm159_vm1, %v10634_v33, %v7137_v17  ;;  %v3865_v33 = vld [vmem:[%s12542_s7 + $0x118] sm:$0xff]  ;;  %v3864_v36 = vld [vmem:[%s12542_s7 + $0x110] sm:$0xff]  ;;  %v3744_v26 = vsel %vm159_vm1, %v10678_v14, %v7161_v31 }
 0x4fc   :  { %3939 = vmatmul.f32.gmra.mxu0 %v3773_v29  ;;  %v3805_v30 = vsel %vm723_vm6, %v3789_v28, %v7122_v12  ;;  %4044 = vmatpush.msra.mxu3 %v3865_v33  ;;  %v7162_v12 = vunpack.i.h.bf16 %v11069_v25 }
 0x4fe   :  { %4045 = vmatpush.msra.mxu3 %v3864_v36 }
 0x4ff   :  { %v7150_v42 = vpop.permute.xlu1 %7149  ;;  %v7130_v48 = vpop.permute.xlu0 %7129 }
 0x500   :  { %v7131_v6 = vunpack.i.l.bf16 %v7130_v48  ;;  %v7132_v59 = vunpack.i.h.bf16 %v7130_v48  ;;  %v7151_v20 = vunpack.i.l.bf16 %v7150_v42  ;;  %v7152_v62 = vunpack.i.h.bf16 %v7150_v42 }
 0x502   :  { %v3820_v38 = vsel %vm740_vm7, %v3804_v8, %v7131_v6  ;;  %v3821_v41 = vsel %vm740_vm7, %v3805_v30, %v7132_v59  ;;  %v3790_v39 = vsel %vm159_vm1, %v10656_v37, %v7151_v20  ;;  %v3791_v61 = vsel %vm159_vm1, %v10776_v58, %v7152_v62  ;;  %v3863_v59 = vld [vmem:[%s12542_s7 + $0x108] sm:$0xff]  ;;  %v3862_v58 = vld [vmem:[%s12542_s7 + $0x100] sm:$0xff] }
 0x503   :  { %4001 = vmatmul.f32.gmra.mxu1 %v3820_v38  ;;  %v7180_v47 = vpop.permute.xlu2 %7179  ;;  %4046 = vmatpush.msra.mxu3 %v3863_v59  ;;  %v3745_v20 = vsel %vm159_vm1, %v10725_v50, %v7162_v12 }
 0x504   :  { %v7181_v7 = vunpack.i.l.bf16 %v7180_v47  ;;  %v7182_v38 = vunpack.i.h.bf16 %v7180_v47 }
 0x505   :  { %4047 = vmatpush.msra.mxu3 %v3862_v58 }
 0x507   :  { %v7155_v19 = vpop.permute.xlu1 %7154  ;;  %v7140_v56 = vpop.permute.xlu0 %7139 }
 0x508   :  { %v7141_v35 = vunpack.i.l.bf16 %v7140_v56  ;;  %v7156_v51 = vunpack.i.l.bf16 %v7155_v19  ;;  %v7142_v15 = vunpack.i.h.bf16 %v7140_v56  ;;  %v7157_v29 = vunpack.i.h.bf16 %v7155_v19 }
 0x50a   :  { %v3758_v24 = vsel %vm723_vm6, %v3742_v21, %v7141_v35  ;;  %v3806_v2 = vsel %vm723_vm6, %v3790_v39, %v7156_v51  ;;  %v3759_v40 = vsel %vm723_vm6, %v3743_v3, %v7142_v15  ;;  %v3807_v8 = vsel %vm723_vm6, %v3791_v61, %v7157_v29 }
 0x50b   :  { %4004 = vmatmul.f32.gmra.mxu1 %v3821_v41  ;;  %v3774_v9 = vsel %vm740_vm7, %v3758_v24, %v7146_v43  ;;  %v3822_v11 = vsel %vm740_vm7, %v3806_v2, %v7181_v7  ;;  %v3775_v37 = vsel %vm740_vm7, %v3759_v40, %v7147_v5  ;;  %v3823_v28 = vsel %vm740_vm7, %v3807_v8, %v7182_v38  ;;  %v7195_v19 = vpop.permute.xlu2 %7194 }
 0x50c   :  { %3942 = vmatmul.f32.gmra.mxu0 %v3774_v9  ;;  %v7176_v35 = vunpack.i.l.bf16 %v11080_v60  ;;  %v7177_v9 = vunpack.i.h.bf16 %v11080_v60  ;;  %v7196_v7 = vunpack.i.l.bf16 %v7195_v19  ;;  %v7197_v33 = vunpack.i.h.bf16 %v7195_v19 }
 0x50e   :  { %v3792_v25 = vsel %vm159_vm1, %v10760_v18, %v7176_v35  ;;  %v3793_v18 = vsel %vm159_vm1, %v10866_v34, %v7177_v9 }
 0x50f   :  { %v7165_v46 = vpop.permute.xlu1 %7164  ;;  %v7170_v63 = vpop.permute.xlu0 %7169 }
 0x510   :  { %v7166_v1 = vunpack.i.l.bf16 %v7165_v46  ;;  %v7171_v42 = vunpack.i.l.bf16 %v7170_v63  ;;  %v7167_v56 = vunpack.i.h.bf16 %v7165_v46  ;;  %v7172_v43 = vunpack.i.h.bf16 %v7170_v63 }
 0x512   :  { %v3760_v45 = vsel %vm723_vm6, %v3744_v26, %v7166_v1  ;;  %v3761_v24 = vsel %vm723_vm6, %v3745_v20, %v7167_v56 }
 0x513   :  { %4007 = vmatmul.f32.gmra.mxu1 %v3822_v11  ;;  %v3776_v14 = vsel %vm740_vm7, %v3760_v45, %v7171_v42  ;;  %v3777_v47 = vsel %vm740_vm7, %v3761_v24, %v7172_v43  ;;  %v7215_v50 = vpop.permute.xlu2 %7214 }
 0x514   :  { %3945 = vmatmul.f32.gmra.mxu0 %v3775_v37  ;;  %v7216_v56 = vunpack.i.l.bf16 %v7215_v50 }
 0x517   :  { %v7200_v48 = vpop.permute.xlu1 %7199  ;;  %v7185_v6 = vpop.permute.xlu0 %7184 }
 0x518   :  { %v7201_v17 = vunpack.i.l.bf16 %v7200_v48  ;;  %v7186_v15 = vunpack.i.l.bf16 %v7185_v6  ;;  %v7202_v40 = vunpack.i.h.bf16 %v7200_v48  ;;  %v7187_v62 = vunpack.i.h.bf16 %v7185_v6 }
 0x51a   :  { %v3746_v3 = vsel %vm159_vm1, %v10778_v52, %v7186_v15  ;;  %v3747_v34 = vsel %vm159_vm1, %v10847_v32, %v7187_v62 }
 0x51b   :  { %4010 = vmatmul.f32.gmra.mxu1 %v3823_v28  ;;  %v3762_v5 = vsel %vm723_vm6, %v3746_v3, %v7196_v7  ;;  %v7230_v37 = vpop.permute.xlu2 %7229  ;;  %v3763_v8 = vsel %vm723_vm6, %v3747_v34, %v7197_v33  ;;  %v12735_v3 = vld [vmem:[#allocation24_spill] sm:$0xff]  ;;  %v12736_v7 = vld [vmem:[#allocation25_spill] sm:$0xff] }
 0x51c   :  { %3948 = vmatmul.f32.gmra.mxu0 %v3776_v14  ;;  %v7232_v48 = vunpack.i.h.bf16 %v7230_v37  ;;  %v7231_v12 = vunpack.i.l.bf16 %v7230_v37 }
 0x51f   :  { %v7205_v30 = vpop.permute.xlu1 %7204  ;;  %v7190_v21 = vpop.permute.xlu0 %7189 }
 0x520   :  { %v7191_v41 = vunpack.i.l.bf16 %v7190_v21  ;;  %v7192_v46 = vunpack.i.h.bf16 %v7190_v21  ;;  %v7206_v63 = vunpack.i.l.bf16 %v7205_v30  ;;  %v7207_v1 = vunpack.i.h.bf16 %v7205_v30 }
 0x522   :  { %v3808_v51 = vsel %vm723_vm6, %v3792_v25, %v7191_v41  ;;  %v3809_v60 = vsel %vm723_vm6, %v3793_v18, %v7192_v46  ;;  %v3778_v11 = vsel %vm740_vm7, %v3762_v5, %v7206_v63  ;;  %v3779_v26 = vsel %vm740_vm7, %v3763_v8, %v7207_v1  ;;  %v12743_v1 = vld [vmem:[#allocation28_spill] sm:$0xff]  ;;  %v4865_v8 = vld [vmem:[%s12544_s9 + $0x100] sm:$0xff] }
 0x523   :  { %v3824_v39 = vsel %vm740_vm7, %v3808_v51, %v7201_v17  ;;  %v3825_v31 = vsel %vm740_vm7, %v3809_v60, %v7202_v40  ;;  %v7250_v9 = vpop.permute.xlu2 %7249  ;;  %v3441_v18 = vrot.slane %v12735_v3, 2  ;;  %v12737_v60 = vld [vmem:[#allocation26_spill] sm:$0xff] }
 0x524   :  { %3951 = vmatmul.f32.gmra.mxu0 %v3777_v47  ;;  %4013 = vmatmul.f32.gmra.mxu1 %v3824_v39  ;;  %v7251_v47 = vunpack.i.l.bf16 %v7250_v9  ;;  %v7252_v63 = vunpack.i.h.bf16 %v7250_v9 }
 0x527   :  { %v7210_v2 = vpop.permute.xlu1 %7209 }
 0x528   :  { %v7211_v19 = vunpack.i.l.bf16 %v7210_v2  ;;  %v7212_v30 = vunpack.i.h.bf16 %v7210_v2 }
 0x529   :  { %v7225_v29 = vpop.permute.xlu0 %7224 }
 0x52a   :  { %v7227_v61 = vunpack.i.h.bf16 %v7225_v29  ;;  %v7226_v59 = vunpack.i.l.bf16 %v7225_v29  ;;  %v3794_v14 = vsel %vm159_vm1, %v10869_v53, %v7211_v19  ;;  %v3795_v41 = vsel %vm159_vm1, %v10967_v10, %v7212_v30  ;;  %v12742_v29 = vld [vmem:[#allocation27_spill] sm:$0xff] }
 0x52b   :  { %v3443_v37 = vrot.slane %v12742_v29, 2 }
 0x52c   :  { %3954 = vmatmul.f32.gmra.mxu0 %v3778_v11  ;;  %4016 = vmatmul.f32.gmra.mxu1 %v3825_v31  ;;  %v12741_v31 = vld [vmem:[#allocation32_spill] sm:$0xff] }
 0x52f   :  { %v7220_v52 = vpop.permute.xlu1 %7219 }
 0x530   :  { %v7222_v36 = vunpack.i.h.bf16 %v7220_v52  ;;  %v7221_v42 = vunpack.i.l.bf16 %v7220_v52  ;;  %v3444_v52 = vrot.slane %v12743_v1, 2 }
 0x531   :  { %v7235_v17 = vpop.permute.xlu0 %7234 }
 0x532   :  { %v3749_v6 = vsel %vm159_vm1, %v10928_v55, %v7222_v36  ;;  %v3748_v32 = vsel %vm159_vm1, %v10894_v57, %v7221_v42  ;;  %v3810_v57 = vsel %vm723_vm6, %v3794_v14, %v7216_v56  ;;  %v7236_v15 = vunpack.i.l.bf16 %v7235_v17 }
 0x533   :  { %v3765_v38 = vsel %vm723_vm6, %v3749_v6, %v7227_v61  ;;  %v3764_v28 = vsel %vm723_vm6, %v3748_v32, %v7226_v59  ;;  %v3445_v34 = vsel %vm322_vm5, %v3443_v37, %v3444_v52  ;;  %v4868_v61 = vld [vmem:[%s12544_s9 + $0x118] sm:$0xff]  ;;  %v11219_v6 = vld [vmem:[%s12543_s8] ss:$0 sm:$0xff] }
 0x534   :  { %3957 = vmatmul.f32.gmra.mxu0 %v3779_v26  ;;  %v3781_v45 = vsel %vm740_vm7, %v3765_v38, %v7232_v48  ;;  %v3780_v55 = vsel %vm740_vm7, %v3764_v28, %v7231_v12  ;;  %5047 = vmatpush.msra.mxu1 %v4868_v61  ;;  %v4866_v48 = vld [vmem:[%s12544_s9 + $0x108] sm:$0xff]  ;;  %v4848_v28 = vld [vmem:[%s12544_s9 + $0x78] sm:$0xff] }
 0x535   :  { %3963 = vmatmul.f32.vlgmr.msrb.gmra.mxu3 %v3781_v45  ;;  %4905 = vmatpush.msrb.mxu2 %v4848_v28 }
 0x537   :  { %v7240_v58 = vpop.permute.xlu1 %7239 }
 0x538   :  { %v7241_v24 = vunpack.i.l.bf16 %v7240_v58  ;;  %v7242_v10 = vunpack.i.h.bf16 %v7240_v58 }
 0x53a   :  { %v3796_v51 = vsel %vm159_vm1, %v10961_v27, %v7241_v24  ;;  %v3797_v46 = vsel %vm159_vm1, %v10994_v22, %v7242_v10 }
 0x53c   :  { %3960 = vmatmul.f32.gmra.mxu0 %v3780_v55  ;;  %v3919_v5 = vpop.f32.mrf.mxu0 }
 0x53d   :  { %6202 = vmatmul.msk.f32.vlgmr.msra.gmra.mxu3 %vm159_vm1, %v10434_v54  ;;  %v7217_v54 = vunpack.i.h.bf16 %v7215_v50  ;;  %v7237_v50 = vunpack.i.h.bf16 %v7235_v17  ;;  %v3920_v26 = vadd.f32 %v11219_v6, %v3919_v5 }
 0x53f   :  { %v7245_v35 = vpop.permute.xlu1 %7244  ;;  %v3811_v53 = vsel %vm723_vm6, %v3795_v41, %v7217_v54  ;;  %v3813_v27 = vsel %vm723_vm6, %v3797_v46, %v7237_v50  ;;  %v4234_v41 = vld [vmem:[#allocation2 + $0x8] sm:$0x3]  ;;  %v4847_v54 = vld [vmem:[%s12544_s9 + $0x70] sm:$0xff] }
 0x540   :  { %v7246_v43 = vunpack.i.l.bf16 %v7245_v35  ;;  %v7247_v20 = vunpack.i.h.bf16 %v7245_v35  ;;  %v3829_v2 = vsel %vm740_vm7, %v3813_v27, %v7252_v63  ;;  %4906 = vmatpush.msrb.mxu2 %v4847_v54  ;;  %v4354_v17 = vrot.slane %v4234_v41, 2 }
 0x542   :  { %v3826_v21 = vsel %vm740_vm7, %v3810_v57, %v7246_v43  ;;  %v3827_v25 = vsel %vm740_vm7, %v3811_v53, %v7247_v20  ;;  %v11237_v20 = vld [vmem:[#allocation2] sm:$0xff] }
 0x543   :  { %4019 = vmatmul.f32.gmra.mxu1 %v3826_v21  ;;  %v4353_v53 = vrot.slane %v11237_v20, 2  ;;  %v4305_v9 = vrot.slane %v11237_v20, 1 }
 0x544   :  { %v3922_v11 = vpop.f32.mrf.mxu0 }
 0x545   :  { %6203 = vmatmul.msk.f32.gmra.mxu3 %vm159_vm1, %v10482_v23  ;;  %v3812_v23 = vsel %vm723_vm6, %v3796_v51, %v7236_v15  ;;  %v3923_v19 = vadd.f32 %v11219_v6, %v3922_v11  ;;  %v4306_v15 = vrot.slane %v4234_v41, 1  ;;  %v4355_v27 = vsel %vm322_vm5, %v4353_v53, %v4354_v17 }
 0x546   :  { %v3828_v39 = vsel %vm740_vm7, %v3812_v23, %v7251_v47 }
 0x54b   :  { %4022 = vmatmul.f32.gmra.mxu1 %v3827_v25 }
 0x54d   :  { %6204 = vmatmul.msk.f32.gmra.mxu3 %vm159_vm1, %v10517_v4  ;;  %v12734_v4 = vld [vmem:[#allocation23_spill] sm:$0xff] }
 0x54e   :  { %v3440_v22 = vrot.slane %v12734_v4, 2 }
 0x550   :  { %v3984_v40 = vpop.f32.mrf.mxu1 }
 0x551   :  { %v3925_v33 = vpop.f32.mrf.mxu0  ;;  %v3985_v32 = vadd.f32 %v3984_v40, %v3920_v26  ;;  %v4863_v26 = vld [vmem:[%s12544_s9 + $0xf0] sm:$0xff] }
 0x552   :  { %v3926_v25 = vadd.f32 %v11219_v6, %v3925_v33 }
 0x553   :  { %4025 = vmatmul.f32.gmra.mxu1 %v3828_v39 }
 0x555   :  { %6205 = vmatmul.msk.f32.gmra.mxu3 %vm159_vm1, %v10556_v13  ;;  %v3442_v13 = vsel %vm322_vm5, %v3440_v22, %v3441_v18  ;;  %v4307_v18 = vsel %vm273_vm4, %v4305_v9, %v4306_v15  ;;  %v4862_v9 = vld [vmem:[%s12544_s9 + $0xe8] sm:$0xff]  ;;  %v4844_v15 = vld [vmem:[%s12544_s9 + $0x58] sm:$0xff] }
 0x558   :  { %v3987_v62 = vpop.f32.mrf.mxu1 }
 0x559   :  { %v3928_v38 = vpop.f32.mrf.mxu0  ;;  %v3988_v14 = vadd.f32 %v3987_v62, %v3923_v19 }
 0x55a   :  { %v3929_v11 = vadd.f32 %v11219_v6, %v3928_v38 }
 0x55b   :  { %4028 = vmatmul.f32.gmra.mxu1 %v3829_v2 }
 0x55d   :  { %6206 = vmatmul.msk.f32.gmra.mxu3 %vm159_vm1, %v10569_v0  ;;  %v12738_v0 = vld [vmem:[#allocation29_spill] sm:$0xff] }
 0x560   :  { %v3990_v36 = vpop.f32.mrf.mxu1 }
 0x561   :  { %v11229_v56 = vpop.f32.mrf.mxu0  ;;  %v3991_v23 = vadd.f32 %v3990_v36, %v3926_v25 }
 0x562   :  { %v3932_v19 = vadd.f32 %v11219_v6, %v11229_v56 }
 0x565   :  { %6207 = vmatmul.msk.f32.gmra.mxu3 %vm159_vm1, %v10623_v16  ;;  %v12739_v16 = vld [vmem:[#allocation30_spill] sm:$0xff] }
 0x568   :  { %v3993_v45 = vpop.f32.mrf.mxu1 }
 0x569   :  { %v11253_v4 = vpop.f32.mrf.mxu0  ;;  %v3994_v29 = vadd.f32 %v3993_v45, %v3929_v11  ;;  %v4843_v11 = vld [vmem:[%s12544_s9 + $0x50] sm:$0xff] }
 0x56d   :  { %6208 = vmatmul.msk.f32.gmra.mxu3 %vm159_vm1, %v10647_v44  ;;  %v12740_v44 = vld [vmem:[#allocation31_spill] sm:$0xff] }
 0x570   :  { %v11233_v57 = vpop.f32.mrf.mxu1 }
 0x571   :  { %v11289_v38 = vpop.f32.mrf.mxu0 }
 0x575   :  { %6209 = vmatmul.msk.f32.gmra.mxu3 %vm159_vm1, %v3442_v13 }
 0x57d   :  { %6210 = vmatmul.msk.f32.gmra.mxu3 %vm159_vm1, %v12736_v7  ;;  %v4846_v7 = vld [vmem:[%s12544_s9 + $0x68] sm:$0xff] }
 0x57e   :  { %4907 = vmatpush.msrb.mxu2 %v4846_v7 }
 0x585   :  { %6211 = vmatmul.msk.f32.gmra.mxu3 %vm159_vm1, %v12737_v60  ;;  %v4864_v60 = vld [vmem:[%s12544_s9 + $0xf8] sm:$0xff] }
 0x586   :  { %4970 = vmatpush.msrb.mxu0 %v4864_v60 }
 0x588   :  { %4971 = vmatpush.msrb.mxu0 %v4863_v26 }
 0x58a   :  { %4972 = vmatpush.msrb.mxu0 %v4862_v9 }
 0x58d   :  { %6212 = vmatmul.msk.f32.gmra.mxu3 %vm159_vm1, %v12738_v0  ;;  %v11263_v0 = vpop.f32.mrf.mxu1 }
 0x595   :  { %6213 = vmatmul.msk.f32.gmra.mxu3 %vm159_vm1, %v12739_v16  ;;  %v11293_v28 = vpop.f32.mrf.mxu1 }
 0x59d   :  { %6214 = vmatmul.msk.f32.gmra.mxu3 %vm159_vm1, %v12740_v44 }
 0x5a5   :  { %6215 = vmatmul.msk.f32.gmra.mxu3 %vm159_vm1, %v10946_v49  ;;  %v4867_v49 = vld [vmem:[%s12544_s9 + $0x110] sm:$0xff] }
 0x5a6   :  { %5048 = vmatpush.msra.mxu1 %v4867_v49 }
 0x5a8   :  { %5049 = vmatpush.msra.mxu1 %v4866_v48 }
 0x5aa   :  { %5050 = vmatpush.msra.mxu1 %v4865_v8  ;;  %v4845_v8 = vld [vmem:[%s12544_s9 + $0x60] sm:$0xff] }
 0x5ab   :  { %4908 = vmatpush.msrb.mxu2 %v4845_v8 }
 0x5ad   :  { %6216 = vmatmul.msk.f32.gmra.mxu3 %vm159_vm1, %v12741_v31  ;;  %4909 = vmatpush.msrb.mxu2 %v4844_v15 }
 0x5af   :  { %4910 = vmatpush.msrb.mxu2 %v4843_v11 }
 0x5b5   :  { %6217 = vmatmul.msk.f32.gmra.mxu3 %vm159_vm1, %v3445_v34 }
 0x5b8   :  { %v11211_v42 = vpop.f32.mrf.mxu3 }
 0x5c0   :  { %v4049_v59 = vpop.f32.mrf.mxu3 }
 0x5c1   :  { %v4050_v58 = vadd.f32 %v4049_v59, %v3985_v32 }
 0x5c3   :  { %v4097_v12 = vmax.f32 %v4050_v58, 0.0 }
 0x5c5   :  { %v4129_v55 = vrot.slane %v4097_v12, 7 }
 0x5c7   :  { %v4161_v35 = vsel %vm126_vm3, 0.0, %v4129_v55  ;;  %v4177_v43 = vsel %vm126_vm3, %v4129_v55, 0.0 }
 0x5c8   :  { %4195 = vst.msk [vmem:[#allocation2 + $0x10] sm:$0xff] %vm159_vm1, %v4161_v35  ;;  %v4052_v30 = vpop.f32.mrf.mxu3 }
 0x5c9   :  { %4196 = vst.msk [vmem:[#allocation2 + $0x18] sm:$0x3] %vm161_vm2, %v4177_v43  ;;  %v4053_v21 = vadd.f32 %v4052_v30, %v3988_v14  ;;  %v3997_v14 = vadd.f32 %v11233_v57, %v3932_v19 }
 0x5cb   :  { %v4098_v24 = vmax.f32 %v4053_v21, 0.0 }
 0x5cd   :  { %v4130_v51 = vrot.slane %v4098_v24, 7 }
 0x5cf   :  { %v4162_v47 = vsel %vm126_vm3, 0.0, %v4130_v51  ;;  %v4178_v10 = vsel %vm126_vm3, %v4130_v51, 0.0  ;;  %v11247_v39 = vld [vmem:[#allocation2 + $0x10] sm:$0xff] }
 0x5d0   :  { %4197 = vst.msk [vmem:[#allocation2 + $0x20] sm:$0xff] %vm159_vm1, %v4162_v47  ;;  %v4055_v46 = vpop.f32.mrf.mxu3  ;;  %v4236_v50 = vld [vmem:[#allocation2 + $0x18] sm:$0x3]  ;;  %v4356_v63 = vrot.slane %v11247_v39, 2  ;;  %v4308_v2 = vrot.slane %v11247_v39, 1 }
 0x5d1   :  { %4198 = vst.msk [vmem:[#allocation2 + $0x28] sm:$0x3] %vm161_vm2, %v4178_v10  ;;  %v4056_v22 = vadd.f32 %v4055_v46, %v3991_v23  ;;  %v4357_v3 = vrot.slane %v4236_v50, 2  ;;  %v4309_v13 = vrot.slane %v4236_v50, 1  ;;  %v3935_v10 = vadd.f32 %v11219_v6, %v11253_v4  ;;  %v3940_v46 = vpop.f32.mrf.mxu0 }
 0x5d3   :  { %v4099_v16 = vmax.f32 %v4056_v22, 0.0  ;;  %v4358_v44 = vsel %vm322_vm5, %v4356_v63, %v4357_v3  ;;  %v11267_v40 = vsel %vm273_vm4, %v4308_v2, %v4309_v13  ;;  %v4005_v63 = vpop.f32.mrf.mxu1  ;;  %v4000_v2 = vadd.f32 %v11263_v0, %v3935_v10 }
 0x5d4   :  { %v7258_v5 = vpack.i.bf16 %v4358_v44, %v4355_v27  ;;  %v7253_v62 = vpack.i.bf16 %v11267_v40, %v4307_v18 }
 0x5d5   :  { %v4131_v31 = vrot.slane %v4099_v16, 7 }
 0x5d6   :  { %7259 = vrot.lane.b32.xlu2 %v7258_v5, %s7771_s22  ;;  %7254 = vrot.lane.b32.xlu0 %v7253_v62, %s7770_s26  ;;  %v4861_v62 = vld [vmem:[%s12544_s9 + $0xe0] sm:$0xff] }
 0x5d7   :  { %v4163_v37 = vsel %vm126_vm3, 0.0, %v4131_v31  ;;  %v4179_v1 = vsel %vm126_vm3, %v4131_v31, 0.0  ;;  %v11275_v52 = vld [vmem:[#allocation2 + $0x20] sm:$0xff]  ;;  %4973 = vmatpush.msrb.mxu0 %v4861_v62 }
 0x5d8   :  { %4199 = vst.msk [vmem:[#allocation2 + $0x30] sm:$0xff] %vm159_vm1, %v4163_v37  ;;  %v4058_v34 = vpop.f32.mrf.mxu3  ;;  %v7263_v33 = vpack.i.bf16 %v11275_v52, %v11247_v39  ;;  %v4238_v36 = vld [vmem:[#allocation2 + $0x28] sm:$0x3]  ;;  %v4359_v61 = vrot.slane %v11275_v52, 2  ;;  %v4311_v59 = vrot.slane %v11275_v52, 1 }
 0x5d9   :  { %4200 = vst.msk [vmem:[#allocation2 + $0x38] sm:$0x3] %vm161_vm2, %v4179_v1  ;;  %v4059_v49 = vadd.f32 %v4058_v34, %v3994_v29  ;;  %v4360_v48 = vrot.slane %v4238_v36, 2  ;;  %v4312_v58 = vrot.slane %v4238_v36, 1  ;;  %v3938_v34 = vadd.f32 %v11219_v6, %v11289_v38 }
 0x5da   :  { %7264 = vrot.lane.b32.xlu1 %v7263_v33, %s7772_s0  ;;  %v3943_v33 = vpop.f32.mrf.mxu0 }
 0x5db   :  { %v4100_v45 = vmax.f32 %v4059_v49, 0.0  ;;  %v4361_v32 = vsel %vm322_vm5, %v4359_v61, %v4360_v48  ;;  %v11305_v21 = vsel %vm273_vm4, %v4311_v59, %v4312_v58  ;;  %v4003_v61 = vadd.f32 %v11293_v28, %v3938_v34 }
 0x5dc   :  { %6218 = vmatmul.msk.f32.vlgmr.msra.gmra.mxu1 %vm159_vm1, %v4361_v32  ;;  %v7268_v12 = vpack.i.bf16 %v4361_v32, %v4358_v44 }
 0x5dd   :  { %v4132_v55 = vrot.slane %v4100_v45, 7  ;;  %v4008_v45 = vpop.f32.mrf.mxu1 }
 0x5de   :  { %7269 = vrot.lane.b32.xlu2 %v7268_v12, %s7770_s26 }
 0x5df   :  { %v4164_v35 = vsel %vm126_vm3, 0.0, %v4132_v55  ;;  %v4180_v43 = vsel %vm126_vm3, %v4132_v55, 0.0  ;;  %v11302_v30 = vld [vmem:[#allocation2 + $0x30] sm:$0xff] }
 0x5e0   :  { %4201 = vst.msk [vmem:[#allocation2 + $0x40] sm:$0xff] %vm159_vm1, %v4164_v35  ;;  %v4061_v41 = vpop.f32.mrf.mxu3  ;;  %v7278_v56 = vpack.i.bf16 %v11302_v30, %v11305_v21  ;;  %v7273_v54 = vpack.i.bf16 %v11302_v30, %v11275_v52  ;;  %v4240_v24 = vld [vmem:[#allocation2 + $0x38] sm:$0x3]  ;;  %v4362_v57 = vrot.slane %v11302_v30, 2  ;;  %v4314_v53 = vrot.slane %v11302_v30, 1 }
 0x5e1   :  { %4202 = vst.msk [vmem:[#allocation2 + $0x48] sm:$0x3] %vm161_vm2, %v4180_v43  ;;  %v4062_v17 = vadd.f32 %v4061_v41, %v3997_v14  ;;  %v4315_v25 = vrot.slane %v4240_v24, 1  ;;  %v4363_v51 = vrot.slane %v4240_v24, 2  ;;  %v4860_v43 = vld [vmem:[%s12544_s9 + $0xd8] sm:$0xff]  ;;  %v4842_v41 = vld [vmem:[%s12544_s9 + $0x48] sm:$0xff]  ;;  %v3941_v24 = vadd.f32 %v11219_v6, %v3940_v46 }
 0x5e2   :  { %7279 = vrot.lane.b32.xlu1 %v7278_v56, %s7772_s0  ;;  %7274 = vrot.lane.b32.xlu0 %v7273_v54, %s7771_s22 }
 0x5e3   :  { %v4101_v23 = vmax.f32 %v4062_v17, 0.0  ;;  %v4364_v47 = vsel %vm322_vm5, %v4362_v57, %v4363_v51  ;;  %v11328_v27 = vsel %vm273_vm4, %v4314_v53, %v4315_v25  ;;  %4974 = vmatpush.msrb.mxu0 %v4860_v43  ;;  %4911 = vmatpush.msrb.mxu2 %v4842_v41  ;;  %v4006_v17 = vadd.f32 %v4005_v63, %v3941_v24  ;;  %v3946_v25 = vpop.f32.mrf.mxu0 }
 0x5e4   :  { %6219 = vmatmul.msk.f32.gmra.mxu1 %vm159_vm1, %v4364_v47  ;;  %v7283_v4 = vpack.i.bf16 %v11328_v27, %v11305_v21  ;;  %v7288_v0 = vpack.i.bf16 %v4364_v47, %v4361_v32 }
 0x5e5   :  { %v4133_v50 = vrot.slane %v4101_v23, 7 }
 0x5e7   :  { %v4165_v22 = vsel %vm126_vm3, 0.0, %v4133_v50  ;;  %v4181_v3 = vsel %vm126_vm3, %v4133_v50, 0.0  ;;  %v11333_v18 = vld [vmem:[#allocation2 + $0x40] sm:$0xff] }
 0x5e8   :  { %4203 = vst.msk [vmem:[#allocation2 + $0x50] sm:$0xff] %vm159_vm1, %v4165_v22  ;;  %v4064_v13 = vpop.f32.mrf.mxu3  ;;  %v7293_v7 = vpack.i.bf16 %v11333_v18, %v11328_v27  ;;  %v4242_v60 = vld [vmem:[#allocation2 + $0x48] sm:$0x3]  ;;  %v4365_v16 = vrot.slane %v11333_v18, 2  ;;  %v4317_v1 = vrot.slane %v11333_v18, 1 }
 0x5e9   :  { %4204 = vst.msk [vmem:[#allocation2 + $0x58] sm:$0x3] %vm161_vm2, %v4181_v3  ;;  %v4065_v44 = vadd.f32 %v4064_v13, %v4000_v2  ;;  %v4366_v5 = vrot.slane %v4242_v60, 2  ;;  %v4318_v29 = vrot.slane %v4242_v60, 1  ;;  %v4859_v3 = vld [vmem:[%s12544_s9 + $0xd0] sm:$0xff]  ;;  %v4841_v13 = vld [vmem:[%s12544_s9 + $0x40] sm:$0xff] }
 0x5ea   :  { %7284 = vrot.lane.b32.xlu1 %v7283_v4, %s7770_s26  ;;  %7294 = vrot.lane.b32.xlu2 %v7293_v7, %s7772_s0  ;;  %v4011_v4 = vpop.f32.mrf.mxu1 }
 0x5eb   :  { %v4102_v31 = vmax.f32 %v4065_v44, 0.0  ;;  %7289 = vrot.lane.b32.xlu0 %v7288_v0, %s7771_s22  ;;  %v4367_v37 = vsel %vm322_vm5, %v4365_v16, %v4366_v5  ;;  %v11362_v26 = vsel %vm273_vm4, %v4317_v1, %v4318_v29  ;;  %4975 = vmatpush.msrb.mxu0 %v4859_v3  ;;  %v3944_v44 = vadd.f32 %v11219_v6, %v3943_v33  ;;  %v4254_v3 = vld [vmem:[#allocation2 + $0xa8] sm:$0x3] }
 0x5ec   :  { %6220 = vmatmul.msk.f32.gmra.mxu1 %vm159_vm1, %v4367_v37  ;;  %v7298_v19 = vpack.i.bf16 %v4367_v37, %v4364_v47  ;;  %4912 = vmatpush.msrb.mxu2 %v4841_v13  ;;  %v4856_v13 = vld [vmem:[%s12544_s9 + $0xb8] sm:$0xff] }
 0x5ed   :  { %v4134_v36 = vrot.slane %v4102_v31, 7  ;;  %v4009_v62 = vadd.f32 %v4008_v45, %v3944_v44 }
 0x5ef   :  { %v4166_v49 = vsel %vm126_vm3, 0.0, %v4134_v36  ;;  %v4182_v48 = vsel %vm126_vm3, %v4134_v36, 0.0  ;;  %v11359_v8 = vld [vmem:[#allocation2 + $0x50] sm:$0xff] }
 0x5f0   :  { %4205 = vst.msk [vmem:[#allocation2 + $0x60] sm:$0xff] %vm159_vm1, %v4166_v49  ;;  %v4067_v32 = vpop.f32.mrf.mxu3  ;;  %v7303_v38 = vpack.i.bf16 %v11359_v8, %v11333_v18  ;;  %v7308_v59 = vpack.i.bf16 %v11359_v8, %v11362_v26  ;;  %v4244_v58 = vld [vmem:[#allocation2 + $0x58] sm:$0x3]  ;;  %v4368_v28 = vrot.slane %v11359_v8, 2  ;;  %v4320_v12 = vrot.slane %v11359_v8, 1 }
 0x5f1   :  { %4206 = vst.msk [vmem:[#allocation2 + $0x68] sm:$0x3] %vm161_vm2, %v4182_v48  ;;  %v4068_v55 = vadd.f32 %v4067_v32, %v4003_v61  ;;  %v4321_v14 = vrot.slane %v4244_v58, 1  ;;  %v4369_v35 = vrot.slane %v4244_v58, 2  ;;  %v3949_v48 = vpop.f32.mrf.mxu0 }
 0x5f2   :  { %7304 = vrot.lane.b32.xlu1 %v7303_v38, %s7771_s22  ;;  %7309 = vrot.lane.b32.xlu2 %v7308_v59, %s7772_s0  ;;  %v4858_v38 = vld [vmem:[%s12544_s9 + $0xc8] sm:$0xff]  ;;  %v4840_v59 = vld [vmem:[%s12544_s9 + $0x38] sm:$0xff]  ;;  %v3950_v44 = vadd.f32 %v11219_v6, %v3949_v48 }
 0x5f3   :  { %v4103_v56 = vmax.f32 %v4068_v55, 0.0  ;;  %7299 = vrot.lane.b32.xlu0 %v7298_v19, %s7770_s26  ;;  %v4370_v54 = vsel %vm322_vm5, %v4368_v28, %v4369_v35  ;;  %v11385_v53 = vsel %vm273_vm4, %v4320_v12, %v4321_v14  ;;  %4976 = vmatpush.msrb.mxu0 %v4858_v38  ;;  %v4014_v55 = vpop.f32.mrf.mxu1  ;;  %v3947_v14 = vadd.f32 %v11219_v6, %v3946_v25 }
 0x5f4   :  { %6221 = vmatmul.msk.f32.gmra.mxu1 %vm159_vm1, %v4370_v54  ;;  %v7318_v23 = vpack.i.bf16 %v4370_v54, %v4367_v37  ;;  %v7313_v10 = vpack.i.bf16 %v11385_v53, %v11362_v26  ;;  %4913 = vmatpush.msrb.mxu2 %v4840_v59 }
 0x5f5   :  { %v4135_v57 = vrot.slane %v4103_v56, 7  ;;  %v4012_v41 = vadd.f32 %v4011_v4, %v3947_v14  ;;  %v4838_v14 = vld [vmem:[%s12544_s9 + $0x28] sm:$0xff] }
 0x5f7   :  { %v4167_v51 = vsel %vm126_vm3, 0.0, %v4135_v57  ;;  %v4183_v9 = vsel %vm126_vm3, %v4135_v57, 0.0  ;;  %v11389_v15 = vld [vmem:[#allocation2 + $0x60] sm:$0xff] }
 0x5f8   :  { %4207 = vst.msk [vmem:[#allocation2 + $0x70] sm:$0xff] %vm159_vm1, %v4167_v51  ;;  %v4070_v47 = vpop.f32.mrf.mxu3  ;;  %v7323_v46 = vpack.i.bf16 %v11389_v15, %v11385_v53  ;;  %v4246_v50 = vld [vmem:[#allocation2 + $0x68] sm:$0x3]  ;;  %v4371_v63 = vrot.slane %v11389_v15, 2  ;;  %v4323_v0 = vrot.slane %v11389_v15, 1 }
 0x5f9   :  { %4208 = vst.msk [vmem:[#allocation2 + $0x78] sm:$0x3] %vm161_vm2, %v4183_v9  ;;  %v4071_v2 = vadd.f32 %v4070_v47, %v4006_v17  ;;  %v4372_v22 = vrot.slane %v4246_v50, 2  ;;  %v4324_v60 = vrot.slane %v4246_v50, 1  ;;  %v4251_v50 = vld [vmem:[#allocation2 + $0x90] sm:$0xff]  ;;  %v3952_v4 = vpop.f32.mrf.mxu0 }
 0x5fa   :  { %7319 = vrot.lane.b32.xlu1 %v7318_v23, %s7771_s22  ;;  %7314 = vrot.lane.b32.xlu2 %v7313_v10, %s7770_s26  ;;  %v11455_v23 = vld [vmem:[#allocation2 + $0x98] sm:$0x3] }
 0x5fb   :  { %v4104_v7 = vmax.f32 %v4071_v2, 0.0  ;;  %7324 = vrot.lane.b32.xlu0 %v7323_v46, %s7772_s0  ;;  %v4373_v16 = vsel %vm322_vm5, %v4371_v63, %v4372_v22  ;;  %v11416_v37 = vsel %vm273_vm4, %v4323_v0, %v4324_v60  ;;  %v4857_v63 = vld [vmem:[%s12544_s9 + $0xc0] sm:$0xff]  ;;  %v4839_v2 = vld [vmem:[%s12544_s9 + $0x30] sm:$0xff]  ;;  %v4444_v0 = vrot.slane %v11455_v23, 2 }
 0x5fc   :  { %6222 = vmatmul.msk.f32.gmra.mxu1 %vm159_vm1, %v4373_v16  ;;  %v7328_v1 = vpack.i.bf16 %v4373_v16, %v4370_v54  ;;  %v11469_v22 = vld [vmem:[#allocation2 + $0xa0] sm:$0xff]  ;;  %4977 = vmatpush.msrb.mxu0 %v4857_v63 }
 0x5fd   :  { %v4136_v5 = vrot.slane %v4104_v7, 7  ;;  %4914 = vmatpush.msrb.mxu2 %v4839_v2 }
 0x5fe   :  { %4978 = vmatpush.msrb.mxu0 %v4856_v13 }
 0x5ff   :  { %v4168_v11 = vsel %vm126_vm3, 0.0, %v4136_v5  ;;  %v4184_v31 = vsel %vm126_vm3, %v4136_v5, 0.0  ;;  %v11413_v29 = vld [vmem:[#allocation2 + $0x70] sm:$0xff]  ;;  %4915 = vmatpush.msrb.mxu2 %v4838_v14 }
 0x600   :  { %4209 = vst.msk [vmem:[#allocation2 + $0x80] sm:$0xff] %vm159_vm1, %v4168_v11  ;;  %v4073_v34 = vpop.f32.mrf.mxu3  ;;  %v7333_v36 = vpack.i.bf16 %v11413_v29, %v11389_v15  ;;  %v7338_v33 = vpack.i.bf16 %v11413_v29, %v11416_v37  ;;  %v4248_v61 = vld [vmem:[#allocation2 + $0x78] sm:$0x3]  ;;  %v4374_v49 = vrot.slane %v11413_v29, 2  ;;  %v4326_v28 = vrot.slane %v11413_v29, 1 }
 0x601   :  { %4210 = vst.msk [vmem:[#allocation2 + $0x88] sm:$0x3] %vm161_vm2, %v4184_v31  ;;  %v4074_v45 = vadd.f32 %v4073_v34, %v4009_v62  ;;  %v4375_v32 = vrot.slane %v4248_v61, 2  ;;  %v4327_v58 = vrot.slane %v4248_v61, 1  ;;  %v4329_v62 = vrot.slane %v11469_v22, 1  ;;  %v4017_v31 = vpop.f32.mrf.mxu1 }
 0x602   :  { %7329 = vrot.lane.b32.xlu1 %v7328_v1, %s7770_s26  ;;  %7334 = vrot.lane.b32.xlu2 %v7333_v36, %s7771_s22  ;;  %v4330_v11 = vrot.slane %v4254_v3, 1  ;;  %v4015_v1 = vadd.f32 %v4014_v55, %v3950_v44 }
 0x603   :  { %v4105_v12 = vmax.f32 %v4074_v45, 0.0  ;;  %7339 = vrot.lane.b32.xlu0 %v7338_v33, %s7772_s0  ;;  %v11436_v19 = vsel %vm322_vm5, %v4374_v49, %v4375_v32  ;;  %v11442_v43 = vsel %vm273_vm4, %v4326_v28, %v4327_v58  ;;  %v4437_v45 = vrot.slane %v4251_v50, 1 }
 0x604   :  { %6223 = vmatmul.msk.f32.gmra.mxu1 %vm159_vm1, %v11436_v19  ;;  %v7348_v57 = vpack.i.bf16 %v11436_v19, %v4373_v16  ;;  %v7343_v10 = vpack.i.bf16 %v11442_v43, %v11416_v37  ;;  %v4443_v16 = vrot.slane %v4251_v50, 2  ;;  %v4438_v32 = vrot.slane %v11455_v23, 1  ;;  %v3955_v23 = vpop.f32.mrf.mxu0 }
 0x605   :  { %v4137_v35 = vrot.slane %v4105_v12, 7  ;;  %v4331_v12 = vsel %vm273_vm4, %v4329_v62, %v4330_v11  ;;  %v4837_v11 = vld [vmem:[%s12544_s9 + $0x20] sm:$0xff] }
 0x606   :  { %v4445_v33 = vsel %vm322_vm5, %v4443_v16, %v4444_v0  ;;  %4916 = vmatpush.msrb.mxu2 %v4837_v11 }
 0x607   :  { %v4169_v56 = vsel %vm126_vm3, 0.0, %v4137_v35  ;;  %v4185_v54 = vsel %vm126_vm3, %v4137_v35, 0.0  ;;  %v11446_v24 = vld [vmem:[#allocation2 + $0x80] sm:$0xff]  ;;  %v4377_v35 = vrot.slane %v11469_v22, 2 }
 0x608   :  { %4215 = vst.msk [vmem:[#allocation2 + $0xb0] sm:$0xff] %vm159_vm1, %v4169_v56  ;;  %v4076_v17 = vpop.f32.mrf.mxu3  ;;  %v7353_v51 = vpack.i.bf16 %v11446_v24, %v11442_v43  ;;  %v11452_v25 = vld [vmem:[#allocation2 + $0x88] sm:$0x3]  ;;  %v4427_v9 = vrot.slane %v11446_v24, 2  ;;  %v7358_v28 = vpack.i.bf16 %v4251_v50, %v11446_v24 }
 0x609   :  { %4216 = vst.msk [vmem:[#allocation2 + $0xb8] sm:$0x3] %vm161_vm2, %v4185_v54  ;;  %v4077_v47 = vadd.f32 %v4076_v17, %v4012_v41  ;;  %v4428_v46 = vrot.slane %v11452_v25, 2  ;;  %v4378_v41 = vrot.slane %v4254_v3, 2  ;;  %v4406_v50 = vrot.slane %v11452_v25, 1 }
 0x60a   :  { %7354 = vrot.lane.b32.xlu1 %v7353_v51, %s7772_s0  ;;  %7349 = vrot.lane.b32.xlu2 %v7348_v57, %s7771_s22  ;;  %v4405_v3 = vrot.slane %v11446_v24, 1 }
 0x60b   :  { %v4106_v7 = vmax.f32 %v4077_v47, 0.0  ;;  %7344 = vrot.lane.b32.xlu0 %v7343_v10, %s7770_s26  ;;  %v4429_v60 = vsel %vm322_vm5, %v4427_v9, %v4428_v46  ;;  %v3953_v9 = vadd.f32 %v11219_v6, %v3952_v4  ;;  %v4439_v10 = vsel %vm273_vm4, %v4437_v45, %v4438_v32  ;;  %v4020_v46 = vpop.f32.mrf.mxu1 }
 0x60c   :  { %6224 = vmatmul.msk.f32.gmra.mxu1 %vm159_vm1, %v4429_v60  ;;  %v7363_v49 = vpack.i.bf16 %v4429_v60, %v11436_v19  ;;  %v4855_v19 = vld [vmem:[%s12544_s9 + $0xb0] sm:$0xff]  ;;  %v4379_v63 = vsel %vm322_vm5, %v4377_v35, %v4378_v41  ;;  %v3956_v45 = vadd.f32 %v11219_v6, %v3955_v23 }
 0x60d   :  { %v4138_v5 = vrot.slane %v4106_v7, 7  ;;  %4979 = vmatpush.msrb.mxu0 %v4855_v19  ;;  %v4018_v13 = vadd.f32 %v4017_v31, %v3953_v9  ;;  %v4854_v31 = vld [vmem:[%s12544_s9 + $0xa8] sm:$0xff] }
 0x60f   :  { %v4170_v34 = vsel %vm126_vm3, 0.0, %v4138_v5  ;;  %v4186_v36 = vsel %vm126_vm3, %v4138_v5, 0.0  ;;  %v11483_v61 = vld [vmem:[#allocation2 + $0xb0] sm:$0xff]  ;;  %4980 = vmatpush.msrb.mxu0 %v4854_v31 }
 0x610   :  { %4217 = vst.msk [vmem:[#allocation2 + $0xc0] sm:$0xff] %vm159_vm1, %v4170_v34  ;;  %v4079_v48 = vpop.f32.mrf.mxu3  ;;  %v4256_v38 = vld [vmem:[#allocation2 + $0xb8] sm:$0x3]  ;;  %v4332_v59 = vrot.slane %v11483_v61, 1  ;;  %v4380_v56 = vrot.slane %v11483_v61, 2 }
 0x611   :  { %4218 = vst.msk [vmem:[#allocation2 + $0xc8] sm:$0x3] %vm161_vm2, %v4186_v36  ;;  %v4080_v58 = vadd.f32 %v4079_v48, %v4015_v1  ;;  %v4333_v55 = vrot.slane %v4256_v38, 1  ;;  %v4381_v54 = vrot.slane %v4256_v38, 2  ;;  %v11530_v1 = vsel %vm273_vm4, %v4405_v3, %v4406_v50  ;;  %v3958_v38 = vpop.f32.mrf.mxu0 }
 0x612   :  { %7364 = vrot.lane.b32.xlu2 %v7363_v49, %s7770_s26  ;;  %v7373_v48 = vpack.i.bf16 %v11483_v61, %v11530_v1  ;;  %v3959_v3 = vadd.f32 %v11219_v6, %v3958_v38 }
 0x613   :  { %v4107_v57 = vmax.f32 %v4080_v58, 0.0  ;;  %7359 = vrot.lane.b32.xlu0 %v7358_v28, %s7771_s22  ;;  %v11503_v17 = vsel %vm273_vm4, %v4332_v59, %v4333_v55  ;;  %v4382_v2 = vsel %vm322_vm5, %v4380_v56, %v4381_v54  ;;  %v4021_v59 = vadd.f32 %v4020_v46, %v3956_v45  ;;  %v4023_v14 = vpop.f32.mrf.mxu1 }
 0x614   :  { %6225 = vmatmul.msk.f32.gmra.mxu1 %vm159_vm1, %v4445_v33  ;;  %v7368_v51 = vpack.i.bf16 %v11503_v17, %v4331_v12  ;;  %v7378_v62 = vpack.i.bf16 %v4382_v2, %v4379_v63  ;;  %v4835_v63 = vld [vmem:[%s12544_s9 + $0x10] sm:$0xff] }
 0x615   :  { %v4139_v47 = vrot.slane %v4107_v57, 7 }
 0x616   :  { %7369 = vrot.lane.b32.xlu1 %v7368_v51, %s7770_s26 }
 0x617   :  { %v4171_v7 = vsel %vm126_vm3, 0.0, %v4139_v47  ;;  %v4187_v4 = vsel %vm126_vm3, %v4139_v47, 0.0  ;;  %v11516_v60 = vld [vmem:[#allocation2 + $0xc0] sm:$0xff]  ;;  %v4836_v47 = vld [vmem:[%s12544_s9 + $0x18] sm:$0xff] }
 0x618   :  { %4219 = vst.msk [vmem:[#allocation2 + $0xd0] sm:$0xff] %vm159_vm1, %v4171_v7  ;;  %v4082_v16 = vpop.f32.mrf.mxu3  ;;  %v7383_v25 = vpack.i.bf16 %v11516_v60, %v4439_v10  ;;  %v4258_v0 = vld [vmem:[#allocation2 + $0xc8] sm:$0x3]  ;;  %v4383_v44 = vrot.slane %v11516_v60, 2  ;;  %v4335_v49 = vrot.slane %v11516_v60, 1  ;;  %v4853_v10 = vld [vmem:[%s12544_s9 + $0xa0] sm:$0xff]  ;;  %4917 = vmatpush.msrb.mxu2 %v4836_v47 }
 0x619   :  { %4220 = vst.msk [vmem:[#allocation2 + $0xd8] sm:$0x3] %vm161_vm2, %v4187_v4  ;;  %v4083_v5 = vadd.f32 %v4082_v16, %v4018_v13  ;;  %v4384_v24 = vrot.slane %v4258_v0, 2  ;;  %v4336_v36 = vrot.slane %v4258_v0, 1  ;;  %4981 = vmatpush.msrb.mxu0 %v4853_v10  ;;  %v4852_v4 = vld [vmem:[%s12544_s9 + $0x98] sm:$0xff]  ;;  %v4024_v16 = vadd.f32 %v4023_v14, %v3959_v3  ;;  %v3961_v31 = vpop.f32.mrf.mxu0 }
 0x61a   :  { %7384 = vrot.lane.b32.xlu2 %v7383_v25, %s7772_s0  ;;  %4918 = vmatpush.msrb.mxu2 %v4835_v63  ;;  %v3962_v38 = vadd.f32 %v11219_v6, %v3961_v31 }
 0x61b   :  { %v4108_v34 = vmax.f32 %v4083_v5, 0.0  ;;  %7379 = vrot.lane.b32.xlu0 %v7378_v62, %s7771_s22  ;;  %v4385_v33 = vsel %vm322_vm5, %v4383_v44, %v4384_v24  ;;  %v11545_v55 = vsel %vm273_vm4, %v4335_v49, %v4336_v36  ;;  %4982 = vmatpush.msrb.mxu0 %v4852_v4  ;;  %v4026_v49 = vpop.f32.mrf.mxu1  ;;  %v4850_v4 = vld [vmem:[%s12544_s9 + $0x88] sm:$0xff] }
 0x61c   :  { %6226 = vmatmul.msk.f32.gmra.mxu1 %vm159_vm1, %v4385_v33  ;;  %v7388_v57 = vpack.i.bf16 %v4385_v33, %v4382_v2  ;;  %v7393_v2 = vpack.i.bf16 %v4385_v33, %v11516_v60  ;;  %v4027_v14 = vadd.f32 %v4026_v49, %v3962_v38 }
 0x61d   :  { %v4140_v32 = vrot.slane %v4108_v34, 7 }
 0x61e   :  { %7374 = vrot.lane.b32.xlu1 %v7373_v48, %s7772_s0 }
 0x61f   :  { %v4172_v58 = vsel %vm126_vm3, 0.0, %v4140_v32  ;;  %v4188_v28 = vsel %vm126_vm3, %v4140_v32, 0.0  ;;  %v11542_v12 = vld [vmem:[#allocation2 + $0xd0] sm:$0xff]  ;;  %v4834_v32 = vld [vmem:[%s12544_s9 + $0x8] sm:$0xff] }
 0x620   :  { %4221 = vst.msk [vmem:[#allocation2 + $0xe0] sm:$0xff] %vm159_vm1, %v4172_v58  ;;  %v4085_v19 = vpop.f32.mrf.mxu3  ;;  %v7398_v35 = vpack.i.bf16 %v11542_v12, %v11545_v55  ;;  %v4260_v41 = vld [vmem:[#allocation2 + $0xd8] sm:$0x3]  ;;  %v4386_v56 = vrot.slane %v11542_v12, 2  ;;  %v4338_v54 = vrot.slane %v11542_v12, 1  ;;  %4919 = vmatpush.msrb.mxu2 %v4834_v32 }
 0x621   :  { %4222 = vst.msk [vmem:[#allocation2 + $0xe8] sm:$0x3] %vm161_vm2, %v4188_v28  ;;  %v4086_v51 = vadd.f32 %v4085_v19, %v4021_v59  ;;  %v4339_v9 = vrot.slane %v4260_v41, 1  ;;  %v4387_v23 = vrot.slane %v4260_v41, 2  ;;  %v4851_v28 = vld [vmem:[%s12544_s9 + $0x90] sm:$0xff] }
 0x622   :  { %7399 = vrot.lane.b32.xlu2 %v7398_v35, %s7772_s0  ;;  %4983 = vmatpush.msrb.mxu0 %v4851_v28 }
 0x623   :  { %v4109_v46 = vmax.f32 %v4086_v51, 0.0  ;;  %7389 = vrot.lane.b32.xlu0 %v7388_v57, %s7770_s26  ;;  %v4388_v50 = vsel %vm322_vm5, %v4386_v56, %v4387_v23  ;;  %v11569_v7 = vsel %vm273_vm4, %v4338_v54, %v4339_v9  ;;  %v4833_v57 = vld [vmem:[%s12544_s9] sm:$0xff] }
 0x624   :  { %6227 = vmatmul.msk.f32.gmra.mxu1 %vm159_vm1, %v4388_v50  ;;  %v7403_v62 = vpack.i.bf16 %v11569_v7, %v11545_v55  ;;  %v7408_v34 = vpack.i.bf16 %v4388_v50, %v11542_v12  ;;  %4920 = vmatpush.msrb.mxu2 %v4833_v57 }
 0x625   :  { %v4141_v13 = vrot.slane %v4109_v46, 7  ;;  %4984 = vmatpush.msrb.mxu0 %v4850_v4 }
 0x626   :  { %7394 = vrot.lane.b32.xlu1 %v7393_v2, %s7771_s22 }
 0x627   :  { %v4173_v25 = vsel %vm126_vm3, 0.0, %v4141_v13  ;;  %v4189_v0 = vsel %vm126_vm3, %v4141_v13, 0.0  ;;  %v11577_v44 = vld [vmem:[#allocation2 + $0xe0] sm:$0xff] }
 0x628   :  { %4223 = vst.msk [vmem:[#allocation2 + $0xf0] sm:$0xff] %vm159_vm1, %v4173_v25  ;;  %v4088_v5 = vpop.f32.mrf.mxu3  ;;  %v4262_v24 = vld [vmem:[#allocation2 + $0xe8] sm:$0x3]  ;;  %v4389_v11 = vrot.slane %v11577_v44, 2  ;;  %v7413_v59 = vpack.i.bf16 %v11577_v44, %v11569_v7  ;;  %v4341_v54 = vrot.slane %v11577_v44, 1 }
 0x629   :  { %4224 = vst.msk [vmem:[#allocation2 + $0xf8] sm:$0x3] %vm161_vm2, %v4189_v0  ;;  %v4089_v36 = vadd.f32 %v4088_v5, %v4024_v16  ;;  %v4390_v33 = vrot.slane %v4262_v24, 2  ;;  %v4342_v41 = vrot.slane %v4262_v24, 1  ;;  %v4029_v16 = vpop.f32.mrf.mxu1  ;;  %v3965_v5 = vadd.f32 %v11219_v6, %v11211_v42 }
 0x62a   :  { %7404 = vrot.lane.b32.xlu2 %v7403_v62, %s7770_s26 }
 0x62b   :  { %v4110_v48 = vmax.f32 %v4089_v36, 0.0  ;;  %7409 = vrot.lane.b32.xlu0 %v7408_v34, %s7771_s22  ;;  %v4391_v45 = vsel %vm322_vm5, %v4389_v11, %v4390_v33  ;;  %v4030_v31 = vadd.f32 %v4029_v16, %v3965_v5  ;;  %v11678_v5 = vld [vmem:[#allocation2 + $0x138] sm:$0x3] }
 0x62c   :  { %6228 = vmatmul.msk.f32.gmra.mxu1 %vm159_vm1, %v4391_v45  ;;  %v7418_v51 = vpack.i.bf16 %v4391_v45, %v4388_v50  ;;  %v7423_v10 = vpack.i.bf16 %v4391_v45, %v11577_v44  ;;  %v11615_v50 = vsel %vm273_vm4, %v4341_v54, %v4342_v41  ;;  %v4849_v45 = vld [vmem:[%s12544_s9 + $0x80] sm:$0xff]  ;;  %s6142_s9 = sshll.u32 %s12548_s13, 4  ;;  %s6143_s9 = int_to_ptr.hbm [resolvable:$true] %s6142_s9 }
 0x62d   :  { %v4142_v58 = vrot.slane %v4110_v48, 7  ;;  %4985 = vmatpush.msrb.mxu0 %v4849_v45  ;;  %v4441_v45 = vrot.slane %v11678_v5, 1 }
 0x62e   :  { %7414 = vrot.lane.b32.xlu1 %v7413_v59, %s7772_s0 }
 0x62f   :  { %v4174_v19 = vsel %vm126_vm3, 0.0, %v4142_v58  ;;  %v4190_v35 = vsel %vm126_vm3, %v4142_v58, 0.0  ;;  %v11601_v56 = vld [vmem:[#allocation2 + $0xf0] sm:$0xff] }
 0x630   :  { %4225 = vst.msk [vmem:[#allocation2 + $0x100] sm:$0xff] %vm159_vm1, %v4174_v19  ;;  %v4091_v9 = vpop.f32.mrf.mxu3  ;;  %v4264_v23 = vld [vmem:[#allocation2 + $0xf8] sm:$0x3]  ;;  %v4392_v47 = vrot.slane %v11601_v56, 2  ;;  %v4344_v3 = vrot.slane %v11601_v56, 1  ;;  %v7428_v0 = vpack.i.bf16 %v11601_v56, %v11615_v50  ;;  %v11626_v24 = vpop.permute.xlu2 %7259 }
 0x631   :  { %4226 = vst.msk [vmem:[#allocation2 + $0x108] sm:$0x3] %vm161_vm2, %v4190_v35  ;;  %v4092_v46 = vadd.f32 %v4091_v9, %v4027_v14  ;;  %v4345_v63 = vrot.slane %v4264_v23, 1  ;;  %v4393_v2 = vrot.slane %v4264_v23, 2 }
 0x632   :  { %7419 = vrot.lane.b32.xlu2 %v7418_v51, %s7770_s26 }
 0x633   :  { %v4111_v13 = vmax.f32 %v4092_v46, 0.0  ;;  %7424 = vrot.lane.b32.xlu0 %v7423_v10, %s7771_s22  ;;  %v4394_v25 = vsel %vm322_vm5, %v4392_v47, %v4393_v2  ;;  %v11630_v11 = vsel %vm273_vm4, %v4344_v3, %v4345_v63 }
 0x634   :  { %6229 = vmatmul.msk.f32.gmra.mxu1 %vm159_vm1, %v4394_v25  ;;  %v7438_v42 = vpack.i.bf16 %v4394_v25, %v11601_v56  ;;  %v7433_v38 = vpack.i.bf16 %v11630_v11, %v11615_v50 }
 0x635   :  { %v4143_v62 = vrot.slane %v4111_v13, 7 }
 0x636   :  { %7429 = vrot.lane.b32.xlu1 %v7428_v0, %s7772_s0  ;;  %v11675_v0 = vld [vmem:[#allocation2 + $0x130] sm:$0xff] }
 0x637   :  { %v4175_v34 = vsel %vm126_vm3, 0.0, %v4143_v62  ;;  %v4191_v36 = vsel %vm126_vm3, %v4143_v62, 0.0  ;;  %v11634_v33 = vld [vmem:[#allocation2 + $0x100] sm:$0xff] }
 0x638   :  { %4227 = vst.msk [vmem:[#allocation2 + $0x110] sm:$0xff] %vm159_vm1, %v4175_v34  ;;  %v4094_v6 = vpop.f32.mrf.mxu3  ;;  %v4266_v49 = vld [vmem:[#allocation2 + $0x108] sm:$0x3]  ;;  %v4395_v48 = vrot.slane %v11634_v33, 2  ;;  %v4347_v51 = vrot.slane %v11634_v33, 1  ;;  %v11655_v9 = vpop.permute.xlu2 %7269  ;;  %v7443_v63 = vpack.i.bf16 %v11634_v33, %v11630_v11 }
 0x639   :  { %4228 = vst.msk [vmem:[#allocation2 + $0x118] sm:$0x3] %vm161_vm2, %v4191_v36  ;;  %v4095_v32 = vadd.f32 %v4094_v6, %v4030_v31  ;;  %v4396_v59 = vrot.slane %v4266_v49, 2  ;;  %v4348_v54 = vrot.slane %v4266_v49, 1  ;;  %v4440_v31 = vrot.slane %v11675_v0, 1 }
 0x63a   :  { %7439 = vrot.lane.b32.xlu2 %v7438_v42, %s7771_s22 }
 0x63b   :  { %v4112_v58 = vmax.f32 %v4095_v32, 0.0  ;;  %7434 = vrot.lane.b32.xlu0 %v7433_v38, %s7770_s26  ;;  %v4397_v28 = vsel %vm322_vm5, %v4395_v48, %v4396_v59  ;;  %v11668_v4 = vsel %vm273_vm4, %v4347_v51, %v4348_v54 }
 0x63c   :  { %v7448_v19 = vpack.i.bf16 %v4397_v28, %v4394_v25  ;;  %6230 = vmatmul.msk.f32.gmra.mxu1 %vm159_vm1, %v4397_v28  ;;  %v7453_v23 = vpack.i.bf16 %v4397_v28, %v11634_v33 }
 0x63d   :  { %v4144_v14 = vrot.slane %v4112_v58, 7 }
 0x63e   :  { %7449 = vrot.lane.b32.xlu1 %v7448_v19, %s7770_s26  ;;  %v7261_v19 = vunpack.i.l.bf16 %v11626_v24 }
 0x63f   :  { %v4176_v35 = vsel %vm126_vm3, 0.0, %v4144_v14  ;;  %v4192_v41 = vsel %vm126_vm3, %v4144_v14, 0.0  ;;  %v11652_v57 = vld [vmem:[#allocation2 + $0x110] sm:$0xff] }
 0x640   :  { %4229 = vst.msk [vmem:[#allocation2 + $0x120] sm:$0xff] %vm159_vm1, %v4176_v35  ;;  %v4268_v47 = vld [vmem:[#allocation2 + $0x118] sm:$0x3]  ;;  %v4398_v10 = vrot.slane %v11652_v57, 2  ;;  %v4350_v46 = vrot.slane %v11652_v57, 1  ;;  %v7458_v6 = vpack.i.bf16 %v11652_v57, %v11668_v4 }
 0x641   :  { %4230 = vst.msk [vmem:[#allocation2 + $0x128] sm:$0x3] %vm161_vm2, %v4192_v41  ;;  %v4351_v2 = vrot.slane %v4268_v47, 1  ;;  %v4399_v3 = vrot.slane %v4268_v47, 2 }
 0x642   :  { %7454 = vrot.lane.b32.xlu2 %v7453_v23, %s7771_s22  ;;  %v4442_v23 = vsel %vm273_vm4, %v4440_v31, %v4441_v45 }
 0x643   :  { %7444 = vrot.lane.b32.xlu0 %v7443_v63, %s7772_s0  ;;  %v4400_v13 = vsel %vm322_vm5, %v4398_v10, %v4399_v3  ;;  %v11671_v16 = vsel %vm273_vm4, %v4350_v46, %v4351_v2  ;;  %v7271_v3 = vunpack.i.l.bf16 %v11655_v9 }
 0x644   :  { %v7463_v25 = vpack.i.bf16 %v11671_v16, %v11668_v4  ;;  %6231 = vmatmul.msk.f32.gmra.mxu1 %vm159_vm1, %v4400_v13  ;;  %v11682_v34 = vpop.permute.xlu2 %7294  ;;  %v7468_v41 = vpack.i.bf16 %v4400_v13, %v11652_v57 }
 0x646   :  { %7464 = vrot.lane.b32.xlu1 %v7463_v25, %s7770_s26 }
 0x647   :  { %v4269_v62 = vld [vmem:[#allocation2 + $0x120] sm:$0xff] }
 0x648   :  { %v7255_v36 = vpop.permute.xlu0 %7254  ;;  %v7473_v42 = vpack.i.bf16 %v4269_v62, %v11671_v16  ;;  %v4270_v49 = vld [vmem:[#allocation2 + $0x128] sm:$0x3]  ;;  %v4430_v48 = vrot.slane %v4269_v62, 2  ;;  %v4408_v58 = vrot.slane %v4269_v62, 1 }
 0x649   :  { %v7256_v32 = vunpack.i.l.bf16 %v7255_v36  ;;  %v4409_v38 = vrot.slane %v4270_v49, 1  ;;  %v4431_v59 = vrot.slane %v4270_v49, 2 }
 0x64a   :  { %7474 = vrot.lane.b32.xlu2 %v7473_v42, %s7772_s0 }
 0x64b   :  { %v4737_v28 = vsel %vm159_vm1, %v11237_v20, %v7256_v32  ;;  %7459 = vrot.lane.b32.xlu0 %v7458_v6, %s7772_s0  ;;  %v4432_v14 = vsel %vm322_vm5, %v4430_v48, %v4431_v59  ;;  %v11697_v51 = vsel %vm273_vm4, %v4408_v58, %v4409_v38  ;;  %v7257_v20 = vunpack.i.h.bf16 %v7255_v36 }
 0x64c   :  { %v7265_v35 = vpop.permute.xlu1 %7264  ;;  %6232 = vmatmul.msk.f32.gmra.mxu1 %vm159_vm1, %v4432_v14  ;;  %v4753_v47 = vsel %vm723_vm6, %v4737_v28, %v7261_v19  ;;  %v7488_v46 = vpack.i.bf16 %v4442_v23, %v11697_v51  ;;  %v7478_v63 = vpack.i.bf16 %v4432_v14, %v4400_v13  ;;  %v11704_v2 = vpop.permute.xlu2 %7309  ;;  %v7262_v36 = vunpack.i.h.bf16 %v11626_v24 }
 0x64d   :  { %v7266_v54 = vunpack.i.l.bf16 %v7265_v35  ;;  %v7267_v25 = vunpack.i.h.bf16 %v7265_v35  ;;  %v4738_v31 = vsel %vm159_vm1, %v11247_v39, %v7257_v20  ;;  %v7483_v48 = vpack.i.bf16 %v11675_v0, %v4269_v62 }
 0x64e   :  { %7469 = vrot.lane.b32.xlu1 %v7468_v41, %s7771_s22  ;;  %v4754_v45 = vsel %vm723_vm6, %v4738_v31, %v7262_v36  ;;  %v4785_v32 = vsel %vm159_vm1, %v11267_v40, %v7271_v3  ;;  %v7272_v39 = vunpack.i.h.bf16 %v11655_v9 }
 0x64f   :  { %v4769_v10 = vsel %vm740_vm7, %v4753_v47, %v7266_v54  ;;  %v4770_v38 = vsel %vm740_vm7, %v4754_v45, %v7267_v25  ;;  %v7296_v54 = vunpack.i.l.bf16 %v11682_v34 }
 0x650   :  { %4921 = vmatmul.f32.vlgmr.msrb.gmra.mxu2 %v4769_v10  ;;  %v4786_v40 = vsel %vm159_vm1, %v11305_v21, %v7272_v39 }
 0x652   :  { %7489 = vrot.lane.b32.xlu2 %v7488_v46, %s7772_s0 }
 0x653   :  { %7479 = vrot.lane.b32.xlu0 %v7478_v63, %s7770_s26 }
 0x654   :  { %v7280_v42 = vpop.permute.xlu1 %7279  ;;  %v7275_v49 = vpop.permute.xlu0 %7274 }
 0x655   :  { %v7281_v6 = vunpack.i.l.bf16 %v7280_v42  ;;  %v7276_v13 = vunpack.i.l.bf16 %v7275_v49  ;;  %v7277_v58 = vunpack.i.h.bf16 %v7275_v49  ;;  %v7315_v62 = vpop.permute.xlu2 %7314  ;;  %v7282_v23 = vunpack.i.h.bf16 %v7280_v42 }
 0x656   :  { %7484 = vrot.lane.b32.xlu1 %v7483_v48, %s7771_s22  ;;  %v7311_v49 = vunpack.i.l.bf16 %v11704_v2 }
 0x657   :  { %v4801_v59 = vsel %vm723_vm6, %v4785_v32, %v7276_v13  ;;  %v4802_v41 = vsel %vm723_vm6, %v4786_v40, %v7277_v58  ;;  %v7316_v32 = vunpack.i.l.bf16 %v7315_v62 }
 0x658   :  { %4924 = vmatmul.f32.gmra.mxu2 %v4770_v38  ;;  %v4817_v24 = vsel %vm740_vm7, %v4801_v59, %v7281_v6  ;;  %v4818_v10 = vsel %vm740_vm7, %v4802_v41, %v7296_v54  ;;  %v7317_v41 = vunpack.i.h.bf16 %v7315_v62 }
 0x659   :  { %4986 = vmatmul.f32.vlgmr.msrb.gmra.mxu0 %v4817_v24 }
 0x65c   :  { %v7285_v28 = vpop.permute.xlu1 %7284 }
 0x65d   :  { %v7286_v14 = vunpack.i.l.bf16 %v7285_v28  ;;  %v7290_v19 = vpop.permute.xlu0 %7289  ;;  %v7287_v47 = vunpack.i.h.bf16 %v7285_v28  ;;  %v7335_v36 = vpop.permute.xlu2 %7334 }
 0x65e   :  { %v7291_v35 = vunpack.i.l.bf16 %v7290_v19  ;;  %v7292_v63 = vunpack.i.h.bf16 %v7290_v19 }
 0x65f   :  { %v4739_v9 = vsel %vm159_vm1, %v11275_v52, %v7286_v14  ;;  %v4740_v21 = vsel %vm159_vm1, %v11302_v30, %v7287_v47  ;;  %v7297_v52 = vunpack.i.h.bf16 %v11682_v34  ;;  %v7312_v34 = vunpack.i.h.bf16 %v11704_v2 }
 0x660   :  { %v4755_v20 = vsel %vm723_vm6, %v4739_v9, %v7291_v35  ;;  %v4756_v6 = vsel %vm723_vm6, %v4740_v21, %v7292_v63 }
 0x661   :  { %v4771_v46 = vsel %vm740_vm7, %v4755_v20, %v7282_v23  ;;  %4989 = vmatmul.f32.gmra.mxu0 %v4818_v10  ;;  %v4772_v13 = vsel %vm740_vm7, %v4756_v6, %v7297_v52  ;;  %v7336_v10 = vunpack.i.l.bf16 %v7335_v36 }
 0x662   :  { %4927 = vmatmul.f32.gmra.mxu2 %v4771_v46 }
 0x664   :  { %v7305_v3 = vpop.permute.xlu1 %7304 }
 0x665   :  { %v7306_v25 = vunpack.i.l.bf16 %v7305_v3  ;;  %v7300_v31 = vpop.permute.xlu0 %7299  ;;  %v7307_v39 = vunpack.i.h.bf16 %v7305_v3  ;;  %v7350_v40 = vpop.permute.xlu2 %7349 }
 0x666   :  { %v7301_v42 = vunpack.i.l.bf16 %v7300_v31  ;;  %v7302_v30 = vunpack.i.h.bf16 %v7300_v31 }
 0x668   :  { %v4787_v48 = vsel %vm159_vm1, %v11328_v27, %v7301_v42  ;;  %v4741_v27 = vsel %vm159_vm1, %v11333_v18, %v7316_v32  ;;  %v4788_v14 = vsel %vm159_vm1, %v11362_v26, %v7302_v30  ;;  %v4742_v26 = vsel %vm159_vm1, %v11359_v8, %v7317_v41 }
 0x669   :  { %v4803_v45 = vsel %vm723_vm6, %v4787_v48, %v7306_v25  ;;  %v4804_v54 = vsel %vm723_vm6, %v4788_v14, %v7307_v39 }
 0x66a   :  { %4930 = vmatmul.f32.gmra.mxu2 %v4772_v13  ;;  %v4819_v38 = vsel %vm740_vm7, %v4803_v45, %v7311_v49  ;;  %v7337_v13 = vunpack.i.h.bf16 %v7335_v36  ;;  %v7351_v45 = vunpack.i.l.bf16 %v7350_v40  ;;  %v7352_v36 = vunpack.i.h.bf16 %v7350_v40 }
 0x66b   :  { %4992 = vmatmul.f32.gmra.mxu0 %v4819_v38 }
 0x66c   :  { %v7320_v59 = vpop.permute.xlu1 %7319 }
 0x66d   :  { %v7321_v24 = vunpack.i.l.bf16 %v7320_v59  ;;  %v7325_v58 = vpop.permute.xlu0 %7324  ;;  %v7322_v23 = vunpack.i.h.bf16 %v7320_v59  ;;  %v7365_v31 = vpop.permute.xlu2 %7364 }
 0x66e   :  { %v7326_v28 = vunpack.i.l.bf16 %v7325_v58  ;;  %v7327_v9 = vunpack.i.h.bf16 %v7325_v58 }
 0x66f   :  { %v4757_v19 = vsel %vm723_vm6, %v4741_v27, %v7321_v24  ;;  %v4758_v46 = vsel %vm723_vm6, %v4742_v26, %v7322_v23 }
 0x670   :  { %v4773_v35 = vsel %vm740_vm7, %v4757_v19, %v7312_v34  ;;  %v4820_v47 = vsel %vm740_vm7, %v4804_v54, %v7326_v28  ;;  %v4774_v3 = vsel %vm740_vm7, %v4758_v46, %v7327_v9  ;;  %v7366_v19 = vunpack.i.l.bf16 %v7365_v31 }
 0x672   :  { %4933 = vmatmul.f32.gmra.mxu2 %v4773_v35  ;;  %v4791_v40 = vsel %vm159_vm1, %v11442_v43, %v7366_v19 }
 0x673   :  { %4995 = vmatmul.f32.gmra.mxu0 %v4820_v47 }
 0x674   :  { %v7330_v2 = vpop.permute.xlu1 %7329 }
 0x675   :  { %v7331_v20 = vunpack.i.l.bf16 %v7330_v2  ;;  %v7340_v18 = vpop.permute.xlu0 %7339  ;;  %v7332_v42 = vunpack.i.h.bf16 %v7330_v2  ;;  %v7385_v58 = vpop.permute.xlu2 %7384 }
 0x676   :  { %v7341_v63 = vunpack.i.l.bf16 %v7340_v18 }
 0x677   :  { %v4789_v62 = vsel %vm159_vm1, %v11385_v53, %v7331_v20  ;;  %v4790_v48 = vsel %vm159_vm1, %v11416_v37, %v7332_v42  ;;  %v7342_v53 = vunpack.i.h.bf16 %v7340_v18 }
 0x678   :  { %v4805_v21 = vsel %vm723_vm6, %v4789_v62, %v7336_v10  ;;  %v4806_v59 = vsel %vm723_vm6, %v4790_v48, %v7337_v13  ;;  %v7367_v10 = vunpack.i.h.bf16 %v7365_v31 }
 0x679   :  { %v4821_v25 = vsel %vm740_vm7, %v4805_v21, %v7341_v63 }
 0x67a   :  { %4936 = vmatmul.f32.gmra.mxu2 %v4774_v3  ;;  %v4792_v43 = vsel %vm159_vm1, %v11530_v1, %v7367_v10 }
 0x67b   :  { %4998 = vmatmul.f32.gmra.mxu0 %v4821_v25 }
 0x67c   :  { %v7355_v6 = vpop.permute.xlu1 %7354 }
 0x67d   :  { %v7345_v52 = vpop.permute.xlu0 %7344  ;;  %v7356_v8 = vunpack.i.l.bf16 %v7355_v6  ;;  %v7357_v27 = vunpack.i.h.bf16 %v7355_v6  ;;  %v7400_v54 = vpop.permute.xlu2 %7399 }
 0x67e   :  { %v7346_v49 = vunpack.i.l.bf16 %v7345_v52  ;;  %v7347_v32 = vunpack.i.h.bf16 %v7345_v52 }
 0x67f   :  { %v4822_v24 = vsel %vm740_vm7, %v4806_v59, %v7356_v8  ;;  %v7387_v8 = vunpack.i.h.bf16 %v7385_v58 }
 0x680   :  { %v4743_v30 = vsel %vm159_vm1, %v11389_v15, %v7346_v49  ;;  %v4744_v37 = vsel %vm159_vm1, %v11413_v29, %v7347_v32  ;;  %v7386_v49 = vunpack.i.l.bf16 %v7385_v58  ;;  %v7402_v58 = vunpack.i.h.bf16 %v7400_v54 }
 0x681   :  { %v4759_v38 = vsel %vm723_vm6, %v4743_v30, %v7351_v45  ;;  %v4760_v28 = vsel %vm723_vm6, %v4744_v37, %v7352_v36  ;;  %v7401_v37 = vunpack.i.l.bf16 %v7400_v54 }
 0x682   :  { %v4775_v39 = vsel %vm740_vm7, %v4759_v38, %v7342_v53  ;;  %v4776_v14 = vsel %vm740_vm7, %v4760_v28, %v7357_v27 }
 0x683   :  { %4939 = vmatmul.f32.gmra.mxu2 %v4775_v39  ;;  %5001 = vmatmul.f32.gmra.mxu0 %v4822_v24 }
 0x685   :  { %v7360_v34 = vpop.permute.xlu0 %7359  ;;  %v7405_v42 = vpop.permute.xlu2 %7404 }
 0x686   :  { %v7361_v23 = vunpack.i.l.bf16 %v7360_v34  ;;  %v7362_v21 = vunpack.i.h.bf16 %v7360_v34  ;;  %v7406_v48 = vunpack.i.l.bf16 %v7405_v42  ;;  %v7407_v28 = vunpack.i.h.bf16 %v7405_v42 }
 0x688   :  { %v7370_v15 = vpop.permute.xlu1 %7369  ;;  %v4807_v26 = vsel %vm723_vm6, %v4791_v40, %v7361_v23  ;;  %v4808_v52 = vsel %vm723_vm6, %v4792_v43, %v7362_v21  ;;  %v4747_v1 = vsel %vm159_vm1, %v11516_v60, %v7406_v48  ;;  %v4748_v23 = vsel %vm159_vm1, %v11542_v12, %v7407_v28 }
 0x689   :  { %v7371_v35 = vunpack.i.l.bf16 %v7370_v15  ;;  %v7372_v46 = vunpack.i.h.bf16 %v7370_v15  ;;  %v4824_v53 = vsel %vm740_vm7, %v4808_v52, %v7386_v49 }
 0x68b   :  { %4942 = vmatmul.f32.gmra.mxu2 %v4776_v14  ;;  %v4745_v29 = vsel %vm159_vm1, %v11469_v22, %v7371_v35  ;;  %v4746_v22 = vsel %vm159_vm1, %v11483_v61, %v7372_v46 }
 0x68d   :  { %v7380_v41 = vpop.permute.xlu0 %7379  ;;  %v7420_v60 = vpop.permute.xlu2 %7419 }
 0x68e   :  { %v7381_v47 = vunpack.i.l.bf16 %v7380_v41  ;;  %v7382_v3 = vunpack.i.h.bf16 %v7380_v41 }
 0x690   :  { %v7375_v2 = vpop.permute.xlu1 %7374  ;;  %v4761_v18 = vsel %vm723_vm6, %v4745_v29, %v7381_v47  ;;  %v4762_v31 = vsel %vm723_vm6, %v4746_v22, %v7382_v3  ;;  %v7421_v29 = vunpack.i.l.bf16 %v7420_v60 }
 0x691   :  { %v7377_v9 = vunpack.i.h.bf16 %v7375_v2  ;;  %v7376_v20 = vunpack.i.l.bf16 %v7375_v2  ;;  %v4778_v45 = vsel %vm740_vm7, %v4762_v31, %v7387_v8 }
 0x692   :  { %v4795_v3 = vsel %vm159_vm1, %v11569_v7, %v7421_v29 }
 0x693   :  { %v4777_v63 = vsel %vm740_vm7, %v4761_v18, %v7377_v9  ;;  %v4823_v62 = vsel %vm740_vm7, %v4807_v26, %v7376_v20 }
 0x694   :  { %4945 = vmatmul.f32.gmra.mxu2 %v4777_v63  ;;  %5004 = vmatmul.f32.gmra.mxu0 %v4823_v62 }
 0x695   :  { %v7390_v25 = vpop.permute.xlu0 %7389  ;;  %v7440_v12 = vpop.permute.xlu2 %7439 }
 0x696   :  { %v7391_v13 = vunpack.i.l.bf16 %v7390_v25  ;;  %v7392_v27 = vunpack.i.h.bf16 %v7390_v25  ;;  %v7441_v52 = vunpack.i.l.bf16 %v7440_v12  ;;  %v7442_v48 = vunpack.i.h.bf16 %v7440_v12  ;;  %v5887_v12 = vld [vmem:[%s12546_s11 + $0x118] sm:$0xff] }
 0x697   :  { %6066 = vmatpush.msra.mxu0 %v5887_v12  ;;  %v5882_v12 = vld [vmem:[%s12546_s11 + $0xf0] sm:$0xff] }
 0x698   :  { %v7395_v6 = vpop.permute.xlu1 %7394  ;;  %v4793_v38 = vsel %vm159_vm1, %v11503_v17, %v7391_v13  ;;  %v4794_v54 = vsel %vm159_vm1, %v11545_v55, %v7392_v27 }
 0x699   :  { %v7397_v32 = vunpack.i.h.bf16 %v7395_v6  ;;  %v7396_v30 = vunpack.i.l.bf16 %v7395_v6  ;;  %v7422_v6 = vunpack.i.h.bf16 %v7420_v60 }
 0x69b   :  { %v4763_v39 = vsel %vm723_vm6, %v4747_v1, %v7397_v32  ;;  %v4809_v24 = vsel %vm723_vm6, %v4793_v38, %v7396_v30  ;;  %v4796_v7 = vsel %vm159_vm1, %v11615_v50, %v7422_v6  ;;  %v5884_v6 = vld [vmem:[%s12546_s11 + $0x100] sm:$0xff] }
 0x69c   :  { %4948 = vmatmul.f32.gmra.mxu2 %v4778_v45  ;;  %5007 = vmatmul.f32.gmra.mxu0 %v4824_v53  ;;  %v4779_v36 = vsel %vm740_vm7, %v4763_v39, %v7402_v58  ;;  %v4825_v34 = vsel %vm740_vm7, %v4809_v24, %v7401_v37  ;;  %v4812_v32 = vsel %vm723_vm6, %v4796_v7, %v7441_v52 }
 0x69d   :  { %v7410_v61 = vpop.permute.xlu0 %7409  ;;  %v7455_v45 = vpop.permute.xlu2 %7454 }
 0x69e   :  { %v7412_v14 = vunpack.i.h.bf16 %v7410_v61  ;;  %v7411_v19 = vunpack.i.l.bf16 %v7410_v61  ;;  %v7456_v28 = vunpack.i.l.bf16 %v7455_v45 }
 0x6a0   :  { %v7415_v59 = vpop.permute.xlu1 %7414  ;;  %v4764_v47 = vsel %vm723_vm6, %v4748_v23, %v7412_v14  ;;  %v4810_v2 = vsel %vm723_vm6, %v4794_v54, %v7411_v19 }
 0x6a1   :  { %v7417_v17 = vunpack.i.h.bf16 %v7415_v59  ;;  %v7416_v35 = vunpack.i.l.bf16 %v7415_v59  ;;  %v4447_v59 = vrot.slane %v11678_v5, 2 }
 0x6a3   :  { %v4780_v9 = vsel %vm740_vm7, %v4764_v47, %v7417_v17  ;;  %v4826_v20 = vsel %vm740_vm7, %v4810_v2, %v7416_v35 }
 0x6a4   :  { %4951 = vmatmul.f32.gmra.mxu2 %v4779_v36  ;;  %5010 = vmatmul.f32.gmra.mxu0 %v4825_v34  ;;  %v7457_v34 = vunpack.i.h.bf16 %v7455_v45 }
 0x6a5   :  { %v7425_v15 = vpop.permute.xlu0 %7424  ;;  %v7475_v17 = vpop.permute.xlu2 %7474 }
 0x6a6   :  { %v7426_v18 = vunpack.i.l.bf16 %v7425_v15  ;;  %v7427_v10 = vunpack.i.h.bf16 %v7425_v15 }
 0x6a8   :  { %v7430_v41 = vpop.permute.xlu1 %7429  ;;  %v4811_v22 = vsel %vm723_vm6, %v4795_v3, %v7426_v18 }
 0x6a9   :  { %v7431_v46 = vunpack.i.l.bf16 %v7430_v41  ;;  %v7432_v63 = vunpack.i.h.bf16 %v7430_v41 }
 0x6ab   :  { %v4827_v42 = vsel %vm740_vm7, %v4811_v22, %v7431_v46  ;;  %v5885_v22 = vld [vmem:[%s12546_s11 + $0x108] sm:$0xff] }
 0x6ac   :  { %4954 = vmatmul.f32.gmra.mxu2 %v4780_v9  ;;  %5013 = vmatmul.f32.gmra.mxu0 %v4826_v20  ;;  %v7477_v9 = vunpack.i.h.bf16 %v7475_v17  ;;  %v7476_v20 = vunpack.i.l.bf16 %v7475_v17 }
 0x6ad   :  { %v7435_v40 = vpop.permute.xlu0 %7434 }
 0x6ae   :  { %v7436_v26 = vunpack.i.l.bf16 %v7435_v40  ;;  %v7437_v43 = vunpack.i.h.bf16 %v7435_v40 }
 0x6b0   :  { %v4749_v55 = vsel %vm159_vm1, %v11577_v44, %v7436_v26  ;;  %v7450_v62 = vpop.permute.xlu1 %7449  ;;  %v4750_v49 = vsel %vm159_vm1, %v11601_v56, %v7437_v43  ;;  %v4446_v56 = vrot.slane %v11675_v0, 2 }
 0x6b1   :  { %v4765_v21 = vsel %vm723_vm6, %v4749_v55, %v7427_v10  ;;  %v4766_v53 = vsel %vm723_vm6, %v4750_v49, %v7442_v48  ;;  %v7451_v30 = vunpack.i.l.bf16 %v7450_v62  ;;  %v7452_v15 = vunpack.i.h.bf16 %v7450_v62 }
 0x6b2   :  { %v4781_v25 = vsel %vm740_vm7, %v4765_v21, %v7432_v63  ;;  %v4448_v50 = vsel %vm322_vm5, %v4446_v56, %v4447_v59  ;;  %v11845_v63 = vld [vmem:[%s12545_s10] ss:$0 sm:$0xff]  ;;  %v5886_v21 = vld [vmem:[%s12546_s11 + $0x110] sm:$0xff] }
 0x6b3   :  { %v4797_v36 = vsel %vm159_vm1, %v11630_v11, %v7451_v30  ;;  %6233 = vmatmul.msk.f32.gmra.mxu1 %vm159_vm1, %v4448_v50  ;;  %v5052_v11 = vpop.f32.mrf.mxu1  ;;  %v4798_v23 = vsel %vm159_vm1, %v11668_v4, %v7452_v15  ;;  %6067 = vmatpush.msra.mxu0 %v5886_v21  ;;  %v5866_v15 = vld [vmem:[%s12546_s11 + $0x70] sm:$0xff] }
 0x6b4   :  { %4957 = vmatmul.f32.gmra.mxu2 %v4781_v25  ;;  %5016 = vmatmul.f32.gmra.mxu0 %v4827_v42  ;;  %v4813_v5 = vsel %vm723_vm6, %v4797_v36, %v7456_v28  ;;  %v11875_v28 = vld [vmem:[#allocation3] sm:$0xff] }
 0x6b5   :  { %v7445_v31 = vpop.permute.xlu0 %7444  ;;  %6068 = vmatpush.msra.mxu0 %v5885_v22 }
 0x6b6   :  { %v7447_v8 = vunpack.i.h.bf16 %v7445_v31  ;;  %v7446_v44 = vunpack.i.l.bf16 %v7445_v31 }
 0x6b7   :  { %6069 = vmatpush.msra.mxu0 %v5884_v6 }
 0x6b8   :  { %v7465_v13 = vpop.permute.xlu1 %7464  ;;  %v4782_v1 = vsel %vm740_vm7, %v4766_v53, %v7447_v8  ;;  %v4828_v38 = vsel %vm740_vm7, %v4812_v32, %v7446_v44  ;;  %v12744_v53 = vld [vmem:[#allocation13_spill] sm:$0xff] }
 0x6b9   :  { %v7466_v61 = vunpack.i.l.bf16 %v7465_v13  ;;  %v7467_v60 = vunpack.i.h.bf16 %v7465_v13  ;;  %v12745_v32 = vmax.f32 %v12744_v53, 0.0 }
 0x6bb   :  { %v4751_v37 = vsel %vm159_vm1, %v11634_v33, %v7466_v61  ;;  %v4752_v41 = vsel %vm159_vm1, %v11652_v57, %v7467_v60  ;;  %v7490_v57 = vpop.permute.xlu2 %7489  ;;  %v5055_v46 = vpop.f32.mrf.mxu1 }
 0x6bc   :  { %4960 = vmatmul.f32.gmra.mxu2 %v4782_v1  ;;  %5019 = vmatmul.f32.gmra.mxu0 %v4828_v38  ;;  %v4767_v0 = vsel %vm723_vm6, %v4751_v37, %v7457_v34  ;;  %v7491_v62 = vunpack.i.l.bf16 %v7490_v57  ;;  %v7492_v48 = vunpack.i.h.bf16 %v7490_v57  ;;  %v12746_v37 = vld [vmem:[#allocation10_spill] sm:$0xff] }
 0x6bd   :  { %v7460_v39 = vpop.permute.xlu0 %7459  ;;  %v12747_v36 = vmax.f32 %v12746_v37, 0.0 }
 0x6be   :  { %v7462_v24 = vunpack.i.h.bf16 %v7460_v39  ;;  %v7461_v58 = vunpack.i.l.bf16 %v7460_v39 }
 0x6c0   :  { %v7470_v27 = vpop.permute.xlu1 %7469  ;;  %v4783_v14 = vsel %vm740_vm7, %v4767_v0, %v7462_v24  ;;  %v4829_v19 = vsel %vm740_vm7, %v4813_v5, %v7461_v58  ;;  %v5253_v0 = vld [vmem:[#allocation3 + $0x8] sm:$0x3]  ;;  %v5883_v5 = vld [vmem:[%s12546_s11 + $0xf8] sm:$0xff] }
 0x6c1   :  { %v7472_v33 = vunpack.i.h.bf16 %v7470_v27  ;;  %v7471_v35 = vunpack.i.l.bf16 %v7470_v27  ;;  %5989 = vmatpush.msra.mxu2 %v5883_v5 }
 0x6c3   :  { %v4768_v47 = vsel %vm723_vm6, %v4752_v41, %v7472_v33  ;;  %v4814_v2 = vsel %vm723_vm6, %v4798_v23, %v7471_v35  ;;  %v5058_v49 = vpop.f32.mrf.mxu1  ;;  %v5324_v33 = vrot.slane %v11875_v28, 1  ;;  %v5325_v35 = vrot.slane %v5253_v0, 1  ;;  %5990 = vmatpush.msra.mxu2 %v5882_v12 }
 0x6c4   :  { %4963 = vmatmul.f32.gmra.mxu2 %v4783_v14  ;;  %5022 = vmatmul.f32.gmra.mxu0 %v4829_v19  ;;  %v4784_v18 = vsel %vm740_vm7, %v4768_v47, %v7477_v9  ;;  %v4830_v26 = vsel %vm740_vm7, %v4814_v2, %v7476_v20 }
 0x6c5   :  { %v7480_v54 = vpop.permute.xlu0 %7479  ;;  %v5326_v20 = vsel %vm273_vm4, %v5324_v33, %v5325_v35 }
 0x6c6   :  { %v7481_v40 = vunpack.i.l.bf16 %v7480_v54  ;;  %v7482_v3 = vunpack.i.h.bf16 %v7480_v54 }
 0x6c8   :  { %v7485_v29 = vpop.permute.xlu1 %7484  ;;  %v4799_v4 = vsel %vm159_vm1, %v11671_v16, %v7481_v40  ;;  %v4800_v52 = vsel %vm159_vm1, %v11697_v51, %v7482_v3  ;;  %v5867_v51 = vld [vmem:[%s12546_s11 + $0x78] sm:$0xff]  ;;  %v5372_v40 = vrot.slane %v11875_v28, 2 }
 0x6c9   :  { %v7486_v10 = vunpack.i.l.bf16 %v7485_v29  ;;  %v7487_v43 = vunpack.i.h.bf16 %v7485_v29  ;;  %5924 = vmatpush.msrb.mxu3 %v5867_v51 }
 0x6cb   :  { %v4815_v55 = vsel %vm723_vm6, %v4799_v4, %v7486_v10  ;;  %v4816_v44 = vsel %vm723_vm6, %v4800_v52, %v7487_v43  ;;  %v5061_v58 = vpop.f32.mrf.mxu1  ;;  %5925 = vmatpush.msrb.mxu3 %v5866_v15  ;;  %v12748_v10 = vld [vmem:[#allocation11_spill] sm:$0xff] }
 0x6cc   :  { %4966 = vmatmul.f32.gmra.mxu2 %v4784_v18  ;;  %5025 = vmatmul.f32.gmra.mxu0 %v4830_v26  ;;  %v4831_v25 = vsel %vm740_vm7, %v4815_v55, %v7491_v62  ;;  %v4832_v45 = vsel %vm740_vm7, %v4816_v44, %v7492_v48  ;;  %v5373_v18 = vrot.slane %v5253_v0, 2  ;;  %v12749_v57 = vmax.f32 %v12748_v10, 0.0  ;;  %v5865_v55 = vld [vmem:[%s12546_s11 + $0x68] sm:$0xff] }
 0x6cd   :  { %5926 = vmatpush.msrb.mxu3 %v5865_v55 }
 0x6ce   :  { %v5374_v22 = vsel %vm322_vm5, %v5372_v40, %v5373_v18  ;;  %v5863_v40 = vld [vmem:[%s12546_s11 + $0x58] sm:$0xff] }
 0x6cf   :  { %v5879_v18 = vld [vmem:[%s12546_s11 + $0xd8] sm:$0xff] }
 0x6d3   :  { %v4922_v16 = vpop.f32.mrf.mxu2  ;;  %v5064_v26 = vpop.f32.mrf.mxu1 }
 0x6d4   :  { %v4923_v42 = vadd.f32 %v11845_v63, %v4922_v16  ;;  %5028 = vmatmul.f32.gmra.mxu0 %v4831_v25 }
 0x6d6   :  { %v4987_v31 = vpop.f32.mrf.mxu0 }
 0x6d7   :  { %v4988_v8 = vadd.f32 %v4987_v31, %v4923_v42 }
 0x6d9   :  { %v5053_v13 = vadd.f32 %v5052_v11, %v4988_v8 }
 0x6db   :  { %v4925_v7 = vpop.f32.mrf.mxu2  ;;  %v5100_v30 = vadd.f32 %v5053_v13, %v12745_v32  ;;  %v5067_v37 = vpop.f32.mrf.mxu1 }
 0x6dc   :  { %v4926_v61 = vadd.f32 %v11845_v63, %v4925_v7  ;;  %5031 = vmatmul.f32.gmra.mxu0 %v4832_v45 }
 0x6dd   :  { %v5116_v1 = vmax.f32 %v5100_v30, 0.0  ;;  %v5881_v30 = vld [vmem:[%s12546_s11 + $0xe8] sm:$0xff] }
 0x6de   :  { %v4990_v38 = vpop.f32.mrf.mxu0  ;;  %5991 = vmatpush.msra.mxu2 %v5881_v30 }
 0x6df   :  { %v5148_v56 = vrot.slane %v5116_v1, 7  ;;  %v4991_v59 = vadd.f32 %v4990_v38, %v4926_v61  ;;  %v12750_v61 = vld [vmem:[#allocation21_spill] sm:$0xff] }
 0x6e0   :  { %v12751_v51 = vmax.f32 %v12750_v61, 0.0 }
 0x6e1   :  { %v5180_v39 = vsel %vm126_vm3, 0.0, %v5148_v56  ;;  %v5196_v50 = vsel %vm126_vm3, %v5148_v56, 0.0  ;;  %v5056_v24 = vadd.f32 %v5055_v46, %v4991_v59  ;;  %v5864_v56 = vld [vmem:[%s12546_s11 + $0x60] sm:$0xff] }
 0x6e2   :  { %5214 = vst.msk [vmem:[#allocation3 + $0x10] sm:$0xff] %vm159_vm1, %v5180_v39  ;;  %v5880_v59 = vld [vmem:[%s12546_s11 + $0xe0] sm:$0xff]  ;;  %5927 = vmatpush.msrb.mxu3 %v5864_v56 }
 0x6e3   :  { %5215 = vst.msk [vmem:[#allocation3 + $0x18] sm:$0x3] %vm161_vm2, %v5196_v50  ;;  %v5101_v34 = vadd.f32 %v5056_v24, %v12747_v36  ;;  %5992 = vmatpush.msra.mxu2 %v5880_v59  ;;  %v11964_v55 = vpop.f32.mrf.mxu1 }
 0x6e4   :  { %5928 = vmatpush.msrb.mxu3 %v5863_v40 }
 0x6e5   :  { %v4928_v27 = vpop.f32.mrf.mxu2  ;;  %v5117_v60 = vmax.f32 %v5101_v34, 0.0  ;;  %5993 = vmatpush.msra.mxu2 %v5879_v18 }
 0x6e6   :  { %v4929_v14 = vadd.f32 %v11845_v63, %v4928_v27 }
 0x6e7   :  { %v5149_v19 = vrot.slane %v5117_v60, 7 }
 0x6e8   :  { %v4993_v17 = vpop.f32.mrf.mxu0 }
 0x6e9   :  { %v4994_v11 = vadd.f32 %v4993_v17, %v4929_v14  ;;  %v5181_v41 = vsel %vm126_vm3, 0.0, %v5149_v19  ;;  %v5197_v23 = vsel %vm126_vm3, %v5149_v19, 0.0  ;;  %v5254_v54 = vld [vmem:[#allocation3 + $0x10] sm:$0xff] }
 0x6ea   :  { %5216 = vst.msk [vmem:[#allocation3 + $0x20] sm:$0xff] %vm159_vm1, %v5181_v41  ;;  %v5255_v2 = vld [vmem:[#allocation3 + $0x18] sm:$0x3]  ;;  %v5375_v9 = vrot.slane %v5254_v54, 2  ;;  %v5327_v31 = vrot.slane %v5254_v54, 1 }
 0x6eb   :  { %v5059_v47 = vadd.f32 %v5058_v49, %v4994_v11  ;;  %5217 = vst.msk [vmem:[#allocation3 + $0x28] sm:$0x3] %vm161_vm2, %v5197_v23  ;;  %v5376_v29 = vrot.slane %v5255_v2, 2  ;;  %v5328_v52 = vrot.slane %v5255_v2, 1  ;;  %v12752_v23 = vld [vmem:[#allocation22_spill] sm:$0xff] }
 0x6ed   :  { %v5102_v46 = vadd.f32 %v5059_v47, %v12749_v57  ;;  %v4931_v4 = vpop.f32.mrf.mxu2  ;;  %v5377_v21 = vsel %vm322_vm5, %v5375_v9, %v5376_v29 }
 0x6ee   :  { %v4932_v62 = vadd.f32 %v11845_v63, %v4931_v4  ;;  %v7493_v16 = vpack.i.bf16 %v5377_v21, %v5326_v20 }
 0x6ef   :  { %v5118_v3 = vmax.f32 %v5102_v46, 0.0 }
 0x6f0   :  { %v4996_v25 = vpop.f32.mrf.mxu0  ;;  %7494 = vrot.lane.b32.xlu0 %v7493_v16, %s7770_s26 }
 0x6f1   :  { %v5150_v43 = vrot.slane %v5118_v3, 7  ;;  %v4997_v42 = vadd.f32 %v4996_v25, %v4932_v62  ;;  %v11903_v6 = vld [vmem:[#allocation3 + $0x20] sm:$0xff] }
 0x6f2   :  { %v7498_v48 = vpack.i.bf16 %v11903_v6, %v5374_v22  ;;  %v5257_v13 = vld [vmem:[#allocation3 + $0x28] sm:$0x3]  ;;  %v5378_v7 = vrot.slane %v11903_v6, 2  ;;  %v5330_v53 = vrot.slane %v11903_v6, 1 }
 0x6f3   :  { %v5182_v8 = vsel %vm126_vm3, 0.0, %v5150_v43  ;;  %v5198_v44 = vsel %vm126_vm3, %v5150_v43, 0.0  ;;  %v5062_v49 = vadd.f32 %v5061_v58, %v4997_v42  ;;  %v5379_v45 = vrot.slane %v5257_v13, 2 }
 0x6f4   :  { %5218 = vst.msk [vmem:[#allocation3 + $0x30] sm:$0xff] %vm159_vm1, %v5182_v8  ;;  %v5331_v32 = vrot.slane %v5257_v13, 1  ;;  %7499 = vrot.lane.b32.xlu1 %v7498_v48, %s7771_s22  ;;  %v11930_v58 = vsel %vm273_vm4, %v5327_v31, %v5328_v52  ;;  %v12754_v52 = vld [vmem:[#allocation16_spill] sm:$0xff] }
 0x6f5   :  { %5219 = vst.msk [vmem:[#allocation3 + $0x38] sm:$0x3] %vm161_vm2, %v5198_v44  ;;  %v5103_v1 = vadd.f32 %v5062_v49, %v12751_v51  ;;  %v4934_v38 = vpop.f32.mrf.mxu2  ;;  %v5380_v50 = vsel %vm322_vm5, %v5378_v7, %v5379_v45  ;;  %v12755_v8 = vmax.f32 %v12754_v52, 0.0  ;;  %v5862_v7 = vld [vmem:[%s12546_s11 + $0x50] sm:$0xff] }
 0x6f6   :  { %v4935_v39 = vadd.f32 %v11845_v63, %v4934_v38  ;;  %v11927_v24 = vsel %vm273_vm4, %v5330_v53, %v5331_v32  ;;  %6234 = vmatmul.msk.f32.vlgmr.msra.gmra.mxu0 %vm159_vm1, %v5380_v50  ;;  %v7508_v27 = vpack.i.bf16 %v5380_v50, %v11930_v58  ;;  %v5878_v45 = vld [vmem:[%s12546_s11 + $0xd0] sm:$0xff]  ;;  %5929 = vmatpush.msrb.mxu3 %v5862_v7  ;;  %v5073_v38 = vpop.f32.mrf.mxu1 }
 0x6f7   :  { %v5119_v36 = vmax.f32 %v5103_v1, 0.0  ;;  %v7503_v34 = vpack.i.bf16 %v11927_v24, %v5254_v54  ;;  %v12753_v54 = vmax.f32 %v12752_v23, 0.0  ;;  %5994 = vmatpush.msra.mxu2 %v5878_v45  ;;  %v5859_v45 = vld [vmem:[%s12546_s11 + $0x38] sm:$0xff] }
 0x6f8   :  { %v4999_v0 = vpop.f32.mrf.mxu0  ;;  %7509 = vrot.lane.b32.xlu0 %v7508_v27, %s7770_s26 }
 0x6f9   :  { %v5151_v5 = vrot.slane %v5119_v36, 7  ;;  %v5000_v15 = vadd.f32 %v4999_v0, %v4935_v39  ;;  %7504 = vrot.lane.b32.xlu2 %v7503_v34, %s7772_s0 }
 0x6fb   :  { %v5183_v60 = vsel %vm126_vm3, 0.0, %v5151_v5  ;;  %v5199_v14 = vsel %vm126_vm3, %v5151_v5, 0.0  ;;  %v5065_v19 = vadd.f32 %v5064_v26, %v5000_v15  ;;  %v11939_v17 = vld [vmem:[#allocation3 + $0x30] sm:$0xff]  ;;  %v5861_v15 = vld [vmem:[%s12546_s11 + $0x48] sm:$0xff] }
 0x6fc   :  { %5220 = vst.msk [vmem:[#allocation3 + $0x40] sm:$0xff] %vm159_vm1, %v5183_v60  ;;  %v7513_v33 = vpack.i.bf16 %v11939_v17, %v5377_v21  ;;  %v5259_v35 = vld [vmem:[#allocation3 + $0x38] sm:$0x3]  ;;  %v5381_v11 = vrot.slane %v11939_v17, 2  ;;  %v5333_v41 = vrot.slane %v11939_v17, 1  ;;  %v5877_v60 = vld [vmem:[%s12546_s11 + $0xc8] sm:$0xff]  ;;  %5930 = vmatpush.msrb.mxu3 %v5861_v15 }
 0x6fd   :  { %5221 = vst.msk [vmem:[#allocation3 + $0x48] sm:$0x3] %vm161_vm2, %v5199_v14  ;;  %v5104_v47 = vadd.f32 %v5065_v19, %v12753_v54  ;;  %v4937_v2 = vpop.f32.mrf.mxu2  ;;  %v5334_v9 = vrot.slane %v5259_v35, 1  ;;  %v5382_v20 = vrot.slane %v5259_v35, 2  ;;  %5995 = vmatpush.msra.mxu2 %v5877_v60  ;;  %v12760_v60 = vld [vmem:[#allocation8_spill] sm:$0xff] }
 0x6fe   :  { %v4938_v29 = vadd.f32 %v11845_v63, %v4937_v2  ;;  %7514 = vrot.lane.b32.xlu1 %v7513_v33, %s7771_s22  ;;  %v5076_v40 = vpop.f32.mrf.mxu1 }
 0x6ff   :  { %v5120_v26 = vmax.f32 %v5104_v47, 0.0  ;;  %v5383_v10 = vsel %vm322_vm5, %v5381_v11, %v5382_v20  ;;  %v11958_v57 = vsel %vm273_vm4, %v5333_v41, %v5334_v9 }
 0x700   :  { %6235 = vmatmul.msk.f32.gmra.mxu0 %vm159_vm1, %v5383_v10  ;;  %v7523_v46 = vpack.i.bf16 %v5383_v10, %v11927_v24  ;;  %v5002_v4 = vpop.f32.mrf.mxu0  ;;  %v7518_v12 = vpack.i.bf16 %v11958_v57, %v11903_v6 }
 0x701   :  { %v5152_v62 = vrot.slane %v5120_v26, 7  ;;  %v5003_v21 = vadd.f32 %v5002_v4, %v4938_v29 }
 0x702   :  { %7519 = vrot.lane.b32.xlu2 %v7518_v12, %s7772_s0  ;;  %7524 = vrot.lane.b32.xlu0 %v7523_v46, %s7770_s26  ;;  %v5860_v12 = vld [vmem:[%s12546_s11 + $0x40] sm:$0xff] }
 0x703   :  { %v5184_v3 = vsel %vm126_vm3, 0.0, %v5152_v62  ;;  %v5200_v16 = vsel %vm126_vm3, %v5152_v62, 0.0  ;;  %v5068_v25 = vadd.f32 %v5067_v37, %v5003_v21  ;;  %v11970_v22 = vld [vmem:[#allocation3 + $0x40] sm:$0xff]  ;;  %5931 = vmatpush.msrb.mxu3 %v5860_v12 }
 0x704   :  { %5222 = vst.msk [vmem:[#allocation3 + $0x50] sm:$0xff] %vm159_vm1, %v5184_v3  ;;  %v7528_v43 = vpack.i.bf16 %v11970_v22, %v5380_v50  ;;  %v5261_v42 = vld [vmem:[#allocation3 + $0x48] sm:$0x3]  ;;  %v5384_v6 = vrot.slane %v11970_v22, 2  ;;  %v5336_v31 = vrot.slane %v11970_v22, 1 }
 0x705   :  { %5223 = vst.msk [vmem:[#allocation3 + $0x58] sm:$0x3] %vm161_vm2, %v5200_v16  ;;  %v5105_v44 = vadd.f32 %v5068_v25, %v12755_v8  ;;  %v5337_v49 = vrot.slane %v5261_v42, 1  ;;  %v5385_v48 = vrot.slane %v5261_v42, 2  ;;  %5932 = vmatpush.msrb.mxu3 %v5859_v45 }
 0x706   :  { %v4940_v13 = vpop.f32.mrf.mxu2  ;;  %7529 = vrot.lane.b32.xlu1 %v7528_v43, %s7771_s22 }
 0x707   :  { %v5121_v53 = vmax.f32 %v5105_v44, 0.0  ;;  %v5386_v32 = vsel %vm322_vm5, %v5384_v6, %v5385_v48  ;;  %v11988_v30 = vsel %vm273_vm4, %v5336_v31, %v5337_v49  ;;  %v4941_v33 = vadd.f32 %v11845_v63, %v4940_v13  ;;  %v12758_v48 = vld [vmem:[#allocation17_spill] sm:$0xff] }
 0x708   :  { %v7538_v61 = vpack.i.bf16 %v5386_v32, %v11958_v57  ;;  %6236 = vmatmul.msk.f32.gmra.mxu0 %vm159_vm1, %v5386_v32  ;;  %v7533_v51 = vpack.i.bf16 %v11988_v30, %v11939_v17  ;;  %v12759_v13 = vmax.f32 %v12758_v48, 0.0 }
 0x709   :  { %v5153_v1 = vrot.slane %v5121_v53, 7  ;;  %v5875_v53 = vld [vmem:[%s12546_s11 + $0xb8] sm:$0xff] }
 0x70a   :  { %7534 = vrot.lane.b32.xlu2 %v7533_v51, %s7772_s0  ;;  %7539 = vrot.lane.b32.xlu0 %v7538_v61, %s7770_s26 }
 0x70b   :  { %v11996_v56 = vld [vmem:[#allocation3 + $0x50] sm:$0xff]  ;;  %v5185_v59 = vsel %vm126_vm3, 0.0, %v5153_v1  ;;  %v5201_v39 = vsel %vm126_vm3, %v5153_v1, 0.0 }
 0x70c   :  { %v7543_v50 = vpack.i.bf16 %v11996_v56, %v5383_v10  ;;  %5224 = vst.msk [vmem:[#allocation3 + $0x60] sm:$0xff] %vm159_vm1, %v5185_v59  ;;  %v5263_v37 = vld [vmem:[#allocation3 + $0x58] sm:$0x3]  ;;  %v5387_v36 = vrot.slane %v11996_v56, 2  ;;  %v5339_v34 = vrot.slane %v11996_v56, 1  ;;  %v12756_v10 = vld [vmem:[#allocation7_spill] sm:$0xff] }
 0x70d   :  { %5225 = vst.msk [vmem:[#allocation3 + $0x68] sm:$0x3] %vm161_vm2, %v5201_v39  ;;  %v5340_v27 = vrot.slane %v5263_v37, 1  ;;  %v5388_v0 = vrot.slane %v5263_v37, 2  ;;  %v12757_v46 = vmax.f32 %v12756_v10, 0.0 }
 0x70e   :  { %v4943_v5 = vpop.f32.mrf.mxu2  ;;  %7544 = vrot.lane.b32.xlu1 %v7543_v50, %s7771_s22 }
 0x70f   :  { %v12013_v14 = vsel %vm322_vm5, %v5387_v36, %v5388_v0  ;;  %v12016_v19 = vsel %vm273_vm4, %v5339_v34, %v5340_v27  ;;  %v4944_v16 = vadd.f32 %v11845_v63, %v4943_v5 }
 0x710   :  { %v7553_v35 = vpack.i.bf16 %v12013_v14, %v11988_v30  ;;  %6237 = vmatmul.msk.f32.gmra.mxu0 %vm159_vm1, %v12013_v14  ;;  %v7548_v11 = vpack.i.bf16 %v12016_v19, %v11970_v22 }
 0x711   :  { %v5005_v41 = vpop.f32.mrf.mxu0 }
 0x712   :  { %v5006_v23 = vadd.f32 %v5005_v41, %v4941_v33  ;;  %7549 = vrot.lane.b32.xlu2 %v7548_v11, %s7772_s0  ;;  %7554 = vrot.lane.b32.xlu0 %v7553_v35, %s7770_s26  ;;  %v12761_v33 = vmax.f32 %v12760_v60, 0.0 }
 0x713   :  { %v12027_v54 = vld [vmem:[#allocation3 + $0x60] sm:$0xff] }
 0x714   :  { %v7558_v47 = vpack.i.bf16 %v12027_v54, %v5386_v32  ;;  %v5071_v2 = vadd.f32 %v11964_v55, %v5006_v23  ;;  %v5265_v9 = vld [vmem:[#allocation3 + $0x68] sm:$0x3]  ;;  %v5390_v20 = vrot.slane %v12027_v54, 2  ;;  %v5342_v29 = vrot.slane %v12027_v54, 1  ;;  %v5876_v55 = vld [vmem:[%s12546_s11 + $0xc0] sm:$0xff]  ;;  %v5079_v32 = vpop.f32.mrf.mxu1  ;;  %v5858_v23 = vld [vmem:[%s12546_s11 + $0x30] sm:$0xff] }
 0x715   :  { %v5343_v18 = vrot.slane %v5265_v9, 1  ;;  %v5391_v26 = vrot.slane %v5265_v9, 2  ;;  %5996 = vmatpush.msra.mxu2 %v5876_v55  ;;  %5933 = vmatpush.msrb.mxu3 %v5858_v23 }
 0x716   :  { %v5106_v4 = vadd.f32 %v5071_v2, %v12757_v46  ;;  %7559 = vrot.lane.b32.xlu1 %v7558_v47, %s7771_s22 }
 0x717   :  { %v4946_v62 = vpop.f32.mrf.mxu2  ;;  %v12043_v21 = vsel %vm322_vm5, %v5390_v20, %v5391_v26  ;;  %v12046_v3 = vsel %vm273_vm4, %v5342_v29, %v5343_v18  ;;  %5997 = vmatpush.msra.mxu2 %v5875_v53 }
 0x718   :  { %v5122_v25 = vmax.f32 %v5106_v4, 0.0  ;;  %v7568_v43 = vpack.i.bf16 %v12043_v21, %v12016_v19  ;;  %6238 = vmatmul.msk.f32.gmra.mxu0 %vm159_vm1, %v12043_v21  ;;  %v7563_v42 = vpack.i.bf16 %v12046_v3, %v11996_v56  ;;  %v4947_v51 = vadd.f32 %v11845_v63, %v4946_v62 }
 0x719   :  { %v5008_v6 = vpop.f32.mrf.mxu0 }
 0x71a   :  { %v5154_v31 = vrot.slane %v5122_v25, 7  ;;  %v5009_v52 = vadd.f32 %v5008_v6, %v4944_v16  ;;  %7564 = vrot.lane.b32.xlu2 %v7563_v42, %s7772_s0  ;;  %7569 = vrot.lane.b32.xlu0 %v7568_v43, %s7770_s26  ;;  %v5271_v25 = vld [vmem:[#allocation3 + $0x98] sm:$0x3]  ;;  %v5270_v43 = vld [vmem:[#allocation3 + $0x90] sm:$0xff] }
 0x71b   :  { %v5456_v45 = vrot.slane %v5270_v43, 1 }
 0x71c   :  { %v5186_v8 = vsel %vm126_vm3, 0.0, %v5154_v31  ;;  %v5202_v44 = vsel %vm126_vm3, %v5154_v31, 0.0  ;;  %v5074_v49 = vadd.f32 %v5073_v38, %v5009_v52 }
 0x71d   :  { %5226 = vst.msk [vmem:[#allocation3 + $0x70] sm:$0xff] %vm159_vm1, %v5186_v8  ;;  %v12762_v8 = vld [vmem:[#allocation20_spill] sm:$0xff] }
 0x71e   :  { %5227 = vst.msk [vmem:[#allocation3 + $0x78] sm:$0x3] %vm161_vm2, %v5202_v44  ;;  %v5107_v7 = vadd.f32 %v5074_v49, %v12759_v13  ;;  %v12763_v44 = vmax.f32 %v12762_v8, 0.0 }
 0x71f   :  { %v4949_v61 = vpop.f32.mrf.mxu2 }
 0x720   :  { %v5123_v1 = vmax.f32 %v5107_v7, 0.0  ;;  %v4950_v2 = vadd.f32 %v11845_v63, %v4949_v61  ;;  %v5857_v7 = vld [vmem:[%s12546_s11 + $0x28] sm:$0xff]  ;;  %v12123_v61 = vld [vmem:[#allocation3 + $0xa0] sm:$0xff] }
 0x721   :  { %v5011_v38 = vpop.f32.mrf.mxu0  ;;  %5934 = vmatpush.msrb.mxu3 %v5857_v7  ;;  %v5348_v60 = vrot.slane %v12123_v61, 1 }
 0x722   :  { %v5155_v59 = vrot.slane %v5123_v1, 7  ;;  %v5012_v39 = vadd.f32 %v5011_v38, %v4947_v51  ;;  %v5273_v51 = vld [vmem:[#allocation3 + $0xa8] sm:$0x3] }
 0x724   :  { %v5187_v50 = vsel %vm126_vm3, 0.0, %v5155_v59  ;;  %v5203_v37 = vsel %vm126_vm3, %v5155_v59, 0.0  ;;  %v5077_v36 = vadd.f32 %v5076_v40, %v5012_v39  ;;  %v12072_v34 = vld [vmem:[#allocation3 + $0x70] sm:$0xff]  ;;  %v5082_v40 = vpop.f32.mrf.mxu1 }
 0x725   :  { %5228 = vst.msk [vmem:[#allocation3 + $0x80] sm:$0xff] %vm159_vm1, %v5187_v50  ;;  %v7573_v27 = vpack.i.bf16 %v12072_v34, %v12013_v14  ;;  %v5267_v0 = vld [vmem:[#allocation3 + $0x78] sm:$0x3]  ;;  %v5393_v5 = vrot.slane %v12072_v34, 2  ;;  %v5345_v15 = vrot.slane %v12072_v34, 1  ;;  %v5874_v14 = vld [vmem:[%s12546_s11 + $0xb0] sm:$0xff] }
 0x726   :  { %5229 = vst.msk [vmem:[#allocation3 + $0x88] sm:$0x3] %vm161_vm2, %v5203_v37  ;;  %v5108_v35 = vadd.f32 %v5077_v36, %v12761_v33  ;;  %v5346_v11 = vrot.slane %v5267_v0, 1  ;;  %v5394_v41 = vrot.slane %v5267_v0, 2  ;;  %5998 = vmatpush.msra.mxu2 %v5874_v14  ;;  %v5463_v0 = vrot.slane %v5271_v25, 2 }
 0x727   :  { %v4952_v47 = vpop.f32.mrf.mxu2  ;;  %7574 = vrot.lane.b32.xlu1 %v7573_v27, %s7771_s22  ;;  %v5462_v27 = vrot.slane %v5270_v43, 2  ;;  %v5349_v33 = vrot.slane %v5273_v51, 1 }
 0x728   :  { %v5124_v9 = vmax.f32 %v5108_v35, 0.0  ;;  %v12091_v20 = vsel %vm322_vm5, %v5393_v5, %v5394_v41  ;;  %v12094_v29 = vsel %vm273_vm4, %v5345_v15, %v5346_v11  ;;  %v4953_v1 = vadd.f32 %v11845_v63, %v4952_v47 }
 0x729   :  { %v7583_v18 = vpack.i.bf16 %v12091_v20, %v12046_v3  ;;  %6239 = vmatmul.msk.f32.gmra.mxu0 %vm159_vm1, %v12091_v20  ;;  %v5014_v26 = vpop.f32.mrf.mxu0  ;;  %v7578_v10 = vpack.i.bf16 %v12094_v29, %v12027_v54 }
 0x72a   :  { %v5156_v46 = vrot.slane %v5124_v9, 7  ;;  %v5015_v4 = vadd.f32 %v5014_v26, %v4950_v2  ;;  %v7593_v2 = vpack.i.bf16 %v5270_v43, %v12091_v20  ;;  %v5464_v9 = vsel %vm322_vm5, %v5462_v27, %v5463_v0  ;;  %v5856_v20 = vld [vmem:[%s12546_s11 + $0x20] sm:$0xff] }
 0x72b   :  { %7579 = vrot.lane.b32.xlu2 %v7578_v10, %s7772_s0  ;;  %7584 = vrot.lane.b32.xlu0 %v7583_v18, %s7770_s26  ;;  %v5396_v10 = vrot.slane %v12123_v61, 2 }
 0x72c   :  { %v5188_v12 = vsel %vm126_vm3, 0.0, %v5156_v46  ;;  %v5204_v55 = vsel %vm126_vm3, %v5156_v46, 0.0  ;;  %v5080_v62 = vadd.f32 %v5079_v32, %v5015_v4  ;;  %v12106_v16 = vld [vmem:[#allocation3 + $0x80] sm:$0xff]  ;;  %v5457_v32 = vrot.slane %v5271_v25, 1  ;;  %v5085_v35 = vpop.f32.mrf.mxu1  ;;  %v12764_v46 = vld [vmem:[#allocation9_spill] sm:$0xff]  ;;  %5935 = vmatpush.msrb.mxu3 %v5856_v20 }
 0x72d   :  { %5234 = vst.msk [vmem:[#allocation3 + $0xb0] sm:$0xff] %vm159_vm1, %v5188_v12  ;;  %v7588_v42 = vpack.i.bf16 %v12106_v16, %v12043_v21  ;;  %v5269_v6 = vld [vmem:[#allocation3 + $0x88] sm:$0x3]  ;;  %v5446_v31 = vrot.slane %v12106_v16, 2  ;;  %v5424_v52 = vrot.slane %v12106_v16, 1  ;;  %v12765_v4 = vmax.f32 %v12764_v46, 0.0 }
 0x72e   :  { %5235 = vst.msk [vmem:[#allocation3 + $0xb8] sm:$0x3] %vm161_vm2, %v5204_v55  ;;  %v5109_v49 = vadd.f32 %v5080_v62, %v12763_v44  ;;  %v5425_v48 = vrot.slane %v5269_v6, 1  ;;  %v5447_v13 = vrot.slane %v5269_v6, 2  ;;  %v5873_v21 = vld [vmem:[%s12546_s11 + $0xa8] sm:$0xff]  ;;  %v5458_v14 = vsel %vm273_vm4, %v5456_v45, %v5457_v32  ;;  %v5872_v25 = vld [vmem:[%s12546_s11 + $0xa0] sm:$0xff] }
 0x72f   :  { %v4955_v53 = vpop.f32.mrf.mxu2  ;;  %7589 = vrot.lane.b32.xlu1 %v7588_v42, %s7771_s22  ;;  %5999 = vmatpush.msra.mxu2 %v5873_v21  ;;  %v5350_v12 = vsel %vm273_vm4, %v5348_v60, %v5349_v33  ;;  %v5397_v62 = vrot.slane %v5273_v51, 2  ;;  %v7603_v8 = vpack.i.bf16 %v5458_v14, %v12106_v16  ;;  %v5871_v60 = vld [vmem:[%s12546_s11 + $0x98] sm:$0xff] }
 0x730   :  { %v5125_v38 = vmax.f32 %v5109_v49, 0.0  ;;  %v5448_v59 = vsel %vm322_vm5, %v5446_v31, %v5447_v13  ;;  %v12128_v39 = vsel %vm273_vm4, %v5424_v52, %v5425_v48  ;;  %v4956_v42 = vadd.f32 %v11845_v63, %v4955_v53 }
 0x731   :  { %v7608_v50 = vpack.i.bf16 %v5448_v59, %v12094_v29  ;;  %6240 = vmatmul.msk.f32.gmra.mxu0 %vm159_vm1, %v5448_v59  ;;  %v5017_v37 = vpop.f32.mrf.mxu0  ;;  %v7598_v36 = vpack.i.bf16 %v12128_v39, %v12072_v34  ;;  %6000 = vmatpush.msra.mxu2 %v5872_v25  ;;  %v5398_v13 = vsel %vm322_vm5, %v5396_v10, %v5397_v62 }
 0x732   :  { %v5157_v5 = vrot.slane %v5125_v38, 7  ;;  %v5018_v15 = vadd.f32 %v5017_v37, %v4953_v1  ;;  %v12766_v37 = vld [vmem:[#allocation14_spill] sm:$0xff] }
 0x733   :  { %7599 = vrot.lane.b32.xlu2 %v7598_v36, %s7772_s0  ;;  %7609 = vrot.lane.b32.xlu0 %v7608_v50, %s7770_s26  ;;  %v12767_v36 = vmax.f32 %v12766_v37, 0.0 }
 0x734   :  { %v5189_v11 = vsel %vm126_vm3, 0.0, %v5157_v5  ;;  %v5205_v41 = vsel %vm126_vm3, %v5157_v5, 0.0  ;;  %v5083_v23 = vadd.f32 %v5082_v40, %v5018_v15  ;;  %v12140_v47 = vld [vmem:[#allocation3 + $0xb0] sm:$0xff]  ;;  %v5088_v16 = vpop.f32.mrf.mxu1  ;;  %v5855_v15 = vld [vmem:[%s12546_s11 + $0x18] sm:$0xff]  ;;  %6001 = vmatpush.msra.mxu2 %v5871_v60 }
 0x735   :  { %5236 = vst.msk [vmem:[#allocation3 + $0xc0] sm:$0xff] %vm159_vm1, %v5189_v11  ;;  %v5275_v18 = vld [vmem:[#allocation3 + $0xb8] sm:$0x3]  ;;  %v5399_v26 = vrot.slane %v12140_v47, 2  ;;  %v5351_v7 = vrot.slane %v12140_v47, 1  ;;  %5936 = vmatpush.msrb.mxu3 %v5855_v15  ;;  %v5868_v15 = vld [vmem:[%s12546_s11 + $0x80] sm:$0xff] }
 0x736   :  { %5237 = vst.msk [vmem:[#allocation3 + $0xc8] sm:$0x3] %vm161_vm2, %v5205_v41  ;;  %v5110_v40 = vadd.f32 %v5083_v23, %v12765_v4  ;;  %v5400_v55 = vrot.slane %v5275_v18, 2  ;;  %v5352_v51 = vrot.slane %v5275_v18, 1 }
 0x737   :  { %v4958_v43 = vpop.f32.mrf.mxu2  ;;  %7594 = vrot.lane.b32.xlu1 %v7593_v2, %s7771_s22 }
 0x738   :  { %v5126_v6 = vmax.f32 %v5110_v40, 0.0  ;;  %v5401_v31 = vsel %vm322_vm5, %v5399_v26, %v5400_v55  ;;  %v4959_v33 = vadd.f32 %v11845_v63, %v4958_v43  ;;  %v12189_v41 = vsel %vm273_vm4, %v5351_v7, %v5352_v51  ;;  %v12768_v43 = vld [vmem:[#allocation15_spill] sm:$0xff] }
 0x739   :  { %6241 = vmatmul.msk.f32.gmra.mxu0 %vm159_vm1, %v5464_v9  ;;  %v5020_v52 = vpop.f32.mrf.mxu0  ;;  %v7613_v44 = vpack.i.bf16 %v5401_v31, %v5350_v12 }
 0x73a   :  { %v5158_v49 = vrot.slane %v5126_v6, 7  ;;  %v5021_v48 = vadd.f32 %v5020_v52, %v4956_v42  ;;  %v12769_v42 = vmax.f32 %v12768_v43, 0.0 }
 0x73b   :  { %7604 = vrot.lane.b32.xlu2 %v7603_v8, %s7772_s0  ;;  %7614 = vrot.lane.b32.xlu0 %v7613_v44, %s7770_s26  ;;  %v5854_v44 = vld [vmem:[%s12546_s11 + $0x10] sm:$0xff] }
 0x73c   :  { %v5190_v21 = vsel %vm126_vm3, 0.0, %v5158_v49  ;;  %v5206_v45 = vsel %vm126_vm3, %v5158_v49, 0.0  ;;  %v5086_v53 = vadd.f32 %v5085_v35, %v5021_v48  ;;  %v12168_v32 = vld [vmem:[#allocation3 + $0xc0] sm:$0xff]  ;;  %v5091_v49 = vpop.f32.mrf.mxu1  ;;  %5937 = vmatpush.msrb.mxu3 %v5854_v44 }
 0x73d   :  { %5238 = vst.msk [vmem:[#allocation3 + $0xd0] sm:$0xff] %vm159_vm1, %v5190_v21  ;;  %v7618_v1 = vpack.i.bf16 %v12168_v32, %v5398_v13  ;;  %v5277_v38 = vld [vmem:[#allocation3 + $0xc8] sm:$0x3]  ;;  %v5402_v59 = vrot.slane %v12168_v32, 2  ;;  %v5354_v50 = vrot.slane %v12168_v32, 1 }
 0x73e   :  { %5239 = vst.msk [vmem:[#allocation3 + $0xd8] sm:$0x3] %vm161_vm2, %v5206_v45  ;;  %v5111_v27 = vadd.f32 %v5086_v53, %v12767_v36  ;;  %v5355_v0 = vrot.slane %v5277_v38, 1  ;;  %v5403_v5 = vrot.slane %v5277_v38, 2  ;;  %v5853_v38 = vld [vmem:[%s12546_s11 + $0x8] sm:$0xff] }
 0x73f   :  { %7619 = vrot.lane.b32.xlu1 %v7618_v1, %s7771_s22  ;;  %v4961_v14 = vpop.f32.mrf.mxu2  ;;  %5938 = vmatpush.msrb.mxu3 %v5853_v38 }
 0x740   :  { %v5127_v35 = vmax.f32 %v5111_v27, 0.0  ;;  %v12186_v11 = vsel %vm322_vm5, %v5402_v59, %v5403_v5  ;;  %v12192_v23 = vsel %vm273_vm4, %v5354_v50, %v5355_v0  ;;  %v4962_v48 = vadd.f32 %v11845_v63, %v4961_v14  ;;  %v5869_v59 = vld [vmem:[%s12546_s11 + $0x88] sm:$0xff]  ;;  %v5852_v5 = vld [vmem:[%s12546_s11] sm:$0xff] }
 0x741   :  { %v7628_v2 = vpack.i.bf16 %v12186_v11, %v12189_v41  ;;  %6242 = vmatmul.msk.f32.gmra.mxu0 %vm159_vm1, %v12186_v11  ;;  %v5023_v9 = vpop.f32.mrf.mxu0  ;;  %v7623_v18 = vpack.i.bf16 %v12192_v23, %v12140_v47  ;;  %5939 = vmatpush.msrb.mxu3 %v5852_v5 }
 0x742   :  { %v5159_v26 = vrot.slane %v5127_v35, 7  ;;  %v5024_v10 = vadd.f32 %v5023_v9, %v4959_v33 }
 0x743   :  { %7624 = vrot.lane.b32.xlu2 %v7623_v18, %s7772_s0  ;;  %7629 = vrot.lane.b32.xlu0 %v7628_v2, %s7770_s26  ;;  %v12770_v2 = vld [vmem:[#allocation18_spill] sm:$0xff] }
 0x744   :  { %v5191_v46 = vsel %vm126_vm3, 0.0, %v5159_v26  ;;  %v5207_v4 = vsel %vm126_vm3, %v5159_v26, 0.0  ;;  %v5089_v40 = vadd.f32 %v5088_v16, %v5024_v10  ;;  %v12204_v12 = vld [vmem:[#allocation3 + $0xd0] sm:$0xff]  ;;  %v12771_v9 = vmax.f32 %v12770_v2, 0.0 }
 0x745   :  { %5240 = vst.msk [vmem:[#allocation3 + $0xe0] sm:$0xff] %vm159_vm1, %v5191_v46  ;;  %v7633_v55 = vpack.i.bf16 %v12204_v12, %v5401_v31  ;;  %v5279_v62 = vld [vmem:[#allocation3 + $0xd8] sm:$0x3]  ;;  %v5405_v20 = vrot.slane %v12204_v12, 2  ;;  %v5357_v25 = vrot.slane %v12204_v12, 1  ;;  %v5870_v31 = vld [vmem:[%s12546_s11 + $0x90] sm:$0xff] }
 0x746   :  { %5241 = vst.msk [vmem:[#allocation3 + $0xe8] sm:$0x3] %vm161_vm2, %v5207_v4  ;;  %v5112_v6 = vadd.f32 %v5089_v40, %v12769_v42  ;;  %v5358_v52 = vrot.slane %v5279_v62, 1  ;;  %v5406_v8 = vrot.slane %v5279_v62, 2  ;;  %6002 = vmatpush.msra.mxu2 %v5870_v31 }
 0x747   :  { %7634 = vrot.lane.b32.xlu1 %v7633_v55, %s7771_s22  ;;  %v4964_v50 = vpop.f32.mrf.mxu2  ;;  %v5094_v55 = vpop.f32.mrf.mxu1 }
 0x748   :  { %v5128_v13 = vmax.f32 %v5112_v6, 0.0  ;;  %v5407_v7 = vsel %vm322_vm5, %v5405_v20, %v5406_v8  ;;  %v12223_v21 = vsel %vm273_vm4, %v5357_v25, %v5358_v52  ;;  %6003 = vmatpush.msra.mxu2 %v5869_v59 }
 0x749   :  { %v7643_v45 = vpack.i.bf16 %v5407_v7, %v12192_v23  ;;  %6243 = vmatmul.msk.f32.gmra.mxu0 %vm159_vm1, %v5407_v7  ;;  %v5026_v53 = vpop.f32.mrf.mxu0  ;;  %v7638_v51 = vpack.i.bf16 %v12223_v21, %v12168_v32 }
 0x74a   :  { %v5160_v16 = vrot.slane %v5128_v13, 7  ;;  %v5027_v1 = vadd.f32 %v5026_v53, %v4962_v48  ;;  %6004 = vmatpush.msra.mxu2 %v5868_v15  ;;  %v12772_v53 = vld [vmem:[#allocation19_spill] sm:$0xff] }
 0x74b   :  { %7639 = vrot.lane.b32.xlu2 %v7638_v51, %s7772_s0  ;;  %7644 = vrot.lane.b32.xlu0 %v7643_v45, %s7770_s26  ;;  %v12773_v51 = vmax.f32 %v12772_v53, 0.0 }
 0x74c   :  { %v12237_v37 = vld [vmem:[#allocation3 + $0xe0] sm:$0xff]  ;;  %v5192_v36 = vsel %vm126_vm3, 0.0, %v5160_v16  ;;  %v5208_v27 = vsel %vm126_vm3, %v5160_v16, 0.0  ;;  %v5092_v0 = vadd.f32 %v5091_v49, %v5027_v1 }
 0x74d   :  { %v7648_v60 = vpack.i.bf16 %v12237_v37, %v12186_v11  ;;  %5242 = vst.msk [vmem:[#allocation3 + $0xf0] sm:$0xff] %vm159_vm1, %v5192_v36  ;;  %v5281_v33 = vld [vmem:[#allocation3 + $0xe8] sm:$0x3]  ;;  %v5408_v35 = vrot.slane %v12237_v37, 2  ;;  %v5360_v14 = vrot.slane %v12237_v37, 1  ;;  %v4965_v11 = vadd.f32 %v11845_v63, %v4964_v50 }
 0x74e   :  { %5243 = vst.msk [vmem:[#allocation3 + $0xf8] sm:$0x3] %vm161_vm2, %v5208_v27  ;;  %v5113_v18 = vadd.f32 %v5092_v0, %v12771_v9  ;;  %v5361_v26 = vrot.slane %v5281_v33, 1  ;;  %v5409_v10 = vrot.slane %v5281_v33, 2 }
 0x74f   :  { %7649 = vrot.lane.b32.xlu1 %v7648_v60, %s7771_s22  ;;  %v4967_v49 = vpop.f32.mrf.mxu2  ;;  %v5097_v60 = vpop.f32.mrf.mxu1 }
 0x750   :  { %v5129_v46 = vmax.f32 %v5113_v18, 0.0  ;;  %v5410_v4 = vsel %vm322_vm5, %v5408_v35, %v5409_v10  ;;  %v12259_v40 = vsel %vm273_vm4, %v5360_v14, %v5361_v26 }
 0x751   :  { %v7658_v62 = vpack.i.bf16 %v5410_v4, %v12223_v21  ;;  %6244 = vmatmul.msk.f32.gmra.mxu0 %vm159_vm1, %v5410_v4  ;;  %v5029_v20 = vpop.f32.mrf.mxu0  ;;  %v7653_v25 = vpack.i.bf16 %v12259_v40, %v12204_v12 }
 0x752   :  { %v5161_v43 = vrot.slane %v5129_v46, 7  ;;  %v5030_v42 = vadd.f32 %v5029_v20, %v4965_v11  ;;  %v12774_v11 = vld [vmem:[#allocation12_spill] sm:$0xff] }
 0x753   :  { %7654 = vrot.lane.b32.xlu2 %v7653_v25, %s7772_s0  ;;  %7659 = vrot.lane.b32.xlu0 %v7658_v62, %s7770_s26  ;;  %v12278_v1 = vpop.permute.xlu2 %7504  ;;  %v12775_v46 = vmax.f32 %v12774_v11, 0.0 }
 0x754   :  { %v12267_v6 = vld [vmem:[#allocation3 + $0xf0] sm:$0xff]  ;;  %v5193_v52 = vsel %vm126_vm3, 0.0, %v5161_v43  ;;  %v5209_v8 = vsel %vm126_vm3, %v5161_v43, 0.0  ;;  %v5095_v44 = vadd.f32 %v5094_v55, %v5030_v42 }
 0x755   :  { %v7663_v31 = vpack.i.bf16 %v12267_v6, %v5407_v7  ;;  %5244 = vst.msk [vmem:[#allocation3 + $0x100] sm:$0xff] %vm159_vm1, %v5193_v52  ;;  %v5283_v48 = vld [vmem:[#allocation3 + $0xf8] sm:$0x3]  ;;  %v5411_v13 = vrot.slane %v12267_v6, 2  ;;  %v5363_v45 = vrot.slane %v12267_v6, 1  ;;  %v4968_v7 = vadd.f32 %v11845_v63, %v4967_v49 }
 0x756   :  { %5245 = vst.msk [vmem:[#allocation3 + $0x108] sm:$0x3] %vm161_vm2, %v5209_v8  ;;  %v5114_v16 = vadd.f32 %v5095_v44, %v12773_v51  ;;  %v5364_v38 = vrot.slane %v5283_v48, 1  ;;  %v5412_v59 = vrot.slane %v5283_v48, 2 }
 0x757   :  { %7664 = vrot.lane.b32.xlu1 %v7663_v31, %s7771_s22 }
 0x758   :  { %v5130_v50 = vmax.f32 %v5114_v16, 0.0  ;;  %v5413_v36 = vsel %vm322_vm5, %v5411_v13, %v5412_v59  ;;  %v12284_v27 = vsel %vm273_vm4, %v5363_v45, %v5364_v38 }
 0x759   :  { %v7673_v0 = vpack.i.bf16 %v5413_v36, %v12259_v40  ;;  %6245 = vmatmul.msk.f32.gmra.mxu0 %vm159_vm1, %v5413_v36  ;;  %v5032_v5 = vpop.f32.mrf.mxu0  ;;  %v7668_v15 = vpack.i.bf16 %v12284_v27, %v12237_v37 }
 0x75a   :  { %v5162_v33 = vrot.slane %v5130_v50, 7  ;;  %v5033_v35 = vadd.f32 %v5032_v5, %v4968_v7 }
 0x75b   :  { %7669 = vrot.lane.b32.xlu2 %v7668_v15, %s7772_s0  ;;  %7674 = vrot.lane.b32.xlu0 %v7673_v0, %s7770_s26  ;;  %v7507_v0 = vunpack.i.h.bf16 %v12278_v1 }
 0x75c   :  { %v12292_v63 = vld [vmem:[#allocation3 + $0x100] sm:$0xff]  ;;  %v5194_v14 = vsel %vm126_vm3, 0.0, %v5162_v33  ;;  %v5210_v2 = vsel %vm126_vm3, %v5162_v33, 0.0  ;;  %v5098_v9 = vadd.f32 %v5097_v60, %v5033_v35  ;;  %v12304_v42 = vpop.permute.xlu2 %7519 }
 0x75d   :  { %v7678_v18 = vpack.i.bf16 %v12292_v63, %v5410_v4  ;;  %5246 = vst.msk [vmem:[#allocation3 + $0x110] sm:$0xff] %vm159_vm1, %v5194_v14  ;;  %v5285_v26 = vld [vmem:[#allocation3 + $0x108] sm:$0x3]  ;;  %v5414_v10 = vrot.slane %v12292_v63, 2  ;;  %v5366_v25 = vrot.slane %v12292_v63, 1 }
 0x75e   :  { %5247 = vst.msk [vmem:[#allocation3 + $0x118] sm:$0x3] %vm161_vm2, %v5210_v2  ;;  %v5115_v55 = vadd.f32 %v5098_v9, %v12775_v46  ;;  %v5367_v62 = vrot.slane %v5285_v26, 1  ;;  %v5415_v20 = vrot.slane %v5285_v26, 2 }
 0x75f   :  { %7679 = vrot.lane.b32.xlu1 %v7678_v18, %s7771_s22 }
 0x760   :  { %v5131_v43 = vmax.f32 %v5115_v55, 0.0  ;;  %v5416_v4 = vsel %vm322_vm5, %v5414_v10, %v5415_v20  ;;  %v12308_v52 = vsel %vm273_vm4, %v5366_v25, %v5367_v62 }
 0x761   :  { %v7688_v8 = vpack.i.bf16 %v5416_v4, %v12284_v27  ;;  %6246 = vmatmul.msk.f32.gmra.mxu0 %vm159_vm1, %v5416_v4  ;;  %v7683_v44 = vpack.i.bf16 %v12308_v52, %v12267_v6 }
 0x762   :  { %v5163_v31 = vrot.slane %v5131_v43, 7  ;;  %v7495_v49 = vpop.permute.xlu0 %7494 }
 0x763   :  { %7684 = vrot.lane.b32.xlu2 %v7683_v44, %s7772_s0  ;;  %7689 = vrot.lane.b32.xlu0 %v7688_v8, %s7770_s26  ;;  %v7497_v51 = vunpack.i.h.bf16 %v7495_v49  ;;  %v7496_v16 = vunpack.i.l.bf16 %v7495_v49 }
 0x764   :  { %v12316_v48 = vld [vmem:[#allocation3 + $0x110] sm:$0xff]  ;;  %v5195_v13 = vsel %vm126_vm3, 0.0, %v5163_v31  ;;  %v5211_v45 = vsel %vm126_vm3, %v5163_v31, 0.0  ;;  %v12338_v26 = vpop.permute.xlu2 %7534 }
 0x765   :  { %v7693_v53 = vpack.i.bf16 %v12316_v48, %v5413_v36  ;;  %5248 = vst.msk [vmem:[#allocation3 + $0x120] sm:$0xff] %vm159_vm1, %v5195_v13  ;;  %v5287_v38 = vld [vmem:[#allocation3 + $0x118] sm:$0x3]  ;;  %v5417_v59 = vrot.slane %v12316_v48, 2  ;;  %v5369_v15 = vrot.slane %v12316_v48, 1  ;;  %v7506_v36 = vunpack.i.l.bf16 %v12278_v1 }
 0x766   :  { %5249 = vst.msk [vmem:[#allocation3 + $0x128] sm:$0x3] %vm161_vm2, %v5211_v45  ;;  %v5370_v7 = vrot.slane %v5287_v38, 1  ;;  %v5418_v50 = vrot.slane %v5287_v38, 2  ;;  %v7500_v5 = vpop.permute.xlu1 %7499  ;;  %v5756_v14 = vsel %vm159_vm1, %v11875_v28, %v7496_v16  ;;  %v5804_v2 = vsel %vm159_vm1, %v11930_v58, %v7497_v51  ;;  %v12353_v51 = vld [vmem:[#allocation3 + $0x138] sm:$0x3] }
 0x767   :  { %7694 = vrot.lane.b32.xlu1 %v7693_v53, %s7771_s22  ;;  %v7502_v60 = vunpack.i.h.bf16 %v7500_v5  ;;  %v7501_v33 = vunpack.i.l.bf16 %v7500_v5  ;;  %v7741_v5 = vld [vmem:[#allocation3 + $0x10] sm:$0xff] }
 0x768   :  { %v5419_v35 = vsel %vm322_vm5, %v5417_v59, %v5418_v50  ;;  %v12336_v18 = vsel %vm273_vm4, %v5369_v15, %v5370_v7  ;;  %v7522_v7 = vunpack.i.h.bf16 %v12304_v42  ;;  %v7521_v50 = vunpack.i.l.bf16 %v12304_v42 }
 0x769   :  { %v7703_v9 = vpack.i.bf16 %v5419_v35, %v12308_v52  ;;  %6247 = vmatmul.msk.f32.gmra.mxu0 %vm159_vm1, %v5419_v35  ;;  %v5772_v1 = vsel %vm723_vm6, %v5756_v14, %v7501_v33  ;;  %v5820_v10 = vsel %vm723_vm6, %v5804_v2, %v7502_v60  ;;  %v7698_v11 = vpack.i.bf16 %v12336_v18, %v12292_v63 }
 0x76a   :  { %v7510_v28 = vpop.permute.xlu0 %7509  ;;  %v5788_v58 = vsel %vm740_vm7, %v5772_v1, %v7506_v36  ;;  %v5836_v46 = vsel %vm740_vm7, %v5820_v10, %v7507_v0  ;;  %v12361_v0 = vld [vmem:[#allocation3 + $0x130] sm:$0xff]  ;;  %v5460_v2 = vrot.slane %v12353_v51, 1 }
 0x76b   :  { %7704 = vrot.lane.b32.xlu0 %v7703_v9, %s7770_s26  ;;  %7699 = vrot.lane.b32.xlu2 %v7698_v11, %s7772_s0  ;;  %v7512_v20 = vunpack.i.h.bf16 %v7510_v28  ;;  %v7511_v8 = vunpack.i.l.bf16 %v7510_v28  ;;  %v5459_v60 = vrot.slane %v12361_v0, 1  ;;  %v7723_v10 = vpack.i.bf16 %v12361_v0, %v5419_v35 }
 0x76c   :  { %v5288_v55 = vld [vmem:[#allocation3 + $0x120] sm:$0xff]  ;;  %5940 = vmatmul.f32.vlgmr.msrb.gmra.mxu3 %v5788_v58  ;;  %6005 = vmatmul.f32.vlgmr.msra.gmra.mxu2 %v5836_v46  ;;  %v7550_v9 = vpop.permute.xlu2 %7549 }
 0x76d   :  { %v7708_v62 = vpack.i.bf16 %v5288_v55, %v5416_v4  ;;  %v5289_v25 = vld [vmem:[#allocation3 + $0x128] sm:$0x3]  ;;  %v5449_v43 = vrot.slane %v5288_v55, 2  ;;  %v5427_v49 = vrot.slane %v5288_v55, 1  ;;  %v5757_v15 = vsel %vm159_vm1, %v7741_v5, %v7511_v8 }
 0x76e   :  { %v5428_v44 = vrot.slane %v5289_v25, 1  ;;  %v5450_v31 = vrot.slane %v5289_v25, 2  ;;  %v5805_v36 = vsel %vm159_vm1, %v11927_v24, %v7512_v20  ;;  %v5461_v58 = vsel %vm273_vm4, %v5459_v60, %v5460_v2 }
 0x76f   :  { %7709 = vrot.lane.b32.xlu1 %v7708_v62, %s7771_s22  ;;  %v7537_v62 = vunpack.i.h.bf16 %v12338_v26  ;;  %v7728_v8 = vpack.i.bf16 %v5461_v58, %v5288_v55  ;;  %v7551_v5 = vunpack.i.l.bf16 %v7550_v9 }
 0x770   :  { %v5451_v13 = vsel %vm322_vm5, %v5449_v43, %v5450_v31  ;;  %v7515_v45 = vpop.permute.xlu1 %7514  ;;  %v12351_v53 = vsel %vm273_vm4, %v5427_v49, %v5428_v44  ;;  %v7536_v43 = vunpack.i.l.bf16 %v12338_v26  ;;  %v7742_v44 = vld [vmem:[#allocation3 + $0x20] sm:$0xff] }
 0x771   :  { %v7718_v4 = vpack.i.bf16 %v5451_v13, %v12336_v18  ;;  %6248 = vmatmul.msk.f32.gmra.mxu0 %vm159_vm1, %v5451_v13  ;;  %v7517_v16 = vunpack.i.h.bf16 %v7515_v45  ;;  %v7516_v38 = vunpack.i.l.bf16 %v7515_v45  ;;  %v7713_v59 = vpack.i.bf16 %v12351_v53, %v12316_v48 }
 0x773   :  { %7719 = vrot.lane.b32.xlu0 %v7718_v4, %s7770_s26  ;;  %v5773_v33 = vsel %vm723_vm6, %v5757_v15, %v7516_v38  ;;  %v5821_v14 = vsel %vm723_vm6, %v5805_v36, %v7517_v16  ;;  %7714 = vrot.lane.b32.xlu2 %v7713_v59, %s7772_s0 }
 0x774   :  { %v5789_v42 = vsel %vm740_vm7, %v5773_v33, %v7521_v50  ;;  %v5837_v1 = vsel %vm740_vm7, %v5821_v14, %v7522_v7  ;;  %v7525_v24 = vpop.permute.xlu0 %7524  ;;  %v7565_v26 = vpop.permute.xlu2 %7564 }
 0x775   :  { %5943 = vmatmul.f32.gmra.mxu3 %v5789_v42  ;;  %6008 = vmatmul.f32.gmra.mxu2 %v5837_v1  ;;  %v7527_v11 = vunpack.i.h.bf16 %v7525_v24  ;;  %v7526_v28 = vunpack.i.l.bf16 %v7525_v24  ;;  %v7566_v58 = vunpack.i.l.bf16 %v7565_v26 }
 0x777   :  { %7724 = vrot.lane.b32.xlu1 %v7723_v10, %s7771_s22  ;;  %v5758_v35 = vsel %vm159_vm1, %v7742_v44, %v7526_v28  ;;  %v5806_v31 = vsel %vm159_vm1, %v11958_v57, %v7527_v11  ;;  %v7552_v57 = vunpack.i.h.bf16 %v7550_v9  ;;  %v7567_v28 = vunpack.i.h.bf16 %v7565_v26 }
 0x778   :  { %v7530_v46 = vpop.permute.xlu1 %7529 }
 0x779   :  { %v7532_v20 = vunpack.i.h.bf16 %v7530_v46  ;;  %v7531_v25 = vunpack.i.l.bf16 %v7530_v46 }
 0x77b   :  { %v5774_v49 = vsel %vm723_vm6, %v5758_v35, %v7531_v25  ;;  %v5822_v13 = vsel %vm723_vm6, %v5806_v31, %v7532_v20  ;;  %7729 = vrot.lane.b32.xlu2 %v7728_v8, %s7772_s0 }
 0x77c   :  { %v5790_v45 = vsel %vm740_vm7, %v5774_v49, %v7536_v43  ;;  %v5838_v4 = vsel %vm740_vm7, %v5822_v13, %v7537_v62  ;;  %v7540_v16 = vpop.permute.xlu0 %7539 }
 0x77d   :  { %5946 = vmatmul.f32.gmra.mxu3 %v5790_v45  ;;  %6011 = vmatmul.f32.gmra.mxu2 %v5838_v4  ;;  %v7542_v55 = vunpack.i.h.bf16 %v7540_v16  ;;  %v7541_v38 = vunpack.i.l.bf16 %v7540_v16 }
 0x77f   :  { %v5759_v15 = vsel %vm159_vm1, %v11939_v17, %v7541_v38  ;;  %v5807_v36 = vsel %vm159_vm1, %v11988_v30, %v7542_v55 }
 0x780   :  { %v7545_v59 = vpop.permute.xlu1 %7544 }
 0x781   :  { %v7547_v7 = vunpack.i.h.bf16 %v7545_v59  ;;  %v7546_v50 = vunpack.i.l.bf16 %v7545_v59 }
 0x783   :  { %v5775_v60 = vsel %vm723_vm6, %v5759_v15, %v7546_v50  ;;  %v5823_v33 = vsel %vm723_vm6, %v5807_v36, %v7547_v7 }
 0x784   :  { %v5791_v14 = vsel %vm740_vm7, %v5775_v60, %v7551_v5  ;;  %v5839_v2 = vsel %vm740_vm7, %v5823_v33, %v7552_v57  ;;  %v7555_v42 = vpop.permute.xlu0 %7554 }
 0x785   :  { %5949 = vmatmul.f32.gmra.mxu3 %v5791_v14  ;;  %6014 = vmatmul.f32.gmra.mxu2 %v5839_v2  ;;  %v7557_v1 = vunpack.i.h.bf16 %v7555_v42  ;;  %v7556_v10 = vunpack.i.l.bf16 %v7555_v42  ;;  %v7580_v9 = vpop.permute.xlu2 %7579 }
 0x786   :  { %v7582_v4 = vunpack.i.h.bf16 %v7580_v9 }
 0x787   :  { %v5760_v30 = vsel %vm159_vm1, %v11970_v22, %v7556_v10  ;;  %v5808_v46 = vsel %vm159_vm1, %v12016_v19, %v7557_v1  ;;  %v7581_v19 = vunpack.i.l.bf16 %v7580_v9 }
 0x788   :  { %v7560_v24 = vpop.permute.xlu1 %7559 }
 0x789   :  { %v7562_v11 = vunpack.i.h.bf16 %v7560_v24  ;;  %v7561_v17 = vunpack.i.l.bf16 %v7560_v24 }
 0x78b   :  { %v5776_v62 = vsel %vm723_vm6, %v5760_v30, %v7561_v17  ;;  %v5824_v20 = vsel %vm723_vm6, %v5808_v46, %v7562_v11 }
 0x78c   :  { %v5792_v25 = vsel %vm740_vm7, %v5776_v62, %v7566_v58  ;;  %v5840_v43 = vsel %vm740_vm7, %v5824_v20, %v7567_v28  ;;  %v7570_v44 = vpop.permute.xlu0 %7569 }
 0x78d   :  { %5952 = vmatmul.f32.gmra.mxu3 %v5792_v25  ;;  %6017 = vmatmul.f32.gmra.mxu2 %v5840_v43  ;;  %v7600_v8 = vpop.permute.xlu2 %7599  ;;  %v7572_v35 = vunpack.i.h.bf16 %v7570_v44  ;;  %v7571_v31 = vunpack.i.l.bf16 %v7570_v44 }
 0x78e   :  { %v7602_v33 = vunpack.i.h.bf16 %v7600_v8  ;;  %v7601_v14 = vunpack.i.l.bf16 %v7600_v8 }
 0x78f   :  { %v5761_v16 = vsel %vm159_vm1, %v11996_v56, %v7571_v31  ;;  %v5809_v26 = vsel %vm159_vm1, %v12046_v3, %v7572_v35 }
 0x795   :  { %v7605_v49 = vpop.permute.xlu2 %7604 }
 0x796   :  { %v7606_v46 = vunpack.i.l.bf16 %v7605_v49 }
 0x799   :  { %v7575_v13 = vpop.permute.xlu1 %7574 }
 0x79a   :  { %v7577_v22 = vunpack.i.h.bf16 %v7575_v13  ;;  %v7576_v45 = vunpack.i.l.bf16 %v7575_v13 }
 0x79c   :  { %v5777_v55 = vsel %vm723_vm6, %v5761_v16, %v7576_v45  ;;  %v5825_v38 = vsel %vm723_vm6, %v5809_v26, %v7577_v22 }
 0x79d   :  { %v7585_v59 = vpop.permute.xlu0 %7584  ;;  %v5793_v7 = vsel %vm740_vm7, %v5777_v55, %v7581_v19  ;;  %v5841_v50 = vsel %vm740_vm7, %v5825_v38, %v7582_v4  ;;  %v7625_v36 = vpop.permute.xlu2 %7624 }
 0x79e   :  { %5955 = vmatmul.f32.gmra.mxu3 %v5793_v7  ;;  %6020 = vmatmul.f32.gmra.mxu2 %v5841_v50  ;;  %v7587_v57 = vunpack.i.h.bf16 %v7585_v59  ;;  %v7586_v5 = vunpack.i.l.bf16 %v7585_v59  ;;  %v7627_v45 = vunpack.i.h.bf16 %v7625_v36  ;;  %v7626_v4 = vunpack.i.l.bf16 %v7625_v36 }
 0x7a0   :  { %v5762_v3 = vsel %vm159_vm1, %v12027_v54, %v7586_v5  ;;  %v5810_v2 = vsel %vm159_vm1, %v12094_v29, %v7587_v57  ;;  %v7607_v54 = vunpack.i.h.bf16 %v7605_v49 }
 0x7a1   :  { %v7590_v15 = vpop.permute.xlu1 %7589 }
 0x7a2   :  { %v7592_v60 = vunpack.i.h.bf16 %v7590_v15  ;;  %v7591_v56 = vunpack.i.l.bf16 %v7590_v15 }
 0x7a4   :  { %v5778_v42 = vsel %vm723_vm6, %v5762_v3, %v7591_v56  ;;  %v5826_v1 = vsel %vm723_vm6, %v5810_v2, %v7592_v60 }
 0x7a5   :  { %v7610_v10 = vpop.permute.xlu0 %7609  ;;  %v5794_v9 = vsel %vm740_vm7, %v5778_v42, %v7601_v14  ;;  %v5842_v24 = vsel %vm740_vm7, %v5826_v1, %v7602_v33  ;;  %v7640_v20 = vpop.permute.xlu2 %7639 }
 0x7a6   :  { %5958 = vmatmul.f32.gmra.mxu3 %v5794_v9  ;;  %6023 = vmatmul.f32.gmra.mxu2 %v5842_v24  ;;  %v7612_v11 = vunpack.i.h.bf16 %v7610_v10  ;;  %v7611_v17 = vunpack.i.l.bf16 %v7610_v10  ;;  %v7642_v36 = vunpack.i.h.bf16 %v7640_v20  ;;  %v7641_v60 = vunpack.i.l.bf16 %v7640_v20 }
 0x7a8   :  { %v5763_v29 = vsel %vm159_vm1, %v12072_v34, %v7611_v17  ;;  %v5811_v62 = vsel %vm159_vm1, %v12128_v39, %v7612_v11 }
 0x7a9   :  { %v7595_v28 = vpop.permute.xlu1 %7594 }
 0x7aa   :  { %v7597_v58 = vunpack.i.h.bf16 %v7595_v28  ;;  %v7596_v30 = vunpack.i.l.bf16 %v7595_v28 }
 0x7ac   :  { %v5779_v25 = vsel %vm723_vm6, %v5763_v29, %v7596_v30  ;;  %v5827_v43 = vsel %vm723_vm6, %v5811_v62, %v7597_v58 }
 0x7ad   :  { %v7615_v8 = vpop.permute.xlu0 %7614  ;;  %v5795_v44 = vsel %vm740_vm7, %v5779_v25, %v7606_v46  ;;  %v5843_v35 = vsel %vm740_vm7, %v5827_v43, %v7607_v54  ;;  %v7655_v7 = vpop.permute.xlu2 %7654 }
 0x7ae   :  { %5961 = vmatmul.f32.gmra.mxu3 %v5795_v44  ;;  %6026 = vmatmul.f32.gmra.mxu2 %v5843_v35  ;;  %v7617_v31 = vunpack.i.h.bf16 %v7615_v8  ;;  %v7616_v49 = vunpack.i.l.bf16 %v7615_v8  ;;  %v7657_v17 = vunpack.i.h.bf16 %v7655_v7  ;;  %v7656_v28 = vunpack.i.l.bf16 %v7655_v7 }
 0x7b0   :  { %v5764_v39 = vsel %vm159_vm1, %v12123_v61, %v7616_v49  ;;  %v5812_v19 = vsel %vm159_vm1, %v12189_v41, %v7617_v31 }
 0x7b1   :  { %v7620_v13 = vpop.permute.xlu1 %7619 }
 0x7b2   :  { %v7622_v22 = vunpack.i.h.bf16 %v7620_v13  ;;  %v7621_v34 = vunpack.i.l.bf16 %v7620_v13 }
 0x7b4   :  { %v5780_v16 = vsel %vm723_vm6, %v5764_v39, %v7621_v34  ;;  %v5828_v26 = vsel %vm723_vm6, %v5812_v19, %v7622_v22 }
 0x7b5   :  { %v7630_v55 = vpop.permute.xlu0 %7629  ;;  %v5796_v38 = vsel %vm740_vm7, %v5780_v16, %v7626_v4  ;;  %v5844_v59 = vsel %vm740_vm7, %v5828_v26, %v7627_v45  ;;  %v7670_v9 = vpop.permute.xlu2 %7669 }
 0x7b6   :  { %5964 = vmatmul.f32.gmra.mxu3 %v5796_v38  ;;  %6029 = vmatmul.f32.gmra.mxu2 %v5844_v59  ;;  %v7632_v50 = vunpack.i.h.bf16 %v7630_v55  ;;  %v7631_v57 = vunpack.i.l.bf16 %v7630_v55  ;;  %v7672_v35 = vunpack.i.h.bf16 %v7670_v9  ;;  %v7671_v31 = vunpack.i.l.bf16 %v7670_v9 }
 0x7b8   :  { %v5765_v41 = vsel %vm159_vm1, %v12140_v47, %v7631_v57  ;;  %v5813_v56 = vsel %vm159_vm1, %v12192_v23, %v7632_v50 }
 0x7b9   :  { %v7635_v5 = vpop.permute.xlu1 %7634 }
 0x7ba   :  { %v7637_v15 = vunpack.i.h.bf16 %v7635_v5  ;;  %v7636_v61 = vunpack.i.l.bf16 %v7635_v5 }
 0x7bc   :  { %v5781_v33 = vsel %vm723_vm6, %v5765_v41, %v7636_v61  ;;  %v5829_v14 = vsel %vm723_vm6, %v5813_v56, %v7637_v15  ;;  %v5465_v41 = vrot.slane %v12361_v0, 2 }
 0x7bd   :  { %v7645_v3 = vpop.permute.xlu0 %7644  ;;  %v5797_v2 = vsel %vm740_vm7, %v5781_v33, %v7641_v60  ;;  %v5845_v42 = vsel %vm740_vm7, %v5829_v14, %v7642_v36  ;;  %v7685_v8 = vpop.permute.xlu2 %7684 }
 0x7be   :  { %5967 = vmatmul.f32.gmra.mxu3 %v5797_v2  ;;  %6032 = vmatmul.f32.gmra.mxu2 %v5845_v42  ;;  %v7647_v1 = vunpack.i.h.bf16 %v7645_v3  ;;  %v7646_v10 = vunpack.i.l.bf16 %v7645_v3  ;;  %v7686_v38 = vunpack.i.l.bf16 %v7685_v8 }
 0x7c0   :  { %v5766_v23 = vsel %vm159_vm1, %v12168_v32, %v7646_v10  ;;  %v5814_v58 = vsel %vm159_vm1, %v12223_v21, %v7647_v1 }
 0x7c1   :  { %v7650_v24 = vpop.permute.xlu1 %7649 }
 0x7c2   :  { %v7652_v11 = vunpack.i.h.bf16 %v7650_v24  ;;  %v7651_v47 = vunpack.i.l.bf16 %v7650_v24 }
 0x7c4   :  { %v5782_v30 = vsel %vm723_vm6, %v5766_v23, %v7651_v47  ;;  %v5830_v54 = vsel %vm723_vm6, %v5814_v58, %v7652_v11  ;;  %v6071_v47 = vpop.f32.mrf.mxu0 }
 0x7c5   :  { %v7660_v46 = vpop.permute.xlu0 %7659  ;;  %v5798_v29 = vsel %vm740_vm7, %v5782_v30, %v7656_v28  ;;  %v5846_v62 = vsel %vm740_vm7, %v5830_v54, %v7657_v17  ;;  %v7700_v7 = vpop.permute.xlu2 %7699 }
 0x7c6   :  { %5970 = vmatmul.f32.gmra.mxu3 %v5798_v29  ;;  %6035 = vmatmul.f32.gmra.mxu2 %v5846_v62  ;;  %v7662_v20 = vunpack.i.h.bf16 %v7660_v46  ;;  %v7661_v25 = vunpack.i.l.bf16 %v7660_v46  ;;  %v7702_v3 = vunpack.i.h.bf16 %v7700_v7  ;;  %v7701_v2 = vunpack.i.l.bf16 %v7700_v7 }
 0x7c8   :  { %v5767_v21 = vsel %vm159_vm1, %v12204_v12, %v7661_v25  ;;  %v5815_v49 = vsel %vm159_vm1, %v12259_v40, %v7662_v20  ;;  %v7687_v12 = vunpack.i.h.bf16 %v7685_v8 }
 0x7c9   :  { %v7665_v43 = vpop.permute.xlu1 %7664 }
 0x7ca   :  { %v7667_v44 = vunpack.i.h.bf16 %v7665_v43  ;;  %v7666_v32 = vunpack.i.l.bf16 %v7665_v43 }
 0x7cc   :  { %v5783_v13 = vsel %vm723_vm6, %v5767_v21, %v7666_v32  ;;  %v5831_v22 = vsel %vm723_vm6, %v5815_v49, %v7667_v44 }
 0x7cd   :  { %v7675_v34 = vpop.permute.xlu0 %7674  ;;  %v5799_v45 = vsel %vm740_vm7, %v5783_v13, %v7671_v31  ;;  %v5847_v4 = vsel %vm740_vm7, %v5831_v22, %v7672_v35  ;;  %v7715_v11 = vpop.permute.xlu2 %7714 }
 0x7ce   :  { %5973 = vmatmul.f32.gmra.mxu3 %v5799_v45  ;;  %6038 = vmatmul.f32.gmra.mxu2 %v5847_v4  ;;  %v7677_v39 = vunpack.i.h.bf16 %v7675_v34  ;;  %v7676_v19 = vunpack.i.l.bf16 %v7675_v34  ;;  %v7717_v30 = vunpack.i.h.bf16 %v7715_v11  ;;  %v6074_v35 = vpop.f32.mrf.mxu0  ;;  %v12496_v4 = vld [vmem:[%s12547_s12] ss:$0 sm:$0xff]  ;;  %s7773_s12 = smov [#allocation4]  }
 0x7cf   :  { %s6140_s22 = sshll.u32 %s7773_s12, 4  ;;  %s6141_s22 = int_to_ptr.vmem [resolvable:$true] %s6140_s22 }
 0x7d0   :  { %v5768_v40 = vsel %vm159_vm1, %v12237_v37, %v7676_v19  ;;  %v5816_v59 = vsel %vm159_vm1, %v12284_v27, %v7677_v39  ;;  %v5466_v37 = vrot.slane %v12353_v51, 2 }
 0x7d1   :  { %v7680_v16 = vpop.permute.xlu1 %7679 }
 0x7d2   :  { %v7682_v26 = vunpack.i.h.bf16 %v7680_v16  ;;  %v7681_v55 = vunpack.i.l.bf16 %v7680_v16  ;;  %v5467_v27 = vsel %vm322_vm5, %v5465_v41, %v5466_v37 }
 0x7d3   :  { %6249 = vmatmul.msk.f32.gmra.mxu0 %vm159_vm1, %v5467_v27 }
 0x7d4   :  { %v5784_v50 = vsel %vm723_vm6, %v5768_v40, %v7681_v55  ;;  %v5832_v57 = vsel %vm723_vm6, %v5816_v59, %v7682_v26 }
 0x7d5   :  { %v7690_v5 = vpop.permute.xlu0 %7689  ;;  %v5800_v15 = vsel %vm740_vm7, %v5784_v50, %v7686_v38  ;;  %v5848_v61 = vsel %vm740_vm7, %v5832_v57, %v7687_v12  ;;  %v7730_v32 = vpop.permute.xlu2 %7729 }
 0x7d6   :  { %5976 = vmatmul.f32.gmra.mxu3 %v5800_v15  ;;  %6041 = vmatmul.f32.gmra.mxu2 %v5848_v61  ;;  %v7692_v36 = vunpack.i.h.bf16 %v7690_v5  ;;  %v7691_v60 = vunpack.i.l.bf16 %v7690_v5  ;;  %v7732_v49 = vunpack.i.h.bf16 %v7730_v32  ;;  %v6077_v55 = vpop.f32.mrf.mxu0 }
 0x7d8   :  { %v5769_v42 = vsel %vm159_vm1, %v12267_v6, %v7691_v60  ;;  %v5817_v1 = vsel %vm159_vm1, %v12308_v52, %v7692_v36  ;;  %v7716_v52 = vunpack.i.l.bf16 %v7715_v11 }
 0x7d9   :  { %v7695_v56 = vpop.permute.xlu1 %7694 }
 0x7da   :  { %v7697_v33 = vunpack.i.h.bf16 %v7695_v56  ;;  %v7696_v14 = vunpack.i.l.bf16 %v7695_v56 }
 0x7dc   :  { %v5785_v10 = vsel %vm723_vm6, %v5769_v42, %v7696_v14  ;;  %v5833_v0 = vsel %vm723_vm6, %v5817_v1, %v7697_v33 }
 0x7dd   :  { %v7705_v51 = vpop.permute.xlu0 %7704  ;;  %v5801_v9 = vsel %vm740_vm7, %v5785_v10, %v7701_v2  ;;  %v5849_v24 = vsel %vm740_vm7, %v5833_v0, %v7702_v3 }
 0x7de   :  { %5979 = vmatmul.f32.gmra.mxu3 %v5801_v9  ;;  %6044 = vmatmul.f32.gmra.mxu2 %v5849_v24  ;;  %v7707_v17 = vunpack.i.h.bf16 %v7705_v51  ;;  %v7706_v28 = vunpack.i.l.bf16 %v7705_v51  ;;  %v6080_v50 = vpop.f32.mrf.mxu0 }
 0x7e0   :  { %v5770_v54 = vsel %vm159_vm1, %v12292_v63, %v7706_v28  ;;  %v5818_v46 = vsel %vm159_vm1, %v12336_v18, %v7707_v17  ;;  %v7731_v18 = vunpack.i.l.bf16 %v7730_v32 }
 0x7e1   :  { %v7710_v23 = vpop.permute.xlu1 %7709 }
 0x7e2   :  { %v7712_v6 = vunpack.i.h.bf16 %v7710_v23  ;;  %v7711_v58 = vunpack.i.l.bf16 %v7710_v23 }
 0x7e4   :  { %v5786_v29 = vsel %vm723_vm6, %v5770_v54, %v7711_v58  ;;  %v5834_v62 = vsel %vm723_vm6, %v5818_v46, %v7712_v6 }
 0x7e5   :  { %v7720_v20 = vpop.permute.xlu0 %7719  ;;  %v5802_v25 = vsel %vm740_vm7, %v5786_v29, %v7716_v52  ;;  %v5850_v43 = vsel %vm740_vm7, %v5834_v62, %v7717_v30 }
 0x7e6   :  { %5982 = vmatmul.f32.gmra.mxu3 %v5802_v25  ;;  %6047 = vmatmul.f32.gmra.mxu2 %v5850_v43  ;;  %v7722_v8 = vunpack.i.h.bf16 %v7720_v20  ;;  %v7721_v44 = vunpack.i.l.bf16 %v7720_v20  ;;  %v6083_v41 = vpop.f32.mrf.mxu0 }
 0x7e8   :  { %v5819_v13 = vsel %vm159_vm1, %v12351_v53, %v7722_v8  ;;  %v5771_v22 = vsel %vm159_vm1, %v12316_v48, %v7721_v44 }
 0x7e9   :  { %v7725_v31 = vpop.permute.xlu1 %7724 }
 0x7ea   :  { %v7727_v63 = vunpack.i.h.bf16 %v7725_v31  ;;  %v7726_v21 = vunpack.i.l.bf16 %v7725_v31 }
 0x7ec   :  { %v5787_v34 = vsel %vm723_vm6, %v5771_v22, %v7726_v21  ;;  %v5835_v45 = vsel %vm723_vm6, %v5819_v13, %v7727_v63 }
 0x7ed   :  { %v5803_v39 = vsel %vm740_vm7, %v5787_v34, %v7731_v18  ;;  %v5851_v19 = vsel %vm740_vm7, %v5835_v45, %v7732_v49 }
 0x7ee   :  { %5985 = vmatmul.f32.gmra.mxu3 %v5803_v39  ;;  %6050 = vmatmul.f32.gmra.mxu2 %v5851_v19  ;;  %v6086_v3 = vpop.f32.mrf.mxu0 }
 0x7ef   :  { %v5941_v16 = vpop.f32.mrf.mxu3  ;;  %v6006_v26 = vpop.f32.mrf.mxu2 }
 0x7f0   :  { %v5942_v53 = vadd.f32 %v12496_v4, %v5941_v16 }
 0x7f2   :  { %v6007_v48 = vadd.f32 %v6006_v26, %v5942_v53 }
 0x7f4   :  { %v6072_v12 = vadd.f32 %v6071_v47, %v6007_v48 }
 0x7f6   :  { %6120 = vst.msk [vmem:[#allocation4] sm:$0xff] %vm6119_vm8, %v6072_v12  ;;  %v6089_v51 = vpop.f32.mrf.mxu0 }
 0x7f8   :  { %v5944_v38 = vpop.f32.mrf.mxu3  ;;  %v6009_v40 = vpop.f32.mrf.mxu2 }
 0x7f9   :  { %v5945_v59 = vadd.f32 %v12496_v4, %v5944_v38 }
 0x7fb   :  { %v6010_v7 = vadd.f32 %v6009_v40, %v5945_v59 }
 0x7fd   :  { %v6075_v57 = vadd.f32 %v6074_v35, %v6010_v7 }
 0x7fe   :  { %v6092_v47 = vpop.f32.mrf.mxu0 }
 0x7ff   :  { %6121 = vst.msk [vmem:[#allocation4 + $0x8] sm:$0xff] %vm6119_vm8, %v6075_v57 }
 0x800   :  { %v5947_v5 = vpop.f32.mrf.mxu3  ;;  %v6012_v15 = vpop.f32.mrf.mxu2 }
 0x801   :  { %v5948_v61 = vadd.f32 %v12496_v4, %v5947_v5 }
 0x803   :  { %v6013_v36 = vadd.f32 %v6012_v15, %v5948_v61 }
 0x805   :  { %v6078_v60 = vadd.f32 %v6077_v55, %v6013_v36 }
 0x806   :  { %v6095_v52 = vpop.f32.mrf.mxu0 }
 0x807   :  { %6122 = vst.msk [vmem:[#allocation4 + $0x10] sm:$0xff] %vm6119_vm8, %v6078_v60 }
 0x808   :  { %v5950_v37 = vpop.f32.mrf.mxu3  ;;  %v6015_v56 = vpop.f32.mrf.mxu2 }
 0x809   :  { %v5951_v27 = vadd.f32 %v12496_v4, %v5950_v37 }
 0x80b   :  { %v6016_v33 = vadd.f32 %v6015_v56, %v5951_v27 }
 0x80d   :  { %v6081_v14 = vadd.f32 %v6080_v50, %v6016_v33 }
 0x80e   :  { %v6098_v43 = vpop.f32.mrf.mxu0 }
 0x80f   :  { %6123 = vst.msk [vmem:[#allocation4 + $0x18] sm:$0xff] %vm6119_vm8, %v6081_v14 }
 0x810   :  { %v5953_v2 = vpop.f32.mrf.mxu3  ;;  %v6018_v1 = vpop.f32.mrf.mxu2 }
 0x811   :  { %v5954_v42 = vadd.f32 %v12496_v4, %v5953_v2 }
 0x813   :  { %v6019_v10 = vadd.f32 %v6018_v1, %v5954_v42 }
 0x815   :  { %v6084_v0 = vadd.f32 %v6083_v41, %v6019_v10 }
 0x816   :  { %v6101_v49 = vpop.f32.mrf.mxu0 }
 0x817   :  { %6124 = vst.msk [vmem:[#allocation4 + $0x20] sm:$0xff] %vm6119_vm8, %v6084_v0 }
 0x81e   :  { %v6104_v19 = vpop.f32.mrf.mxu0 }
 0x821   :  { %v5956_v9 = vpop.f32.mrf.mxu3  ;;  %v6021_v24 = vpop.f32.mrf.mxu2 }
 0x822   :  { %v5957_v11 = vadd.f32 %v12496_v4, %v5956_v9 }
 0x824   :  { %v6022_v17 = vadd.f32 %v6021_v24, %v5957_v11 }
 0x826   :  { %v6087_v28 = vadd.f32 %v6086_v3, %v6022_v17  ;;  %v6107_v38 = vpop.f32.mrf.mxu0 }
 0x828   :  { %6125 = vst.msk [vmem:[#allocation4 + $0x28] sm:$0xff] %vm6119_vm8, %v6087_v28 }
 0x829   :  { %v5959_v23 = vpop.f32.mrf.mxu3  ;;  %v6024_v6 = vpop.f32.mrf.mxu2 }
 0x82a   :  { %v5960_v58 = vadd.f32 %v12496_v4, %v5959_v23 }
 0x82c   :  { %v6025_v30 = vadd.f32 %v6024_v6, %v5960_v58 }
 0x82e   :  { %v6090_v54 = vadd.f32 %v6089_v51, %v6025_v30  ;;  %v6110_v15 = vpop.f32.mrf.mxu0 }
 0x830   :  { %6126 = vst.msk [vmem:[#allocation4 + $0x30] sm:$0xff] %vm6119_vm8, %v6090_v54 }
 0x831   :  { %v5962_v46 = vpop.f32.mrf.mxu3  ;;  %v6027_v29 = vpop.f32.mrf.mxu2 }
 0x832   :  { %v5963_v62 = vadd.f32 %v12496_v4, %v5962_v46 }
 0x834   :  { %v6028_v20 = vadd.f32 %v6027_v29, %v5963_v62 }
 0x836   :  { %v6093_v25 = vadd.f32 %v6092_v47, %v6028_v20  ;;  %v6113_v14 = vpop.f32.mrf.mxu0 }
 0x838   :  { %6127 = vst.msk [vmem:[#allocation4 + $0x38] sm:$0xff] %vm6119_vm8, %v6093_v25 }
 0x839   :  { %v5965_v8 = vpop.f32.mrf.mxu3  ;;  %v6030_v44 = vpop.f32.mrf.mxu2 }
 0x83a   :  { %v5966_v32 = vadd.f32 %v12496_v4, %v5965_v8 }
 0x83c   :  { %v6031_v35 = vadd.f32 %v6030_v44, %v5966_v32 }
 0x83e   :  { %v6096_v31 = vadd.f32 %v6095_v52, %v6031_v35 }
 0x840   :  { %6128 = vst.msk [vmem:[#allocation4 + $0x40] sm:$0xff] %vm6119_vm8, %v6096_v31 }
 0x841   :  { %v5968_v63 = vpop.f32.mrf.mxu3  ;;  %v6033_v21 = vpop.f32.mrf.mxu2 }
 0x842   :  { %v5969_v18 = vadd.f32 %v12496_v4, %v5968_v63 }
 0x844   :  { %v6034_v13 = vadd.f32 %v6033_v21, %v5969_v18 }
 0x846   :  { %v6099_v22 = vadd.f32 %v6098_v43, %v6034_v13 }
 0x848   :  { %6129 = vst.msk [vmem:[#allocation4 + $0x48] sm:$0xff] %vm6119_vm8, %v6099_v22 }
 0x849   :  { %v5971_v34 = vpop.f32.mrf.mxu3  ;;  %v6036_v45 = vpop.f32.mrf.mxu2 }
 0x84a   :  { %v5972_v39 = vadd.f32 %v12496_v4, %v5971_v34 }
 0x84c   :  { %v6037_v16 = vadd.f32 %v6036_v45, %v5972_v39 }
 0x84e   :  { %v6102_v53 = vadd.f32 %v6101_v49, %v6037_v16 }
 0x850   :  { %6130 = vst.msk [vmem:[#allocation4 + $0x50] sm:$0xff] %vm6119_vm8, %v6102_v53  ;;  %v6116_v0 = vpop.f32.mrf.mxu0 }
 0x851   :  { %v5974_v26 = vpop.f32.mrf.mxu3  ;;  %v6039_v48 = vpop.f32.mrf.mxu2 }
 0x852   :  { %v5975_v55 = vadd.f32 %v12496_v4, %v5974_v26 }
 0x854   :  { %v6040_v12 = vadd.f32 %v6039_v48, %v5975_v55 }
 0x856   :  { %v6105_v40 = vadd.f32 %v6104_v19, %v6040_v12 }
 0x858   :  { %6131 = vst.msk [vmem:[#allocation4 + $0x58] sm:$0xff] %vm6119_vm8, %v6105_v40 }
 0x859   :  { %v5977_v59 = vpop.f32.mrf.mxu3  ;;  %v6042_v7 = vpop.f32.mrf.mxu2 }
 0x85a   :  { %v5978_v50 = vadd.f32 %v12496_v4, %v5977_v59 }
 0x85c   :  { %v6043_v57 = vadd.f32 %v6042_v7, %v5978_v50 }
 0x85e   :  { %v6108_v5 = vadd.f32 %v6107_v38, %v6043_v57 }
 0x860   :  { %6132 = vst.msk [vmem:[#allocation4 + $0x60] sm:$0xff] %vm6119_vm8, %v6108_v5 }
 0x861   :  { %v5980_v61 = vpop.f32.mrf.mxu3  ;;  %v6045_v36 = vpop.f32.mrf.mxu2 }
 0x862   :  { %v5981_v60 = vadd.f32 %v12496_v4, %v5980_v61 }
 0x864   :  { %v6046_v41 = vadd.f32 %v6045_v36, %v5981_v60 }
 0x866   :  { %v6111_v37 = vadd.f32 %v6110_v15, %v6046_v41 }
 0x868   :  { %6133 = vst.msk [vmem:[#allocation4 + $0x68] sm:$0xff] %vm6119_vm8, %v6111_v37 }
 0x869   :  { %v5983_v56 = vpop.f32.mrf.mxu3  ;;  %v6048_v27 = vpop.f32.mrf.mxu2 }
 0x86a   :  { %v5984_v33 = vadd.f32 %v12496_v4, %v5983_v56 }
 0x86c   :  { %v6049_v3 = vadd.f32 %v6048_v27, %v5984_v33 }
 0x86e   :  { %v6114_v2 = vadd.f32 %v6113_v14, %v6049_v3 }
 0x870   :  { %6134 = vst.msk [vmem:[#allocation4 + $0x70] sm:$0xff] %vm6119_vm8, %v6114_v2 }
 0x871   :  { %v5986_v42 = vpop.f32.mrf.mxu3  ;;  %v6051_v10 = vpop.f32.mrf.mxu2 }
 0x872   :  { %v5987_v1 = vadd.f32 %v12496_v4, %v5986_v42 }
 0x874   :  { %v6052_v51 = vadd.f32 %v6051_v10, %v5987_v1 }
 0x876   :  { %v6117_v9 = vadd.f32 %v6116_v0, %v6052_v51 }
 0x878   :  { %6135 = vst.msk [vmem:[#allocation4 + $0x78] sm:$0xff] %vm6119_vm8, %v6117_v9 }
 0x879   :  { %6148 = dma.vmem_to_hbm [thread:$0]  %s6141_s22, 2048, %s6143_s9, [#allocation5], %s7774_s19, %s7774_s19, %s7775_s20  }
 0x87a   :  { %7767 = dma.done.wait [#allocation5], 2048  }
 0x87b   :  { %7768 = vsyncadd [#allocation5], 4294965248 }
 0x87c   :  { %6153 = vsyncpa [#allocation5], 1 }

</bundles_post_ra>
